<compile_context>
chip_gen: v6e
topology: v6e:2x2x1
jax: 0.10.0
libtpu: 0.0.40
codegen_flags: <defaults>
</compile_context>

<pallas_src>
import math

import jax
import jax.numpy as jnp
from jax.experimental import pallas as pl
from jax.experimental.pallas import tpu as pltpu

# ----------------------- model hyper-parameters (small) -----------------------
BATCH = 2
SEQ = 8            # enc_seq_len == dec_seq_len (required by the torch module)
INPUT_SIZE = 16
VOCAB = 60
VOCAB_ROWS_PAD = 64   # embedding-table rows padded for aligned sublanes
VOCAB_PAD = 128       # final projection padded to one full lane width
MAX_SEQ_LEN = 32
EMBED_DIM = 32
FFN_HIDDEN = 64
NUM_HEADS = 4
NUM_LAYERS = 2
HEAD_DIM = EMBED_DIM // NUM_HEADS
LN_EPS = 1e-5
M_ROWS = BATCH * SEQ
GROUPS = BATCH * NUM_HEADS
LANE_ALIGN = 128
_INV_SQRT_DK = 1.0 / math.sqrt(HEAD_DIM)


# --------------------------- in-kernel math helpers ----------------------------
def _mm(a, w_bf16):
    # Activation cast to bf16, weight already bf16 (pre-cast host-side),
    # f32 accumulation on the MXU.
    return jnp.dot(a.astype(jnp.bfloat16), w_bf16, preferred_element_type=jnp.float32)


def _erf(x):
    # Abramowitz & Stegun 7.1.26 polynomial (|err| < 1.5e-7) -> exact-erf GELU.
    a1, a2, a3, a4, a5 = 0.254829592, -0.284496736, 1.421413741, -1.453152027, 1.061405429
    p = 0.3275911
    s = jnp.where(x >= 0.0, 1.0, -1.0)
    ax = jnp.abs(x)
    t = pl.reciprocal(1.0 + p * ax, approx=True)          # EUP slot, off the VALU path
    poly = ((((a5 * t + a4) * t + a3) * t + a2) * t + a1) * t
    return s * (1.0 - poly * jnp.exp(-ax * ax))


def _gelu(x):
    return 0.5 * x * (1.0 + _erf(x * (1.0 / math.sqrt(2.0))))


def _add_ln(x, res, g, b):
    # Fused residual add + LayerNorm, all f32 elementwise math.
    h = x + res
    mean = jnp.mean(h, axis=-1, keepdims=True)
    var = jnp.mean((h - mean) ** 2, axis=-1, keepdims=True)
    y = (h - mean) * jax.lax.rsqrt(var + LN_EPS)
    return g * y + b


def _to_heads(x2d):
    # (M, D) with lanes ordered (head, dh)  ->  (B*H, S, Dh)
    x4 = x2d.reshape(BATCH, SEQ, NUM_HEADS, HEAD_DIM)
    x4 = jnp.swapaxes(x4, 1, 2)
    return x4.reshape(GROUPS, SEQ, HEAD_DIM)


def _from_heads(x3):
    # (B*H, S, Dh) -> (M, D) with lanes ordered (head, dh)
    x4 = x3.reshape(BATCH, NUM_HEADS, SEQ, HEAD_DIM)
    x4 = jnp.swapaxes(x4, 1, 2)
    return x4.reshape(M_ROWS, EMBED_DIM)


def _attend(q, k, v):
    # q, k, v: (B*H, S, Dh) bf16; q already scaled by 1/sqrt(dk) host-side.
    s = jnp.einsum('gqd,gkd->gqk', q, k, preferred_element_type=jnp.float32)
    m = jnp.max(s, axis=-1, keepdims=True)
    e = jnp.exp(s - m)                                      # f32 softmax math
    p = e * pl.reciprocal(jnp.sum(e, axis=-1, keepdims=True), approx=True)
    return jnp.einsum('gqk,gkd->gqd', p.astype(jnp.bfloat16), v,
                      preferred_element_type=jnp.float32)


def _mhsa(x, w_qkv, b_qkv, w_out, b_out):
    # qkv weight columns pre-permuted to [Q(all heads) | K | V]; one bf16 cast.
    qkv = (_mm(x, w_qkv) + b_qkv).astype(jnp.bfloat16)      # (M, 3D)
    q = _to_heads(qkv[:, :EMBED_DIM])
    k = _to_heads(qkv[:, EMBED_DIM:2 * EMBED_DIM])
    v = _to_heads(qkv[:, 2 * EMBED_DIM:])
    vals = _from_heads(_attend(q, k, v))                    # (M, D) f32
    return _mm(vals, w_out) + b_out


def _mhca(x_enc, y, w_kv, b_kv, w_q, b_q, w_out, b_out):
    kv = (_mm(x_enc, w_kv) + b_kv).astype(jnp.bfloat16)     # (M, 2D): [K | V]
    q = (_mm(y, w_q) + b_q).astype(jnp.bfloat16)            # (M, D), pre-scaled
    k = _to_heads(kv[:, :EMBED_DIM])
    v = _to_heads(kv[:, EMBED_DIM:])
    vals = _from_heads(_attend(_to_heads(q), k, v))
    return _mm(vals, w_out) + b_out


def _ffn(x, w1, b1, w2, b2):
    h = jnp.maximum(_mm(x, w1) + b1, 0.0)
    return _mm(h, w2) + b2


# ------------------------------ forward (fused kernel) --------------------------
def build_forward(meta):
    meta32, meta64, metav = meta["w32"], meta["w64"], meta["vec"]

    def kernel(x_ref, tok_ref, embw1_ref, w32_ref, w64_ref, vec_ref, pe_ref, o_ref):
        # Static, 128-lane-aligned slices of the packed parameter slabs.
        def W32(n):
            o, w = meta32[n]
            return w32_ref[:, o:o + w]

        def W64(n):
            o, w = meta64[n]
            return w64_ref[:, o:o + w]

        def V(n):
            o, w = metav[n]
            return vec_ref[:, o:o + w]

        pe = pe_ref[...]

        # ---------------- encoder ----------------
        # LandmarkEnbedding: Linear(bias=False) -> GELU -> Linear
        h = _gelu(_mm(x_ref[...], embw1_ref[...]))
        h = _mm(h, W32("enc_emb_w2")) + V("enc_emb_b2")
        h = h + pe                                  # x + pe[:batch] (verbatim quirk)
        for i in range(NUM_LAYERS):
            a = _mhsa(h, W32(f"enc{i}_qkv_w"), V(f"enc{i}_qkv_b"),
                      W32(f"enc{i}_out_w"), V(f"enc{i}_out_b"))
            h = _add_ln(a, h, V(f"enc{i}_ln1_g"), V(f"enc{i}_ln1_b"))
            f = _ffn(h, W32(f"enc{i}_ffn_w1"), V(f"enc{i}_ffn_b1"),
                     W64(f"enc{i}_ffn_w2"), V(f"enc{i}_ffn_b2"))
            h = _add_ln(f, h, V(f"enc{i}_ln2_g"), V(f"enc{i}_ln2_b"))

        # ---------------- decoder ----------------
        # Embedding lookup as a bf16 one-hot matmul against the padded table.
        cols = jax.lax.broadcasted_iota(jnp.int32, (M_ROWS, VOCAB_ROWS_PAD), 1)
        onehot = (tok_ref[...] == cols).astype(jnp.bfloat16)
        y = jnp.dot(onehot, W64("dec_emb_table"), preferred_element_type=jnp.float32)
        y = y + pe
        for i in range(NUM_LAYERS):
            a = _mhsa(y, W32(f"dec{i}_qkv_w"), V(f"dec{i}_qkv_b"),
                      W32(f"dec{i}_self_out_w"), V(f"dec{i}_self_out_b"))
            y = _add_ln(a, y, V(f"dec{i}_ln1_g"), V(f"dec{i}_ln1_b"))
            c = _mhca(h, y, W32(f"dec{i}_kv_w"), V(f"dec{i}_kv_b"),
                      W32(f"dec{i}_q_w"), V(f"dec{i}_q_b"),
                      W32(f"dec{i}_cross_out_w"), V(f"dec{i}_cross_out_b"))
            y = _add_ln(c, y, V(f"dec{i}_ln2_g"), V(f"dec{i}_ln2_b"))
            f = _ffn(y, W32(f"dec{i}_ffn_w1"), V(f"dec{i}_ffn_b1"),
                     W64(f"dec{i}_ffn_w2"), V(f"dec{i}_ffn_b2"))
            y = _add_ln(f, y, V(f"dec{i}_ln3_g"), V(f"dec{i}_ln3_b"))

        # -------- output projection (lane-dense, padded to 128 lanes) --------
        o_ref[...] = _mm(y, W32("final_w")) + V("final_b")

    vmem_spec = pl.BlockSpec(memory_space=pltpu.MemorySpace.VMEM)

    @jax.jit
    def forward(slabs, x, y_tokens):
        x2d = x.reshape(M_ROWS, INPUT_SIZE)
        tok2d = y_tokens.reshape(M_ROWS, 1).astype(jnp.int32)
        out = pl.pallas_call(
            kernel,
            out_shape=jax.ShapeDtypeStruct((M_ROWS, VOCAB_PAD), jnp.float32),
            in_specs=[vmem_spec] * 7,
            out_specs=vmem_spec,
        )(x2d, tok2d, slabs["emb_w1"], slabs["w32"], slabs["w64"],
          slabs["vec"], slabs["pe"])
        return out[:, :VOCAB].reshape(BATCH, SEQ, VOCAB)

    return forward


# --------------------------- host-side parameter packing ------------------------
def _pack_lane_slab(entries, rows, dtype, align=LANE_ALIGN):
    """Concatenate (name, (rows, w)) arrays along lanes, each align-padded."""
    cols, meta, off = [], {}, 0
    for name, arr in entries:
        r, w = arr.shape
        assert r == rows, (name, arr.shape)
        pad = (-w) % align
        a = jnp.pad(arr, ((0, 0), (0, pad))) if pad else arr
        cols.append(a.astype(dtype))
        meta[name] = (off, w)
        off += w + pad
    return jnp.concatenate(cols, axis=1), meta


def _reorder_qkv(w, b):
    # torch column layout (head, part, dh) -> (part, head, dh); fold 1/sqrt(dk)
    # into the Q part of both weight and bias.
    perm = [h * 3 * HEAD_DIM + part * HEAD_DIM + d
            for part in range(3) for h in range(NUM_HEADS) for d in range(HEAD_DIM)]
    scale = jnp.concatenate([jnp.full((EMBED_DIM,), _INV_SQRT_DK, jnp.float32),
                             jnp.ones((2 * EMBED_DIM,), jnp.float32)])
    return w[:, perm] * scale, b[:, perm] * scale


def _reorder_kv(w, b):
    # torch column layout (head, part, dh) -> (part, head, dh).
    perm = [h * 2 * HEAD_DIM + part * HEAD_DIM + d
            for part in range(2) for h in range(NUM_HEADS) for d in range(HEAD_DIM)]
    return w[:, perm], b[:, perm]


def pack_params(p):
    """Pack torch-layout f32 params into bf16/f32 VMEM-friendly slabs."""
    fw = jnp.pad(p["final_w"], ((0, 0), (0, VOCAB_PAD - VOCAB)))
    fb = jnp.pad(p["final_b"], ((0, 0), (0, VOCAB_PAD - VOCAB)))
    w32_entries = [("enc_emb_w2", p["enc_emb"]["w2"]), ("final_w", fw)]
    w64_entries = [("dec_emb_table",
                    jnp.pad(p["dec_emb_table"], ((0, VOCAB_ROWS_PAD - VOCAB), (0, 0))))]
    vec_entries = [("enc_emb_b2", p["enc_emb"]["b2"]), ("final_b", fb)]

    for i, lp in enumerate(p["enc_layers"]):
        qw, qb = _reorder_qkv(lp["attn"]["qkv_w"], lp["attn"]["qkv_b"])
        w32_entries += [(f"enc{i}_qkv_w", qw),
                        (f"enc{i}_out_w", lp["attn"]["out_w"]),
                        (f"enc{i}_ffn_w1", lp["ffn"]["w1"])]
        w64_entries += [(f"enc{i}_ffn_w2", lp["ffn"]["w2"])]
        vec_entries += [(f"enc{i}_qkv_b", qb),
                        (f"enc{i}_out_b", lp["attn"]["out_b"]),
                        (f"enc{i}_ln1_g", lp["ln1_g"]), (f"enc{i}_ln1_b", lp["ln1_b"]),
                        (f"enc{i}_ffn_b1", lp["ffn"]["b1"]),
                        (f"enc{i}_ffn_b2", lp["ffn"]["b2"]),
                        (f"enc{i}_ln2_g", lp["ln2_g"]), (f"enc{i}_ln2_b", lp["ln2_b"])]

    for i, lp in enumerate(p["dec_layers"]):
        qw, qb = _reorder_qkv(lp["self_attn"]["qkv_w"], lp["self_attn"]["qkv_b"])
        kw, kb = _reorder_kv(lp["cross_attn"]["kv_w"], lp["cross_attn"]["kv_b"])
        w32_entries += [(f"dec{i}_qkv_w", qw),
                        (f"dec{i}_self_out_w", lp["self_attn"]["out_w"]),
                        (f"dec{i}_kv_w", kw),
                        (f"dec{i}_q_w", lp["cross_attn"]["q_w"] * _INV_SQRT_DK),
                        (f"dec{i}_cross_out_w", lp["cross_attn"]["out_w"]),
                        (f"dec{i}_ffn_w1", lp["ffn"]["w1"])]
        w64_entries += [(f"dec{i}_ffn_w2", lp["ffn"]["w2"])]
        vec_entries += [(f"dec{i}_qkv_b", qb),
                        (f"dec{i}_self_out_b", lp["self_attn"]["out_b"]),
                        (f"dec{i}_ln1_g", lp["ln1_g"]), (f"dec{i}_ln1_b", lp["ln1_b"]),
                        (f"dec{i}_kv_b", kb),
                        (f"dec{i}_q_b", lp["cross_attn"]["q_b"] * _INV_SQRT_DK),
                        (f"dec{i}_cross_out_b", lp["cross_attn"]["out_b"]),
                        (f"dec{i}_ln2_g", lp["ln2_g"]), (f"dec{i}_ln2_b", lp["ln2_b"]),
                        (f"dec{i}_ffn_b1", lp["ffn"]["b1"]),
                        (f"dec{i}_ffn_b2", lp["ffn"]["b2"]),
                        (f"dec{i}_ln3_g", lp["ln3_g"]), (f"dec{i}_ln3_b", lp["ln3_b"])]

    w32, meta32 = _pack_lane_slab(w32_entries, EMBED_DIM, jnp.bfloat16)
    w64, meta64 = _pack_lane_slab(w64_entries, FFN_HIDDEN, jnp.bfloat16)
    vec, metav = _pack_lane_slab(vec_entries, 1, jnp.float32)

    slabs = dict(emb_w1=p["enc_emb"]["w1"].astype(jnp.bfloat16),
                 w32=w32, w64=w64, vec=vec, pe=p["pe_rows"])
    meta = dict(w32=meta32, w64=meta64, vec=metav)
    return slabs, meta


# ------------------------------ parameter init ---------------------------------
def positional_encoding_table(max_len, d):
    position = jnp.arange(max_len, dtype=jnp.float32)[:, None]
    div_term = jnp.exp(jnp.arange(0, d, 2, dtype=jnp.float32) * (-math.log(10000.0) / d))
    pe = jnp.zeros((max_len, 1, d), jnp.float32)
    pe = pe.at[:, 0, 0::2].set(jnp.sin(position * div_term))
    pe = pe.at[:, 0, 1::2].set(jnp.cos(position * div_term))
    return pe


def init_params(key):
    keys = iter(jax.random.split(key, 256))

    def w(shape, scale=0.05):
        return jax.random.normal(next(keys), shape, jnp.float32) * scale

    def b(n):
        return jax.random.normal(next(keys), (1, n), jnp.float32) * 0.05

    def attn_params():
        return dict(qkv_w=w((EMBED_DIM, 3 * EMBED_DIM)), qkv_b=b(3 * EMBED_DIM),
                    out_w=w((EMBED_DIM, EMBED_DIM)), out_b=b(EMBED_DIM))

    def cross_attn_params():
        return dict(kv_w=w((EMBED_DIM, 2 * EMBED_DIM)), kv_b=b(2 * EMBED_DIM),
                    q_w=w((EMBED_DIM, EMBED_DIM)), q_b=b(EMBED_DIM),
                    out_w=w((EMBED_DIM, EMBED_DIM)), out_b=b(EMBED_DIM))

    def ffn_params():
        return dict(w1=w((EMBED_DIM, FFN_HIDDEN)), b1=b(FFN_HIDDEN),
                    w2=w((FFN_HIDDEN, EMBED_DIM)), b2=b(EMBED_DIM))

    ones = jnp.ones((1, EMBED_DIM), jnp.float32)
    zeros = jnp.zeros((1, EMBED_DIM), jnp.float32)

    enc_layers = [dict(attn=attn_params(), ln1_g=ones, ln1_b=zeros,
                       ffn=ffn_params(), ln2_g=ones, ln2_b=zeros)
                  for _ in range(NUM_LAYERS)]
    dec_layers = [dict(self_attn=attn_params(), ln1_g=ones, ln1_b=zeros,
                       cross_attn=cross_attn_params(), ln2_g=ones, ln2_b=zeros,
                       ffn=ffn_params(), ln3_g=ones, ln3_b=zeros)
                  for _ in range(NUM_LAYERS)]

    pe = positional_encoding_table(MAX_SEQ_LEN, EMBED_DIM)     # (max_len, 1, D)
    # Reproduces the torch module verbatim: x + pe[:x.size(0)] indexes the PE
    # table by the *batch* axis and broadcasts over seq; pre-expanded to the
    # flattened (B*S, D) row layout used inside the kernel.
    pe_rows = jnp.repeat(pe[:BATCH, 0, :], SEQ, axis=0)        # (B*S, D)

    return dict(
        enc_emb=dict(w1=w((INPUT_SIZE, EMBED_DIM)),            # Linear(bias=False)
                     w2=w((EMBED_DIM, EMBED_DIM)), b2=b(EMBED_DIM)),
        dec_emb_table=w((VOCAB, EMBED_DIM), scale=1.0),
        pe_rows=pe_rows,
        enc_layers=enc_layers,
        dec_layers=dec_layers,
        final_w=w((EMBED_DIM, VOCAB)), final_b=b(VOCAB),
    )


# ----------------------------------- main ---------------------------------------
if __name__ == "__main__":
    key = jax.random.PRNGKey(0)
    kx, ky, kp = jax.random.split(key, 3)

    x = jax.random.normal(kx, (BATCH, SEQ, INPUT_SIZE), jnp.float32)   # landmarks
    y_tokens = jax.random.randint(ky, (BATCH, SEQ), 0, VOCAB)          # text tokens

    params = init_params(kp)            # torch-layout f32 parameters
    slabs, meta = pack_params(params)   # packed bf16/f32 slabs + static offsets
    fwd = build_forward(meta)

    out = jax.block_until_ready(fwd(slabs, x, y_tokens))

    assert out.shape == (BATCH, SEQ, VOCAB), out.shape
    assert out.dtype == jnp.float32
    assert bool(jnp.all(jnp.isfinite(out)))
    print("KERNEL_OK")
</pallas_src>

<mosaic_0001>
module attributes {stable_mosaic.version = 11 : i64} {
  func.func @kernel(%arg0: memref<16x16xf32, #tpu.memory_space<vmem>>, %arg1: memref<16x1xi32, #tpu.memory_space<vmem>>, %arg2: memref<16x32xbf16, #tpu.memory_space<vmem>>, %arg3: memref<32x2560xbf16, #tpu.memory_space<vmem>>, %arg4: memref<64x640xbf16, #tpu.memory_space<vmem>>, %arg5: memref<1x5632xf32, #tpu.memory_space<vmem>>, %arg6: memref<16x32xf32, #tpu.memory_space<vmem>>, %arg7: memref<16x128xf32, #tpu.memory_space<vmem>>) attributes {dimension_semantics = [], scalar_prefetch = 0 : i64, scratch_operands = 0 : i64, tpu.core_type = #tpu.core_type<tc>} {
    %c0 = arith.constant 0 : index
    %c0_0 = arith.constant 0 : index
    %0 = vector.load %arg6[%c0, %c0_0] : memref<16x32xf32, #tpu.memory_space<vmem>>, vector<16x32xf32>
    %c0_1 = arith.constant 0 : index
    %c0_2 = arith.constant 0 : index
    %1 = vector.load %arg0[%c0_1, %c0_2] : memref<16x16xf32, #tpu.memory_space<vmem>>, vector<16x16xf32>
    %c0_3 = arith.constant 0 : index
    %c0_4 = arith.constant 0 : index
    %2 = vector.load %arg2[%c0_3, %c0_4] : memref<16x32xbf16, #tpu.memory_space<vmem>>, vector<16x32xbf16>
    %3 = arith.truncf %1 : vector<16x16xf32> to vector<16x16xbf16>
    %cst = arith.constant dense<0.000000e+00> : vector<16x32xf32>
    %4 = tpu.matmul %3, %2, %cst {dimension_numbers = #tpu.dot_dimension_numbers<[1], [0], [0], [1], [0, 0, 1, 1], [], []>} : vector<16x16xbf16>, vector<16x32xbf16>, vector<16x32xf32> -> vector<16x32xf32>
    %cst_5 = arith.constant 5.000000e-01 : f32
    %5 = vector.broadcast %cst_5 : f32 to vector<16x32xf32>
    %6 = arith.mulf %5, %4 : vector<16x32xf32>
    %cst_6 = arith.constant 0.707106769 : f32
    %7 = vector.broadcast %cst_6 : f32 to vector<16x32xf32>
    %8 = arith.mulf %4, %7 : vector<16x32xf32>
    %cst_7 = arith.constant 0.000000e+00 : f32
    %9 = vector.broadcast %cst_7 : f32 to vector<16x32xf32>
    %10 = arith.cmpf oge, %8, %9 : vector<16x32xf32>
    %cst_8 = arith.constant 1.000000e+00 : f32
    %cst_9 = arith.constant -1.000000e+00 : f32
    %11 = vector.broadcast %cst_8 : f32 to vector<16x32xf32>
    %12 = vector.broadcast %cst_9 : f32 to vector<16x32xf32>
    %13 = arith.select %10, %11, %12 : vector<16x32xi1>, vector<16x32xf32>
    %14 = math.absf %8 : vector<16x32xf32>
    %cst_10 = arith.constant 0.327591091 : f32
    %15 = vector.broadcast %cst_10 : f32 to vector<16x32xf32>
    %16 = arith.mulf %15, %14 : vector<16x32xf32>
    %cst_11 = arith.constant 1.000000e+00 : f32
    %17 = vector.broadcast %cst_11 : f32 to vector<16x32xf32>
    %18 = arith.addf %17, %16 : vector<16x32xf32>
    %19 = tpu.reciprocal %18 {approx = true} : vector<16x32xf32> -> vector<16x32xf32>
    %cst_12 = arith.constant 1.06140542 : f32
    %20 = vector.broadcast %cst_12 : f32 to vector<16x32xf32>
    %21 = arith.mulf %20, %19 : vector<16x32xf32>
    %cst_13 = arith.constant -1.45315206 : f32
    %22 = vector.broadcast %cst_13 : f32 to vector<16x32xf32>
    %23 = arith.addf %21, %22 : vector<16x32xf32>
    %24 = arith.mulf %23, %19 : vector<16x32xf32>
    %cst_14 = arith.constant 1.42141378 : f32
    %25 = vector.broadcast %cst_14 : f32 to vector<16x32xf32>
    %26 = arith.addf %24, %25 : vector<16x32xf32>
    %27 = arith.mulf %26, %19 : vector<16x32xf32>
    %cst_15 = arith.constant -0.284496725 : f32
    %28 = vector.broadcast %cst_15 : f32 to vector<16x32xf32>
    %29 = arith.addf %27, %28 : vector<16x32xf32>
    %30 = arith.mulf %29, %19 : vector<16x32xf32>
    %cst_16 = arith.constant 0.254829586 : f32
    %31 = vector.broadcast %cst_16 : f32 to vector<16x32xf32>
    %32 = arith.addf %30, %31 : vector<16x32xf32>
    %33 = arith.mulf %32, %19 : vector<16x32xf32>
    %cst_17 = arith.constant 0.000000e+00 : f32
    %34 = vector.broadcast %cst_17 : f32 to vector<16x32xf32>
    %35 = arith.subf %34, %14 : vector<16x32xf32>
    %36 = arith.mulf %35, %14 : vector<16x32xf32>
    %37 = math.exp %36 : vector<16x32xf32>
    %38 = arith.mulf %33, %37 : vector<16x32xf32>
    %cst_18 = arith.constant 1.000000e+00 : f32
    %39 = vector.broadcast %cst_18 : f32 to vector<16x32xf32>
    %40 = arith.subf %39, %38 : vector<16x32xf32>
    %41 = arith.mulf %13, %40 : vector<16x32xf32>
    %cst_19 = arith.constant 1.000000e+00 : f32
    %42 = vector.broadcast %cst_19 : f32 to vector<16x32xf32>
    %43 = arith.addf %42, %41 : vector<16x32xf32>
    %44 = arith.mulf %6, %43 : vector<16x32xf32>
    %c0_20 = arith.constant 0 : index
    %c0_21 = arith.constant 0 : index
    %45 = vector.load %arg3[%c0_20, %c0_21] : memref<32x2560xbf16, #tpu.memory_space<vmem>>, vector<32x32xbf16>
    %46 = arith.truncf %44 : vector<16x32xf32> to vector<16x32xbf16>
    %cst_22 = arith.constant dense<0.000000e+00> : vector<16x32xf32>
    %47 = tpu.matmul %46, %45, %cst_22 {dimension_numbers = #tpu.dot_dimension_numbers<[1], [0], [0], [1], [0, 0, 1, 1], [], []>} : vector<16x32xbf16>, vector<32x32xbf16>, vector<16x32xf32> -> vector<16x32xf32>
    %c0_23 = arith.constant 0 : index
    %c0_24 = arith.constant 0 : index
    %48 = vector.load %arg5[%c0_23, %c0_24] : memref<1x5632xf32, #tpu.memory_space<vmem>>, vector<1x32xf32>
    %49 = vector.broadcast %48 : vector<1x32xf32> to vector<16x32xf32>
    %50 = arith.addf %47, %49 : vector<16x32xf32>
    %51 = arith.addf %50, %0 : vector<16x32xf32>
    %c0_25 = arith.constant 0 : index
    %c256 = arith.constant 256 : index
    %52 = vector.load %arg3[%c0_25, %c256] : memref<32x2560xbf16, #tpu.memory_space<vmem>>, vector<32x96xbf16>
    %c0_26 = arith.constant 0 : index
    %c256_27 = arith.constant 256 : index
    %53 = vector.load %arg5[%c0_26, %c256_27] : memref<1x5632xf32, #tpu.memory_space<vmem>>, vector<1x96xf32>
    %c0_28 = arith.constant 0 : index
    %c384 = arith.constant 384 : index
    %54 = vector.load %arg3[%c0_28, %c384] : memref<32x2560xbf16, #tpu.memory_space<vmem>>, vector<32x32xbf16>
    %c0_29 = arith.constant 0 : index
    %c384_30 = arith.constant 384 : index
    %55 = vector.load %arg5[%c0_29, %c384_30] : memref<1x5632xf32, #tpu.memory_space<vmem>>, vector<1x32xf32>
    %56 = arith.truncf %51 : vector<16x32xf32> to vector<16x32xbf16>
    %cst_31 = arith.constant dense<0.000000e+00> : vector<16x96xf32>
    %57 = tpu.matmul %56, %52, %cst_31 {dimension_numbers = #tpu.dot_dimension_numbers<[1], [0], [0], [1], [0, 0, 1, 1], [], []>} : vector<16x32xbf16>, vector<32x96xbf16>, vector<16x96xf32> -> vector<16x96xf32>
    %58 = vector.broadcast %53 : vector<1x96xf32> to vector<16x96xf32>
    %59 = arith.addf %57, %58 : vector<16x96xf32>
    %60 = arith.truncf %59 : vector<16x96xf32> to vector<16x96xbf16>
    %61 = vector.extract_strided_slice %60 {offsets = [0, 0], sizes = [16, 32], strides = [1, 1]} : vector<16x96xbf16> to vector<16x32xbf16>
    %62 = vector.shape_cast %61 : vector<16x32xbf16> to vector<2x8x4x8xbf16>
    %63 = tpu.transpose %62, [0, 2, 1, 3] : vector<2x8x4x8xbf16> -> vector<2x4x8x8xbf16>
    %64 = vector.shape_cast %63 : vector<2x4x8x8xbf16> to vector<8x8x8xbf16>
    %65 = vector.extract_strided_slice %60 {offsets = [0, 32], sizes = [16, 32], strides = [1, 1]} : vector<16x96xbf16> to vector<16x32xbf16>
    %66 = vector.shape_cast %65 : vector<16x32xbf16> to vector<2x8x4x8xbf16>
    %67 = tpu.transpose %66, [0, 2, 1, 3] : vector<2x8x4x8xbf16> -> vector<2x4x8x8xbf16>
    %68 = vector.shape_cast %67 : vector<2x4x8x8xbf16> to vector<8x8x8xbf16>
    %69 = vector.extract_strided_slice %60 {offsets = [0, 64], sizes = [16, 32], strides = [1, 1]} : vector<16x96xbf16> to vector<16x32xbf16>
    %70 = vector.shape_cast %69 : vector<16x32xbf16> to vector<2x8x4x8xbf16>
    %71 = tpu.transpose %70, [0, 2, 1, 3] : vector<2x8x4x8xbf16> -> vector<2x4x8x8xbf16>
    %72 = vector.shape_cast %71 : vector<2x4x8x8xbf16> to vector<8x8x8xbf16>
    "tpu.trace_start"() <{level = 10 : i32, message = "gqd,gkd->gqk"}> : () -> ()
    %cst_32 = arith.constant dense<0.000000e+00> : vector<8x8x8xf32>
    %73 = tpu.matmul %64, %68, %cst_32 {dimension_numbers = #tpu.dot_dimension_numbers<[2], [2], [1], [1], [0, 0, 0, 1, 1, 1], [0], [0]>} : vector<8x8x8xbf16>, vector<8x8x8xbf16>, vector<8x8x8xf32> -> vector<8x8x8xf32>
    "tpu.trace_stop"() : () -> ()
    %cst_33 = arith.constant dense<0xFF800000> : vector<8x8xf32>
    %74 = vector.multi_reduction <maximumf>, %73, %cst_33 [2] : vector<8x8x8xf32> to vector<8x8xf32>
    %75 = vector.shape_cast %74 : vector<8x8xf32> to vector<8x8x1xf32>
    %76 = vector.broadcast %75 : vector<8x8x1xf32> to vector<8x8x8xf32>
    %77 = arith.subf %73, %76 : vector<8x8x8xf32>
    %78 = math.exp %77 : vector<8x8x8xf32>
    %cst_34 = arith.constant dense<0.000000e+00> : vector<8x8xf32>
    %79 = vector.multi_reduction <add>, %78, %cst_34 [2] : vector<8x8x8xf32> to vector<8x8xf32>
    %80 = vector.shape_cast %79 : vector<8x8xf32> to vector<8x8x1xf32>
    %81 = tpu.reciprocal %80 {approx = true} : vector<8x8x1xf32> -> vector<8x8x1xf32>
    %82 = vector.broadcast %81 : vector<8x8x1xf32> to vector<8x8x8xf32>
    %83 = arith.mulf %78, %82 : vector<8x8x8xf32>
    %84 = arith.truncf %83 : vector<8x8x8xf32> to vector<8x8x8xbf16>
    "tpu.trace_start"() <{level = 10 : i32, message = "gqk,gkd->gqd"}> : () -> ()
    %cst_35 = arith.constant dense<0.000000e+00> : vector<8x8x8xf32>
    %85 = tpu.matmul %84, %72, %cst_35 {dimension_numbers = #tpu.dot_dimension_numbers<[2], [1], [1], [2], [0, 0, 0, 1, 1, 2], [0], [0]>} : vector<8x8x8xbf16>, vector<8x8x8xbf16>, vector<8x8x8xf32> -> vector<8x8x8xf32>
    "tpu.trace_stop"() : () -> ()
    %86 = vector.shape_cast %85 : vector<8x8x8xf32> to vector<2x4x8x8xf32>
    %87 = tpu.transpose %86, [0, 2, 1, 3] : vector<2x4x8x8xf32> -> vector<2x8x4x8xf32>
    %88 = vector.shape_cast %87 : vector<2x8x4x8xf32> to vector<16x32xf32>
    %89 = arith.truncf %88 : vector<16x32xf32> to vector<16x32xbf16>
    %cst_36 = arith.constant dense<0.000000e+00> : vector<16x32xf32>
    %90 = tpu.matmul %89, %54, %cst_36 {dimension_numbers = #tpu.dot_dimension_numbers<[1], [0], [0], [1], [0, 0, 1, 1], [], []>} : vector<16x32xbf16>, vector<32x32xbf16>, vector<16x32xf32> -> vector<16x32xf32>
    %91 = vector.broadcast %55 : vector<1x32xf32> to vector<16x32xf32>
    %92 = arith.addf %90, %91 : vector<16x32xf32>
    %c0_37 = arith.constant 0 : index
    %c512 = arith.constant 512 : index
    %93 = vector.load %arg5[%c0_37, %c512] : memref<1x5632xf32, #tpu.memory_space<vmem>>, vector<1x32xf32>
    %c0_38 = arith.constant 0 : index
    %c640 = arith.constant 640 : index
    %94 = vector.load %arg5[%c0_38, %c640] : memref<1x5632xf32, #tpu.memory_space<vmem>>, vector<1x32xf32>
    %95 = arith.addf %92, %51 : vector<16x32xf32>
    %cst_39 = arith.constant dense<0.000000e+00> : vector<16xf32>
    %96 = vector.multi_reduction <add>, %95, %cst_39 [1] : vector<16x32xf32> to vector<16xf32>
    %97 = vector.shape_cast %96 : vector<16xf32> to vector<16x1xf32>
    %cst_40 = arith.constant 3.200000e+01 : f32
    %98 = vector.broadcast %cst_40 : f32 to vector<16x1xf32>
    %99 = arith.divf %97, %98 : vector<16x1xf32>
    %100 = vector.broadcast %99 : vector<16x1xf32> to vector<16x32xf32>
    %101 = arith.subf %95, %100 : vector<16x32xf32>
    %102 = arith.mulf %101, %101 : vector<16x32xf32>
    %cst_41 = arith.constant dense<0.000000e+00> : vector<16xf32>
    %103 = vector.multi_reduction <add>, %102, %cst_41 [1] : vector<16x32xf32> to vector<16xf32>
    %104 = vector.shape_cast %103 : vector<16xf32> to vector<16x1xf32>
    %cst_42 = arith.constant 3.200000e+01 : f32
    %105 = vector.broadcast %cst_42 : f32 to vector<16x1xf32>
    %106 = arith.divf %104, %105 : vector<16x1xf32>
    %107 = vector.broadcast %99 : vector<16x1xf32> to vector<16x32xf32>
    %108 = arith.subf %95, %107 : vector<16x32xf32>
    %cst_43 = arith.constant 9.99999974E-6 : f32
    %109 = vector.broadcast %cst_43 : f32 to vector<16x1xf32>
    %110 = arith.addf %106, %109 : vector<16x1xf32>
    %111 = math.rsqrt %110 : vector<16x1xf32>
    %112 = vector.broadcast %111 : vector<16x1xf32> to vector<16x32xf32>
    %113 = arith.mulf %108, %112 : vector<16x32xf32>
    %114 = vector.broadcast %93 : vector<1x32xf32> to vector<16x32xf32>
    %115 = arith.mulf %114, %113 : vector<16x32xf32>
    %116 = vector.broadcast %94 : vector<1x32xf32> to vector<16x32xf32>
    %117 = arith.addf %115, %116 : vector<16x32xf32>
    %c0_44 = arith.constant 0 : index
    %c512_45 = arith.constant 512 : index
    %118 = vector.load %arg3[%c0_44, %c512_45] : memref<32x2560xbf16, #tpu.memory_space<vmem>>, vector<32x64xbf16>
    %c0_46 = arith.constant 0 : index
    %c768 = arith.constant 768 : index
    %119 = vector.load %arg5[%c0_46, %c768] : memref<1x5632xf32, #tpu.memory_space<vmem>>, vector<1x64xf32>
    %c0_47 = arith.constant 0 : index
    %c128 = arith.constant 128 : index
    %120 = vector.load %arg4[%c0_47, %c128] : memref<64x640xbf16, #tpu.memory_space<vmem>>, vector<64x32xbf16>
    %c0_48 = arith.constant 0 : index
    %c896 = arith.constant 896 : index
    %121 = vector.load %arg5[%c0_48, %c896] : memref<1x5632xf32, #tpu.memory_space<vmem>>, vector<1x32xf32>
    %122 = arith.truncf %117 : vector<16x32xf32> to vector<16x32xbf16>
    %cst_49 = arith.constant dense<0.000000e+00> : vector<16x64xf32>
    %123 = tpu.matmul %122, %118, %cst_49 {dimension_numbers = #tpu.dot_dimension_numbers<[1], [0], [0], [1], [0, 0, 1, 1], [], []>} : vector<16x32xbf16>, vector<32x64xbf16>, vector<16x64xf32> -> vector<16x64xf32>
    %124 = vector.broadcast %119 : vector<1x64xf32> to vector<16x64xf32>
    %125 = arith.addf %123, %124 : vector<16x64xf32>
    %cst_50 = arith.constant 0.000000e+00 : f32
    %126 = vector.broadcast %cst_50 : f32 to vector<16x64xf32>
    %127 = arith.maximumf %125, %126 : vector<16x64xf32>
    %128 = arith.truncf %127 : vector<16x64xf32> to vector<16x64xbf16>
    %cst_51 = arith.constant dense<0.000000e+00> : vector<16x32xf32>
    %129 = tpu.matmul %128, %120, %cst_51 {dimension_numbers = #tpu.dot_dimension_numbers<[1], [0], [0], [1], [0, 0, 1, 1], [], []>} : vector<16x64xbf16>, vector<64x32xbf16>, vector<16x32xf32> -> vector<16x32xf32>
    %130 = vector.broadcast %121 : vector<1x32xf32> to vector<16x32xf32>
    %131 = arith.addf %129, %130 : vector<16x32xf32>
    %c0_52 = arith.constant 0 : index
    %c1024 = arith.constant 1024 : index
    %132 = vector.load %arg5[%c0_52, %c1024] : memref<1x5632xf32, #tpu.memory_space<vmem>>, vector<1x32xf32>
    %c0_53 = arith.constant 0 : index
    %c1152 = arith.constant 1152 : index
    %133 = vector.load %arg5[%c0_53, %c1152] : memref<1x5632xf32, #tpu.memory_space<vmem>>, vector<1x32xf32>
    %134 = arith.addf %131, %117 : vector<16x32xf32>
    %cst_54 = arith.constant dense<0.000000e+00> : vector<16xf32>
    %135 = vector.multi_reduction <add>, %134, %cst_54 [1] : vector<16x32xf32> to vector<16xf32>
    %136 = vector.shape_cast %135 : vector<16xf32> to vector<16x1xf32>
    %cst_55 = arith.constant 3.200000e+01 : f32
    %137 = vector.broadcast %cst_55 : f32 to vector<16x1xf32>
    %138 = arith.divf %136, %137 : vector<16x1xf32>
    %139 = vector.broadcast %138 : vector<16x1xf32> to vector<16x32xf32>
    %140 = arith.subf %134, %139 : vector<16x32xf32>
    %141 = arith.mulf %140, %140 : vector<16x32xf32>
    %cst_56 = arith.constant dense<0.000000e+00> : vector<16xf32>
    %142 = vector.multi_reduction <add>, %141, %cst_56 [1] : vector<16x32xf32> to vector<16xf32>
    %143 = vector.shape_cast %142 : vector<16xf32> to vector<16x1xf32>
    %cst_57 = arith.constant 3.200000e+01 : f32
    %144 = vector.broadcast %cst_57 : f32 to vector<16x1xf32>
    %145 = arith.divf %143, %144 : vector<16x1xf32>
    %146 = vector.broadcast %138 : vector<16x1xf32> to vector<16x32xf32>
    %147 = arith.subf %134, %146 : vector<16x32xf32>
    %cst_58 = arith.constant 9.99999974E-6 : f32
    %148 = vector.broadcast %cst_58 : f32 to vector<16x1xf32>
    %149 = arith.addf %145, %148 : vector<16x1xf32>
    %150 = math.rsqrt %149 : vector<16x1xf32>
    %151 = vector.broadcast %150 : vector<16x1xf32> to vector<16x32xf32>
    %152 = arith.mulf %147, %151 : vector<16x32xf32>
    %153 = vector.broadcast %132 : vector<1x32xf32> to vector<16x32xf32>
    %154 = arith.mulf %153, %152 : vector<16x32xf32>
    %155 = vector.broadcast %133 : vector<1x32xf32> to vector<16x32xf32>
    %156 = arith.addf %154, %155 : vector<16x32xf32>
    %c0_59 = arith.constant 0 : index
    %c640_60 = arith.constant 640 : index
    %157 = vector.load %arg3[%c0_59, %c640_60] : memref<32x2560xbf16, #tpu.memory_space<vmem>>, vector<32x96xbf16>
    %c0_61 = arith.constant 0 : index
    %c1280 = arith.constant 1280 : index
    %158 = vector.load %arg5[%c0_61, %c1280] : memref<1x5632xf32, #tpu.memory_space<vmem>>, vector<1x96xf32>
    %c0_62 = arith.constant 0 : index
    %c768_63 = arith.constant 768 : index
    %159 = vector.load %arg3[%c0_62, %c768_63] : memref<32x2560xbf16, #tpu.memory_space<vmem>>, vector<32x32xbf16>
    %c0_64 = arith.constant 0 : index
    %c1408 = arith.constant 1408 : index
    %160 = vector.load %arg5[%c0_64, %c1408] : memref<1x5632xf32, #tpu.memory_space<vmem>>, vector<1x32xf32>
    %161 = arith.truncf %156 : vector<16x32xf32> to vector<16x32xbf16>
    %cst_65 = arith.constant dense<0.000000e+00> : vector<16x96xf32>
    %162 = tpu.matmul %161, %157, %cst_65 {dimension_numbers = #tpu.dot_dimension_numbers<[1], [0], [0], [1], [0, 0, 1, 1], [], []>} : vector<16x32xbf16>, vector<32x96xbf16>, vector<16x96xf32> -> vector<16x96xf32>
    %163 = vector.broadcast %158 : vector<1x96xf32> to vector<16x96xf32>
    %164 = arith.addf %162, %163 : vector<16x96xf32>
    %165 = arith.truncf %164 : vector<16x96xf32> to vector<16x96xbf16>
    %166 = vector.extract_strided_slice %165 {offsets = [0, 0], sizes = [16, 32], strides = [1, 1]} : vector<16x96xbf16> to vector<16x32xbf16>
    %167 = vector.shape_cast %166 : vector<16x32xbf16> to vector<2x8x4x8xbf16>
    %168 = tpu.transpose %167, [0, 2, 1, 3] : vector<2x8x4x8xbf16> -> vector<2x4x8x8xbf16>
    %169 = vector.shape_cast %168 : vector<2x4x8x8xbf16> to vector<8x8x8xbf16>
    %170 = vector.extract_strided_slice %165 {offsets = [0, 32], sizes = [16, 32], strides = [1, 1]} : vector<16x96xbf16> to vector<16x32xbf16>
    %171 = vector.shape_cast %170 : vector<16x32xbf16> to vector<2x8x4x8xbf16>
    %172 = tpu.transpose %171, [0, 2, 1, 3] : vector<2x8x4x8xbf16> -> vector<2x4x8x8xbf16>
    %173 = vector.shape_cast %172 : vector<2x4x8x8xbf16> to vector<8x8x8xbf16>
    %174 = vector.extract_strided_slice %165 {offsets = [0, 64], sizes = [16, 32], strides = [1, 1]} : vector<16x96xbf16> to vector<16x32xbf16>
    %175 = vector.shape_cast %174 : vector<16x32xbf16> to vector<2x8x4x8xbf16>
    %176 = tpu.transpose %175, [0, 2, 1, 3] : vector<2x8x4x8xbf16> -> vector<2x4x8x8xbf16>
    %177 = vector.shape_cast %176 : vector<2x4x8x8xbf16> to vector<8x8x8xbf16>
    "tpu.trace_start"() <{level = 10 : i32, message = "gqd,gkd->gqk"}> : () -> ()
    %cst_66 = arith.constant dense<0.000000e+00> : vector<8x8x8xf32>
    %178 = tpu.matmul %169, %173, %cst_66 {dimension_numbers = #tpu.dot_dimension_numbers<[2], [2], [1], [1], [0, 0, 0, 1, 1, 1], [0], [0]>} : vector<8x8x8xbf16>, vector<8x8x8xbf16>, vector<8x8x8xf32> -> vector<8x8x8xf32>
    "tpu.trace_stop"() : () -> ()
    %cst_67 = arith.constant dense<0xFF800000> : vector<8x8xf32>
    %179 = vector.multi_reduction <maximumf>, %178, %cst_67 [2] : vector<8x8x8xf32> to vector<8x8xf32>
    %180 = vector.shape_cast %179 : vector<8x8xf32> to vector<8x8x1xf32>
    %181 = vector.broadcast %180 : vector<8x8x1xf32> to vector<8x8x8xf32>
    %182 = arith.subf %178, %181 : vector<8x8x8xf32>
    %183 = math.exp %182 : vector<8x8x8xf32>
    %cst_68 = arith.constant dense<0.000000e+00> : vector<8x8xf32>
    %184 = vector.multi_reduction <add>, %183, %cst_68 [2] : vector<8x8x8xf32> to vector<8x8xf32>
    %185 = vector.shape_cast %184 : vector<8x8xf32> to vector<8x8x1xf32>
    %186 = tpu.reciprocal %185 {approx = true} : vector<8x8x1xf32> -> vector<8x8x1xf32>
    %187 = vector.broadcast %186 : vector<8x8x1xf32> to vector<8x8x8xf32>
    %188 = arith.mulf %183, %187 : vector<8x8x8xf32>
    %189 = arith.truncf %188 : vector<8x8x8xf32> to vector<8x8x8xbf16>
    "tpu.trace_start"() <{level = 10 : i32, message = "gqk,gkd->gqd"}> : () -> ()
    %cst_69 = arith.constant dense<0.000000e+00> : vector<8x8x8xf32>
    %190 = tpu.matmul %189, %177, %cst_69 {dimension_numbers = #tpu.dot_dimension_numbers<[2], [1], [1], [2], [0, 0, 0, 1, 1, 2], [0], [0]>} : vector<8x8x8xbf16>, vector<8x8x8xbf16>, vector<8x8x8xf32> -> vector<8x8x8xf32>
    "tpu.trace_stop"() : () -> ()
    %191 = vector.shape_cast %190 : vector<8x8x8xf32> to vector<2x4x8x8xf32>
    %192 = tpu.transpose %191, [0, 2, 1, 3] : vector<2x4x8x8xf32> -> vector<2x8x4x8xf32>
    %193 = vector.shape_cast %192 : vector<2x8x4x8xf32> to vector<16x32xf32>
    %194 = arith.truncf %193 : vector<16x32xf32> to vector<16x32xbf16>
    %cst_70 = arith.constant dense<0.000000e+00> : vector<16x32xf32>
    %195 = tpu.matmul %194, %159, %cst_70 {dimension_numbers = #tpu.dot_dimension_numbers<[1], [0], [0], [1], [0, 0, 1, 1], [], []>} : vector<16x32xbf16>, vector<32x32xbf16>, vector<16x32xf32> -> vector<16x32xf32>
    %196 = vector.broadcast %160 : vector<1x32xf32> to vector<16x32xf32>
    %197 = arith.addf %195, %196 : vector<16x32xf32>
    %c0_71 = arith.constant 0 : index
    %c1536 = arith.constant 1536 : index
    %198 = vector.load %arg5[%c0_71, %c1536] : memref<1x5632xf32, #tpu.memory_space<vmem>>, vector<1x32xf32>
    %c0_72 = arith.constant 0 : index
    %c1664 = arith.constant 1664 : index
    %199 = vector.load %arg5[%c0_72, %c1664] : memref<1x5632xf32, #tpu.memory_space<vmem>>, vector<1x32xf32>
    %200 = arith.addf %197, %156 : vector<16x32xf32>
    %cst_73 = arith.constant dense<0.000000e+00> : vector<16xf32>
    %201 = vector.multi_reduction <add>, %200, %cst_73 [1] : vector<16x32xf32> to vector<16xf32>
    %202 = vector.shape_cast %201 : vector<16xf32> to vector<16x1xf32>
    %cst_74 = arith.constant 3.200000e+01 : f32
    %203 = vector.broadcast %cst_74 : f32 to vector<16x1xf32>
    %204 = arith.divf %202, %203 : vector<16x1xf32>
    %205 = vector.broadcast %204 : vector<16x1xf32> to vector<16x32xf32>
    %206 = arith.subf %200, %205 : vector<16x32xf32>
    %207 = arith.mulf %206, %206 : vector<16x32xf32>
    %cst_75 = arith.constant dense<0.000000e+00> : vector<16xf32>
    %208 = vector.multi_reduction <add>, %207, %cst_75 [1] : vector<16x32xf32> to vector<16xf32>
    %209 = vector.shape_cast %208 : vector<16xf32> to vector<16x1xf32>
    %cst_76 = arith.constant 3.200000e+01 : f32
    %210 = vector.broadcast %cst_76 : f32 to vector<16x1xf32>
    %211 = arith.divf %209, %210 : vector<16x1xf32>
    %212 = vector.broadcast %204 : vector<16x1xf32> to vector<16x32xf32>
    %213 = arith.subf %200, %212 : vector<16x32xf32>
    %cst_77 = arith.constant 9.99999974E-6 : f32
    %214 = vector.broadcast %cst_77 : f32 to vector<16x1xf32>
    %215 = arith.addf %211, %214 : vector<16x1xf32>
    %216 = math.rsqrt %215 : vector<16x1xf32>
    %217 = vector.broadcast %216 : vector<16x1xf32> to vector<16x32xf32>
    %218 = arith.mulf %213, %217 : vector<16x32xf32>
    %219 = vector.broadcast %198 : vector<1x32xf32> to vector<16x32xf32>
    %220 = arith.mulf %219, %218 : vector<16x32xf32>
    %221 = vector.broadcast %199 : vector<1x32xf32> to vector<16x32xf32>
    %222 = arith.addf %220, %221 : vector<16x32xf32>
    %c0_78 = arith.constant 0 : index
    %c896_79 = arith.constant 896 : index
    %223 = vector.load %arg3[%c0_78, %c896_79] : memref<32x2560xbf16, #tpu.memory_space<vmem>>, vector<32x64xbf16>
    %c0_80 = arith.constant 0 : index
    %c1792 = arith.constant 1792 : index
    %224 = vector.load %arg5[%c0_80, %c1792] : memref<1x5632xf32, #tpu.memory_space<vmem>>, vector<1x64xf32>
    %c0_81 = arith.constant 0 : index
    %c256_82 = arith.constant 256 : index
    %225 = vector.load %arg4[%c0_81, %c256_82] : memref<64x640xbf16, #tpu.memory_space<vmem>>, vector<64x32xbf16>
    %c0_83 = arith.constant 0 : index
    %c1920 = arith.constant 1920 : index
    %226 = vector.load %arg5[%c0_83, %c1920] : memref<1x5632xf32, #tpu.memory_space<vmem>>, vector<1x32xf32>
    %227 = arith.truncf %222 : vector<16x32xf32> to vector<16x32xbf16>
    %cst_84 = arith.constant dense<0.000000e+00> : vector<16x64xf32>
    %228 = tpu.matmul %227, %223, %cst_84 {dimension_numbers = #tpu.dot_dimension_numbers<[1], [0], [0], [1], [0, 0, 1, 1], [], []>} : vector<16x32xbf16>, vector<32x64xbf16>, vector<16x64xf32> -> vector<16x64xf32>
    %229 = vector.broadcast %224 : vector<1x64xf32> to vector<16x64xf32>
    %230 = arith.addf %228, %229 : vector<16x64xf32>
    %cst_85 = arith.constant 0.000000e+00 : f32
    %231 = vector.broadcast %cst_85 : f32 to vector<16x64xf32>
    %232 = arith.maximumf %230, %231 : vector<16x64xf32>
    %233 = arith.truncf %232 : vector<16x64xf32> to vector<16x64xbf16>
    %cst_86 = arith.constant dense<0.000000e+00> : vector<16x32xf32>
    %234 = tpu.matmul %233, %225, %cst_86 {dimension_numbers = #tpu.dot_dimension_numbers<[1], [0], [0], [1], [0, 0, 1, 1], [], []>} : vector<16x64xbf16>, vector<64x32xbf16>, vector<16x32xf32> -> vector<16x32xf32>
    %235 = vector.broadcast %226 : vector<1x32xf32> to vector<16x32xf32>
    %236 = arith.addf %234, %235 : vector<16x32xf32>
    %c0_87 = arith.constant 0 : index
    %c2048 = arith.constant 2048 : index
    %237 = vector.load %arg5[%c0_87, %c2048] : memref<1x5632xf32, #tpu.memory_space<vmem>>, vector<1x32xf32>
    %c0_88 = arith.constant 0 : index
    %c2176 = arith.constant 2176 : index
    %238 = vector.load %arg5[%c0_88, %c2176] : memref<1x5632xf32, #tpu.memory_space<vmem>>, vector<1x32xf32>
    %239 = arith.addf %236, %222 : vector<16x32xf32>
    %cst_89 = arith.constant dense<0.000000e+00> : vector<16xf32>
    %240 = vector.multi_reduction <add>, %239, %cst_89 [1] : vector<16x32xf32> to vector<16xf32>
    %241 = vector.shape_cast %240 : vector<16xf32> to vector<16x1xf32>
    %cst_90 = arith.constant 3.200000e+01 : f32
    %242 = vector.broadcast %cst_90 : f32 to vector<16x1xf32>
    %243 = arith.divf %241, %242 : vector<16x1xf32>
    %244 = vector.broadcast %243 : vector<16x1xf32> to vector<16x32xf32>
    %245 = arith.subf %239, %244 : vector<16x32xf32>
    %246 = arith.mulf %245, %245 : vector<16x32xf32>
    %cst_91 = arith.constant dense<0.000000e+00> : vector<16xf32>
    %247 = vector.multi_reduction <add>, %246, %cst_91 [1] : vector<16x32xf32> to vector<16xf32>
    %248 = vector.shape_cast %247 : vector<16xf32> to vector<16x1xf32>
    %cst_92 = arith.constant 3.200000e+01 : f32
    %249 = vector.broadcast %cst_92 : f32 to vector<16x1xf32>
    %250 = arith.divf %248, %249 : vector<16x1xf32>
    %251 = vector.broadcast %243 : vector<16x1xf32> to vector<16x32xf32>
    %252 = arith.subf %239, %251 : vector<16x32xf32>
    %cst_93 = arith.constant 9.99999974E-6 : f32
    %253 = vector.broadcast %cst_93 : f32 to vector<16x1xf32>
    %254 = arith.addf %250, %253 : vector<16x1xf32>
    %255 = math.rsqrt %254 : vector<16x1xf32>
    %256 = vector.broadcast %255 : vector<16x1xf32> to vector<16x32xf32>
    %257 = arith.mulf %252, %256 : vector<16x32xf32>
    %258 = vector.broadcast %237 : vector<1x32xf32> to vector<16x32xf32>
    %259 = arith.mulf %258, %257 : vector<16x32xf32>
    %260 = vector.broadcast %238 : vector<1x32xf32> to vector<16x32xf32>
    %261 = arith.addf %259, %260 : vector<16x32xf32>
    %262 = tpu.iota {dimensions = array<i32: 1>} : vector<16x64xi32>
    %c0_94 = arith.constant 0 : index
    %c0_95 = arith.constant 0 : index
    %263 = vector.load %arg1[%c0_94, %c0_95] : memref<16x1xi32, #tpu.memory_space<vmem>>, vector<16x1xi32>
    %264 = vector.broadcast %263 : vector<16x1xi32> to vector<16x64xi32>
    %265 = arith.cmpi eq, %264, %262 : vector<16x64xi32>
    %266 = arith.extui %265 : vector<16x64xi1> to vector<16x64xi32>
    %267 = arith.sitofp %266 : vector<16x64xi32> to vector<16x64xf32>
    %268 = arith.truncf %267 : vector<16x64xf32> to vector<16x64xbf16>
    %c0_96 = arith.constant 0 : index
    %c0_97 = arith.constant 0 : index
    %269 = vector.load %arg4[%c0_96, %c0_97] : memref<64x640xbf16, #tpu.memory_space<vmem>>, vector<64x32xbf16>
    %cst_98 = arith.constant dense<0.000000e+00> : vector<16x32xf32>
    %270 = tpu.matmul %268, %269, %cst_98 {dimension_numbers = #tpu.dot_dimension_numbers<[1], [0], [0], [1], [0, 0, 1, 1], [], []>} : vector<16x64xbf16>, vector<64x32xbf16>, vector<16x32xf32> -> vector<16x32xf32>
    %271 = arith.addf %270, %0 : vector<16x32xf32>
    %c0_99 = arith.constant 0 : index
    %c1024_100 = arith.constant 1024 : index
    %272 = vector.load %arg3[%c0_99, %c1024_100] : memref<32x2560xbf16, #tpu.memory_space<vmem>>, vector<32x96xbf16>
    %c0_101 = arith.constant 0 : index
    %c2304 = arith.constant 2304 : index
    %273 = vector.load %arg5[%c0_101, %c2304] : memref<1x5632xf32, #tpu.memory_space<vmem>>, vector<1x96xf32>
    %c0_102 = arith.constant 0 : index
    %c1152_103 = arith.constant 1152 : index
    %274 = vector.load %arg3[%c0_102, %c1152_103] : memref<32x2560xbf16, #tpu.memory_space<vmem>>, vector<32x32xbf16>
    %c0_104 = arith.constant 0 : index
    %c2432 = arith.constant 2432 : index
    %275 = vector.load %arg5[%c0_104, %c2432] : memref<1x5632xf32, #tpu.memory_space<vmem>>, vector<1x32xf32>
    %276 = arith.truncf %271 : vector<16x32xf32> to vector<16x32xbf16>
    %cst_105 = arith.constant dense<0.000000e+00> : vector<16x96xf32>
    %277 = tpu.matmul %276, %272, %cst_105 {dimension_numbers = #tpu.dot_dimension_numbers<[1], [0], [0], [1], [0, 0, 1, 1], [], []>} : vector<16x32xbf16>, vector<32x96xbf16>, vector<16x96xf32> -> vector<16x96xf32>
    %278 = vector.broadcast %273 : vector<1x96xf32> to vector<16x96xf32>
    %279 = arith.addf %277, %278 : vector<16x96xf32>
    %280 = arith.truncf %279 : vector<16x96xf32> to vector<16x96xbf16>
    %281 = vector.extract_strided_slice %280 {offsets = [0, 0], sizes = [16, 32], strides = [1, 1]} : vector<16x96xbf16> to vector<16x32xbf16>
    %282 = vector.shape_cast %281 : vector<16x32xbf16> to vector<2x8x4x8xbf16>
    %283 = tpu.transpose %282, [0, 2, 1, 3] : vector<2x8x4x8xbf16> -> vector<2x4x8x8xbf16>
    %284 = vector.shape_cast %283 : vector<2x4x8x8xbf16> to vector<8x8x8xbf16>
    %285 = vector.extract_strided_slice %280 {offsets = [0, 32], sizes = [16, 32], strides = [1, 1]} : vector<16x96xbf16> to vector<16x32xbf16>
    %286 = vector.shape_cast %285 : vector<16x32xbf16> to vector<2x8x4x8xbf16>
    %287 = tpu.transpose %286, [0, 2, 1, 3] : vector<2x8x4x8xbf16> -> vector<2x4x8x8xbf16>
    %288 = vector.shape_cast %287 : vector<2x4x8x8xbf16> to vector<8x8x8xbf16>
    %289 = vector.extract_strided_slice %280 {offsets = [0, 64], sizes = [16, 32], strides = [1, 1]} : vector<16x96xbf16> to vector<16x32xbf16>
    %290 = vector.shape_cast %289 : vector<16x32xbf16> to vector<2x8x4x8xbf16>
    %291 = tpu.transpose %290, [0, 2, 1, 3] : vector<2x8x4x8xbf16> -> vector<2x4x8x8xbf16>
    %292 = vector.shape_cast %291 : vector<2x4x8x8xbf16> to vector<8x8x8xbf16>
    "tpu.trace_start"() <{level = 10 : i32, message = "gqd,gkd->gqk"}> : () -> ()
    %cst_106 = arith.constant dense<0.000000e+00> : vector<8x8x8xf32>
    %293 = tpu.matmul %284, %288, %cst_106 {dimension_numbers = #tpu.dot_dimension_numbers<[2], [2], [1], [1], [0, 0, 0, 1, 1, 1], [0], [0]>} : vector<8x8x8xbf16>, vector<8x8x8xbf16>, vector<8x8x8xf32> -> vector<8x8x8xf32>
    "tpu.trace_stop"() : () -> ()
    %cst_107 = arith.constant dense<0xFF800000> : vector<8x8xf32>
    %294 = vector.multi_reduction <maximumf>, %293, %cst_107 [2] : vector<8x8x8xf32> to vector<8x8xf32>
    %295 = vector.shape_cast %294 : vector<8x8xf32> to vector<8x8x1xf32>
    %296 = vector.broadcast %295 : vector<8x8x1xf32> to vector<8x8x8xf32>
    %297 = arith.subf %293, %296 : vector<8x8x8xf32>
    %298 = math.exp %297 : vector<8x8x8xf32>
    %cst_108 = arith.constant dense<0.000000e+00> : vector<8x8xf32>
    %299 = vector.multi_reduction <add>, %298, %cst_108 [2] : vector<8x8x8xf32> to vector<8x8xf32>
    %300 = vector.shape_cast %299 : vector<8x8xf32> to vector<8x8x1xf32>
    %301 = tpu.reciprocal %300 {approx = true} : vector<8x8x1xf32> -> vector<8x8x1xf32>
    %302 = vector.broadcast %301 : vector<8x8x1xf32> to vector<8x8x8xf32>
    %303 = arith.mulf %298, %302 : vector<8x8x8xf32>
    %304 = arith.truncf %303 : vector<8x8x8xf32> to vector<8x8x8xbf16>
    "tpu.trace_start"() <{level = 10 : i32, message = "gqk,gkd->gqd"}> : () -> ()
    %cst_109 = arith.constant dense<0.000000e+00> : vector<8x8x8xf32>
    %305 = tpu.matmul %304, %292, %cst_109 {dimension_numbers = #tpu.dot_dimension_numbers<[2], [1], [1], [2], [0, 0, 0, 1, 1, 2], [0], [0]>} : vector<8x8x8xbf16>, vector<8x8x8xbf16>, vector<8x8x8xf32> -> vector<8x8x8xf32>
    "tpu.trace_stop"() : () -> ()
    %306 = vector.shape_cast %305 : vector<8x8x8xf32> to vector<2x4x8x8xf32>
    %307 = tpu.transpose %306, [0, 2, 1, 3] : vector<2x4x8x8xf32> -> vector<2x8x4x8xf32>
    %308 = vector.shape_cast %307 : vector<2x8x4x8xf32> to vector<16x32xf32>
    %309 = arith.truncf %308 : vector<16x32xf32> to vector<16x32xbf16>
    %cst_110 = arith.constant dense<0.000000e+00> : vector<16x32xf32>
    %310 = tpu.matmul %309, %274, %cst_110 {dimension_numbers = #tpu.dot_dimension_numbers<[1], [0], [0], [1], [0, 0, 1, 1], [], []>} : vector<16x32xbf16>, vector<32x32xbf16>, vector<16x32xf32> -> vector<16x32xf32>
    %311 = vector.broadcast %275 : vector<1x32xf32> to vector<16x32xf32>
    %312 = arith.addf %310, %311 : vector<16x32xf32>
    %c0_111 = arith.constant 0 : index
    %c2560 = arith.constant 2560 : index
    %313 = vector.load %arg5[%c0_111, %c2560] : memref<1x5632xf32, #tpu.memory_space<vmem>>, vector<1x32xf32>
    %c0_112 = arith.constant 0 : index
    %c2688 = arith.constant 2688 : index
    %314 = vector.load %arg5[%c0_112, %c2688] : memref<1x5632xf32, #tpu.memory_space<vmem>>, vector<1x32xf32>
    %315 = arith.addf %312, %271 : vector<16x32xf32>
    %cst_113 = arith.constant dense<0.000000e+00> : vector<16xf32>
    %316 = vector.multi_reduction <add>, %315, %cst_113 [1] : vector<16x32xf32> to vector<16xf32>
    %317 = vector.shape_cast %316 : vector<16xf32> to vector<16x1xf32>
    %cst_114 = arith.constant 3.200000e+01 : f32
    %318 = vector.broadcast %cst_114 : f32 to vector<16x1xf32>
    %319 = arith.divf %317, %318 : vector<16x1xf32>
    %320 = vector.broadcast %319 : vector<16x1xf32> to vector<16x32xf32>
    %321 = arith.subf %315, %320 : vector<16x32xf32>
    %322 = arith.mulf %321, %321 : vector<16x32xf32>
    %cst_115 = arith.constant dense<0.000000e+00> : vector<16xf32>
    %323 = vector.multi_reduction <add>, %322, %cst_115 [1] : vector<16x32xf32> to vector<16xf32>
    %324 = vector.shape_cast %323 : vector<16xf32> to vector<16x1xf32>
    %cst_116 = arith.constant 3.200000e+01 : f32
    %325 = vector.broadcast %cst_116 : f32 to vector<16x1xf32>
    %326 = arith.divf %324, %325 : vector<16x1xf32>
    %327 = vector.broadcast %319 : vector<16x1xf32> to vector<16x32xf32>
    %328 = arith.subf %315, %327 : vector<16x32xf32>
    %cst_117 = arith.constant 9.99999974E-6 : f32
    %329 = vector.broadcast %cst_117 : f32 to vector<16x1xf32>
    %330 = arith.addf %326, %329 : vector<16x1xf32>
    %331 = math.rsqrt %330 : vector<16x1xf32>
    %332 = vector.broadcast %331 : vector<16x1xf32> to vector<16x32xf32>
    %333 = arith.mulf %328, %332 : vector<16x32xf32>
    %334 = vector.broadcast %313 : vector<1x32xf32> to vector<16x32xf32>
    %335 = arith.mulf %334, %333 : vector<16x32xf32>
    %336 = vector.broadcast %314 : vector<1x32xf32> to vector<16x32xf32>
    %337 = arith.addf %335, %336 : vector<16x32xf32>
    %c0_118 = arith.constant 0 : index
    %c1280_119 = arith.constant 1280 : index
    %338 = vector.load %arg3[%c0_118, %c1280_119] : memref<32x2560xbf16, #tpu.memory_space<vmem>>, vector<32x64xbf16>
    %c0_120 = arith.constant 0 : index
    %c2816 = arith.constant 2816 : index
    %339 = vector.load %arg5[%c0_120, %c2816] : memref<1x5632xf32, #tpu.memory_space<vmem>>, vector<1x64xf32>
    %c0_121 = arith.constant 0 : index
    %c1408_122 = arith.constant 1408 : index
    %340 = vector.load %arg3[%c0_121, %c1408_122] : memref<32x2560xbf16, #tpu.memory_space<vmem>>, vector<32x32xbf16>
    %c0_123 = arith.constant 0 : index
    %c2944 = arith.constant 2944 : index
    %341 = vector.load %arg5[%c0_123, %c2944] : memref<1x5632xf32, #tpu.memory_space<vmem>>, vector<1x32xf32>
    %c0_124 = arith.constant 0 : index
    %c1536_125 = arith.constant 1536 : index
    %342 = vector.load %arg3[%c0_124, %c1536_125] : memref<32x2560xbf16, #tpu.memory_space<vmem>>, vector<32x32xbf16>
    %c0_126 = arith.constant 0 : index
    %c3072 = arith.constant 3072 : index
    %343 = vector.load %arg5[%c0_126, %c3072] : memref<1x5632xf32, #tpu.memory_space<vmem>>, vector<1x32xf32>
    %344 = arith.truncf %261 : vector<16x32xf32> to vector<16x32xbf16>
    %cst_127 = arith.constant dense<0.000000e+00> : vector<16x64xf32>
    %345 = tpu.matmul %344, %338, %cst_127 {dimension_numbers = #tpu.dot_dimension_numbers<[1], [0], [0], [1], [0, 0, 1, 1], [], []>} : vector<16x32xbf16>, vector<32x64xbf16>, vector<16x64xf32> -> vector<16x64xf32>
    %346 = vector.broadcast %339 : vector<1x64xf32> to vector<16x64xf32>
    %347 = arith.addf %345, %346 : vector<16x64xf32>
    %348 = arith.truncf %347 : vector<16x64xf32> to vector<16x64xbf16>
    %349 = arith.truncf %337 : vector<16x32xf32> to vector<16x32xbf16>
    %cst_128 = arith.constant dense<0.000000e+00> : vector<16x32xf32>
    %350 = tpu.matmul %349, %340, %cst_128 {dimension_numbers = #tpu.dot_dimension_numbers<[1], [0], [0], [1], [0, 0, 1, 1], [], []>} : vector<16x32xbf16>, vector<32x32xbf16>, vector<16x32xf32> -> vector<16x32xf32>
    %351 = vector.broadcast %341 : vector<1x32xf32> to vector<16x32xf32>
    %352 = arith.addf %350, %351 : vector<16x32xf32>
    %353 = arith.truncf %352 : vector<16x32xf32> to vector<16x32xbf16>
    %354 = vector.extract_strided_slice %348 {offsets = [0, 0], sizes = [16, 32], strides = [1, 1]} : vector<16x64xbf16> to vector<16x32xbf16>
    %355 = vector.shape_cast %354 : vector<16x32xbf16> to vector<2x8x4x8xbf16>
    %356 = tpu.transpose %355, [0, 2, 1, 3] : vector<2x8x4x8xbf16> -> vector<2x4x8x8xbf16>
    %357 = vector.shape_cast %356 : vector<2x4x8x8xbf16> to vector<8x8x8xbf16>
    %358 = vector.extract_strided_slice %348 {offsets = [0, 32], sizes = [16, 32], strides = [1, 1]} : vector<16x64xbf16> to vector<16x32xbf16>
    %359 = vector.shape_cast %358 : vector<16x32xbf16> to vector<2x8x4x8xbf16>
    %360 = tpu.transpose %359, [0, 2, 1, 3] : vector<2x8x4x8xbf16> -> vector<2x4x8x8xbf16>
    %361 = vector.shape_cast %360 : vector<2x4x8x8xbf16> to vector<8x8x8xbf16>
    %362 = vector.shape_cast %353 : vector<16x32xbf16> to vector<2x8x4x8xbf16>
    %363 = tpu.transpose %362, [0, 2, 1, 3] : vector<2x8x4x8xbf16> -> vector<2x4x8x8xbf16>
    %364 = vector.shape_cast %363 : vector<2x4x8x8xbf16> to vector<8x8x8xbf16>
    "tpu.trace_start"() <{level = 10 : i32, message = "gqd,gkd->gqk"}> : () -> ()
    %cst_129 = arith.constant dense<0.000000e+00> : vector<8x8x8xf32>
    %365 = tpu.matmul %364, %357, %cst_129 {dimension_numbers = #tpu.dot_dimension_numbers<[2], [2], [1], [1], [0, 0, 0, 1, 1, 1], [0], [0]>} : vector<8x8x8xbf16>, vector<8x8x8xbf16>, vector<8x8x8xf32> -> vector<8x8x8xf32>
    "tpu.trace_stop"() : () -> ()
    %cst_130 = arith.constant dense<0xFF800000> : vector<8x8xf32>
    %366 = vector.multi_reduction <maximumf>, %365, %cst_130 [2] : vector<8x8x8xf32> to vector<8x8xf32>
    %367 = vector.shape_cast %366 : vector<8x8xf32> to vector<8x8x1xf32>
    %368 = vector.broadcast %367 : vector<8x8x1xf32> to vector<8x8x8xf32>
    %369 = arith.subf %365, %368 : vector<8x8x8xf32>
    %370 = math.exp %369 : vector<8x8x8xf32>
    %cst_131 = arith.constant dense<0.000000e+00> : vector<8x8xf32>
    %371 = vector.multi_reduction <add>, %370, %cst_131 [2] : vector<8x8x8xf32> to vector<8x8xf32>
    %372 = vector.shape_cast %371 : vector<8x8xf32> to vector<8x8x1xf32>
    %373 = tpu.reciprocal %372 {approx = true} : vector<8x8x1xf32> -> vector<8x8x1xf32>
    %374 = vector.broadcast %373 : vector<8x8x1xf32> to vector<8x8x8xf32>
    %375 = arith.mulf %370, %374 : vector<8x8x8xf32>
    %376 = arith.truncf %375 : vector<8x8x8xf32> to vector<8x8x8xbf16>
    "tpu.trace_start"() <{level = 10 : i32, message = "gqk,gkd->gqd"}> : () -> ()
    %cst_132 = arith.constant dense<0.000000e+00> : vector<8x8x8xf32>
    %377 = tpu.matmul %376, %361, %cst_132 {dimension_numbers = #tpu.dot_dimension_numbers<[2], [1], [1], [2], [0, 0, 0, 1, 1, 2], [0], [0]>} : vector<8x8x8xbf16>, vector<8x8x8xbf16>, vector<8x8x8xf32> -> vector<8x8x8xf32>
    "tpu.trace_stop"() : () -> ()
    %378 = vector.shape_cast %377 : vector<8x8x8xf32> to vector<2x4x8x8xf32>
    %379 = tpu.transpose %378, [0, 2, 1, 3] : vector<2x4x8x8xf32> -> vector<2x8x4x8xf32>
    %380 = vector.shape_cast %379 : vector<2x8x4x8xf32> to vector<16x32xf32>
    %381 = arith.truncf %380 : vector<16x32xf32> to vector<16x32xbf16>
    %cst_133 = arith.constant dense<0.000000e+00> : vector<16x32xf32>
    %382 = tpu.matmul %381, %342, %cst_133 {dimension_numbers = #tpu.dot_dimension_numbers<[1], [0], [0], [1], [0, 0, 1, 1], [], []>} : vector<16x32xbf16>, vector<32x32xbf16>, vector<16x32xf32> -> vector<16x32xf32>
    %383 = vector.broadcast %343 : vector<1x32xf32> to vector<16x32xf32>
    %384 = arith.addf %382, %383 : vector<16x32xf32>
    %c0_134 = arith.constant 0 : index
    %c3200 = arith.constant 3200 : index
    %385 = vector.load %arg5[%c0_134, %c3200] : memref<1x5632xf32, #tpu.memory_space<vmem>>, vector<1x32xf32>
    %c0_135 = arith.constant 0 : index
    %c3328 = arith.constant 3328 : index
    %386 = vector.load %arg5[%c0_135, %c3328] : memref<1x5632xf32, #tpu.memory_space<vmem>>, vector<1x32xf32>
    %387 = arith.addf %384, %337 : vector<16x32xf32>
    %cst_136 = arith.constant dense<0.000000e+00> : vector<16xf32>
    %388 = vector.multi_reduction <add>, %387, %cst_136 [1] : vector<16x32xf32> to vector<16xf32>
    %389 = vector.shape_cast %388 : vector<16xf32> to vector<16x1xf32>
    %cst_137 = arith.constant 3.200000e+01 : f32
    %390 = vector.broadcast %cst_137 : f32 to vector<16x1xf32>
    %391 = arith.divf %389, %390 : vector<16x1xf32>
    %392 = vector.broadcast %391 : vector<16x1xf32> to vector<16x32xf32>
    %393 = arith.subf %387, %392 : vector<16x32xf32>
    %394 = arith.mulf %393, %393 : vector<16x32xf32>
    %cst_138 = arith.constant dense<0.000000e+00> : vector<16xf32>
    %395 = vector.multi_reduction <add>, %394, %cst_138 [1] : vector<16x32xf32> to vector<16xf32>
    %396 = vector.shape_cast %395 : vector<16xf32> to vector<16x1xf32>
    %cst_139 = arith.constant 3.200000e+01 : f32
    %397 = vector.broadcast %cst_139 : f32 to vector<16x1xf32>
    %398 = arith.divf %396, %397 : vector<16x1xf32>
    %399 = vector.broadcast %391 : vector<16x1xf32> to vector<16x32xf32>
    %400 = arith.subf %387, %399 : vector<16x32xf32>
    %cst_140 = arith.constant 9.99999974E-6 : f32
    %401 = vector.broadcast %cst_140 : f32 to vector<16x1xf32>
    %402 = arith.addf %398, %401 : vector<16x1xf32>
    %403 = math.rsqrt %402 : vector<16x1xf32>
    %404 = vector.broadcast %403 : vector<16x1xf32> to vector<16x32xf32>
    %405 = arith.mulf %400, %404 : vector<16x32xf32>
    %406 = vector.broadcast %385 : vector<1x32xf32> to vector<16x32xf32>
    %407 = arith.mulf %406, %405 : vector<16x32xf32>
    %408 = vector.broadcast %386 : vector<1x32xf32> to vector<16x32xf32>
    %409 = arith.addf %407, %408 : vector<16x32xf32>
    %c0_141 = arith.constant 0 : index
    %c1664_142 = arith.constant 1664 : index
    %410 = vector.load %arg3[%c0_141, %c1664_142] : memref<32x2560xbf16, #tpu.memory_space<vmem>>, vector<32x64xbf16>
    %c0_143 = arith.constant 0 : index
    %c3456 = arith.constant 3456 : index
    %411 = vector.load %arg5[%c0_143, %c3456] : memref<1x5632xf32, #tpu.memory_space<vmem>>, vector<1x64xf32>
    %c0_144 = arith.constant 0 : index
    %c384_145 = arith.constant 384 : index
    %412 = vector.load %arg4[%c0_144, %c384_145] : memref<64x640xbf16, #tpu.memory_space<vmem>>, vector<64x32xbf16>
    %c0_146 = arith.constant 0 : index
    %c3584 = arith.constant 3584 : index
    %413 = vector.load %arg5[%c0_146, %c3584] : memref<1x5632xf32, #tpu.memory_space<vmem>>, vector<1x32xf32>
    %414 = arith.truncf %409 : vector<16x32xf32> to vector<16x32xbf16>
    %cst_147 = arith.constant dense<0.000000e+00> : vector<16x64xf32>
    %415 = tpu.matmul %414, %410, %cst_147 {dimension_numbers = #tpu.dot_dimension_numbers<[1], [0], [0], [1], [0, 0, 1, 1], [], []>} : vector<16x32xbf16>, vector<32x64xbf16>, vector<16x64xf32> -> vector<16x64xf32>
    %416 = vector.broadcast %411 : vector<1x64xf32> to vector<16x64xf32>
    %417 = arith.addf %415, %416 : vector<16x64xf32>
    %cst_148 = arith.constant 0.000000e+00 : f32
    %418 = vector.broadcast %cst_148 : f32 to vector<16x64xf32>
    %419 = arith.maximumf %417, %418 : vector<16x64xf32>
    %420 = arith.truncf %419 : vector<16x64xf32> to vector<16x64xbf16>
    %cst_149 = arith.constant dense<0.000000e+00> : vector<16x32xf32>
    %421 = tpu.matmul %420, %412, %cst_149 {dimension_numbers = #tpu.dot_dimension_numbers<[1], [0], [0], [1], [0, 0, 1, 1], [], []>} : vector<16x64xbf16>, vector<64x32xbf16>, vector<16x32xf32> -> vector<16x32xf32>
    %422 = vector.broadcast %413 : vector<1x32xf32> to vector<16x32xf32>
    %423 = arith.addf %421, %422 : vector<16x32xf32>
    %c0_150 = arith.constant 0 : index
    %c3712 = arith.constant 3712 : index
    %424 = vector.load %arg5[%c0_150, %c3712] : memref<1x5632xf32, #tpu.memory_space<vmem>>, vector<1x32xf32>
    %c0_151 = arith.constant 0 : index
    %c3840 = arith.constant 3840 : index
    %425 = vector.load %arg5[%c0_151, %c3840] : memref<1x5632xf32, #tpu.memory_space<vmem>>, vector<1x32xf32>
    %426 = arith.addf %423, %409 : vector<16x32xf32>
    %cst_152 = arith.constant dense<0.000000e+00> : vector<16xf32>
    %427 = vector.multi_reduction <add>, %426, %cst_152 [1] : vector<16x32xf32> to vector<16xf32>
    %428 = vector.shape_cast %427 : vector<16xf32> to vector<16x1xf32>
    %cst_153 = arith.constant 3.200000e+01 : f32
    %429 = vector.broadcast %cst_153 : f32 to vector<16x1xf32>
    %430 = arith.divf %428, %429 : vector<16x1xf32>
    %431 = vector.broadcast %430 : vector<16x1xf32> to vector<16x32xf32>
    %432 = arith.subf %426, %431 : vector<16x32xf32>
    %433 = arith.mulf %432, %432 : vector<16x32xf32>
    %cst_154 = arith.constant dense<0.000000e+00> : vector<16xf32>
    %434 = vector.multi_reduction <add>, %433, %cst_154 [1] : vector<16x32xf32> to vector<16xf32>
    %435 = vector.shape_cast %434 : vector<16xf32> to vector<16x1xf32>
    %cst_155 = arith.constant 3.200000e+01 : f32
    %436 = vector.broadcast %cst_155 : f32 to vector<16x1xf32>
    %437 = arith.divf %435, %436 : vector<16x1xf32>
    %438 = vector.broadcast %430 : vector<16x1xf32> to vector<16x32xf32>
    %439 = arith.subf %426, %438 : vector<16x32xf32>
    %cst_156 = arith.constant 9.99999974E-6 : f32
    %440 = vector.broadcast %cst_156 : f32 to vector<16x1xf32>
    %441 = arith.addf %437, %440 : vector<16x1xf32>
    %442 = math.rsqrt %441 : vector<16x1xf32>
    %443 = vector.broadcast %442 : vector<16x1xf32> to vector<16x32xf32>
    %444 = arith.mulf %439, %443 : vector<16x32xf32>
    %445 = vector.broadcast %424 : vector<1x32xf32> to vector<16x32xf32>
    %446 = arith.mulf %445, %444 : vector<16x32xf32>
    %447 = vector.broadcast %425 : vector<1x32xf32> to vector<16x32xf32>
    %448 = arith.addf %446, %447 : vector<16x32xf32>
    %c0_157 = arith.constant 0 : index
    %c1792_158 = arith.constant 1792 : index
    %449 = vector.load %arg3[%c0_157, %c1792_158] : memref<32x2560xbf16, #tpu.memory_space<vmem>>, vector<32x96xbf16>
    %c0_159 = arith.constant 0 : index
    %c3968 = arith.constant 3968 : index
    %450 = vector.load %arg5[%c0_159, %c3968] : memref<1x5632xf32, #tpu.memory_space<vmem>>, vector<1x96xf32>
    %c0_160 = arith.constant 0 : index
    %c1920_161 = arith.constant 1920 : index
    %451 = vector.load %arg3[%c0_160, %c1920_161] : memref<32x2560xbf16, #tpu.memory_space<vmem>>, vector<32x32xbf16>
    %c0_162 = arith.constant 0 : index
    %c4096 = arith.constant 4096 : index
    %452 = vector.load %arg5[%c0_162, %c4096] : memref<1x5632xf32, #tpu.memory_space<vmem>>, vector<1x32xf32>
    %453 = arith.truncf %448 : vector<16x32xf32> to vector<16x32xbf16>
    %cst_163 = arith.constant dense<0.000000e+00> : vector<16x96xf32>
    %454 = tpu.matmul %453, %449, %cst_163 {dimension_numbers = #tpu.dot_dimension_numbers<[1], [0], [0], [1], [0, 0, 1, 1], [], []>} : vector<16x32xbf16>, vector<32x96xbf16>, vector<16x96xf32> -> vector<16x96xf32>
    %455 = vector.broadcast %450 : vector<1x96xf32> to vector<16x96xf32>
    %456 = arith.addf %454, %455 : vector<16x96xf32>
    %457 = arith.truncf %456 : vector<16x96xf32> to vector<16x96xbf16>
    %458 = vector.extract_strided_slice %457 {offsets = [0, 0], sizes = [16, 32], strides = [1, 1]} : vector<16x96xbf16> to vector<16x32xbf16>
    %459 = vector.shape_cast %458 : vector<16x32xbf16> to vector<2x8x4x8xbf16>
    %460 = tpu.transpose %459, [0, 2, 1, 3] : vector<2x8x4x8xbf16> -> vector<2x4x8x8xbf16>
    %461 = vector.shape_cast %460 : vector<2x4x8x8xbf16> to vector<8x8x8xbf16>
    %462 = vector.extract_strided_slice %457 {offsets = [0, 32], sizes = [16, 32], strides = [1, 1]} : vector<16x96xbf16> to vector<16x32xbf16>
    %463 = vector.shape_cast %462 : vector<16x32xbf16> to vector<2x8x4x8xbf16>
    %464 = tpu.transpose %463, [0, 2, 1, 3] : vector<2x8x4x8xbf16> -> vector<2x4x8x8xbf16>
    %465 = vector.shape_cast %464 : vector<2x4x8x8xbf16> to vector<8x8x8xbf16>
    %466 = vector.extract_strided_slice %457 {offsets = [0, 64], sizes = [16, 32], strides = [1, 1]} : vector<16x96xbf16> to vector<16x32xbf16>
    %467 = vector.shape_cast %466 : vector<16x32xbf16> to vector<2x8x4x8xbf16>
    %468 = tpu.transpose %467, [0, 2, 1, 3] : vector<2x8x4x8xbf16> -> vector<2x4x8x8xbf16>
    %469 = vector.shape_cast %468 : vector<2x4x8x8xbf16> to vector<8x8x8xbf16>
    "tpu.trace_start"() <{level = 10 : i32, message = "gqd,gkd->gqk"}> : () -> ()
    %cst_164 = arith.constant dense<0.000000e+00> : vector<8x8x8xf32>
    %470 = tpu.matmul %461, %465, %cst_164 {dimension_numbers = #tpu.dot_dimension_numbers<[2], [2], [1], [1], [0, 0, 0, 1, 1, 1], [0], [0]>} : vector<8x8x8xbf16>, vector<8x8x8xbf16>, vector<8x8x8xf32> -> vector<8x8x8xf32>
    "tpu.trace_stop"() : () -> ()
    %cst_165 = arith.constant dense<0xFF800000> : vector<8x8xf32>
    %471 = vector.multi_reduction <maximumf>, %470, %cst_165 [2] : vector<8x8x8xf32> to vector<8x8xf32>
    %472 = vector.shape_cast %471 : vector<8x8xf32> to vector<8x8x1xf32>
    %473 = vector.broadcast %472 : vector<8x8x1xf32> to vector<8x8x8xf32>
    %474 = arith.subf %470, %473 : vector<8x8x8xf32>
    %475 = math.exp %474 : vector<8x8x8xf32>
    %cst_166 = arith.constant dense<0.000000e+00> : vector<8x8xf32>
    %476 = vector.multi_reduction <add>, %475, %cst_166 [2] : vector<8x8x8xf32> to vector<8x8xf32>
    %477 = vector.shape_cast %476 : vector<8x8xf32> to vector<8x8x1xf32>
    %478 = tpu.reciprocal %477 {approx = true} : vector<8x8x1xf32> -> vector<8x8x1xf32>
    %479 = vector.broadcast %478 : vector<8x8x1xf32> to vector<8x8x8xf32>
    %480 = arith.mulf %475, %479 : vector<8x8x8xf32>
    %481 = arith.truncf %480 : vector<8x8x8xf32> to vector<8x8x8xbf16>
    "tpu.trace_start"() <{level = 10 : i32, message = "gqk,gkd->gqd"}> : () -> ()
    %cst_167 = arith.constant dense<0.000000e+00> : vector<8x8x8xf32>
    %482 = tpu.matmul %481, %469, %cst_167 {dimension_numbers = #tpu.dot_dimension_numbers<[2], [1], [1], [2], [0, 0, 0, 1, 1, 2], [0], [0]>} : vector<8x8x8xbf16>, vector<8x8x8xbf16>, vector<8x8x8xf32> -> vector<8x8x8xf32>
    "tpu.trace_stop"() : () -> ()
    %483 = vector.shape_cast %482 : vector<8x8x8xf32> to vector<2x4x8x8xf32>
    %484 = tpu.transpose %483, [0, 2, 1, 3] : vector<2x4x8x8xf32> -> vector<2x8x4x8xf32>
    %485 = vector.shape_cast %484 : vector<2x8x4x8xf32> to vector<16x32xf32>
    %486 = arith.truncf %485 : vector<16x32xf32> to vector<16x32xbf16>
    %cst_168 = arith.constant dense<0.000000e+00> : vector<16x32xf32>
    %487 = tpu.matmul %486, %451, %cst_168 {dimension_numbers = #tpu.dot_dimension_numbers<[1], [0], [0], [1], [0, 0, 1, 1], [], []>} : vector<16x32xbf16>, vector<32x32xbf16>, vector<16x32xf32> -> vector<16x32xf32>
    %488 = vector.broadcast %452 : vector<1x32xf32> to vector<16x32xf32>
    %489 = arith.addf %487, %488 : vector<16x32xf32>
    %c0_169 = arith.constant 0 : index
    %c4224 = arith.constant 4224 : index
    %490 = vector.load %arg5[%c0_169, %c4224] : memref<1x5632xf32, #tpu.memory_space<vmem>>, vector<1x32xf32>
    %c0_170 = arith.constant 0 : index
    %c4352 = arith.constant 4352 : index
    %491 = vector.load %arg5[%c0_170, %c4352] : memref<1x5632xf32, #tpu.memory_space<vmem>>, vector<1x32xf32>
    %492 = arith.addf %489, %448 : vector<16x32xf32>
    %cst_171 = arith.constant dense<0.000000e+00> : vector<16xf32>
    %493 = vector.multi_reduction <add>, %492, %cst_171 [1] : vector<16x32xf32> to vector<16xf32>
    %494 = vector.shape_cast %493 : vector<16xf32> to vector<16x1xf32>
    %cst_172 = arith.constant 3.200000e+01 : f32
    %495 = vector.broadcast %cst_172 : f32 to vector<16x1xf32>
    %496 = arith.divf %494, %495 : vector<16x1xf32>
    %497 = vector.broadcast %496 : vector<16x1xf32> to vector<16x32xf32>
    %498 = arith.subf %492, %497 : vector<16x32xf32>
    %499 = arith.mulf %498, %498 : vector<16x32xf32>
    %cst_173 = arith.constant dense<0.000000e+00> : vector<16xf32>
    %500 = vector.multi_reduction <add>, %499, %cst_173 [1] : vector<16x32xf32> to vector<16xf32>
    %501 = vector.shape_cast %500 : vector<16xf32> to vector<16x1xf32>
    %cst_174 = arith.constant 3.200000e+01 : f32
    %502 = vector.broadcast %cst_174 : f32 to vector<16x1xf32>
    %503 = arith.divf %501, %502 : vector<16x1xf32>
    %504 = vector.broadcast %496 : vector<16x1xf32> to vector<16x32xf32>
    %505 = arith.subf %492, %504 : vector<16x32xf32>
    %cst_175 = arith.constant 9.99999974E-6 : f32
    %506 = vector.broadcast %cst_175 : f32 to vector<16x1xf32>
    %507 = arith.addf %503, %506 : vector<16x1xf32>
    %508 = math.rsqrt %507 : vector<16x1xf32>
    %509 = vector.broadcast %508 : vector<16x1xf32> to vector<16x32xf32>
    %510 = arith.mulf %505, %509 : vector<16x32xf32>
    %511 = vector.broadcast %490 : vector<1x32xf32> to vector<16x32xf32>
    %512 = arith.mulf %511, %510 : vector<16x32xf32>
    %513 = vector.broadcast %491 : vector<1x32xf32> to vector<16x32xf32>
    %514 = arith.addf %512, %513 : vector<16x32xf32>
    %c0_176 = arith.constant 0 : index
    %c2048_177 = arith.constant 2048 : index
    %515 = vector.load %arg3[%c0_176, %c2048_177] : memref<32x2560xbf16, #tpu.memory_space<vmem>>, vector<32x64xbf16>
    %c0_178 = arith.constant 0 : index
    %c4480 = arith.constant 4480 : index
    %516 = vector.load %arg5[%c0_178, %c4480] : memref<1x5632xf32, #tpu.memory_space<vmem>>, vector<1x64xf32>
    %c0_179 = arith.constant 0 : index
    %c2176_180 = arith.constant 2176 : index
    %517 = vector.load %arg3[%c0_179, %c2176_180] : memref<32x2560xbf16, #tpu.memory_space<vmem>>, vector<32x32xbf16>
    %c0_181 = arith.constant 0 : index
    %c4608 = arith.constant 4608 : index
    %518 = vector.load %arg5[%c0_181, %c4608] : memref<1x5632xf32, #tpu.memory_space<vmem>>, vector<1x32xf32>
    %c0_182 = arith.constant 0 : index
    %c2304_183 = arith.constant 2304 : index
    %519 = vector.load %arg3[%c0_182, %c2304_183] : memref<32x2560xbf16, #tpu.memory_space<vmem>>, vector<32x32xbf16>
    %c0_184 = arith.constant 0 : index
    %c4736 = arith.constant 4736 : index
    %520 = vector.load %arg5[%c0_184, %c4736] : memref<1x5632xf32, #tpu.memory_space<vmem>>, vector<1x32xf32>
    %521 = arith.truncf %261 : vector<16x32xf32> to vector<16x32xbf16>
    %cst_185 = arith.constant dense<0.000000e+00> : vector<16x64xf32>
    %522 = tpu.matmul %521, %515, %cst_185 {dimension_numbers = #tpu.dot_dimension_numbers<[1], [0], [0], [1], [0, 0, 1, 1], [], []>} : vector<16x32xbf16>, vector<32x64xbf16>, vector<16x64xf32> -> vector<16x64xf32>
    %523 = vector.broadcast %516 : vector<1x64xf32> to vector<16x64xf32>
    %524 = arith.addf %522, %523 : vector<16x64xf32>
    %525 = arith.truncf %524 : vector<16x64xf32> to vector<16x64xbf16>
    %526 = arith.truncf %514 : vector<16x32xf32> to vector<16x32xbf16>
    %cst_186 = arith.constant dense<0.000000e+00> : vector<16x32xf32>
    %527 = tpu.matmul %526, %517, %cst_186 {dimension_numbers = #tpu.dot_dimension_numbers<[1], [0], [0], [1], [0, 0, 1, 1], [], []>} : vector<16x32xbf16>, vector<32x32xbf16>, vector<16x32xf32> -> vector<16x32xf32>
    %528 = vector.broadcast %518 : vector<1x32xf32> to vector<16x32xf32>
    %529 = arith.addf %527, %528 : vector<16x32xf32>
    %530 = arith.truncf %529 : vector<16x32xf32> to vector<16x32xbf16>
    %531 = vector.extract_strided_slice %525 {offsets = [0, 0], sizes = [16, 32], strides = [1, 1]} : vector<16x64xbf16> to vector<16x32xbf16>
    %532 = vector.shape_cast %531 : vector<16x32xbf16> to vector<2x8x4x8xbf16>
    %533 = tpu.transpose %532, [0, 2, 1, 3] : vector<2x8x4x8xbf16> -> vector<2x4x8x8xbf16>
    %534 = vector.shape_cast %533 : vector<2x4x8x8xbf16> to vector<8x8x8xbf16>
    %535 = vector.extract_strided_slice %525 {offsets = [0, 32], sizes = [16, 32], strides = [1, 1]} : vector<16x64xbf16> to vector<16x32xbf16>
    %536 = vector.shape_cast %535 : vector<16x32xbf16> to vector<2x8x4x8xbf16>
    %537 = tpu.transpose %536, [0, 2, 1, 3] : vector<2x8x4x8xbf16> -> vector<2x4x8x8xbf16>
    %538 = vector.shape_cast %537 : vector<2x4x8x8xbf16> to vector<8x8x8xbf16>
    %539 = vector.shape_cast %530 : vector<16x32xbf16> to vector<2x8x4x8xbf16>
    %540 = tpu.transpose %539, [0, 2, 1, 3] : vector<2x8x4x8xbf16> -> vector<2x4x8x8xbf16>
    %541 = vector.shape_cast %540 : vector<2x4x8x8xbf16> to vector<8x8x8xbf16>
    "tpu.trace_start"() <{level = 10 : i32, message = "gqd,gkd->gqk"}> : () -> ()
    %cst_187 = arith.constant dense<0.000000e+00> : vector<8x8x8xf32>
    %542 = tpu.matmul %541, %534, %cst_187 {dimension_numbers = #tpu.dot_dimension_numbers<[2], [2], [1], [1], [0, 0, 0, 1, 1, 1], [0], [0]>} : vector<8x8x8xbf16>, vector<8x8x8xbf16>, vector<8x8x8xf32> -> vector<8x8x8xf32>
    "tpu.trace_stop"() : () -> ()
    %cst_188 = arith.constant dense<0xFF800000> : vector<8x8xf32>
    %543 = vector.multi_reduction <maximumf>, %542, %cst_188 [2] : vector<8x8x8xf32> to vector<8x8xf32>
    %544 = vector.shape_cast %543 : vector<8x8xf32> to vector<8x8x1xf32>
    %545 = vector.broadcast %544 : vector<8x8x1xf32> to vector<8x8x8xf32>
    %546 = arith.subf %542, %545 : vector<8x8x8xf32>
    %547 = math.exp %546 : vector<8x8x8xf32>
    %cst_189 = arith.constant dense<0.000000e+00> : vector<8x8xf32>
    %548 = vector.multi_reduction <add>, %547, %cst_189 [2] : vector<8x8x8xf32> to vector<8x8xf32>
    %549 = vector.shape_cast %548 : vector<8x8xf32> to vector<8x8x1xf32>
    %550 = tpu.reciprocal %549 {approx = true} : vector<8x8x1xf32> -> vector<8x8x1xf32>
    %551 = vector.broadcast %550 : vector<8x8x1xf32> to vector<8x8x8xf32>
    %552 = arith.mulf %547, %551 : vector<8x8x8xf32>
    %553 = arith.truncf %552 : vector<8x8x8xf32> to vector<8x8x8xbf16>
    "tpu.trace_start"() <{level = 10 : i32, message = "gqk,gkd->gqd"}> : () -> ()
    %cst_190 = arith.constant dense<0.000000e+00> : vector<8x8x8xf32>
    %554 = tpu.matmul %553, %538, %cst_190 {dimension_numbers = #tpu.dot_dimension_numbers<[2], [1], [1], [2], [0, 0, 0, 1, 1, 2], [0], [0]>} : vector<8x8x8xbf16>, vector<8x8x8xbf16>, vector<8x8x8xf32> -> vector<8x8x8xf32>
    "tpu.trace_stop"() : () -> ()
    %555 = vector.shape_cast %554 : vector<8x8x8xf32> to vector<2x4x8x8xf32>
    %556 = tpu.transpose %555, [0, 2, 1, 3] : vector<2x4x8x8xf32> -> vector<2x8x4x8xf32>
    %557 = vector.shape_cast %556 : vector<2x8x4x8xf32> to vector<16x32xf32>
    %558 = arith.truncf %557 : vector<16x32xf32> to vector<16x32xbf16>
    %cst_191 = arith.constant dense<0.000000e+00> : vector<16x32xf32>
    %559 = tpu.matmul %558, %519, %cst_191 {dimension_numbers = #tpu.dot_dimension_numbers<[1], [0], [0], [1], [0, 0, 1, 1], [], []>} : vector<16x32xbf16>, vector<32x32xbf16>, vector<16x32xf32> -> vector<16x32xf32>
    %560 = vector.broadcast %520 : vector<1x32xf32> to vector<16x32xf32>
    %561 = arith.addf %559, %560 : vector<16x32xf32>
    %c0_192 = arith.constant 0 : index
    %c4864 = arith.constant 4864 : index
    %562 = vector.load %arg5[%c0_192, %c4864] : memref<1x5632xf32, #tpu.memory_space<vmem>>, vector<1x32xf32>
    %c0_193 = arith.constant 0 : index
    %c4992 = arith.constant 4992 : index
    %563 = vector.load %arg5[%c0_193, %c4992] : memref<1x5632xf32, #tpu.memory_space<vmem>>, vector<1x32xf32>
    %564 = arith.addf %561, %514 : vector<16x32xf32>
    %cst_194 = arith.constant dense<0.000000e+00> : vector<16xf32>
    %565 = vector.multi_reduction <add>, %564, %cst_194 [1] : vector<16x32xf32> to vector<16xf32>
    %566 = vector.shape_cast %565 : vector<16xf32> to vector<16x1xf32>
    %cst_195 = arith.constant 3.200000e+01 : f32
    %567 = vector.broadcast %cst_195 : f32 to vector<16x1xf32>
    %568 = arith.divf %566, %567 : vector<16x1xf32>
    %569 = vector.broadcast %568 : vector<16x1xf32> to vector<16x32xf32>
    %570 = arith.subf %564, %569 : vector<16x32xf32>
    %571 = arith.mulf %570, %570 : vector<16x32xf32>
    %cst_196 = arith.constant dense<0.000000e+00> : vector<16xf32>
    %572 = vector.multi_reduction <add>, %571, %cst_196 [1] : vector<16x32xf32> to vector<16xf32>
    %573 = vector.shape_cast %572 : vector<16xf32> to vector<16x1xf32>
    %cst_197 = arith.constant 3.200000e+01 : f32
    %574 = vector.broadcast %cst_197 : f32 to vector<16x1xf32>
    %575 = arith.divf %573, %574 : vector<16x1xf32>
    %576 = vector.broadcast %568 : vector<16x1xf32> to vector<16x32xf32>
    %577 = arith.subf %564, %576 : vector<16x32xf32>
    %cst_198 = arith.constant 9.99999974E-6 : f32
    %578 = vector.broadcast %cst_198 : f32 to vector<16x1xf32>
    %579 = arith.addf %575, %578 : vector<16x1xf32>
    %580 = math.rsqrt %579 : vector<16x1xf32>
    %581 = vector.broadcast %580 : vector<16x1xf32> to vector<16x32xf32>
    %582 = arith.mulf %577, %581 : vector<16x32xf32>
    %583 = vector.broadcast %562 : vector<1x32xf32> to vector<16x32xf32>
    %584 = arith.mulf %583, %582 : vector<16x32xf32>
    %585 = vector.broadcast %563 : vector<1x32xf32> to vector<16x32xf32>
    %586 = arith.addf %584, %585 : vector<16x32xf32>
    %c0_199 = arith.constant 0 : index
    %c2432_200 = arith.constant 2432 : index
    %587 = vector.load %arg3[%c0_199, %c2432_200] : memref<32x2560xbf16, #tpu.memory_space<vmem>>, vector<32x64xbf16>
    %c0_201 = arith.constant 0 : index
    %c5120 = arith.constant 5120 : index
    %588 = vector.load %arg5[%c0_201, %c5120] : memref<1x5632xf32, #tpu.memory_space<vmem>>, vector<1x64xf32>
    %c0_202 = arith.constant 0 : index
    %c512_203 = arith.constant 512 : index
    %589 = vector.load %arg4[%c0_202, %c512_203] : memref<64x640xbf16, #tpu.memory_space<vmem>>, vector<64x32xbf16>
    %c0_204 = arith.constant 0 : index
    %c5248 = arith.constant 5248 : index
    %590 = vector.load %arg5[%c0_204, %c5248] : memref<1x5632xf32, #tpu.memory_space<vmem>>, vector<1x32xf32>
    %591 = arith.truncf %586 : vector<16x32xf32> to vector<16x32xbf16>
    %cst_205 = arith.constant dense<0.000000e+00> : vector<16x64xf32>
    %592 = tpu.matmul %591, %587, %cst_205 {dimension_numbers = #tpu.dot_dimension_numbers<[1], [0], [0], [1], [0, 0, 1, 1], [], []>} : vector<16x32xbf16>, vector<32x64xbf16>, vector<16x64xf32> -> vector<16x64xf32>
    %593 = vector.broadcast %588 : vector<1x64xf32> to vector<16x64xf32>
    %594 = arith.addf %592, %593 : vector<16x64xf32>
    %cst_206 = arith.constant 0.000000e+00 : f32
    %595 = vector.broadcast %cst_206 : f32 to vector<16x64xf32>
    %596 = arith.maximumf %594, %595 : vector<16x64xf32>
    %597 = arith.truncf %596 : vector<16x64xf32> to vector<16x64xbf16>
    %cst_207 = arith.constant dense<0.000000e+00> : vector<16x32xf32>
    %598 = tpu.matmul %597, %589, %cst_207 {dimension_numbers = #tpu.dot_dimension_numbers<[1], [0], [0], [1], [0, 0, 1, 1], [], []>} : vector<16x64xbf16>, vector<64x32xbf16>, vector<16x32xf32> -> vector<16x32xf32>
    %599 = vector.broadcast %590 : vector<1x32xf32> to vector<16x32xf32>
    %600 = arith.addf %598, %599 : vector<16x32xf32>
    %c0_208 = arith.constant 0 : index
    %c5376 = arith.constant 5376 : index
    %601 = vector.load %arg5[%c0_208, %c5376] : memref<1x5632xf32, #tpu.memory_space<vmem>>, vector<1x32xf32>
    %c0_209 = arith.constant 0 : index
    %c5504 = arith.constant 5504 : index
    %602 = vector.load %arg5[%c0_209, %c5504] : memref<1x5632xf32, #tpu.memory_space<vmem>>, vector<1x32xf32>
    %603 = arith.addf %600, %586 : vector<16x32xf32>
    %cst_210 = arith.constant dense<0.000000e+00> : vector<16xf32>
    %604 = vector.multi_reduction <add>, %603, %cst_210 [1] : vector<16x32xf32> to vector<16xf32>
    %605 = vector.shape_cast %604 : vector<16xf32> to vector<16x1xf32>
    %cst_211 = arith.constant 3.200000e+01 : f32
    %606 = vector.broadcast %cst_211 : f32 to vector<16x1xf32>
    %607 = arith.divf %605, %606 : vector<16x1xf32>
    %608 = vector.broadcast %607 : vector<16x1xf32> to vector<16x32xf32>
    %609 = arith.subf %603, %608 : vector<16x32xf32>
    %610 = arith.mulf %609, %609 : vector<16x32xf32>
    %cst_212 = arith.constant dense<0.000000e+00> : vector<16xf32>
    %611 = vector.multi_reduction <add>, %610, %cst_212 [1] : vector<16x32xf32> to vector<16xf32>
    %612 = vector.shape_cast %611 : vector<16xf32> to vector<16x1xf32>
    %cst_213 = arith.constant 3.200000e+01 : f32
    %613 = vector.broadcast %cst_213 : f32 to vector<16x1xf32>
    %614 = arith.divf %612, %613 : vector<16x1xf32>
    %615 = vector.broadcast %607 : vector<16x1xf32> to vector<16x32xf32>
    %616 = arith.subf %603, %615 : vector<16x32xf32>
    %cst_214 = arith.constant 9.99999974E-6 : f32
    %617 = vector.broadcast %cst_214 : f32 to vector<16x1xf32>
    %618 = arith.addf %614, %617 : vector<16x1xf32>
    %619 = math.rsqrt %618 : vector<16x1xf32>
    %620 = vector.broadcast %619 : vector<16x1xf32> to vector<16x32xf32>
    %621 = arith.mulf %616, %620 : vector<16x32xf32>
    %622 = vector.broadcast %601 : vector<1x32xf32> to vector<16x32xf32>
    %623 = arith.mulf %622, %621 : vector<16x32xf32>
    %624 = vector.broadcast %602 : vector<1x32xf32> to vector<16x32xf32>
    %625 = arith.addf %623, %624 : vector<16x32xf32>
    %c0_215 = arith.constant 0 : index
    %c128_216 = arith.constant 128 : index
    %626 = vector.load %arg3[%c0_215, %c128_216] : memref<32x2560xbf16, #tpu.memory_space<vmem>>, vector<32x128xbf16>
    %627 = arith.truncf %625 : vector<16x32xf32> to vector<16x32xbf16>
    %cst_217 = arith.constant dense<0.000000e+00> : vector<16x128xf32>
    %628 = tpu.matmul %627, %626, %cst_217 {dimension_numbers = #tpu.dot_dimension_numbers<[1], [0], [0], [1], [0, 0, 1, 1], [], []>} : vector<16x32xbf16>, vector<32x128xbf16>, vector<16x128xf32> -> vector<16x128xf32>
    %c0_218 = arith.constant 0 : index
    %c128_219 = arith.constant 128 : index
    %629 = vector.load %arg5[%c0_218, %c128_219] : memref<1x5632xf32, #tpu.memory_space<vmem>>, vector<1x128xf32>
    %630 = vector.broadcast %629 : vector<1x128xf32> to vector<16x128xf32>
    %631 = arith.addf %628, %630 : vector<16x128xf32>
    %c0_220 = arith.constant 0 : index
    %c0_221 = arith.constant 0 : index
    %632 = vector.load %arg7[%c0_220, %c0_221] : memref<16x128xf32, #tpu.memory_space<vmem>>, vector<16x128xf32>
    tpu.vector_store %arg7[%c0_220, %c0_221], %631 {strides = array<i32>} : memref<16x128xf32, #tpu.memory_space<vmem>>, vector<16x128xf32>,
    return
  }
}

</mosaic_0001>

<bundles_post_ra>
// kernel: forward.1
= control target key start
LH: loop header
LB: loop body
LE: loop exit
PB: predicated region body
PF: predicated region fallthrough
CT: control target
= control target key end

     0   :  { %12 = vsyncpa [#allocation3], 0  ;;  %s18767_s0 = inlined_call_operand.vmem [shape: f32[16,16], index: 0, kind: input, shape index: {}]   ;;  %s18768_s1 = inlined_call_operand.vmem [shape: s32[16,1], index: 1, kind: input, shape index: {}]   ;;  %s18769_s2 = inlined_call_operand.vmem [shape: bf16[16,32], index: 2, kind: input, shape index: {}]   ;;  %s18770_s3 = inlined_call_operand.hbm [shape: bf16[32,2560], index: 3, kind: input, shape index: {}]   ;;  %s18771_s4 = inlined_call_operand.hbm [shape: bf16[64,640], index: 4, kind: input, shape index: {}]   ;;  %s18772_s5 = inlined_call_operand.hbm [shape: f32[1,5632], index: 5, kind: input, shape index: {}]   ;;  %s18773_s6 = inlined_call_operand.hbm [shape: f32[16,32], index: 6, kind: input, shape index: {}]   ;;  %s18774_s7 = inlined_call_operand.vmem [shape: f32[16,128], index: 7, kind: output, shape index: {}]  }
   0x1   :  { %13 = vsyncpa [#allocation5], 0 }
   0x2   :  { %14 = vsyncpa [#allocation8], 0  ;;  %s16220_s24 = smov [#allocation4]  }
   0x3   :  { %s38_s25 = sshll.u32 %s16220_s24, 4  ;;  %s39_s25 = int_to_ptr.vmem [resolvable:$true] %s38_s25 }
   0x4   :  { %s16142_s26 = scalar_lea.vmem %s39_s25, 2560  ;;  %p16147_p1 = scmp.lt.s32.totalorder %s39_s25, %s39_s25 }
   0x5   :  { %p16143_p0 = scmp.ne.s32.totalorder %s39_s25, %s16142_s26  ;;  %p16148_p2 = scmp.lt.s32.totalorder %s16142_s26, %s16142_s26 }
   0x7   :  { %p16149_p3 = por %p16148_p2, %p16147_p1 }
   0x9   :  { %p16150_p4 = pnand %p16149_p3, %p16143_p0 }
   0xb   :  { %16153 = shalt.err (!%p16150_p4)
}
   0xc   :  { %s16221_s27 = smov 320   ;;  %s16222_s28 = smov 20  }
   0xd   :  { %44 = dma.hbm_to_vmem [thread:$0]  %s18771_s4, 2560, %s39_s25, [#allocation5], %s16221_s27, %s16221_s27, %s16222_s28  }
   0xe   :  { %s16223_s8 = smov [#allocation2]  }
   0xf   :  { %s26_s9 = sshll.u32 %s16223_s8, 4  ;;  %s27_s9 = int_to_ptr.vmem [resolvable:$true] %s26_s9 }
  0x10   :  { %s16162_s10 = scalar_lea.vmem %s27_s9, 5120  ;;  %p16167_p6 = scmp.lt.s32.totalorder %s27_s9, %s27_s9 }
  0x11   :  { %p16163_p5 = scmp.ne.s32.totalorder %s27_s9, %s16162_s10  ;;  %p16168_p7 = scmp.lt.s32.totalorder %s16162_s10, %s16162_s10 }
  0x13   :  { %p16169_p8 = por %p16168_p7, %p16167_p6 }
  0x15   :  { %p16170_p9 = pnand %p16169_p8, %p16163_p5 }
  0x17   :  { %16173 = shalt.err (!%p16170_p9)
}
  0x18   :  { %s16224_s11 = smov 1280   ;;  %s16225_s12 = smov 80  }
  0x19   :  { %32 = dma.hbm_to_vmem [thread:$0]  %s18770_s3, 5120, %s27_s9, [#allocation3], %s16224_s11, %s16224_s11, %s16225_s12  }
  0x1a   :  { %s16226_s15 = smov [#allocation6]   ;;  %s16227_s17 = smov [#allocation7]  }
  0x1b   :  { %s51_s16 = sshll.u32 %s16226_s15, 4  ;;  %s60_s4 = sshll.u32 %s16227_s17, 4  ;;  %s52_s16 = int_to_ptr.vmem [resolvable:$true] %s51_s16  ;;  %s61_s4 = int_to_ptr.vmem [resolvable:$true] %s60_s4 }
  0x1c   :  { %s16182_s18 = scalar_lea.vmem %s52_s16, 704  ;;  %p16187_p11 = scmp.lt.s32.totalorder %s52_s16, %s52_s16 }
  0x1d   :  { %p16183_p10 = scmp.ne.s32.totalorder %s52_s16, %s16182_s18  ;;  %p16188_p12 = scmp.lt.s32.totalorder %s16182_s18, %s16182_s18 }
  0x1f   :  { %p16189_p13 = por %p16188_p12, %p16187_p11 }
  0x21   :  { %p16190_p0 = pnand %p16189_p13, %p16183_p10 }
  0x23   :  { %16193 = shalt.err (!%p16190_p0)
}
  0x24   :  { %54 = dma.hbm_to_vmem [thread:$0]  %s18772_s5, 704, %s52_s16, [#allocation5]  }
  0x25   :  { %s16202_s21 = scalar_lea.vmem %s61_s4, 256  ;;  %p16207_p2 = scmp.lt.s32.totalorder %s61_s4, %s61_s4 }
  0x26   :  { %p16203_p1 = scmp.ne.s32.totalorder %s61_s4, %s16202_s21  ;;  %p16208_p3 = scmp.lt.s32.totalorder %s16202_s21, %s16202_s21 }
  0x28   :  { %p16209_p4 = por %p16208_p3, %p16207_p2 }
  0x2a   :  { %p16210_p5 = pnand %p16209_p4, %p16203_p1 }
  0x2c   :  { %16213 = shalt.err (!%p16210_p5)
}
  0x2d   :  { %s16228_s3 = smov 128   ;;  %s16229_s22 = smov 8  }
  0x2e   :  { %66 = dma.hbm_to_vmem [thread:$0]  %s18773_s6, 256, %s61_s4, [#allocation8], %s16228_s3, %s16228_s3, %s16229_s22  }
  0x2f   :  { %16214 = dma.done.wait [#allocation3], 5120  }
  0x30   :  { %16215 = vsyncadd [#allocation3], 4294962176 }
  0x31   :  { %16216 = dma.done.wait [#allocation5], 3264  }
  0x32   :  { %16217 = vsyncadd [#allocation5], 4294964032 }
  0x33   :  { %16218 = dma.done.wait [#allocation8], 256  }
  0x34   :  { %16219 = vsyncadd [#allocation8], 4294967040  ;;  %v16230_v0 = vmov 0.0   ;;  %vm16231_vm0 = vmmov 0   ;;  %v15831_v1 = vld [vmem:[%s18769_s2] sm:$0xff]   ;;  %v83_v3 = vld [vmem:[%s18767_s0 + $0x8] sm:$0xff] }
  0x35   :  { %14914 = vmatprep.subr.bf16.mxu0 %v16230_v0  ;;  %14916 = vmatprep.mubr.msk.bf16.mxu0 %vm16231_vm0, %v16230_v0  ;;  %v82_v2 = vld [vmem:[%s18767_s0] sm:$0xff]  ;;  %vm93_vm1 = vcmask 130048   ;;  %v16232_v49 = vmov -1.0   ;;  %vm214_vm4 = vcmask 261120   ;;  %v15834_v63 = vld [vmem:[#allocation2 + $0xa8] ss:$80 sps:$4 sm:$0xff]  }
  0x36   :  { %14920 = vmatprep.subr.bf16.mxu1 %v16230_v0  ;;  %14924 = vmatprep.mubr.msk.bf16.mxu1 %vm16231_vm0, %v16230_v0  ;;  %v86_v4 = vpack.c.bf16 %v83_v3, %v82_v2  ;;  %v15832_v5 = vld [vmem:[#allocation2 + $0xa0] ss:$80 sps:$4 sm:$0xff]   ;;  %s16234_s0 = smov 104   ;;  %s16235_s2 = smov 120   ;;  %vm1180_vm5 = vcmask 64512   ;;  %vm1648_vm6 = vcmask 1043456  }
  0x37   :  { %14915 = vmatpush3.bf16.msra.mxu0 %v15831_v1  ;;  %14921 = vmatpush3.bf16.msra.mxu1 %v15832_v5  ;;  %v15833_v6 = vld [vmem:[#allocation2] ss:$80 sps:$4 sm:$0xff]   ;;  %v15835_v1 = vld [vmem:[#allocation2 + $0x8] ss:$80 sps:$4 sm:$0xff]   ;;  %s16236_s29 = smov 96   ;;  %s16237_s30 = smov 112  }
  0x38   :  { %14928 = vmatprep.subr.bf16.mxu0 %v16230_v0  ;;  %14922 = vmatprep.subr.bf16.mxu1 %v16230_v0  ;;  %v14312_v2 = vld [vmem:[#allocation6] ss:$0 sm:$0xff]  ;;  %s16240_s8 = smov 64   ;;  %s16241_s9 = smov 16   ;;  %vm2314_vm7 = vcmask 195584   ;;  %vm2537_vm8 = vcmask 523264  }
  0x39   :  { %s16242_s10 = smov 24  }
  0x3a   :  { %14917 = vmatmul.mubr.msk.bf16.vlgmr.msra.gmra.mxu0 %vm93_vm1, %v86_v4 }
  0x3b   :  { %14932 = vmatprep.mubr.msk.bf16.mxu0 %vm16231_vm0, %v16230_v0  ;;  %14923 = vmatpush3.bf16.msra.mxu1 %v15833_v6  ;;  %v80_v6 = vld [vmem:[#allocation7] sm:$0xff] }
  0x3c   :  { %14936 = vmatprep.subr.bf16.mxu1 %v16230_v0  ;;  %14929 = vmatpush3.bf16.msra.mxu0 %v15834_v63 }
  0x3d   :  { %14930 = vmatprep.subr.bf16.mxu0 %v16230_v0 }
  0x40   :  { %14931 = vmatpush3.bf16.msra.mxu0 %v15835_v1 }
  0x41   :  { %14942 = vmatprep.subr.bf16.mxu0 %v16230_v0 }
  0xfa   :  { %v131_v7 = vpop.f32.mrf.mxu0 }
  0xfb   :  { %v140_v8 = vmul.f32 0.70710677, %v131_v7  ;;  %v138_v57 = vmul.f32 0.5, %v131_v7  ;;  %v81_v7 = vld [vmem:[#allocation7 + $0x8] sm:$0xff] }
  0xfc   :  { %v14918_v9 = vpop.f32.mrf.mxu0 }
  0xfd   :  { %v146_v10 = vand.u32 2147483647, %v140_v8  ;;  %vm142_vm2 = vcmp.ge.f32.partialorder %v140_v8, 0.0 }
  0xfe   :  { %v134_v11 = vpop.f32.mrf.mxu0  ;;  %v144_v50 = vsel %vm142_vm2, 1.0, %v16232_v49 }
  0xff   :  { %v148_v12 = vmul.f32 0.3275911, %v146_v10  ;;  %v141_v13 = vmul.f32 0.70710677, %v134_v11  ;;  %v172_v19 = vsub.f32 0.0, %v146_v10  ;;  %v139_v58 = vmul.f32 0.5, %v134_v11 }
 0x100   :  { %v14919_v14 = vpop.f32.mrf.mxu0 }
 0x101   :  { %v150_v15 = vadd.f32 1.0, %v148_v12  ;;  %v147_v16 = vand.u32 2147483647, %v141_v13  ;;  %v174_v20 = vmul.f32 %v172_v19, %v146_v10  ;;  %vm143_vm3 = vcmp.ge.f32.partialorder %v141_v13, 0.0 }
 0x102   :  { %v145_v54 = vsel %vm143_vm3, 1.0, %v16232_v49  ;;  %v16233_v14 = vmov 0  }
 0x103   :  { %15892 = vrcp.f32 %v150_v15  ;;  %v149_v17 = vmul.f32 0.3275911, %v147_v16  ;;  %v173_v21 = vsub.f32 0.0, %v147_v16  ;;  %v176_v24 = vmul.f32 1.442695, %v174_v20  ;;  %15770 = vset.pattern.permute.xlu0 %v16233_v14  ;;  %15769 = vset.pattern.permute.xlu1 %v16233_v14 }
 0x105   :  { %v151_v18 = vadd.f32 1.0, %v149_v17  ;;  %v175_v25 = vmul.f32 %v173_v21, %v147_v16  ;;  %v14316_v16 = vld [vmem:[#allocation6 + $0x2] ss:$0 sm:$0xff] }
 0x107   :  { %15894 = vrcp.f32 %v151_v18  ;;  %v178_v30 = vmul.f32 1.442695, %v175_v25 }
 0x108   :  { %15896 = vpow2.f32 %v176_v24 }
 0x109   :  { %15898 = vpow2.f32 %v178_v30 }
 0x110   :  { %v15893_v22 = vpop.eup %15892 }
 0x111   :  { %v154_v23 = vmul.f32 1.0614054, %v15893_v22 }
 0x113   :  { %v156_v26 = vadd.f32 -1.4531521, %v154_v23 }
 0x114   :  { %v15895_v27 = vpop.eup %15894 }
 0x115   :  { %v158_v28 = vmul.f32 %v15893_v22, %v156_v26  ;;  %v155_v29 = vmul.f32 1.0614054, %v15895_v27  ;;  %v15897_v43 = vpop.eup %15896  ;;  %v16238_v26 = vmov 1983009808  }
 0x116   :  { %v15899_v48 = vpop.eup %15898 }
 0x117   :  { %v160_v31 = vadd.f32 1.4214138, %v158_v28  ;;  %v157_v32 = vadd.f32 -1.4531521, %v155_v29  ;;  %v368_v28 = vlaneseq }
 0x119   :  { %v162_v33 = vmul.f32 %v15893_v22, %v160_v31  ;;  %v159_v34 = vmul.f32 %v15895_v27, %v157_v32  ;;  %v369_v31 = vshrl.u32 %v368_v28, 7 }
 0x11b   :  { %v164_v35 = vadd.f32 -0.28449672, %v162_v33  ;;  %v161_v36 = vadd.f32 1.4214138, %v159_v34  ;;  %v16239_v34 = vmov 1934713408  }
 0x11d   :  { %v166_v37 = vmul.f32 %v15893_v22, %v164_v35  ;;  %v163_v38 = vmul.f32 %v15895_v27, %v161_v36  ;;  %v397_v35 = vunpack.c.l.s4 %v16239_v34 }
 0x11f   :  { %v168_v39 = vadd.f32 0.2548296, %v166_v37  ;;  %v165_v40 = vadd.f32 -0.28449672, %v163_v38 }
 0x121   :  { %v170_v41 = vmul.f32 %v15893_v22, %v168_v39  ;;  %v167_v42 = vmul.f32 %v15895_v27, %v165_v40 }
 0x123   :  { %v180_v44 = vmul.f32 %v15897_v43, %v170_v41  ;;  %v169_v45 = vadd.f32 0.2548296, %v167_v42  ;;  %v398_v42 = vunpack.c.0.s8 %v397_v35 }
 0x125   :  { %v182_v46 = vsub.f32 1.0, %v180_v44  ;;  %v171_v47 = vmul.f32 %v15895_v27, %v169_v45  ;;  %v366_v27 = vunpack.c.l.s4 %v16238_v26 }
 0x127   :  { %v184_v51 = vmul.f32 %v182_v46, %v144_v50  ;;  %v181_v52 = vmul.f32 %v15899_v48, %v171_v47  ;;  %v367_v30 = vunpack.c.0.s8 %v366_v27  ;;  %v16381_v50 = vpack.i.b16 %v16233_v14, %v16233_v14 }
 0x129   :  { %v183_v53 = vsub.f32 1.0, %v181_v52  ;;  %v186_v55 = vadd.f32 1.0, %v184_v51  ;;  %v16364_v39 = vsub.s32 %v367_v30, %v369_v31  ;;  %v16383_v52 = vsub.s32 %v398_v42, %v369_v31 }
 0x12b   :  { %v185_v56 = vmul.f32 %v183_v53, %v145_v54  ;;  %v188_v60 = vmul.f32 %v186_v55, %v138_v57 }
 0x12d   :  { %v187_v59 = vadd.f32 1.0, %v185_v56 }
 0x12f   :  { %v189_v61 = vmul.f32 %v187_v59, %v139_v58 }
 0x131   :  { %v194_v62 = vpack.c.bf16 %v189_v61, %v188_v60 }
 0x133   :  { %14925 = vmatmul.mubr.msk.bf16.vlgmr.msra.gmra.mxu1 %vm214_vm4, %v194_v62 }
 0x134   :  { %14938 = vmatprep.mubr.msk.bf16.mxu1 %vm16231_vm0, %v16230_v0 }
 0x1f3   :  { %v252_v3 = vpop.f32.mrf.mxu1 }
 0x1f4   :  { %v253_v5 = vadd.f32 %v14312_v2, %v252_v3 }
 0x1f5   :  { %v14926_v4 = vpop.f32.mrf.mxu1 }
 0x1f6   :  { %v16322_v11 = vadd.f32 %v253_v5, %v80_v6 }
 0x1f7   :  { %v255_v8 = vpop.f32.mrf.mxu1 }
 0x1f8   :  { %v256_v9 = vadd.f32 %v14312_v2, %v255_v8 }
 0x1f9   :  { %v14927_v10 = vpop.f32.mrf.mxu1 }
 0x1fa   :  { %v16324_v12 = vadd.f32 %v256_v9, %v81_v7 }
 0x1fc   :  { %v271_v13 = vpack.c.bf16 %v16324_v12, %v16322_v11 }
 0x1fe   :  { %14933 = vmatmul.mubr.msk.bf16.vlgmr.msra.gmra.mxu0 %vm214_vm4, %v271_v13 }
 0x1ff   :  { %14944 = vmatprep.mubr.msk.bf16.mxu0 %vm16231_vm0, %v16230_v0 }
 0x2be   :  { %v327_v15 = vpop.f32.mrf.mxu0 }
 0x2bf   :  { %v328_v19 = vadd.f32 %v14316_v16, %v327_v15 }
 0x2c0   :  { %v14934_v17 = vpop.f32.mrf.mxu0 }
 0x2c2   :  { %v330_v18 = vpop.f32.mrf.mxu0 }
 0x2c3   :  { %v331_v20 = vadd.f32 %v14316_v16, %v330_v18 }
 0x2c4   :  { %v14935_v21 = vpop.f32.mrf.mxu0 }
 0x2c5   :  { %v16333_v22 = vpack.c.bf16 %v331_v20, %v328_v19 }
 0x2c7   :  { %340 = vrot.lane.b32.xlu1 %v16333_v22, %s16234_s0  ;;  %336 = vrot.lane.b32.xlu0 %v16333_v22, %s16235_s2  ;;  %v346_v37 = vshrl.u32 %v16333_v22, 16 }
 0x2cb   :  { %620 = vrot.lane.b32.xlu1 %v16333_v22, %s16236_s29  ;;  %338 = vrot.lane.b32.xlu0 %v16333_v22, %s16237_s30 }
 0x339   :  { %v16343_v23 = vpop.permute.xlu0 %336  ;;  %v16347_v24 = vpop.permute.xlu1 %340 }
 0x33a   :  { %622 = vrot.lane.b32.xlu0 %v16343_v23, %s16236_s29  ;;  %v355_v32 = vshrl.u32 %v16347_v24, 16  ;;  %v347_v33 = vshrl.u32 %v16343_v23, 16  ;;  %v16368_v40 = vpack.i.b16 %v16343_v23, %v16333_v22 }
 0x33c   :  { %v16370_v41 = vpack.i.b16 %v347_v33, %v346_v37  ;;  %v371_v46 = vrot.slane %v16368_v40, %v16364_v39  ;;  %v364_v63 = vcombine.high %v16368_v40, %v16381_v50 }
 0x33d   :  { %v16349_v25 = vpop.permute.xlu0 %338  ;;  %v621_v44 = vpop.permute.xlu1 %620 }
 0x33e   :  { %626 = vrot.lane.b32.xlu0 %v16347_v24, %s16236_s29  ;;  %624 = vrot.lane.b32.xlu1 %v16349_v25, %s16236_s29  ;;  %v354_v29 = vshrl.u32 %v16349_v25, 16  ;;  %v16361_v36 = vpack.i.b16 %v16347_v24, %v16349_v25  ;;  %v437_v48 = vrot.slane %v16370_v41, %v16364_v39  ;;  %v632_v51 = vshrl.u32 %v621_v44, 16 }
 0x33f   :  { %v430_v15 = vcombine.high %v16370_v41, %v16381_v50 }
 0x340   :  { %v356_v38 = vpack.i.b16 %v355_v32, %v354_v29  ;;  %v386_v43 = vrot.slane %v16361_v36, %v16364_v39  ;;  %v379_v16 = vcombine.high %v16361_v36, %v16381_v50 }
 0x342   :  { %v452_v45 = vrot.slane %v356_v38, %v16364_v39  ;;  %v394_v53 = vcombine.low %v371_v46, %v386_v43  ;;  %v395_v54 = vcombine.high %v371_v46, %v386_v43  ;;  %v445_v60 = vcombine.high %v356_v38, %v16381_v50 }
 0x344   :  { %v460_v55 = vcombine.low %v437_v48, %v452_v45  ;;  %v461_v56 = vcombine.high %v437_v48, %v452_v45  ;;  %v402_v1 = vrot.slane %v394_v53, %v16383_v52  ;;  %v409_v4 = vrot.slane %v395_v54, %v16383_v52 }
 0x345   :  { %v16401_v17 = vrot.slane %v445_v60, %v16364_v39 }
 0x346   :  { %v468_v5 = vrot.slane %v460_v55, %v16383_v52  ;;  %v475_v6 = vrot.slane %v461_v56, %v16383_v52  ;;  %v496_v27 = vcombine.low %v402_v1, %v409_v4 }
 0x348   :  { %v521_v29 = vcombine.low %v468_v5, %v475_v6  ;;  %v14321_v32 = vcombine.high %v468_v5, %v475_v6  ;;  %v503_v5 = vrot.slane %v496_v27, %v16364_v39 }
 0x34a   :  { %v528_v54 = vrot.slane %v521_v29, %v16364_v39 }
 0x3ac   :  { %v623_v47 = vpop.permute.xlu0 %622 }
 0x3ad   :  { %v633_v49 = vshrl.u32 %v623_v47, 16  ;;  %v630_v57 = vpack.i.b16 %v623_v47, %v621_v44 }
 0x3af   :  { %v634_v61 = vpack.i.b16 %v633_v49, %v632_v51  ;;  %v644_v7 = vcombine.high %v630_v57, %v16381_v50  ;;  %v651_v8 = vrot.slane %v630_v57, %v16364_v39  ;;  %v14320_v49 = vcombine.high %v402_v1, %v409_v4 }
 0x3b0   :  { %v625_v58 = vpop.permute.xlu1 %624  ;;  %v627_v59 = vpop.permute.xlu0 %626  ;;  %v444_v1 = vrot.slane %v430_v15, %v16364_v39 }
 0x3b1   :  { %v640_v62 = vshrl.u32 %v625_v58, 16  ;;  %v638_v2 = vpack.i.b16 %v627_v59, %v625_v58  ;;  %v641_v3 = vshrl.u32 %v627_v59, 16  ;;  %v710_v18 = vcombine.high %v634_v61, %v16381_v50 }
 0x3b2   :  { %v717_v30 = vrot.slane %v634_v61, %v16364_v39  ;;  %v658_v33 = vrot.slane %v644_v7, %v16364_v39  ;;  %v511_v6 = vrot.slane %v14320_v49, %v16364_v39  ;;  %v477_v15 = vcombine.high %v444_v1, %v16401_v17 }
 0x3b3   :  { %v642_v9 = vpack.i.b16 %v641_v3, %v640_v62  ;;  %v659_v10 = vcombine.high %v638_v2, %v16381_v50  ;;  %v666_v13 = vrot.slane %v638_v2, %v16364_v39  ;;  %v724_v36 = vrot.slane %v710_v18, %v16364_v39 }
 0x3b4   :  { %v536_v62 = vrot.slane %v14321_v32, %v16364_v39  ;;  %v393_v2 = vrot.slane %v379_v16, %v16364_v39  ;;  %v476_v18 = vcombine.low %v444_v1, %v16401_v17  ;;  %v512_v29 = vcombine.low %v503_v5, %v511_v6 }
 0x3b5   :  { %v673_v19 = vrot.slane %v659_v10, %v16364_v39  ;;  %v674_v20 = vcombine.low %v651_v8, %v666_v13  ;;  %v675_v21 = vcombine.high %v651_v8, %v666_v13  ;;  %v725_v26 = vcombine.high %v642_v9, %v16381_v50 }
 0x3b6   :  { %v732_v31 = vrot.slane %v642_v9, %v16364_v39  ;;  %v378_v9 = vrot.slane %v364_v63, %v16364_v39  ;;  %v484_v17 = vrot.slane %v476_v18, %v16383_v52 }
 0x3b7   :  { %v682_v34 = vrot.slane %v674_v20, %v16383_v52  ;;  %v689_v35 = vrot.slane %v675_v21, %v16383_v52  ;;  %v739_v37 = vrot.slane %v725_v26, %v16364_v39  ;;  %v690_v41 = vcombine.low %v658_v33, %v673_v19 }
 0x3b8   :  { %v740_v38 = vcombine.low %v717_v30, %v732_v31  ;;  %v741_v40 = vcombine.high %v717_v30, %v732_v31  ;;  %v691_v42 = vcombine.high %v658_v33, %v673_v19  ;;  %v537_v19 = vcombine.low %v528_v54, %v536_v62 }
 0x3b9   :  { %v776_v43 = vcombine.low %v682_v34, %v689_v35  ;;  %v14324_v44 = vcombine.high %v682_v34, %v689_v35  ;;  %v756_v47 = vcombine.low %v724_v36, %v739_v37  ;;  %v757_v48 = vcombine.high %v724_v36, %v739_v37 }
 0x3ba   :  { %v748_v45 = vrot.slane %v740_v38, %v16383_v52  ;;  %v755_v46 = vrot.slane %v741_v40, %v16383_v52  ;;  %v698_v59 = vrot.slane %v690_v41, %v16383_v52  ;;  %v705_v60 = vrot.slane %v691_v42, %v16383_v52 }
 0x3bb   :  { %v783_v51 = vrot.slane %v776_v43, %v16364_v39  ;;  %v791_v53 = vrot.slane %v14324_v44, %v16364_v39  ;;  %v764_v55 = vrot.slane %v756_v47, %v16383_v52  ;;  %v771_v56 = vrot.slane %v757_v48, %v16383_v52 }
 0x3bc   :  { %v801_v57 = vcombine.low %v748_v45, %v755_v46  ;;  %v14325_v58 = vcombine.high %v748_v45, %v755_v46  ;;  %v826_v16 = vcombine.low %v698_v59, %v705_v60  ;;  %v410_v20 = vcombine.low %v378_v9, %v393_v2 }
 0x3bd   :  { %v792_v61 = vcombine.low %v783_v51, %v791_v53  ;;  %v851_v7 = vcombine.low %v764_v55, %v771_v56  ;;  %v14327_v8 = vcombine.high %v764_v55, %v771_v56  ;;  %v411_v21 = vcombine.high %v378_v9, %v393_v2 }
 0x3be   :  { %v808_v3 = vrot.slane %v801_v57, %v16364_v39  ;;  %v816_v4 = vrot.slane %v14325_v58, %v16364_v39  ;;  %v14326_v26 = vcombine.high %v698_v59, %v705_v60  ;;  %v491_v35 = vrot.slane %v477_v15, %v16383_v52 }
 0x3bf   :  { %v799_v10 = vrot.slane %v792_v61, %v16383_v52  ;;  %v858_v30 = vrot.slane %v851_v7, %v16364_v39  ;;  %v866_v63 = vrot.slane %v14327_v8, %v16364_v39  ;;  %v544_v36 = vrot.slane %v537_v19, %v16383_v52 }
 0x3c0   :  { %v817_v13 = vcombine.low %v808_v3, %v816_v4  ;;  %v833_v37 = vrot.slane %v826_v16, %v16364_v39  ;;  %v841_v42 = vrot.slane %v14326_v26, %v16364_v39  ;;  %v418_v43 = vrot.slane %v410_v20, %v16383_v52 }
 0x3c1   :  { %v879_v32 = vshrl.u32 %v799_v10, 16  ;;  %v800_v41 = vcombine.high %v799_v10, %v16233_v14  ;;  %v425_v44 = vrot.slane %v411_v21, %v16383_v52  ;;  %v519_v46 = vrot.slane %v512_v29, %v16383_v52 }
 0x3c2   :  { %v824_v27 = vrot.slane %v817_v13, %v16383_v52  ;;  %v867_v48 = vcombine.low %v858_v30, %v866_v63  ;;  %v571_v49 = vcombine.low %v484_v17, %v491_v35  ;;  %v14323_v51 = vcombine.high %v484_v17, %v491_v35 }
 0x3c3   :  { %v600_v54 = vshrl.u32 %v544_v36, 16  ;;  %v885_v55 = vshrl.u32 %v800_v41, 16  ;;  %v842_v56 = vcombine.low %v833_v37, %v841_v42  ;;  %v546_v57 = vcombine.low %v418_v43, %v425_v44 }
 0x3c4   :  { %v878_v31 = vpack.i.b16 %v824_v27, %v799_v10  ;;  %v880_v33 = vshrl.u32 %v824_v27, 16  ;;  %v825_v34 = vcombine.high %v824_v27, %v16233_v14  ;;  %v14322_v58 = vcombine.high %v418_v43, %v425_v44 }
 0x3c5   :  { %v598_v59 = vpack.i.b16 %v544_v36, %v519_v46  ;;  %v599_v60 = vshrl.u32 %v519_v46, 16  ;;  %v874_v62 = vrot.slane %v867_v48, %v16383_v52  ;;  %v578_v1 = vrot.slane %v571_v49, %v16364_v39 }
 0x3c6   :  { %v1185_v38 = vsel %vm1180_vm5, %v878_v31, 0  ;;  %v881_v40 = vpack.i.b16 %v880_v33, %v879_v32  ;;  %v886_v47 = vshrl.u32 %v825_v34, 16  ;;  %v884_v53 = vpack.i.b16 %v825_v34, %v800_v41 }
 0x3c7   :  { %14937 = vmatpush3.bf16.xpose.msra.mxu1 %v1185_v38  ;;  %v586_v2 = vrot.slane %v14323_v51, %v16364_v39  ;;  %v601_v4 = vpack.i.b16 %v600_v54, %v599_v60  ;;  %v545_v5 = vcombine.high %v544_v36, %v16233_v14  ;;  %v849_v6 = vrot.slane %v842_v56, %v16383_v52 }
 0x3c8   :  { %v1231_v45 = vsel %vm1180_vm5, %v881_v40, 0  ;;  %14948 = vmatprep.subr.bf16.mxu1 %v16230_v0  ;;  %v887_v61 = vpack.i.b16 %v886_v47, %v885_v55  ;;  %v1277_v3 = vsel %vm1180_vm5, %v884_v53, 0  ;;  %v553_v7 = vrot.slane %v546_v57, %v16364_v39 }
 0x3c9   :  { %14943 = vmatpush3.bf16.xpose.msra.mxu0 %v1231_v45  ;;  %v561_v8 = vrot.slane %v14322_v58, %v16364_v39  ;;  %v520_v10 = vcombine.high %v519_v46, %v16233_v14  ;;  %v892_v13 = vshrl.u32 %v874_v62, 16  ;;  %v890_v18 = vpack.i.b16 %v874_v62, %v849_v6 }
 0x3ca   :  { %14954 = vmatprep.subr.bf16.mxu0 %v16230_v0  ;;  %v1323_v9 = vsel %vm1180_vm5, %v887_v61, 0  ;;  %v606_v15 = vshrl.u32 %v545_v5, 16  ;;  %v891_v16 = vshrl.u32 %v849_v6, 16  ;;  %v587_v19 = vcombine.low %v578_v1, %v586_v2 }
 0x3cb   :  { %v562_v20 = vcombine.low %v553_v7, %v561_v8  ;;  %v604_v21 = vpack.i.b16 %v545_v5, %v520_v10  ;;  %v605_v26 = vshrl.u32 %v520_v10, 16  ;;  %v875_v29 = vcombine.high %v874_v62, %v16233_v14 }
 0x3cc   :  { %v893_v27 = vpack.i.b16 %v892_v13, %v891_v16  ;;  %v1369_v30 = vsel %vm1180_vm5, %v890_v18, 0  ;;  %v594_v31 = vrot.slane %v587_v19, %v16383_v52  ;;  %v850_v32 = vcombine.high %v849_v6, %v16233_v14 }
 0x3cd   :  { %v607_v63 = vpack.i.b16 %v606_v15, %v605_v26  ;;  %v569_v34 = vrot.slane %v562_v20, %v16383_v52  ;;  %v898_v17 = vshrl.u32 %v875_v29, 16 }
 0x3ce   :  { %14939 = vmatmul.mubr.msk.bf16.vlgmr.msra.gmra.mxu1 %vm1180_vm5, %v598_v59  ;;  %v1415_v33 = vsel %vm1180_vm5, %v893_v27, 0  ;;  %v896_v35 = vpack.i.b16 %v875_v29, %v850_v32  ;;  %v612_v36 = vshrl.u32 %v594_v31, 16  ;;  %v897_v37 = vshrl.u32 %v850_v32, 16 }
 0x3cf   :  { %14949 = vmatpush3.bf16.xpose.msra.mxu1 %v1277_v3  ;;  %14950 = vmatprep.mubr.msk.bf16.mxu1 %vm16231_vm0, %v16230_v0  ;;  %v610_v38 = vpack.i.b16 %v594_v31, %v569_v34  ;;  %v611_v40 = vshrl.u32 %v569_v34, 16  ;;  %v595_v44 = vcombine.high %v594_v31, %v16233_v14  ;;  %v570_v46 = vcombine.high %v569_v34, %v16233_v14 }
 0x3d0   :  { %14945 = vmatmul.mubr.msk.bf16.vlgmr.msra.gmra.mxu0 %vm1180_vm5, %v601_v4  ;;  %14960 = vmatprep.subr.bf16.mxu1 %v16230_v0  ;;  %v899_v41 = vpack.i.b16 %v898_v17, %v897_v37  ;;  %v1461_v42 = vsel %vm1180_vm5, %v896_v35, 0 }
 0x3d1   :  { %14955 = vmatpush3.bf16.xpose.msra.mxu0 %v1323_v9  ;;  %14956 = vmatprep.mubr.msk.bf16.mxu0 %vm16231_vm0, %v16230_v0  ;;  %v613_v43 = vpack.i.b16 %v612_v36, %v611_v40  ;;  %v618_v47 = vshrl.u32 %v595_v44, 16  ;;  %v616_v48 = vpack.i.b16 %v595_v44, %v570_v46  ;;  %v617_v49 = vshrl.u32 %v570_v46, 16 }
 0x3d2   :  { %14966 = vmatprep.subr.bf16.mxu0 %v16230_v0  ;;  %v1507_v45 = vsel %vm1180_vm5, %v899_v41, 0 }
 0x3d3   :  { %v619_v51 = vpack.i.b16 %v618_v47, %v617_v49 }
 0x3d6   :  { %14951 = vmatmul.mubr.msk.bf16.vlgmr.msra.gmra.mxu1 %vm1180_vm5, %v604_v21 }
 0x3d7   :  { %14961 = vmatpush3.bf16.xpose.msra.mxu1 %v1369_v30  ;;  %14962 = vmatprep.mubr.msk.bf16.mxu1 %vm16231_vm0, %v16230_v0 }
 0x3d8   :  { %14957 = vmatmul.mubr.msk.bf16.vlgmr.msra.gmra.mxu0 %vm1180_vm5, %v607_v63  ;;  %14972 = vmatprep.subr.bf16.mxu1 %v16230_v0 }
 0x3d9   :  { %14967 = vmatpush3.bf16.xpose.msra.mxu0 %v1415_v33  ;;  %14968 = vmatprep.mubr.msk.bf16.mxu0 %vm16231_vm0, %v16230_v0 }
 0x3da   :  { %14978 = vmatprep.subr.bf16.mxu0 %v16230_v0 }
 0x3de   :  { %14963 = vmatmul.mubr.msk.bf16.vlgmr.msra.gmra.mxu1 %vm1180_vm5, %v610_v38 }
 0x3df   :  { %14973 = vmatpush3.bf16.xpose.msra.mxu1 %v1461_v42  ;;  %14974 = vmatprep.mubr.msk.bf16.mxu1 %vm16231_vm0, %v16230_v0 }
 0x3e0   :  { %14969 = vmatmul.mubr.msk.bf16.vlgmr.msra.gmra.mxu0 %vm1180_vm5, %v613_v43  ;;  %14984 = vmatprep.subr.bf16.mxu1 %v16230_v0 }
 0x3e1   :  { %14979 = vmatpush3.bf16.xpose.msra.mxu0 %v1507_v45  ;;  %14980 = vmatprep.mubr.msk.bf16.mxu0 %vm16231_vm0, %v16230_v0 }
 0x3e2   :  { %14990 = vmatprep.subr.bf16.mxu0 %v16230_v0 }
 0x3e6   :  { %14975 = vmatmul.mubr.msk.bf16.vlgmr.msra.gmra.mxu1 %vm1180_vm5, %v616_v48 }
 0x3e7   :  { %14986 = vmatprep.mubr.msk.bf16.mxu1 %vm16231_vm0, %v16230_v0 }
 0x3e8   :  { %14981 = vmatmul.mubr.msk.bf16.vlgmr.msra.gmra.mxu0 %vm1180_vm5, %v619_v51 }
 0x3e9   :  { %14992 = vmatprep.mubr.msk.bf16.mxu0 %vm16231_vm0, %v16230_v0 }
 0x48e   :  { %v1221_v53 = vpop.f32.mrf.mxu1 }
 0x48f   :  { %v1549_v54 = vsel %vm1180_vm5, %v1221_v53, -inf }
 0x490   :  { %1550 = vmax.xlane.f32.xlu1 %v1549_v54  ;;  %v14940_v55 = vpop.f32.mrf.mxu1  ;;  %v1267_v56 = vpop.f32.mrf.mxu0 }
 0x491   :  { %v1552_v57 = vsel %vm1180_vm5, %v1267_v56, -inf }
 0x492   :  { %v1224_v58 = vpop.f32.mrf.mxu1  ;;  %1553 = vmax.xlane.f32.xlu0 %v1552_v57  ;;  %v14946_v59 = vpop.f32.mrf.mxu0 }
 0x494   :  { %v14941_v60 = vpop.f32.mrf.mxu1  ;;  %v1270_v61 = vpop.f32.mrf.mxu0 }
 0x496   :  { %v14947_v62 = vpop.f32.mrf.mxu0  ;;  %v16502_v1 = vpop.f32.mrf.mxu1 }
 0x497   :  { %v1555_v2 = vsel %vm1180_vm5, %v16502_v1, -inf }
 0x498   :  { %v14952_v3 = vpop.f32.mrf.mxu1  ;;  %1556 = vmax.xlane.f32.xlu0 %v1555_v2  ;;  %v1359_v4 = vpop.f32.mrf.mxu0 }
 0x499   :  { %v1558_v5 = vsel %vm1180_vm5, %v1359_v4, -inf }
 0x49a   :  { %v1316_v6 = vpop.f32.mrf.mxu1  ;;  %1559 = vmax.xlane.f32.xlu1 %v1558_v5  ;;  %v14958_v7 = vpop.f32.mrf.mxu0 }
 0x49c   :  { %v14953_v8 = vpop.f32.mrf.mxu1  ;;  %v1362_v9 = vpop.f32.mrf.mxu0 }
 0x49e   :  { %v14959_v10 = vpop.f32.mrf.mxu0  ;;  %v1405_v13 = vpop.f32.mrf.mxu1 }
 0x49f   :  { %v1561_v18 = vsel %vm1180_vm5, %v1405_v13, -inf }
 0x4a0   :  { %v14964_v15 = vpop.f32.mrf.mxu1  ;;  %1562 = vmax.xlane.f32.xlu0 %v1561_v18  ;;  %v1451_v16 = vpop.f32.mrf.mxu0 }
 0x4a1   :  { %v1564_v19 = vsel %vm1180_vm5, %v1451_v16, -inf }
 0x4a2   :  { %v1408_v20 = vpop.f32.mrf.mxu1  ;;  %1565 = vmax.xlane.f32.xlu1 %v1564_v19  ;;  %v14970_v21 = vpop.f32.mrf.mxu0 }
 0x4a4   :  { %v14965_v26 = vpop.f32.mrf.mxu1  ;;  %v1454_v27 = vpop.f32.mrf.mxu0 }
 0x4a6   :  { %v14971_v29 = vpop.f32.mrf.mxu0  ;;  %v1497_v30 = vpop.f32.mrf.mxu1 }
 0x4a7   :  { %v1567_v63 = vsel %vm1180_vm5, %v1497_v30, -inf }
 0x4a8   :  { %v14976_v31 = vpop.f32.mrf.mxu1  ;;  %1568 = vmax.xlane.f32.xlu0 %v1567_v63  ;;  %v1543_v32 = vpop.f32.mrf.mxu0 }
 0x4a9   :  { %v1570_v33 = vsel %vm1180_vm5, %v1543_v32, -inf }
 0x4aa   :  { %v1500_v34 = vpop.f32.mrf.mxu1  ;;  %1571 = vmax.xlane.f32.xlu1 %v1570_v33  ;;  %v14982_v17 = vpop.f32.mrf.mxu0 }
 0x4ac   :  { %v14977_v35 = vpop.f32.mrf.mxu1  ;;  %v1546_v36 = vpop.f32.mrf.mxu0 }
 0x4ae   :  { %v14983_v37 = vpop.f32.mrf.mxu0 }
 0x4bb   :  { %902 = vrot.lane.b32.xlu1 %v16343_v23, %s16240_s8 }
 0x4be   :  { %900 = vrot.lane.b32.xlu0 %v16333_v22, %s16240_s8 }
 0x519   :  { %v1551_v38 = vpop.xlane.xlu1 %1550 }
 0x51a   :  { %v1573_v40 = vsub.f32 %v1221_v53, %v1551_v38 }
 0x51b   :  { %v1554_v41 = vpop.xlane.xlu0 %1553 }
 0x51c   :  { %v1581_v42 = vmul.f32 1.442695, %v1573_v40  ;;  %v1574_v43 = vsub.f32 %v1267_v56, %v1554_v41 }
 0x51e   :  { %15900 = vpow2.f32 %v1581_v42  ;;  %v1583_v44 = vmul.f32 1.442695, %v1574_v43 }
 0x520   :  { %15902 = vpow2.f32 %v1583_v44 }
 0x521   :  { %v1557_v22 = vpop.xlane.xlu0 %1556 }
 0x522   :  { %v1575_v53 = vsub.f32 %v16502_v1, %v1557_v22 }
 0x523   :  { %v1560_v48 = vpop.xlane.xlu1 %1559 }
 0x524   :  { %v1576_v49 = vsub.f32 %v1359_v4, %v1560_v48  ;;  %v1585_v58 = vmul.f32 1.442695, %v1575_v53 }
 0x526   :  { %v1587_v55 = vmul.f32 1.442695, %v1576_v49 }
 0x528   :  { %15904 = vpow2.f32 %v1587_v55 }
 0x529   :  { %v1563_v51 = vpop.xlane.xlu0 %1562  ;;  %15906 = vpow2.f32 %v1585_v58 }
 0x52a   :  { %v1577_v56 = vsub.f32 %v1405_v13, %v1563_v51 }
 0x52b   :  { %v16515_v45 = vpop.eup %15900  ;;  %v1566_v54 = vpop.xlane.xlu1 %1565 }
 0x52c   :  { %v1597_v46 = vsel %vm1180_vm5, %v16515_v45, 0.0  ;;  %v1578_v59 = vsub.f32 %v1451_v16, %v1566_v54  ;;  %v1589_v61 = vmul.f32 1.442695, %v1577_v56 }
 0x52d   :  { %v16519_v47 = vpop.eup %15902  ;;  %1598 = vadd.xlane.f32.xlu0 %v1597_v46 }
 0x52e   :  { %v1600_v23 = vsel %vm1180_vm5, %v16519_v47, 0.0  ;;  %15908 = vpow2.f32 %v1589_v61 }
 0x52f   :  { %1601 = vadd.xlane.f32.xlu1 %v1600_v23 }
 0x531   :  { %v1569_v57 = vpop.xlane.xlu0 %1568 }
 0x532   :  { %v1579_v62 = vsub.f32 %v1497_v30, %v1569_v57 }
 0x533   :  { %v1572_v60 = vpop.xlane.xlu1 %1571 }
 0x534   :  { %v1580_v2 = vsub.f32 %v1543_v32, %v1572_v60 }
 0x535   :  { %v16528_v1 = vpop.eup %15904  ;;  %v901_v19 = vpop.permute.xlu0 %900 }
 0x536   :  { %v1595_v3 = vmul.f32 1.442695, %v1580_v2  ;;  %v16530_v4 = vpop.eup %15906  ;;  %v1606_v5 = vsel %vm1180_vm5, %v16528_v1, 0.0  ;;  %v912_v63 = vshrl.u32 %v901_v19, 16 }
 0x537   :  { %v1603_v7 = vsel %vm1180_vm5, %v16530_v4, 0.0  ;;  %v903_v20 = vpop.permute.xlu1 %902 }
 0x538   :  { %v913_v27 = vshrl.u32 %v903_v20, 16  ;;  %v16552_v30 = vpack.i.b16 %v903_v20, %v901_v19 }
 0x53a   :  { %v16556_v17 = vpack.i.b16 %v913_v27, %v912_v63  ;;  %v931_v35 = vrot.slane %v16552_v30, %v16364_v39 }
 0x53b   :  { %v16534_v6 = vpop.eup %15908 }
 0x53c   :  { %v1609_v9 = vsel %vm1180_vm5, %v16534_v6, 0.0  ;;  %v997_v41 = vrot.slane %v16556_v17, %v16364_v39 }
 0x540   :  { %904 = vrot.lane.b32.xlu1 %v16349_v25, %s16240_s8  ;;  %v1591_v25 = vmul.f32 1.442695, %v1578_v59 }
 0x542   :  { %15910 = vpow2.f32 %v1591_v25 }
 0x543   :  { %906 = vrot.lane.b32.xlu0 %v16347_v24, %s16240_s8  ;;  %v1593_v24 = vmul.f32 1.442695, %v1579_v62 }
 0x545   :  { %15912 = vpow2.f32 %v1593_v24 }
 0x546   :  { %15914 = vpow2.f32 %v1595_v3 }
 0x54f   :  { %v16538_v8 = vpop.eup %15910 }
 0x550   :  { %v1612_v13 = vsel %vm1180_vm5, %v16538_v8, 0.0 }
 0x552   :  { %v16542_v10 = vpop.eup %15912 }
 0x553   :  { %v16546_v18 = vpop.eup %15914  ;;  %v1615_v15 = vsel %vm1180_vm5, %v16542_v10, 0.0 }
 0x554   :  { %v1618_v16 = vsel %vm1180_vm5, %v16546_v18, 0.0 }
 0x562   :  { %1607 = vadd.xlane.f32.xlu0 %v1606_v5 }
 0x564   :  { %1604 = vadd.xlane.f32.xlu1 %v1603_v7 }
 0x566   :  { %1610 = vadd.xlane.f32.xlu0 %v1609_v9 }
 0x568   :  { %1613 = vadd.xlane.f32.xlu1 %v1612_v13 }
 0x56a   :  { %1616 = vadd.xlane.f32.xlu0 %v1615_v15 }
 0x56c   :  { %1619 = vadd.xlane.f32.xlu1 %v1618_v16 }
 0x5b6   :  { %v1599_v21 = vpop.xlane.xlu0 %1598 }
 0x5b7   :  { %15916 = vrcp.f32 %v1599_v21 }
 0x5b8   :  { %v1602_v26 = vpop.xlane.xlu1 %1601 }
 0x5b9   :  { %15918 = vrcp.f32 %v1602_v26 }
 0x5ba   :  { %v907_v29 = vpop.permute.xlu0 %906 }
 0x5bb   :  { %v921_v32 = vshrl.u32 %v907_v29, 16 }
 0x5bc   :  { %v905_v31 = vpop.permute.xlu1 %904 }
 0x5bd   :  { %v16554_v33 = vpack.i.b16 %v907_v29, %v905_v31  ;;  %v920_v34 = vshrl.u32 %v905_v31, 16 }
 0x5bf   :  { %v922_v36 = vpack.i.b16 %v921_v32, %v920_v34  ;;  %v946_v37 = vrot.slane %v16554_v33, %v16364_v39  ;;  %v990_v32 = vcombine.high %v16556_v17, %v16381_v50  ;;  %v939_v34 = vcombine.high %v16554_v33, %v16381_v50 }
 0x5c1   :  { %v954_v38 = vcombine.low %v931_v35, %v946_v37  ;;  %v955_v40 = vcombine.high %v931_v35, %v946_v37  ;;  %v1012_v42 = vrot.slane %v922_v36, %v16364_v39  ;;  %v1005_v63 = vcombine.high %v922_v36, %v16381_v50 }
 0x5c2   :  { %v924_v36 = vcombine.high %v16552_v30, %v16381_v50  ;;  %v1004_v17 = vrot.slane %v990_v32, %v16364_v39  ;;  %v953_v33 = vrot.slane %v939_v34, %v16364_v39 }
 0x5c3   :  { %v962_v43 = vrot.slane %v954_v38, %v16383_v52  ;;  %v969_v44 = vrot.slane %v955_v40, %v16383_v52  ;;  %v1020_v46 = vcombine.low %v997_v41, %v1012_v42  ;;  %v1021_v23 = vcombine.high %v997_v41, %v1012_v42 }
 0x5c4   :  { %v15917_v61 = vpop.eup %15916  ;;  %v1019_v37 = vrot.slane %v1005_v63, %v16364_v39  ;;  %v938_v38 = vrot.slane %v924_v36, %v16364_v39 }
 0x5c5   :  { %v1056_v22 = vcombine.low %v962_v43, %v969_v44  ;;  %v14328_v48 = vcombine.high %v962_v43, %v969_v44  ;;  %v1028_v49 = vrot.slane %v1020_v46, %v16383_v52  ;;  %v1035_v51 = vrot.slane %v1021_v23, %v16383_v52 }
 0x5c6   :  { %v15919_v2 = vpop.eup %15918  ;;  %v1629_v3 = vmul.f32 %v15917_v61, %v16515_v45  ;;  %v1036_v40 = vcombine.low %v1004_v17, %v1019_v37  ;;  %v1037_v41 = vcombine.high %v1004_v17, %v1019_v37  ;;  %v970_v42 = vcombine.low %v938_v38, %v953_v33 }
 0x5c7   :  { %v1063_v53 = vrot.slane %v1056_v22, %v16364_v39  ;;  %v1071_v54 = vrot.slane %v14328_v48, %v16364_v39  ;;  %v1081_v55 = vcombine.low %v1028_v49, %v1035_v51  ;;  %v14329_v56 = vcombine.high %v1028_v49, %v1035_v51 }
 0x5c8   :  { %v1630_v15 = vmul.f32 %v15919_v2, %v16519_v47  ;;  %v1637_v29 = vpack.c.bf16 %v1629_v3, %v1629_v3  ;;  %v971_v43 = vcombine.high %v938_v38, %v953_v33  ;;  %v1044_v44 = vrot.slane %v1036_v40, %v16383_v52 }
 0x5c9   :  { %v1072_v57 = vcombine.low %v1063_v53, %v1071_v54  ;;  %v1088_v58 = vrot.slane %v1081_v55, %v16364_v39  ;;  %v1096_v59 = vrot.slane %v14329_v56, %v16364_v39  ;;  %v1051_v46 = vrot.slane %v1037_v41, %v16383_v52 }
 0x5ca   :  { %v1638_v31 = vpack.c.bf16 %v1630_v15, %v1630_v15  ;;  %v978_v30 = vrot.slane %v970_v42, %v16383_v52  ;;  %v985_v23 = vrot.slane %v971_v43, %v16383_v52 }
 0x5cb   :  { %v1079_v60 = vrot.slane %v1072_v57, %v16383_v52  ;;  %v1097_v62 = vcombine.low %v1088_v58, %v1096_v59  ;;  %v1131_v22 = vcombine.low %v1044_v44, %v1051_v46  ;;  %v14331_v48 = vcombine.high %v1044_v44, %v1051_v46 }
 0x5cc   :  { %v1106_v49 = vcombine.low %v978_v30, %v985_v23  ;;  %v14330_v51 = vcombine.high %v978_v30, %v985_v23 }
 0x5cd   :  { %v1080_v25 = vcombine.high %v1079_v60, %v16233_v14  ;;  %v1104_v24 = vrot.slane %v1097_v62, %v16383_v52  ;;  %v1159_v7 = vshrl.u32 %v1079_v60, 16  ;;  %v1138_v53 = vrot.slane %v1131_v22, %v16364_v39 }
 0x5ce   :  { %v1146_v54 = vrot.slane %v14331_v48, %v16364_v39  ;;  %v1113_v56 = vrot.slane %v1106_v49, %v16364_v39  ;;  %v1121_v57 = vrot.slane %v14330_v51, %v16364_v39 }
 0x5cf   :  { %v1158_v5 = vpack.i.b16 %v1104_v24, %v1079_v60  ;;  %v1160_v9 = vshrl.u32 %v1104_v24, 16  ;;  %v1105_v13 = vcombine.high %v1104_v24, %v16233_v14  ;;  %v1165_v16 = vshrl.u32 %v1080_v25, 16 }
 0x5d0   :  { %v1147_v59 = vcombine.low %v1138_v53, %v1146_v54  ;;  %v1122_v61 = vcombine.low %v1113_v56, %v1121_v57 }
 0x5d1   :  { %v1650_v19 = vsel %vm1648_vm6, %v1158_v5, 0  ;;  %v1161_v20 = vpack.i.b16 %v1160_v9, %v1159_v7  ;;  %v1164_v21 = vpack.i.b16 %v1105_v13, %v1080_v25  ;;  %v1166_v26 = vshrl.u32 %v1105_v13, 16 }
 0x5d2   :  { %14985 = vmatpush3.bf16.msra.mxu1 %v1650_v19  ;;  %v1154_v25 = vrot.slane %v1147_v59, %v16383_v52  ;;  %v1129_v2 = vrot.slane %v1122_v61, %v16383_v52 }
 0x5d3   :  { %v1696_v27 = vsel %vm1648_vm6, %v1161_v20, 0  ;;  %14996 = vmatprep.subr.bf16.mxu1 %v16230_v0  ;;  %v1167_v45 = vpack.i.b16 %v1166_v26, %v1165_v16  ;;  %v1742_v47 = vsel %vm1648_vm6, %v1164_v21, 0 }
 0x5d4   :  { %14991 = vmatpush3.bf16.msra.mxu0 %v1696_v27  ;;  %v1172_v3 = vshrl.u32 %v1154_v25, 16  ;;  %v1171_v7 = vshrl.u32 %v1129_v2, 16  ;;  %v1155_v16 = vcombine.high %v1154_v25, %v16233_v14  ;;  %v1170_v26 = vpack.i.b16 %v1154_v25, %v1129_v2 }
 0x5d5   :  { %14987 = vmatmul.mubr.msk.bf16.vlgmr.msra.gmra.mxu1 %vm1180_vm5, %v1637_v29  ;;  %15002 = vmatprep.subr.bf16.mxu0 %v16230_v0  ;;  %v1788_v35 = vsel %vm1648_vm6, %v1167_v45, 0  ;;  %v1130_v27 = vcombine.high %v1129_v2, %v16233_v14 }
 0x5d6   :  { %14997 = vmatpush3.bf16.msra.mxu1 %v1742_v47  ;;  %14998 = vmatprep.mubr.msk.bf16.mxu1 %vm16231_vm0, %v16230_v0  ;;  %v1173_v15 = vpack.i.b16 %v1172_v3, %v1171_v7  ;;  %v1178_v47 = vshrl.u32 %v1155_v16, 16 }
 0x5d7   :  { %14993 = vmatmul.mubr.msk.bf16.vlgmr.msra.gmra.mxu0 %vm1180_vm5, %v1638_v31  ;;  %15008 = vmatprep.subr.bf16.mxu1 %v16230_v0  ;;  %v1177_v32 = vshrl.u32 %v1130_v27, 16  ;;  %v1176_v37 = vpack.i.b16 %v1155_v16, %v1130_v27 }
 0x5d8   :  { %15003 = vmatpush3.bf16.msra.mxu0 %v1788_v35  ;;  %15004 = vmatprep.mubr.msk.bf16.mxu0 %vm16231_vm0, %v16230_v0  ;;  %v1880_v45 = vsel %vm1648_vm6, %v1173_v15, 0 }
 0x5d9   :  { %15014 = vmatprep.subr.bf16.mxu0 %v16230_v0  ;;  %v1179_v34 = vpack.i.b16 %v1178_v47, %v1177_v32 }
 0x5db   :  { %v1972_v33 = vsel %vm1648_vm6, %v1179_v34, 0 }
 0x5eb   :  { %v1608_v55 = vpop.xlane.xlu0 %1607 }
 0x5ec   :  { %15920 = vrcp.f32 %v1608_v55 }
 0x5ed   :  { %v1605_v58 = vpop.xlane.xlu1 %1604 }
 0x5ee   :  { %15922 = vrcp.f32 %v1605_v58 }
 0x5ef   :  { %v1611_v60 = vpop.xlane.xlu0 %1610 }
 0x5f0   :  { %15924 = vrcp.f32 %v1611_v60 }
 0x5f1   :  { %v1614_v62 = vpop.xlane.xlu1 %1613 }
 0x5f2   :  { %15926 = vrcp.f32 %v1614_v62 }
 0x5f3   :  { %v1617_v5 = vpop.xlane.xlu0 %1616 }
 0x5f5   :  { %v1620_v24 = vpop.xlane.xlu1 %1619 }
 0x5f6   :  { %15928 = vrcp.f32 %v1620_v24 }
 0x5f7   :  { %15930 = vrcp.f32 %v1617_v5 }
 0x5f9   :  { %v15921_v9 = vpop.eup %15920 }
 0x5fa   :  { %v1632_v13 = vmul.f32 %v15921_v9, %v16528_v1  ;;  %v1834_v1 = vsel %vm1648_vm6, %v1170_v26, 0 }
 0x5fb   :  { %v15923_v19 = vpop.eup %15922 }
 0x5fc   :  { %v1640_v20 = vpack.c.bf16 %v1632_v13, %v1632_v13  ;;  %v1631_v21 = vmul.f32 %v15923_v19, %v16530_v4 }
 0x5fd   :  { %v15925_v29 = vpop.eup %15924 }
 0x5fe   :  { %15005 = vmatmul.mubr.msk.bf16.vlgmr.msra.gmra.mxu0 %vm1180_vm5, %v1640_v20  ;;  %v1639_v63 = vpack.c.bf16 %v1631_v21, %v1631_v21  ;;  %v1633_v35 = vmul.f32 %v15925_v29, %v16534_v6 }
 0x5ff   :  { %v15927_v31 = vpop.eup %15926  ;;  %15015 = vmatpush3.bf16.msra.mxu0 %v1880_v45  ;;  %15016 = vmatprep.mubr.msk.bf16.mxu0 %vm16231_vm0, %v16230_v0 }
 0x600   :  { %14999 = vmatmul.mubr.msk.bf16.vlgmr.msra.gmra.mxu1 %vm1180_vm5, %v1639_v63  ;;  %15026 = vmatprep.subr.bf16.mxu0 %v16230_v0  ;;  %v1634_v4 = vmul.f32 %v15927_v31, %v16538_v8  ;;  %v1641_v38 = vpack.c.bf16 %v1633_v35, %v1633_v35  ;;  %v1926_v8 = vsel %vm1648_vm6, %v1176_v37, 0 }
 0x601   :  { %15009 = vmatpush3.bf16.msra.mxu1 %v1834_v1  ;;  %15010 = vmatprep.mubr.msk.bf16.mxu1 %vm16231_vm0, %v16230_v0 }
 0x602   :  { %15020 = vmatprep.subr.bf16.mxu1 %v16230_v0  ;;  %v1642_v36 = vpack.c.bf16 %v1634_v4, %v1634_v4 }
 0x603   :  { %v15929_v17 = vpop.eup %15928 }
 0x604   :  { %v15931_v40 = vpop.eup %15930  ;;  %v1636_v41 = vmul.f32 %v15929_v17, %v16546_v18 }
 0x605   :  { %v1635_v6 = vmul.f32 %v15931_v40, %v16542_v10 }
 0x606   :  { %15017 = vmatmul.mubr.msk.bf16.vlgmr.msra.gmra.mxu0 %vm1180_vm5, %v1642_v36  ;;  %v1644_v42 = vpack.c.bf16 %v1636_v41, %v1636_v41 }
 0x607   :  { %15027 = vmatpush3.bf16.msra.mxu0 %v1972_v33  ;;  %15028 = vmatprep.mubr.msk.bf16.mxu0 %vm16231_vm0, %v16230_v0  ;;  %v1643_v43 = vpack.c.bf16 %v1635_v6, %v1635_v6 }
 0x608   :  { %15011 = vmatmul.mubr.msk.bf16.vlgmr.msra.gmra.mxu1 %vm1180_vm5, %v1641_v38  ;;  %15040 = vmatprep.subr.bf16.mxu0 %v16230_v0 }
 0x609   :  { %15021 = vmatpush3.bf16.msra.mxu1 %v1926_v8  ;;  %15022 = vmatprep.mubr.msk.bf16.mxu1 %vm16231_vm0, %v16230_v0 }
 0x60a   :  { %15032 = vmatprep.subr.bf16.mxu1 %v16230_v0 }
 0x60e   :  { %15029 = vmatmul.mubr.msk.bf16.vlgmr.msra.gmra.mxu0 %vm1180_vm5, %v1644_v42 }
 0x60f   :  { %15044 = vmatprep.mubr.msk.bf16.mxu0 %vm16231_vm0, %v16230_v0 }
 0x610   :  { %15023 = vmatmul.mubr.msk.bf16.vlgmr.msra.gmra.mxu1 %vm1180_vm5, %v1643_v43 }
 0x611   :  { %15036 = vmatprep.mubr.msk.bf16.mxu1 %vm16231_vm0, %v16230_v0 }
 0x695   :  { %v1686_v18 = vpop.f32.mrf.mxu1 }
 0x697   :  { %v14988_v44 = vpop.f32.mrf.mxu1  ;;  %v1732_v46 = vpop.f32.mrf.mxu0 }
 0x699   :  { %v1689_v30 = vpop.f32.mrf.mxu1  ;;  %v14994_v23 = vpop.f32.mrf.mxu0 }
 0x69b   :  { %v14989_v10 = vpop.f32.mrf.mxu1  ;;  %v1735_v22 = vpop.f32.mrf.mxu0 }
 0x69d   :  { %v14995_v48 = vpop.f32.mrf.mxu0 }
 0x6be   :  { %v1824_v49 = vpop.f32.mrf.mxu0 }
 0x6bf   :  { %v2030_v51 = vcombine.low %v1732_v46, %v1824_v49  ;;  %v2031_v53 = vcombine.high %v1732_v46, %v1824_v49 }
 0x6c0   :  { %v1778_v54 = vpop.f32.mrf.mxu1  ;;  %v15006_v55 = vpop.f32.mrf.mxu0 }
 0x6c1   :  { %v2014_v56 = vcombine.low %v1686_v18, %v1778_v54  ;;  %v2015_v57 = vcombine.high %v1686_v18, %v1778_v54  ;;  %v2038_v60 = vrot.slane %v2030_v51, %v16364_v39  ;;  %v2045_v61 = vrot.slane %v2031_v53, %v16364_v39 }
 0x6c2   :  { %v15000_v58 = vpop.f32.mrf.mxu1  ;;  %v1827_v59 = vpop.f32.mrf.mxu0 }
 0x6c3   :  { %v2022_v62 = vrot.slane %v2014_v56, %v16364_v39  ;;  %v2029_v25 = vrot.slane %v2015_v57, %v16364_v39 }
 0x6c4   :  { %v1781_v2 = vpop.f32.mrf.mxu1  ;;  %v15007_v24 = vpop.f32.mrf.mxu0 }
 0x6c5   :  { %v2046_v3 = vcombine.low %v2022_v62, %v2038_v60  ;;  %v2047_v5 = vcombine.high %v2022_v62, %v2038_v60  ;;  %v2062_v7 = vcombine.low %v2029_v25, %v2045_v61  ;;  %v2063_v9 = vcombine.high %v2029_v25, %v2045_v61 }
 0x6c6   :  { %v15001_v13 = vpop.f32.mrf.mxu1  ;;  %v1916_v15 = vpop.f32.mrf.mxu0 }
 0x6c7   :  { %v2054_v16 = vrot.slane %v2046_v3, %v16383_v52  ;;  %v2061_v19 = vrot.slane %v2047_v5, %v16383_v52  ;;  %v2070_v20 = vrot.slane %v2062_v7, %v16383_v52  ;;  %v2077_v21 = vrot.slane %v2063_v9, %v16383_v52  ;;  %v15836_v13 = vld [vmem:[#allocation2 + $0xac] ss:$80 sps:$4 sm:$0xff]  }
 0x6c8   :  { %v1870_v26 = vpop.f32.mrf.mxu1  ;;  %v15018_v27 = vpop.f32.mrf.mxu0  ;;  %15033 = vmatpush3.bf16.msra.mxu1 %v15836_v13 }
 0x6c9   :  { %v2150_v29 = vcombine.low %v2054_v16, %v2061_v19  ;;  %v14348_v45 = vcombine.high %v2054_v16, %v2061_v19  ;;  %v2166_v63 = vcombine.low %v2070_v20, %v2077_v21  ;;  %v14349_v47 = vcombine.high %v2070_v20, %v2077_v21  ;;  %15034 = vmatprep.subr.bf16.mxu1 %v16230_v0 }
 0x6ca   :  { %v15012_v31 = vpop.f32.mrf.mxu1  ;;  %v1919_v1 = vpop.f32.mrf.mxu0 }
 0x6cb   :  { %v2157_v4 = vrot.slane %v2150_v29, %v16364_v39  ;;  %v2165_v32 = vrot.slane %v14348_v45, %v16364_v39  ;;  %v2173_v34 = vrot.slane %v2166_v63, %v16364_v39  ;;  %v2181_v35 = vrot.slane %v14349_v47, %v16364_v39 }
 0x6cc   :  { %v1873_v36 = vpop.f32.mrf.mxu1  ;;  %v15019_v37 = vpop.f32.mrf.mxu0 }
 0x6cd   :  { %v2182_v17 = vcombine.low %v2157_v4, %v2165_v32  ;;  %v2198_v33 = vcombine.low %v2173_v34, %v2181_v35  ;;  %v2183_v2 = vcombine.high %v2157_v4, %v2165_v32  ;;  %v2199_v24 = vcombine.high %v2173_v34, %v2181_v35  ;;  %v15837_v32 = vld [vmem:[#allocation2 + $0xc] ss:$80 sps:$4 sm:$0xff]  }
 0x6ce   :  { %v15013_v38 = vpop.f32.mrf.mxu1  ;;  %v2008_v40 = vpop.f32.mrf.mxu0  ;;  %15035 = vmatpush3.bf16.msra.mxu1 %v15837_v32 }
 0x6cf   :  { %v2098_v8 = vcombine.low %v1916_v15, %v2008_v40  ;;  %v2099_v41 = vcombine.high %v1916_v15, %v2008_v40  ;;  %v16661_v43 = vrot.slane %v2182_v17, %v16383_v52  ;;  %v16664_v18 = vrot.slane %v2198_v33, %v16383_v52  ;;  %15048 = vmatprep.subr.bf16.mxu1 %v16230_v0 }
 0x6d0   :  { %v1962_v6 = vpop.f32.mrf.mxu1  ;;  %v15030_v42 = vpop.f32.mrf.mxu0  ;;  %v2197_v21 = vrot.slane %v2183_v2, %v16383_v52 }
 0x6d1   :  { %v2082_v44 = vcombine.low %v1870_v26, %v1962_v6  ;;  %v2083_v46 = vcombine.high %v1870_v26, %v1962_v6  ;;  %v2214_v10 = vcombine.low %v16661_v43, %v16664_v18  ;;  %v2106_v22 = vrot.slane %v2098_v8, %v16364_v39 }
 0x6d2   :  { %v15024_v30 = vpop.f32.mrf.mxu1  ;;  %v2011_v23 = vpop.f32.mrf.mxu0  ;;  %v2113_v48 = vrot.slane %v2099_v41, %v16364_v39  ;;  %v2213_v26 = vrot.slane %v2199_v24, %v16383_v52  ;;  %v2215_v36 = vcombine.high %v16661_v43, %v16664_v18  ;;  %v14352_v43 = vld [vmem:[#allocation6 + $0x3] ss:$0 sm:$0xff] }
 0x6d3   :  { %v2090_v49 = vrot.slane %v2082_v44, %v16364_v39  ;;  %v2097_v51 = vrot.slane %v2083_v46, %v16364_v39 }
 0x6d4   :  { %v1965_v53 = vpop.f32.mrf.mxu1  ;;  %v15031_v54 = vpop.f32.mrf.mxu0  ;;  %v2216_v34 = vcombine.low %v2197_v21, %v2213_v26  ;;  %v2217_v8 = vcombine.high %v2197_v21, %v2213_v26  ;;  %v15838_v26 = vld [vmem:[#allocation2 + $0xb0] ss:$80 sps:$4 sm:$0xff]  }
 0x6d5   :  { %v2114_v55 = vcombine.low %v2090_v49, %v2106_v22  ;;  %v2115_v56 = vcombine.high %v2090_v49, %v2106_v22  ;;  %v2130_v57 = vcombine.low %v2097_v51, %v2113_v48  ;;  %v2131_v58 = vcombine.high %v2097_v51, %v2113_v48  ;;  %15041 = vmatpush3.bf16.msra.mxu0 %v15838_v26 }
 0x6d6   :  { %v15025_v59 = vpop.f32.mrf.mxu1  ;;  %15042 = vmatprep.subr.bf16.mxu0 %v16230_v0 }
 0x6d7   :  { %v2122_v60 = vrot.slane %v2114_v55, %v16383_v52  ;;  %v2129_v61 = vrot.slane %v2115_v56, %v16383_v52  ;;  %v2138_v62 = vrot.slane %v2130_v57, %v16383_v52  ;;  %v2145_v25 = vrot.slane %v2131_v58, %v16383_v52 }
 0x6d9   :  { %v2218_v3 = vcombine.low %v2122_v60, %v2129_v61  ;;  %v14350_v5 = vcombine.high %v2122_v60, %v2129_v61  ;;  %v2234_v7 = vcombine.low %v2138_v62, %v2145_v25  ;;  %v14351_v9 = vcombine.high %v2138_v62, %v2145_v25 }
 0x6db   :  { %v2225_v15 = vrot.slane %v2218_v3, %v16364_v39  ;;  %v2233_v16 = vrot.slane %v14350_v5, %v16364_v39  ;;  %v2241_v19 = vrot.slane %v2234_v7, %v16364_v39  ;;  %v2249_v20 = vrot.slane %v14351_v9, %v16364_v39 }
 0x6dd   :  { %v2251_v27 = vcombine.high %v2225_v15, %v2233_v16  ;;  %v2267_v29 = vcombine.high %v2241_v19, %v2249_v20  ;;  %v2250_v45 = vcombine.low %v2225_v15, %v2233_v16  ;;  %v2266_v63 = vcombine.low %v2241_v19, %v2249_v20 }
 0x6df   :  { %v2265_v47 = vrot.slane %v2251_v27, %v16383_v52  ;;  %v2281_v31 = vrot.slane %v2267_v29, %v16383_v52  ;;  %v2258_v1 = vrot.slane %v2250_v45, %v16383_v52  ;;  %v2274_v4 = vrot.slane %v2266_v63, %v16383_v52  ;;  %v15840_v27 = vld [vmem:[#allocation4 + $0x7c] ss:$20 sps:$4 sm:$0xff]  }
 0x6e1   :  { %v2284_v35 = vcombine.low %v2265_v47, %v2281_v31  ;;  %v2283_v37 = vcombine.high %v2258_v1, %v2274_v4  ;;  %v2282_v17 = vcombine.low %v2258_v1, %v2274_v4  ;;  %v2285_v40 = vcombine.high %v2265_v47, %v2281_v31 }
 0x6e3   :  { %v15744_v33 = vpack.i.bf16 %v2284_v35, %v2216_v34  ;;  %v15739_v38 = vpack.i.bf16 %v2283_v37, %v2215_v36  ;;  %v15749_v41 = vpack.i.bf16 %v2285_v40, %v2217_v8  ;;  %v14356_v34 = vld [vmem:[#allocation6 + $0x4] ss:$0 sm:$0xff] }
 0x6e5   :  { %15745 = vrot.lane.b32.xlu1 %v15744_v33, %s16241_s9  ;;  %15740 = vrot.lane.b32.xlu0 %v15739_v38, %s16229_s22 }
 0x6e9   :  { %15750 = vrot.lane.b32.xlu1 %v15749_v41, %s16242_s10  ;;  %v15841_v41 = vld [vmem:[#allocation4 + $0x54] ss:$20 sps:$4 sm:$0xff]  }
 0x757   :  { %v15746_v6 = vpop.permute.xlu1 %15745  ;;  %v15741_v42 = vpop.permute.xlu0 %15740 }
 0x758   :  { %v15743_v44 = vunpack.i.h.bf16 %v15741_v42  ;;  %v15742_v46 = vunpack.i.l.bf16 %v15741_v42  ;;  %v15748_v30 = vunpack.i.h.bf16 %v15746_v6  ;;  %v15747_v23 = vunpack.i.l.bf16 %v15746_v6  ;;  %v15842_v6 = vld [vmem:[#allocation4 + $0x2c] ss:$20 sps:$4 sm:$0xff]   ;;  %v15843_v42 = vld [vmem:[#allocation4 + $0x4] ss:$20 sps:$4 sm:$0xff]  }
 0x75a   :  { %v2310_v22 = vsel %vm1180_vm5, %v2214_v10, %v15742_v46  ;;  %v2311_v48 = vsel %vm1180_vm5, %v2282_v17, %v15743_v44  ;;  %v14357_v17 = vld [vmem:[#allocation6 + $0x5] ss:$0 sm:$0xff]  ;;  %v14358_v44 = vld [vmem:[#allocation6 + $0x6] ss:$0 sm:$0xff] }
 0x75b   :  { %v15751_v49 = vpop.permute.xlu1 %15750  ;;  %v2312_v54 = vsel %vm93_vm1, %v2310_v22, %v15747_v23  ;;  %v2313_v55 = vsel %vm93_vm1, %v2311_v48, %v15748_v30 }
 0x75c   :  { %v15753_v51 = vunpack.i.h.bf16 %v15751_v49  ;;  %v15752_v53 = vunpack.i.l.bf16 %v15751_v49 }
 0x75e   :  { %v2315_v56 = vsel %vm2314_vm7, %v2312_v54, %v15752_v53  ;;  %v2316_v57 = vsel %vm2314_vm7, %v2313_v55, %v15753_v51  ;;  %v14362_v55 = vld [vmem:[#allocation6 + $0x7] ss:$0 sm:$0xff] }
 0x75f   :  { %v2317_v58 = vpack.c.bf16 %v2316_v57, %v2315_v56 }
 0x761   :  { %15037 = vmatmul.mubr.msk.bf16.vlgmr.msra.gmra.mxu1 %vm214_vm4, %v2317_v58 }
 0x762   :  { %15056 = vmatprep.mubr.msk.bf16.mxu1 %vm16231_vm0, %v16230_v0  ;;  %15049 = vmatpush3.bf16.msra.mxu1 %v15840_v27 }
 0x763   :  { %15050 = vmatprep.subr.bf16.mxu1 %v16230_v0 }
 0x766   :  { %15051 = vmatpush3.bf16.msra.mxu1 %v15841_v41 }
 0x767   :  { %15052 = vmatprep.subr.bf16.mxu1 %v16230_v0 }
 0x76a   :  { %15053 = vmatpush3.bf16.msra.mxu1 %v15842_v6 }
 0x76b   :  { %15054 = vmatprep.subr.bf16.mxu1 %v16230_v0 }
 0x76e   :  { %15055 = vmatpush3.bf16.msra.mxu1 %v15843_v42 }
 0x76f   :  { %15074 = vmatprep.subr.bf16.mxu1 %v16230_v0 }
 0x821   :  { %v2373_v18 = vpop.f32.mrf.mxu1 }
 0x822   :  { %v2374_v10 = vadd.f32 %v14352_v43, %v2373_v18 }
 0x823   :  { %v15038_v59 = vpop.f32.mrf.mxu1 }
 0x824   :  { %v2382_v60 = vadd.f32 %v2374_v10, %v16322_v11 }
 0x825   :  { %v2376_v61 = vpop.f32.mrf.mxu1 }
 0x826   :  { %v2377_v62 = vadd.f32 %v14352_v43, %v2376_v61  ;;  %v2384_v25 = vsel %vm214_vm4, %v2382_v60, 0.0 }
 0x827   :  { %2385 = vadd.xlane.f32.xlu0 %v2384_v25  ;;  %v15039_v2 = vpop.f32.mrf.mxu1 }
 0x828   :  { %v2383_v24 = vadd.f32 %v2377_v62, %v16324_v12  ;;  %v15839_v12 = vld [vmem:[#allocation2 + $0x10] ss:$80 sps:$4 sm:$0xff]  }
 0x829   :  { %15043 = vmatpush3.bf16.msra.mxu0 %v15839_v12 }
 0x82a   :  { %v2387_v3 = vsel %vm214_vm4, %v2383_v24, 0.0  ;;  %15060 = vmatprep.subr.bf16.mxu0 %v16230_v0 }
 0x82b   :  { %2388 = vadd.xlane.f32.xlu1 %v2387_v3 }
 0x8b0   :  { %v2386_v5 = vpop.xlane.xlu0 %2385 }
 0x8b1   :  { %v2391_v7 = vmul.f32 0.03125, %v2386_v5 }
 0x8b3   :  { %v2393_v9 = vsub.f32 %v2382_v60, %v2391_v7 }
 0x8b4   :  { %v2389_v13 = vpop.xlane.xlu1 %2388 }
 0x8b5   :  { %v2392_v15 = vmul.f32 0.03125, %v2389_v13  ;;  %v2395_v16 = vmul.f32 %v2393_v9, %v2393_v9 }
 0x8b7   :  { %v2394_v19 = vsub.f32 %v2383_v24, %v2392_v15  ;;  %v2397_v11 = vsel %vm214_vm4, %v2395_v16, 0.0 }
 0x8b8   :  { %2398 = vadd.xlane.f32.xlu0 %v2397_v11  ;;  %v15845_v11 = vld [vmem:[#allocation2 + $0x14] ss:$80 sps:$4 sm:$0xff]  }
 0x8b9   :  { %v2396_v20 = vmul.f32 %v2394_v19, %v2394_v19 }
 0x8bb   :  { %v2400_v21 = vsel %vm214_vm4, %v2396_v20, 0.0 }
 0x8bc   :  { %2401 = vadd.xlane.f32.xlu0 %v2400_v21 }
 0x941   :  { %v2399_v29 = vpop.xlane.xlu0 %2398 }
 0x942   :  { %v2403_v45 = vmul.f32 0.03125, %v2399_v29 }
 0x944   :  { %v2405_v63 = vadd.f32 1e-05, %v2403_v45 }
 0x945   :  { %v2402_v47 = vpop.xlane.xlu0 %2401 }
 0x946   :  { %15932 = vrsqrt.f32 %v2405_v63  ;;  %v2404_v31 = vmul.f32 0.03125, %v2402_v47  ;;  %v14368_v47 = vld [vmem:[#allocation6 + $0x8] ss:$0 sm:$0xff] }
 0x948   :  { %v2406_v1 = vadd.f32 1e-05, %v2404_v31 }
 0x94a   :  { %15934 = vrsqrt.f32 %v2406_v1 }
 0x953   :  { %v15933_v4 = vpop.eup %15932 }
 0x954   :  { %v2409_v32 = vmul.f32 %v15933_v4, %v2393_v9 }
 0x956   :  { %v2417_v37 = vmul.f32 %v14356_v34, %v2409_v32  ;;  %v14369_v32 = vld [vmem:[#allocation6 + $0x9] ss:$0 sm:$0xff] }
 0x957   :  { %v15935_v35 = vpop.eup %15934 }
 0x958   :  { %v2410_v36 = vmul.f32 %v15935_v35, %v2394_v19  ;;  %v2425_v38 = vadd.f32 %v14357_v17, %v2417_v37  ;;  %v15844_v19 = vld [vmem:[#allocation2 + $0xb4] ss:$80 sps:$4 sm:$0xff]  }
 0x95a   :  { %v2418_v33 = vmul.f32 %v14356_v34, %v2410_v36 }
 0x95c   :  { %v2426_v40 = vadd.f32 %v14357_v17, %v2418_v33  ;;  %v14370_v33 = vld [vmem:[#allocation6 + $0xa] ss:$0 sm:$0xff] }
 0x95e   :  { %v2441_v8 = vpack.c.bf16 %v2426_v40, %v2425_v38 }
 0x960   :  { %15045 = vmatmul.mubr.msk.bf16.vlgmr.msra.gmra.mxu0 %vm214_vm4, %v2441_v8 }
 0x961   :  { %15064 = vmatprep.mubr.msk.bf16.mxu0 %vm16231_vm0, %v16230_v0  ;;  %15061 = vmatpush3.bf16.msra.mxu0 %v15844_v19 }
 0x962   :  { %15062 = vmatprep.subr.bf16.mxu0 %v16230_v0 }
 0x965   :  { %15063 = vmatpush3.bf16.msra.mxu0 %v15845_v11 }
 0x966   :  { %15068 = vmatprep.subr.bf16.mxu0 %v16230_v0 }
 0xa20   :  { %v2497_v46 = vpop.f32.mrf.mxu0 }
 0xa21   :  { %v2498_v23 = vadd.f32 %v14358_v44, %v2497_v46 }
 0xa22   :  { %v15046_v30 = vpop.f32.mrf.mxu0 }
 0xa23   :  { %v2504_v51 = vmax.f32 %v2498_v23, 0.0 }
 0xa24   :  { %v2500_v22 = vpop.f32.mrf.mxu0 }
 0xa25   :  { %v2501_v48 = vadd.f32 %v14358_v44, %v2500_v22 }
 0xa26   :  { %v15047_v49 = vpop.f32.mrf.mxu0 }
 0xa27   :  { %v2505_v53 = vmax.f32 %v2501_v48, 0.0 }
 0xa29   :  { %v2506_v54 = vpack.c.bf16 %v2505_v53, %v2504_v51 }
 0xa2b   :  { %15057 = vmatmul.mubr.msk.bf16.vlgmr.msra.gmra.mxu1 %vm2537_vm8, %v2506_v54 }
 0xa2c   :  { %15076 = vmatprep.mubr.msk.bf16.mxu1 %vm16231_vm0, %v16230_v0 }
 0xaeb   :  { %v2575_v56 = vpop.f32.mrf.mxu1 }
 0xaec   :  { %v2576_v57 = vadd.f32 %v14362_v55, %v2575_v56 }
 0xaed   :  { %v15058_v58 = vpop.f32.mrf.mxu1 }
 0xaee   :  { %v2584_v43 = vadd.f32 %v2576_v57, %v2425_v38 }
 0xaef   :  { %v2578_v18 = vpop.f32.mrf.mxu1 }
 0xaf0   :  { %v2579_v10 = vadd.f32 %v14362_v55, %v2578_v18  ;;  %v2586_v59 = vsel %vm214_vm4, %v2584_v43, 0.0 }
 0xaf1   :  { %2587 = vadd.xlane.f32.xlu1 %v2586_v59  ;;  %v15059_v60 = vpop.f32.mrf.mxu1 }
 0xaf2   :  { %v2585_v61 = vadd.f32 %v2579_v10, %v2426_v40 }
 0xaf4   :  { %v2589_v62 = vsel %vm214_vm4, %v2585_v61, 0.0 }
 0xaf5   :  { %2590 = vadd.xlane.f32.xlu0 %v2589_v62 }
 0xb7a   :  { %v2588_v25 = vpop.xlane.xlu1 %2587 }
 0xb7b   :  { %v2592_v2 = vmul.f32 0.03125, %v2588_v25 }
 0xb7d   :  { %v2594_v24 = vsub.f32 %v2584_v43, %v2592_v2 }
 0xb7e   :  { %v2591_v3 = vpop.xlane.xlu0 %2590 }
 0xb7f   :  { %v2593_v5 = vmul.f32 0.03125, %v2591_v3  ;;  %v2596_v7 = vmul.f32 %v2594_v24, %v2594_v24 }
 0xb81   :  { %v2595_v9 = vsub.f32 %v2585_v61, %v2593_v5  ;;  %v2598_v13 = vsel %vm214_vm4, %v2596_v7, 0.0 }
 0xb82   :  { %2599 = vadd.xlane.f32.xlu1 %v2598_v13 }
 0xb83   :  { %v2597_v15 = vmul.f32 %v2595_v9, %v2595_v9 }
 0xb85   :  { %v2601_v16 = vsel %vm214_vm4, %v2597_v15, 0.0 }
 0xb86   :  { %2602 = vadd.xlane.f32.xlu0 %v2601_v16 }
 0xc0b   :  { %v2600_v20 = vpop.xlane.xlu1 %2599 }
 0xc0c   :  { %v2604_v21 = vmul.f32 0.03125, %v2600_v20 }
 0xc0e   :  { %v2606_v26 = vadd.f32 1e-05, %v2604_v21 }
 0xc0f   :  { %v2603_v12 = vpop.xlane.xlu0 %2602 }
 0xc10   :  { %15936 = vrsqrt.f32 %v2606_v26  ;;  %v2605_v27 = vmul.f32 0.03125, %v2603_v12 }
 0xc12   :  { %v2607_v29 = vadd.f32 1e-05, %v2605_v27 }
 0xc14   :  { %15938 = vrsqrt.f32 %v2607_v29 }
 0xc1d   :  { %v15937_v45 = vpop.eup %15936 }
 0xc1e   :  { %v2610_v63 = vmul.f32 %v15937_v45, %v2594_v24 }
 0xc20   :  { %v2618_v4 = vmul.f32 %v14368_v47, %v2610_v63 }
 0xc21   :  { %v15939_v31 = vpop.eup %15938 }
 0xc22   :  { %v2611_v1 = vmul.f32 %v15939_v31, %v2595_v9  ;;  %v16729_v35 = vadd.f32 %v14369_v32, %v2618_v4 }
 0xc24   :  { %v2619_v34 = vmul.f32 %v14368_v47, %v2611_v1 }
 0xc26   :  { %v16731_v36 = vadd.f32 %v14369_v32, %v2619_v34 }
 0xc28   :  { %v2638_v37 = vpack.c.bf16 %v16731_v36, %v16729_v35 }
 0xc2a   :  { %15065 = vmatmul.mubr.msk.bf16.vlgmr.msra.gmra.mxu0 %vm214_vm4, %v2638_v37 }
 0xc2b   :  { %15070 = vmatprep.mubr.msk.bf16.mxu0 %vm16231_vm0, %v16230_v0 }
 0xcea   :  { %v2694_v17 = vpop.f32.mrf.mxu0 }
 0xceb   :  { %v2695_v8 = vadd.f32 %v14370_v33, %v2694_v17 }
 0xcec   :  { %v15066_v38 = vpop.f32.mrf.mxu0 }
 0xcee   :  { %v2697_v40 = vpop.f32.mrf.mxu0 }
 0xcef   :  { %v2698_v41 = vadd.f32 %v14370_v33, %v2697_v40 }
 0xcf0   :  { %v15067_v6 = vpop.f32.mrf.mxu0 }
 0xcf1   :  { %v16738_v42 = vpack.c.bf16 %v2698_v41, %v2695_v8 }
 0xcf3   :  { %2705 = vrot.lane.b32.xlu0 %v16738_v42, %s16237_s30  ;;  %2703 = vrot.lane.b32.xlu1 %v16738_v42, %s16235_s2  ;;  %v2713_v51 = vshrl.u32 %v16738_v42, 16 }
 0xcf7   :  { %2707 = vrot.lane.b32.xlu1 %v16738_v42, %s16234_s0 }
 0xcfb   :  { %2981 = vrot.lane.b32.xlu1 %v16738_v42, %s16236_s29 }
 0xd65   :  { %v16748_v44 = vpop.permute.xlu0 %2705  ;;  %v16750_v46 = vpop.permute.xlu1 %2703 }
 0xd66   :  { %2985 = vrot.lane.b32.xlu1 %v16748_v44, %s16236_s29  ;;  %2983 = vrot.lane.b32.xlu0 %v16750_v46, %s16236_s29  ;;  %v2721_v22 = vshrl.u32 %v16748_v44, 16  ;;  %v2714_v48 = vshrl.u32 %v16750_v46, 16  ;;  %v16770_v54 = vpack.i.b16 %v16750_v46, %v16738_v42 }
 0xd68   :  { %v16772_v55 = vpack.i.b16 %v2714_v48, %v2713_v51  ;;  %v2732_v58 = vrot.slane %v16770_v54, %v16364_v39  ;;  %v2725_v5 = vcombine.high %v16770_v54, %v16381_v50 }
 0xd69   :  { %v16756_v30 = vpop.permute.xlu1 %2707 }
 0xd6a   :  { %2987 = vrot.lane.b32.xlu0 %v16756_v30, %s16236_s29  ;;  %v2722_v23 = vshrl.u32 %v16756_v30, 16  ;;  %v16765_v49 = vpack.i.b16 %v16756_v30, %v16748_v44  ;;  %v2798_v18 = vrot.slane %v16772_v55, %v16364_v39  ;;  %v2791_v15 = vcombine.high %v16772_v55, %v16381_v50 }
 0xd6c   :  { %v2723_v53 = vpack.i.b16 %v2722_v23, %v2721_v22  ;;  %v2747_v56 = vrot.slane %v16765_v49, %v16364_v39  ;;  %v2740_v47 = vcombine.high %v16765_v49, %v16381_v50 }
 0xd6d   :  { %v2982_v43 = vpop.permute.xlu1 %2981 }
 0xd6e   :  { %v2813_v57 = vrot.slane %v2723_v53, %v16364_v39  ;;  %v2755_v59 = vcombine.low %v2732_v58, %v2747_v56  ;;  %v2756_v60 = vcombine.high %v2732_v58, %v2747_v56  ;;  %v2993_v2 = vshrl.u32 %v2982_v43, 16 }
 0xd6f   :  { %v2806_v7 = vcombine.high %v2723_v53, %v16381_v50 }
 0xd70   :  { %v2821_v62 = vcombine.low %v2798_v18, %v2813_v57  ;;  %v2822_v25 = vcombine.high %v2798_v18, %v2813_v57  ;;  %v2763_v16 = vrot.slane %v2755_v59, %v16383_v52  ;;  %v2770_v19 = vrot.slane %v2756_v60, %v16383_v52 }
 0xd71   :  { %v16797_v31 = vrot.slane %v2806_v7, %v16364_v39 }
 0xd72   :  { %v2829_v20 = vrot.slane %v2821_v62, %v16383_v52  ;;  %v2836_v21 = vrot.slane %v2822_v25, %v16383_v52  ;;  %v2857_v32 = vcombine.low %v2763_v16, %v2770_v19  ;;  %v14374_v60 = vcombine.high %v2763_v16, %v2770_v19 }
 0xd73   :  { %v2805_v16 = vrot.slane %v2791_v15, %v16364_v39  ;;  %v2754_v19 = vrot.slane %v2740_v47, %v16364_v39 }
 0xd74   :  { %v2882_v33 = vcombine.low %v2829_v20, %v2836_v21  ;;  %v14375_v41 = vcombine.high %v2829_v20, %v2836_v21 }
 0xd75   :  { %v2837_v47 = vcombine.low %v2805_v16, %v16797_v31 }
 0xd76   :  { %v2889_v25 = vrot.slane %v2882_v33, %v16364_v39  ;;  %v2897_v20 = vrot.slane %v14375_v41, %v16364_v39 }
 0xdd8   :  { %v2984_v10 = vpop.permute.xlu0 %2983  ;;  %v2986_v3 = vpop.permute.xlu1 %2985 }
 0xdd9   :  { %v2994_v61 = vshrl.u32 %v2984_v10, 16  ;;  %v2991_v24 = vpack.i.b16 %v2984_v10, %v2982_v43  ;;  %v3001_v26 = vshrl.u32 %v2986_v3, 16 }
 0xddb   :  { %v2995_v9 = vpack.i.b16 %v2994_v61, %v2993_v2  ;;  %v3005_v27 = vcombine.high %v2991_v24, %v16381_v50  ;;  %v3012_v29 = vrot.slane %v2991_v24, %v16364_v39 }
 0xddc   :  { %v2988_v13 = vpop.permute.xlu0 %2987 }
 0xddd   :  { %v2999_v11 = vpack.i.b16 %v2988_v13, %v2986_v3  ;;  %v3002_v12 = vshrl.u32 %v2988_v13, 16  ;;  %v3071_v1 = vcombine.high %v2995_v9, %v16381_v50  ;;  %v3078_v38 = vrot.slane %v2995_v9, %v16364_v39 }
 0xdde   :  { %v3019_v6 = vrot.slane %v3005_v27, %v16364_v39  ;;  %v2872_v27 = vrot.slane %v14374_v60, %v16364_v39 }
 0xddf   :  { %v3020_v45 = vcombine.high %v2999_v11, %v16381_v50  ;;  %v3027_v63 = vrot.slane %v2999_v11, %v16364_v39  ;;  %v3003_v4 = vpack.i.b16 %v3002_v12, %v3001_v26  ;;  %v3085_v48 = vrot.slane %v3071_v1, %v16364_v39 }
 0xde0   :  { %v2864_v12 = vrot.slane %v2857_v32, %v16364_v39 }
 0xde1   :  { %v3034_v34 = vrot.slane %v3020_v45, %v16364_v39  ;;  %v3035_v37 = vcombine.low %v3012_v29, %v3027_v63  ;;  %v3036_v17 = vcombine.high %v3012_v29, %v3027_v63  ;;  %v3086_v40 = vcombine.high %v3003_v4, %v16381_v50 }
 0xde2   :  { %v3093_v8 = vrot.slane %v3003_v4, %v16364_v39  ;;  %v2739_v63 = vrot.slane %v2725_v5, %v16364_v39  ;;  %v2838_v4 = vcombine.high %v2805_v16, %v16797_v31 }
 0xde3   :  { %v3043_v23 = vrot.slane %v3035_v37, %v16383_v52  ;;  %v3050_v22 = vrot.slane %v3036_v17, %v16383_v52  ;;  %v3100_v49 = vrot.slane %v3086_v40, %v16364_v39  ;;  %v3051_v55 = vcombine.low %v3019_v6, %v3034_v34 }
 0xde4   :  { %v3101_v51 = vcombine.low %v3078_v38, %v3093_v8  ;;  %v3102_v53 = vcombine.high %v3078_v38, %v3093_v8  ;;  %v3052_v56 = vcombine.high %v3019_v6, %v3034_v34  ;;  %v2898_v37 = vcombine.low %v2889_v25, %v2897_v20 }
 0xde5   :  { %v3137_v57 = vcombine.low %v3043_v23, %v3050_v22  ;;  %v14378_v58 = vcombine.high %v3043_v23, %v3050_v22  ;;  %v3117_v10 = vcombine.low %v3085_v48, %v3100_v49  ;;  %v3118_v59 = vcombine.high %v3085_v48, %v3100_v49 }
 0xde6   :  { %v3109_v43 = vrot.slane %v3101_v51, %v16383_v52  ;;  %v3116_v18 = vrot.slane %v3102_v53, %v16383_v52  ;;  %v3059_v9 = vrot.slane %v3051_v55, %v16383_v52  ;;  %v3066_v13 = vrot.slane %v3052_v56, %v16383_v52 }
 0xde7   :  { %v3144_v61 = vrot.slane %v3137_v57, %v16364_v39  ;;  %v3152_v62 = vrot.slane %v14378_v58, %v16364_v39  ;;  %v3125_v2 = vrot.slane %v3117_v10, %v16383_v52  ;;  %v3132_v24 = vrot.slane %v3118_v59, %v16383_v52 }
 0xde8   :  { %v3162_v3 = vcombine.low %v3109_v43, %v3116_v18  ;;  %v14379_v7 = vcombine.high %v3109_v43, %v3116_v18  ;;  %v3187_v34 = vcombine.low %v3059_v9, %v3066_v13  ;;  %v2771_v17 = vcombine.low %v2739_v63, %v2754_v19 }
 0xde9   :  { %v3153_v11 = vcombine.low %v3144_v61, %v3152_v62  ;;  %v3212_v29 = vcombine.low %v3125_v2, %v3132_v24  ;;  %v14381_v45 = vcombine.high %v3125_v2, %v3132_v24  ;;  %v14380_v32 = vcombine.high %v3059_v9, %v3066_v13 }
 0xdea   :  { %v3169_v21 = vrot.slane %v3162_v3, %v16364_v39  ;;  %v3177_v26 = vrot.slane %v14379_v7, %v16364_v39  ;;  %v2772_v38 = vcombine.high %v2739_v63, %v2754_v19  ;;  %v2873_v40 = vcombine.low %v2864_v12, %v2872_v27 }
 0xdeb   :  { %v3160_v1 = vrot.slane %v3153_v11, %v16383_v52  ;;  %v3219_v8 = vrot.slane %v3212_v29, %v16364_v39  ;;  %v3227_v54 = vrot.slane %v14381_v45, %v16364_v39  ;;  %v2845_v22 = vrot.slane %v2837_v47, %v16383_v52 }
 0xdec   :  { %v3178_v15 = vcombine.low %v3169_v21, %v3177_v26  ;;  %v2852_v31 = vrot.slane %v2838_v4, %v16383_v52  ;;  %v2905_v48 = vrot.slane %v2898_v37, %v16383_v52  ;;  %v3194_v49 = vrot.slane %v3187_v34, %v16364_v39 }
 0xded   :  { %v3240_v41 = vshrl.u32 %v3160_v1, 16  ;;  %v3161_v55 = vcombine.high %v3160_v1, %v16233_v14  ;;  %v3202_v56 = vrot.slane %v14380_v32, %v16364_v39  ;;  %v2779_v57 = vrot.slane %v2771_v17, %v16383_v52 }
 0xdee   :  { %v3185_v33 = vrot.slane %v3178_v15, %v16383_v52  ;;  %v2786_v58 = vrot.slane %v2772_v38, %v16383_v52  ;;  %v2880_v18 = vrot.slane %v2873_v40, %v16383_v52  ;;  %v3228_v59 = vcombine.low %v3219_v8, %v3227_v54 }
 0xdef   :  { %v2932_v60 = vcombine.low %v2845_v22, %v2852_v31  ;;  %v14377_v61 = vcombine.high %v2845_v22, %v2852_v31  ;;  %v2961_v25 = vshrl.u32 %v2905_v48, 16  ;;  %v3246_v2 = vshrl.u32 %v3161_v55, 16 }
 0xdf0   :  { %v3239_v5 = vpack.i.b16 %v3185_v33, %v3160_v1  ;;  %v3241_v6 = vshrl.u32 %v3185_v33, 16  ;;  %v3186_v23 = vcombine.high %v3185_v33, %v16233_v14  ;;  %v3203_v24 = vcombine.low %v3194_v49, %v3202_v56 }
 0xdf1   :  { %v2907_v3 = vcombine.low %v2779_v57, %v2786_v58  ;;  %v14376_v7 = vcombine.high %v2779_v57, %v2786_v58  ;;  %v2959_v9 = vpack.i.b16 %v2905_v48, %v2880_v18  ;;  %v2960_v13 = vshrl.u32 %v2880_v18, 16 }
 0xdf2   :  { %v3545_v51 = vsel %vm1180_vm5, %v3239_v5, 0  ;;  %v3242_v53 = vpack.i.b16 %v3241_v6, %v3240_v41  ;;  %v3247_v10 = vshrl.u32 %v3186_v23, 16  ;;  %v3245_v62 = vpack.i.b16 %v3186_v23, %v3161_v55 }
 0xdf3   :  { %15069 = vmatpush3.bf16.xpose.msra.mxu0 %v3545_v51  ;;  %v3235_v20 = vrot.slane %v3228_v59, %v16383_v52  ;;  %v2939_v16 = vrot.slane %v2932_v60, %v16364_v39  ;;  %v2947_v19 = vrot.slane %v14377_v61, %v16364_v39  ;;  %v2962_v26 = vpack.i.b16 %v2961_v25, %v2960_v13 }
 0xdf4   :  { %v3591_v43 = vsel %vm1180_vm5, %v3242_v53, 0  ;;  %15080 = vmatprep.subr.bf16.mxu0 %v16230_v0  ;;  %v3248_v11 = vpack.i.b16 %v3247_v10, %v3246_v2  ;;  %v3637_v21 = vsel %vm1180_vm5, %v3245_v62, 0  ;;  %v2906_v12 = vcombine.high %v2905_v48, %v16233_v14 }
 0xdf5   :  { %15075 = vmatpush3.bf16.xpose.msra.mxu1 %v3591_v43  ;;  %v3210_v27 = vrot.slane %v3203_v24, %v16383_v52  ;;  %v2914_v29 = vrot.slane %v2907_v3, %v16364_v39  ;;  %v2922_v45 = vrot.slane %v14376_v7, %v16364_v39  ;;  %v2881_v1 = vcombine.high %v2880_v18, %v16233_v14 }
 0xdf6   :  { %15086 = vmatprep.subr.bf16.mxu1 %v16230_v0  ;;  %v3683_v63 = vsel %vm1180_vm5, %v3248_v11, 0  ;;  %v3253_v15 = vshrl.u32 %v3235_v20, 16  ;;  %v2967_v4 = vshrl.u32 %v2906_v12, 16  ;;  %v2948_v37 = vcombine.low %v2939_v16, %v2947_v19 }
 0xdf7   :  { %v3251_v47 = vpack.i.b16 %v3235_v20, %v3210_v27  ;;  %v3252_v34 = vshrl.u32 %v3210_v27, 16  ;;  %v2923_v17 = vcombine.low %v2914_v29, %v2922_v45  ;;  %v2965_v32 = vpack.i.b16 %v2906_v12, %v2881_v1 }
 0xdf8   :  { %v2966_v33 = vshrl.u32 %v2881_v1, 16  ;;  %v3236_v40 = vcombine.high %v3235_v20, %v16233_v14  ;;  %v2955_v5 = vrot.slane %v2948_v37, %v16383_v52  ;;  %v3211_v41 = vcombine.high %v3210_v27, %v16233_v14 }
 0xdf9   :  { %v3254_v38 = vpack.i.b16 %v3253_v15, %v3252_v34  ;;  %v3729_v8 = vsel %vm1180_vm5, %v3251_v47, 0  ;;  %v2930_v23 = vrot.slane %v2923_v17, %v16383_v52 }
 0xdfa   :  { %15071 = vmatmul.mubr.msk.bf16.vlgmr.msra.gmra.mxu0 %vm1180_vm5, %v2959_v9  ;;  %v2968_v54 = vpack.i.b16 %v2967_v4, %v2966_v33  ;;  %v3259_v22 = vshrl.u32 %v3236_v40, 16  ;;  %v3257_v31 = vpack.i.b16 %v3236_v40, %v3211_v41  ;;  %v2973_v48 = vshrl.u32 %v2955_v5, 16 }
 0xdfb   :  { %15081 = vmatpush3.bf16.xpose.msra.mxu0 %v3637_v21  ;;  %15082 = vmatprep.mubr.msk.bf16.mxu0 %vm16231_vm0, %v16230_v0  ;;  %v3775_v6 = vsel %vm1180_vm5, %v3254_v38, 0  ;;  %v3258_v49 = vshrl.u32 %v3211_v41, 16  ;;  %v2971_v51 = vpack.i.b16 %v2955_v5, %v2930_v23  ;;  %v2972_v53 = vshrl.u32 %v2930_v23, 16 }
 0xdfc   :  { %15077 = vmatmul.mubr.msk.bf16.vlgmr.msra.gmra.mxu1 %vm1180_vm5, %v2962_v26  ;;  %15092 = vmatprep.subr.bf16.mxu0 %v16230_v0  ;;  %v3821_v56 = vsel %vm1180_vm5, %v3257_v31, 0  ;;  %v2956_v58 = vcombine.high %v2955_v5, %v16233_v14  ;;  %v2931_v18 = vcombine.high %v2930_v23, %v16233_v14 }
 0xdfd   :  { %15087 = vmatpush3.bf16.xpose.msra.mxu1 %v3683_v63  ;;  %15088 = vmatprep.mubr.msk.bf16.mxu1 %vm16231_vm0, %v16230_v0  ;;  %v3260_v55 = vpack.i.b16 %v3259_v22, %v3258_v49  ;;  %v2974_v57 = vpack.i.b16 %v2973_v48, %v2972_v53 }
 0xdfe   :  { %15098 = vmatprep.subr.bf16.mxu1 %v16230_v0  ;;  %v2979_v10 = vshrl.u32 %v2956_v58, 16  ;;  %v2977_v59 = vpack.i.b16 %v2956_v58, %v2931_v18  ;;  %v2978_v60 = vshrl.u32 %v2931_v18, 16 }
 0xdff   :  { %v3867_v43 = vsel %vm1180_vm5, %v3260_v55, 0 }
 0xe00   :  { %v2980_v61 = vpack.i.b16 %v2979_v10, %v2978_v60 }
 0xe02   :  { %15083 = vmatmul.mubr.msk.bf16.vlgmr.msra.gmra.mxu0 %vm1180_vm5, %v2965_v32 }
 0xe03   :  { %15093 = vmatpush3.bf16.xpose.msra.mxu0 %v3729_v8  ;;  %15094 = vmatprep.mubr.msk.bf16.mxu0 %vm16231_vm0, %v16230_v0 }
 0xe04   :  { %15089 = vmatmul.mubr.msk.bf16.vlgmr.msra.gmra.mxu1 %vm1180_vm5, %v2968_v54  ;;  %15104 = vmatprep.subr.bf16.mxu0 %v16230_v0 }
 0xe05   :  { %15099 = vmatpush3.bf16.xpose.msra.mxu1 %v3775_v6  ;;  %15100 = vmatprep.mubr.msk.bf16.mxu1 %vm16231_vm0, %v16230_v0 }
 0xe06   :  { %15110 = vmatprep.subr.bf16.mxu1 %v16230_v0 }
 0xe0a   :  { %15095 = vmatmul.mubr.msk.bf16.vlgmr.msra.gmra.mxu0 %vm1180_vm5, %v2971_v51 }
 0xe0b   :  { %15105 = vmatpush3.bf16.xpose.msra.mxu0 %v3821_v56  ;;  %15106 = vmatprep.mubr.msk.bf16.mxu0 %vm16231_vm0, %v16230_v0 }
 0xe0c   :  { %15101 = vmatmul.mubr.msk.bf16.vlgmr.msra.gmra.mxu1 %vm1180_vm5, %v2974_v57  ;;  %15116 = vmatprep.subr.bf16.mxu0 %v16230_v0 }
 0xe0d   :  { %15111 = vmatpush3.bf16.xpose.msra.mxu1 %v3867_v43  ;;  %15112 = vmatprep.mubr.msk.bf16.mxu1 %vm16231_vm0, %v16230_v0 }
 0xe0e   :  { %15122 = vmatprep.subr.bf16.mxu1 %v16230_v0 }
 0xe12   :  { %15107 = vmatmul.mubr.msk.bf16.vlgmr.msra.gmra.mxu0 %vm1180_vm5, %v2977_v59 }
 0xe13   :  { %15118 = vmatprep.mubr.msk.bf16.mxu0 %vm16231_vm0, %v16230_v0 }
 0xe14   :  { %15113 = vmatmul.mubr.msk.bf16.vlgmr.msra.gmra.mxu1 %vm1180_vm5, %v2980_v61 }
 0xe15   :  { %15124 = vmatprep.mubr.msk.bf16.mxu1 %vm16231_vm0, %v16230_v0 }
 0xeba   :  { %v3581_v62 = vpop.f32.mrf.mxu0 }
 0xebb   :  { %v3909_v25 = vsel %vm1180_vm5, %v3581_v62, -inf }
 0xebc   :  { %v3627_v2 = vpop.f32.mrf.mxu1  ;;  %3910 = vmax.xlane.f32.xlu1 %v3909_v25  ;;  %v15072_v24 = vpop.f32.mrf.mxu0 }
 0xebd   :  { %v3912_v3 = vsel %vm1180_vm5, %v3627_v2, -inf }
 0xebe   :  { %3913 = vmax.xlane.f32.xlu0 %v3912_v3  ;;  %v3584_v7 = vpop.f32.mrf.mxu0  ;;  %v15078_v9 = vpop.f32.mrf.mxu1 }
 0xec0   :  { %v15073_v13 = vpop.f32.mrf.mxu0  ;;  %v3630_v11 = vpop.f32.mrf.mxu1 }
 0xec2   :  { %v15079_v20 = vpop.f32.mrf.mxu1  ;;  %v16901_v16 = vpop.f32.mrf.mxu0 }
 0xec3   :  { %v3915_v19 = vsel %vm1180_vm5, %v16901_v16, -inf }
 0xec4   :  { %v3719_v21 = vpop.f32.mrf.mxu1  ;;  %3916 = vmax.xlane.f32.xlu0 %v3915_v19  ;;  %v15084_v26 = vpop.f32.mrf.mxu0 }
 0xec5   :  { %v3918_v12 = vsel %vm1180_vm5, %v3719_v21, -inf }
 0xec6   :  { %v15090_v27 = vpop.f32.mrf.mxu1  ;;  %3919 = vmax.xlane.f32.xlu1 %v3918_v12  ;;  %v3676_v29 = vpop.f32.mrf.mxu0 }
 0xec8   :  { %v15085_v45 = vpop.f32.mrf.mxu0  ;;  %v3722_v63 = vpop.f32.mrf.mxu1 }
 0xeca   :  { %v15091_v1 = vpop.f32.mrf.mxu1  ;;  %v3765_v15 = vpop.f32.mrf.mxu0 }
 0xecb   :  { %v3921_v47 = vsel %vm1180_vm5, %v3765_v15, -inf }
 0xecc   :  { %v3811_v4 = vpop.f32.mrf.mxu1  ;;  %3922 = vmax.xlane.f32.xlu0 %v3921_v47  ;;  %v15096_v34 = vpop.f32.mrf.mxu0 }
 0xecd   :  { %v3924_v37 = vsel %vm1180_vm5, %v3811_v4, -inf }
 0xece   :  { %v15102_v17 = vpop.f32.mrf.mxu1  ;;  %3925 = vmax.xlane.f32.xlu1 %v3924_v37  ;;  %v3768_v32 = vpop.f32.mrf.mxu0 }
 0xed0   :  { %v15097_v33 = vpop.f32.mrf.mxu0  ;;  %v3814_v38 = vpop.f32.mrf.mxu1 }
 0xed2   :  { %v15103_v40 = vpop.f32.mrf.mxu1  ;;  %v3857_v8 = vpop.f32.mrf.mxu0 }
 0xed3   :  { %v3927_v54 = vsel %vm1180_vm5, %v3857_v8, -inf }
 0xed4   :  { %v3903_v5 = vpop.f32.mrf.mxu1  ;;  %3928 = vmax.xlane.f32.xlu0 %v3927_v54  ;;  %v15108_v41 = vpop.f32.mrf.mxu0 }
 0xed5   :  { %v3930_v6 = vsel %vm1180_vm5, %v3903_v5, -inf }
 0xed6   :  { %v15114_v23 = vpop.f32.mrf.mxu1  ;;  %3931 = vmax.xlane.f32.xlu1 %v3930_v6  ;;  %v3860_v22 = vpop.f32.mrf.mxu0 }
 0xed8   :  { %v15109_v31 = vpop.f32.mrf.mxu0  ;;  %v3906_v48 = vpop.f32.mrf.mxu1 }
 0xeda   :  { %v15115_v49 = vpop.f32.mrf.mxu1 }
 0xee7   :  { %3263 = vrot.lane.b32.xlu1 %v16750_v46, %s16240_s8 }
 0xeea   :  { %3261 = vrot.lane.b32.xlu0 %v16738_v42, %s16240_s8 }
 0xf45   :  { %v3911_v51 = vpop.xlane.xlu1 %3910 }
 0xf46   :  { %v3933_v53 = vsub.f32 %v3581_v62, %v3911_v51 }
 0xf47   :  { %v3914_v55 = vpop.xlane.xlu0 %3913 }
 0xf48   :  { %v3941_v56 = vmul.f32 1.442695, %v3933_v53  ;;  %v3934_v57 = vsub.f32 %v3627_v2, %v3914_v55 }
 0xf4a   :  { %15940 = vpow2.f32 %v3941_v56  ;;  %v3943_v58 = vmul.f32 1.442695, %v3934_v57 }
 0xf4c   :  { %15942 = vpow2.f32 %v3943_v58 }
 0xf4d   :  { %v3917_v42 = vpop.xlane.xlu0 %3916 }
 0xf4e   :  { %v3935_v62 = vsub.f32 %v16901_v16, %v3917_v42 }
 0xf4f   :  { %v3920_v59 = vpop.xlane.xlu1 %3919 }
 0xf50   :  { %v3936_v60 = vsub.f32 %v3719_v21, %v3920_v59  ;;  %v3945_v7 = vmul.f32 1.442695, %v3935_v62 }
 0xf52   :  { %v3947_v2 = vmul.f32 1.442695, %v3936_v60 }
 0xf54   :  { %15944 = vpow2.f32 %v3947_v2 }
 0xf55   :  { %v3923_v61 = vpop.xlane.xlu0 %3922  ;;  %15946 = vpow2.f32 %v3945_v7 }
 0xf56   :  { %v3937_v24 = vsub.f32 %v3765_v15, %v3923_v61 }
 0xf57   :  { %v16914_v43 = vpop.eup %15940  ;;  %v3926_v25 = vpop.xlane.xlu1 %3925 }
 0xf58   :  { %v3957_v18 = vsel %vm1180_vm5, %v16914_v43, 0.0  ;;  %v3938_v9 = vsub.f32 %v3811_v4, %v3926_v25  ;;  %v3949_v11 = vmul.f32 1.442695, %v3937_v24 }
 0xf59   :  { %v16918_v10 = vpop.eup %15942  ;;  %3958 = vadd.xlane.f32.xlu0 %v3957_v18 }
 0xf5a   :  { %v3960_v46 = vsel %vm1180_vm5, %v16918_v10, 0.0  ;;  %15948 = vpow2.f32 %v3949_v11 }
 0xf5b   :  { %3961 = vadd.xlane.f32.xlu1 %v3960_v46 }
 0xf5d   :  { %v3929_v3 = vpop.xlane.xlu0 %3928 }
 0xf5e   :  { %v3939_v20 = vsub.f32 %v3857_v8, %v3929_v3 }
 0xf5f   :  { %v3932_v13 = vpop.xlane.xlu1 %3931 }
 0xf60   :  { %v3940_v19 = vsub.f32 %v3903_v5, %v3932_v13 }
 0xf61   :  { %v16927_v16 = vpop.eup %15944  ;;  %v3262_v37 = vpop.permute.xlu0 %3261 }
 0xf62   :  { %v3955_v21 = vmul.f32 1.442695, %v3940_v19  ;;  %v16929_v26 = vpop.eup %15946  ;;  %v3966_v12 = vsel %vm1180_vm5, %v16927_v16, 0.0  ;;  %v3273_v54 = vshrl.u32 %v3262_v37, 16 }
 0xf63   :  { %v3963_v29 = vsel %vm1180_vm5, %v16929_v26, 0.0  ;;  %v3264_v17 = vpop.permute.xlu1 %3263 }
 0xf64   :  { %v3274_v38 = vshrl.u32 %v3264_v17, 16  ;;  %v16951_v8 = vpack.i.b16 %v3264_v17, %v3262_v37 }
 0xf66   :  { %v16955_v22 = vpack.i.b16 %v3274_v38, %v3273_v54  ;;  %v3292_v31 = vrot.slane %v16951_v8, %v16364_v39 }
 0xf67   :  { %v16933_v27 = vpop.eup %15948 }
 0xf68   :  { %v3969_v63 = vsel %vm1180_vm5, %v16933_v27, 0.0  ;;  %v3358_v55 = vrot.slane %v16955_v22, %v16364_v39 }
 0xf6c   :  { %3265 = vrot.lane.b32.xlu1 %v16748_v44, %s16240_s8  ;;  %v3951_v44 = vmul.f32 1.442695, %v3938_v9 }
 0xf6e   :  { %15950 = vpow2.f32 %v3951_v44 }
 0xf6f   :  { %3267 = vrot.lane.b32.xlu0 %v16756_v30, %s16240_s8  ;;  %v3953_v30 = vmul.f32 1.442695, %v3939_v20 }
 0xf71   :  { %15952 = vpow2.f32 %v3953_v30 }
 0xf72   :  { %15954 = vpow2.f32 %v3955_v21 }
 0xf7b   :  { %v16937_v45 = vpop.eup %15950 }
 0xf7c   :  { %v3972_v15 = vsel %vm1180_vm5, %v16937_v45, 0.0 }
 0xf7e   :  { %v16941_v1 = vpop.eup %15952 }
 0xf7f   :  { %v16945_v47 = vpop.eup %15954  ;;  %v3975_v4 = vsel %vm1180_vm5, %v16941_v1, 0.0 }
 0xf80   :  { %v3978_v34 = vsel %vm1180_vm5, %v16945_v47, 0.0 }
 0xf8e   :  { %3967 = vadd.xlane.f32.xlu0 %v3966_v12 }
 0xf90   :  { %3964 = vadd.xlane.f32.xlu1 %v3963_v29 }
 0xf92   :  { %3970 = vadd.xlane.f32.xlu0 %v3969_v63 }
 0xf94   :  { %3973 = vadd.xlane.f32.xlu1 %v3972_v15 }
 0xf96   :  { %3976 = vadd.xlane.f32.xlu0 %v3975_v4 }
 0xf98   :  { %3979 = vadd.xlane.f32.xlu1 %v3978_v34 }
 0xfe2   :  { %v3959_v32 = vpop.xlane.xlu0 %3958 }
 0xfe3   :  { %15956 = vrcp.f32 %v3959_v32 }
 0xfe4   :  { %v3962_v33 = vpop.xlane.xlu1 %3961 }
 0xfe5   :  { %15958 = vrcp.f32 %v3962_v33 }
 0xfe6   :  { %v3268_v40 = vpop.permute.xlu0 %3267 }
 0xfe7   :  { %v3282_v41 = vshrl.u32 %v3268_v40, 16 }
 0xfe8   :  { %v3266_v5 = vpop.permute.xlu1 %3265 }
 0xfe9   :  { %v16953_v6 = vpack.i.b16 %v3268_v40, %v3266_v5  ;;  %v3281_v23 = vshrl.u32 %v3266_v5, 16 }
 0xfeb   :  { %v3283_v48 = vpack.i.b16 %v3282_v41, %v3281_v23  ;;  %v3307_v49 = vrot.slane %v16953_v6, %v16364_v39  ;;  %v3351_v41 = vcombine.high %v16955_v22, %v16381_v50  ;;  %v3300_v23 = vcombine.high %v16953_v6, %v16381_v50 }
 0xfed   :  { %v3315_v51 = vcombine.low %v3292_v31, %v3307_v49  ;;  %v3316_v53 = vcombine.high %v3292_v31, %v3307_v49  ;;  %v3373_v56 = vrot.slane %v3283_v48, %v16364_v39  ;;  %v3366_v54 = vcombine.high %v3283_v48, %v16381_v50 }
 0xfee   :  { %v3285_v48 = vcombine.high %v16951_v8, %v16381_v50  ;;  %v3365_v22 = vrot.slane %v3351_v41, %v16364_v39  ;;  %v3314_v6 = vrot.slane %v3300_v23, %v16364_v39 }
 0xfef   :  { %v3323_v57 = vrot.slane %v3315_v51, %v16383_v52  ;;  %v3330_v58 = vrot.slane %v3316_v53, %v16383_v52  ;;  %v3381_v18 = vcombine.low %v3358_v55, %v3373_v56  ;;  %v3382_v46 = vcombine.high %v3358_v55, %v3373_v56 }
 0xff0   :  { %v15957_v11 = vpop.eup %15956  ;;  %v3380_v49 = vrot.slane %v3366_v54, %v16364_v39  ;;  %v3299_v51 = vrot.slane %v3285_v48, %v16364_v39 }
 0xff1   :  { %v3417_v42 = vcombine.low %v3323_v57, %v3330_v58  ;;  %v14382_v59 = vcombine.high %v3323_v57, %v3330_v58  ;;  %v3389_v60 = vrot.slane %v3381_v18, %v16383_v52  ;;  %v3396_v61 = vrot.slane %v3382_v46, %v16383_v52 }
 0xff2   :  { %v15959_v19 = vpop.eup %15958  ;;  %v3989_v21 = vmul.f32 %v15957_v11, %v16914_v43  ;;  %v3397_v53 = vcombine.low %v3365_v22, %v3380_v49  ;;  %v3398_v55 = vcombine.high %v3365_v22, %v3380_v49  ;;  %v3331_v56 = vcombine.low %v3299_v51, %v3314_v6 }
 0xff3   :  { %v3424_v62 = vrot.slane %v3417_v42, %v16364_v39  ;;  %v3432_v25 = vrot.slane %v14382_v59, %v16364_v39  ;;  %v3442_v2 = vcombine.low %v3389_v60, %v3396_v61  ;;  %v14383_v24 = vcombine.high %v3389_v60, %v3396_v61 }
 0xff4   :  { %v3990_v4 = vmul.f32 %v15959_v19, %v16918_v10  ;;  %v3997_v40 = vpack.c.bf16 %v3989_v21, %v3989_v21  ;;  %v3332_v57 = vcombine.high %v3299_v51, %v3314_v6  ;;  %v3405_v58 = vrot.slane %v3397_v53, %v16383_v52 }
 0xff5   :  { %v3433_v3 = vcombine.low %v3424_v62, %v3432_v25  ;;  %v3449_v7 = vrot.slane %v3442_v2, %v16364_v39  ;;  %v3457_v9 = vrot.slane %v14383_v24, %v16364_v39  ;;  %v3412_v18 = vrot.slane %v3398_v55, %v16383_v52 }
 0xff6   :  { %v3998_v5 = vpack.c.bf16 %v3990_v4, %v3990_v4  ;;  %v3339_v8 = vrot.slane %v3331_v56, %v16383_v52  ;;  %v3346_v46 = vrot.slane %v3332_v57, %v16383_v52 }
 0xff7   :  { %v3440_v13 = vrot.slane %v3433_v3, %v16383_v52  ;;  %v3458_v20 = vcombine.low %v3449_v7, %v3457_v9  ;;  %v3492_v42 = vcombine.low %v3405_v58, %v3412_v18  ;;  %v14385_v59 = vcombine.high %v3405_v58, %v3412_v18 }
 0xff8   :  { %v3467_v60 = vcombine.low %v3339_v8, %v3346_v46  ;;  %v14384_v61 = vcombine.high %v3339_v8, %v3346_v46 }
 0xff9   :  { %v3441_v44 = vcombine.high %v3440_v13, %v16233_v14  ;;  %v3465_v30 = vrot.slane %v3458_v20, %v16383_v52  ;;  %v3520_v29 = vshrl.u32 %v3440_v13, 16  ;;  %v3499_v62 = vrot.slane %v3492_v42, %v16364_v39 }
 0xffa   :  { %v3507_v25 = vrot.slane %v14385_v59, %v16364_v39  ;;  %v3474_v24 = vrot.slane %v3467_v60, %v16364_v39  ;;  %v3482_v3 = vrot.slane %v14384_v61, %v16364_v39 }
 0xffb   :  { %v3519_v12 = vpack.i.b16 %v3465_v30, %v3440_v13  ;;  %v3521_v63 = vshrl.u32 %v3465_v30, 16  ;;  %v3466_v15 = vcombine.high %v3465_v30, %v16233_v14  ;;  %v3526_v34 = vshrl.u32 %v3441_v44, 16 }
 0xffc   :  { %v3508_v9 = vcombine.low %v3499_v62, %v3507_v25  ;;  %v3483_v11 = vcombine.low %v3474_v24, %v3482_v3 }
 0xffd   :  { %v4009_v37 = vsel %vm1648_vm6, %v3519_v12, 0  ;;  %v3522_v17 = vpack.i.b16 %v3521_v63, %v3520_v29  ;;  %v3525_v32 = vpack.i.b16 %v3466_v15, %v3441_v44  ;;  %v3527_v33 = vshrl.u32 %v3466_v15, 16 }
 0xffe   :  { %15117 = vmatpush3.bf16.msra.mxu0 %v4009_v37  ;;  %v3515_v44 = vrot.slane %v3508_v9, %v16383_v52  ;;  %v3490_v19 = vrot.slane %v3483_v11, %v16383_v52 }
 0xfff   :  { %v4055_v38 = vsel %vm1648_vm6, %v3522_v17, 0  ;;  %15128 = vmatprep.subr.bf16.mxu0 %v16230_v0  ;;  %v3528_v43 = vpack.i.b16 %v3527_v33, %v3526_v34  ;;  %v4101_v10 = vsel %vm1648_vm6, %v3525_v32, 0 }
0x1000   :  { %15123 = vmatpush3.bf16.msra.mxu1 %v4055_v38  ;;  %v3533_v21 = vshrl.u32 %v3515_v44, 16  ;;  %v3532_v29 = vshrl.u32 %v3490_v19, 16  ;;  %v3516_v34 = vcombine.high %v3515_v44, %v16233_v14  ;;  %v3531_v33 = vpack.i.b16 %v3515_v44, %v3490_v19 }
0x1001   :  { %15119 = vmatmul.mubr.msk.bf16.vlgmr.msra.gmra.mxu0 %vm1180_vm5, %v3997_v40  ;;  %15134 = vmatprep.subr.bf16.mxu1 %v16230_v0  ;;  %v4147_v31 = vsel %vm1648_vm6, %v3528_v43, 0  ;;  %v3491_v38 = vcombine.high %v3490_v19, %v16233_v14 }
0x1002   :  { %15129 = vmatpush3.bf16.msra.mxu0 %v4101_v10  ;;  %15130 = vmatprep.mubr.msk.bf16.mxu0 %vm16231_vm0, %v16230_v0  ;;  %v3534_v4 = vpack.i.b16 %v3533_v21, %v3532_v29  ;;  %v3539_v10 = vshrl.u32 %v3516_v34, 16 }
0x1003   :  { %15125 = vmatmul.mubr.msk.bf16.vlgmr.msra.gmra.mxu1 %vm1180_vm5, %v3998_v5  ;;  %15140 = vmatprep.subr.bf16.mxu0 %v16230_v0  ;;  %v3538_v41 = vshrl.u32 %v3491_v38, 16  ;;  %v3537_v49 = vpack.i.b16 %v3516_v34, %v3491_v38 }
0x1004   :  { %15135 = vmatpush3.bf16.msra.mxu1 %v4147_v31  ;;  %15136 = vmatprep.mubr.msk.bf16.mxu1 %vm16231_vm0, %v16230_v0  ;;  %v4239_v43 = vsel %vm1648_vm6, %v3534_v4, 0 }
0x1005   :  { %15146 = vmatprep.subr.bf16.mxu1 %v16230_v0  ;;  %v3540_v23 = vpack.i.b16 %v3539_v10, %v3538_v41 }
0x1007   :  { %v4331_v6 = vsel %vm1648_vm6, %v3540_v23, 0 }
0x1017   :  { %v3968_v2 = vpop.xlane.xlu0 %3967 }
0x1018   :  { %15960 = vrcp.f32 %v3968_v2 }
0x1019   :  { %v3965_v7 = vpop.xlane.xlu1 %3964 }
0x101a   :  { %15962 = vrcp.f32 %v3965_v7 }
0x101b   :  { %v3971_v13 = vpop.xlane.xlu0 %3970 }
0x101c   :  { %15964 = vrcp.f32 %v3971_v13 }
0x101d   :  { %v3974_v20 = vpop.xlane.xlu1 %3973 }
0x101e   :  { %15966 = vrcp.f32 %v3974_v20 }
0x101f   :  { %v3977_v12 = vpop.xlane.xlu0 %3976 }
0x1021   :  { %v3980_v30 = vpop.xlane.xlu1 %3979 }
0x1022   :  { %15968 = vrcp.f32 %v3980_v30 }
0x1023   :  { %15970 = vrcp.f32 %v3977_v12 }
0x1025   :  { %v15961_v63 = vpop.eup %15960 }
0x1026   :  { %v3992_v15 = vmul.f32 %v15961_v63, %v16927_v16  ;;  %v4193_v16 = vsel %vm1648_vm6, %v3531_v33, 0 }
0x1027   :  { %v15963_v37 = vpop.eup %15962 }
0x1028   :  { %v4000_v17 = vpack.c.bf16 %v3992_v15, %v3992_v15  ;;  %v3991_v32 = vmul.f32 %v15963_v37, %v16929_v26 }
0x1029   :  { %v15965_v40 = vpop.eup %15964 }
0x102a   :  { %15137 = vmatmul.mubr.msk.bf16.vlgmr.msra.gmra.mxu1 %vm1180_vm5, %v4000_v17  ;;  %v3999_v54 = vpack.c.bf16 %v3991_v32, %v3991_v32  ;;  %v3993_v31 = vmul.f32 %v15965_v40, %v16933_v27 }
0x102b   :  { %v15967_v5 = vpop.eup %15966  ;;  %15147 = vmatpush3.bf16.msra.mxu1 %v4239_v43  ;;  %15148 = vmatprep.mubr.msk.bf16.mxu1 %vm16231_vm0, %v16230_v0 }
0x102c   :  { %15131 = vmatmul.mubr.msk.bf16.vlgmr.msra.gmra.mxu0 %vm1180_vm5, %v3999_v54  ;;  %15158 = vmatprep.subr.bf16.mxu1 %v16230_v0  ;;  %v3994_v26 = vmul.f32 %v15967_v5, %v16937_v45  ;;  %v4001_v51 = vpack.c.bf16 %v3993_v31, %v3993_v31  ;;  %v4285_v45 = vsel %vm1648_vm6, %v3537_v49, 0 }
0x102d   :  { %15141 = vmatpush3.bf16.msra.mxu0 %v4193_v16  ;;  %15142 = vmatprep.mubr.msk.bf16.mxu0 %vm16231_vm0, %v16230_v0 }
0x102e   :  { %15152 = vmatprep.subr.bf16.mxu0 %v16230_v0  ;;  %v4002_v48 = vpack.c.bf16 %v3994_v26, %v3994_v26 }
0x102f   :  { %v15969_v22 = vpop.eup %15968 }
0x1030   :  { %v15971_v53 = vpop.eup %15970  ;;  %v3996_v55 = vmul.f32 %v15969_v22, %v16945_v47 }
0x1031   :  { %v3995_v27 = vmul.f32 %v15971_v53, %v16941_v1 }
0x1032   :  { %15149 = vmatmul.mubr.msk.bf16.vlgmr.msra.gmra.mxu1 %vm1180_vm5, %v4002_v48  ;;  %v4004_v56 = vpack.c.bf16 %v3996_v55, %v3996_v55 }
0x1033   :  { %15159 = vmatpush3.bf16.msra.mxu1 %v4331_v6  ;;  %15160 = vmatprep.mubr.msk.bf16.mxu1 %vm16231_vm0, %v16230_v0  ;;  %v4003_v57 = vpack.c.bf16 %v3995_v27, %v3995_v27 }
0x1034   :  { %15143 = vmatmul.mubr.msk.bf16.vlgmr.msra.gmra.mxu0 %vm1180_vm5, %v4001_v51  ;;  %15172 = vmatprep.subr.bf16.mxu1 %v16230_v0 }
0x1035   :  { %15153 = vmatpush3.bf16.msra.mxu0 %v4285_v45  ;;  %15154 = vmatprep.mubr.msk.bf16.mxu0 %vm16231_vm0, %v16230_v0 }
0x1036   :  { %15164 = vmatprep.subr.bf16.mxu0 %v16230_v0 }
0x103a   :  { %15161 = vmatmul.mubr.msk.bf16.vlgmr.msra.gmra.mxu1 %vm1180_vm5, %v4004_v56 }
0x103b   :  { %15176 = vmatprep.mubr.msk.bf16.mxu1 %vm16231_vm0, %v16230_v0 }
0x103c   :  { %15155 = vmatmul.mubr.msk.bf16.vlgmr.msra.gmra.mxu0 %vm1180_vm5, %v4003_v57 }
0x103d   :  { %15168 = vmatprep.mubr.msk.bf16.mxu0 %vm16231_vm0, %v16230_v0 }
0x10c1   :  { %v4045_v47 = vpop.f32.mrf.mxu0 }
0x10c3   :  { %v15120_v58 = vpop.f32.mrf.mxu0  ;;  %v4091_v18 = vpop.f32.mrf.mxu1 }
0x10c5   :  { %v4048_v8 = vpop.f32.mrf.mxu0  ;;  %v15126_v46 = vpop.f32.mrf.mxu1 }
0x10c7   :  { %v15121_v1 = vpop.f32.mrf.mxu0  ;;  %v4094_v42 = vpop.f32.mrf.mxu1 }
0x10c9   :  { %v15127_v59 = vpop.f32.mrf.mxu1 }
0x10ea   :  { %v4183_v60 = vpop.f32.mrf.mxu1 }
0x10eb   :  { %v4389_v61 = vcombine.low %v4091_v18, %v4183_v60  ;;  %v4390_v62 = vcombine.high %v4091_v18, %v4183_v60 }
0x10ec   :  { %v4137_v25 = vpop.f32.mrf.mxu0  ;;  %v15138_v2 = vpop.f32.mrf.mxu1 }
0x10ed   :  { %v4373_v24 = vcombine.low %v4045_v47, %v4137_v25  ;;  %v4374_v3 = vcombine.high %v4045_v47, %v4137_v25  ;;  %v4397_v13 = vrot.slane %v4389_v61, %v16364_v39  ;;  %v4404_v11 = vrot.slane %v4390_v62, %v16364_v39 }
0x10ee   :  { %v15132_v7 = vpop.f32.mrf.mxu0  ;;  %v4186_v9 = vpop.f32.mrf.mxu1 }
0x10ef   :  { %v4381_v20 = vrot.slane %v4373_v24, %v16364_v39  ;;  %v4388_v44 = vrot.slane %v4374_v3, %v16364_v39 }
0x10f0   :  { %v4140_v19 = vpop.f32.mrf.mxu0  ;;  %v15139_v30 = vpop.f32.mrf.mxu1 }
0x10f1   :  { %v4405_v21 = vcombine.low %v4381_v20, %v4397_v13  ;;  %v4406_v12 = vcombine.high %v4381_v20, %v4397_v13  ;;  %v4421_v29 = vcombine.low %v4388_v44, %v4404_v11  ;;  %v4422_v63 = vcombine.high %v4388_v44, %v4404_v11 }
0x10f2   :  { %v15133_v15 = vpop.f32.mrf.mxu0  ;;  %v4275_v4 = vpop.f32.mrf.mxu1 }
0x10f3   :  { %v4413_v34 = vrot.slane %v4405_v21, %v16383_v52  ;;  %v4420_v37 = vrot.slane %v4406_v12, %v16383_v52  ;;  %v4429_v17 = vrot.slane %v4421_v29, %v16383_v52  ;;  %v4436_v32 = vrot.slane %v4422_v63, %v16383_v52  ;;  %v15846_v15 = vld [vmem:[#allocation2 + $0xb8] ss:$80 sps:$4 sm:$0xff]  }
0x10f4   :  { %v4229_v33 = vpop.f32.mrf.mxu0  ;;  %v15150_v38 = vpop.f32.mrf.mxu1  ;;  %15165 = vmatpush3.bf16.msra.mxu0 %v15846_v15 }
0x10f5   :  { %v4509_v40 = vcombine.low %v4413_v34, %v4420_v37  ;;  %v14402_v43 = vcombine.high %v4413_v34, %v4420_v37  ;;  %v4525_v54 = vcombine.low %v4429_v17, %v4436_v32  ;;  %v14403_v10 = vcombine.high %v4429_v17, %v4436_v32  ;;  %15166 = vmatprep.subr.bf16.mxu0 %v16230_v0 }
0x10f6   :  { %v15144_v5 = vpop.f32.mrf.mxu0  ;;  %v4278_v16 = vpop.f32.mrf.mxu1 }
0x10f7   :  { %v4516_v26 = vrot.slane %v4509_v40, %v16364_v39  ;;  %v4524_v41 = vrot.slane %v14402_v43, %v16364_v39  ;;  %v4532_v23 = vrot.slane %v4525_v54, %v16364_v39  ;;  %v4540_v31 = vrot.slane %v14403_v10, %v16364_v39 }
0x10f8   :  { %v4232_v48 = vpop.f32.mrf.mxu0  ;;  %v15151_v49 = vpop.f32.mrf.mxu1 }
0x10f9   :  { %v4541_v22 = vcombine.low %v4516_v26, %v4524_v41  ;;  %v4557_v6 = vcombine.low %v4532_v23, %v4540_v31  ;;  %v4542_v19 = vcombine.high %v4516_v26, %v4524_v41  ;;  %v4558_v30 = vcombine.high %v4532_v23, %v4540_v31  ;;  %v15847_v41 = vld [vmem:[#allocation2 + $0x18] ss:$80 sps:$4 sm:$0xff]  }
0x10fa   :  { %v15145_v51 = vpop.f32.mrf.mxu0  ;;  %v4367_v53 = vpop.f32.mrf.mxu1  ;;  %15167 = vmatpush3.bf16.msra.mxu0 %v15847_v41 }
0x10fb   :  { %v4457_v45 = vcombine.low %v4275_v4, %v4367_v53  ;;  %v4458_v55 = vcombine.high %v4275_v4, %v4367_v53  ;;  %v17060_v57 = vrot.slane %v4541_v22, %v16383_v52  ;;  %v17063_v47 = vrot.slane %v4557_v6, %v16383_v52  ;;  %15180 = vmatprep.subr.bf16.mxu0 %v16230_v0 }
0x10fc   :  { %v4321_v27 = vpop.f32.mrf.mxu0  ;;  %v15162_v56 = vpop.f32.mrf.mxu1  ;;  %v4556_v32 = vrot.slane %v4542_v19, %v16383_v52 }
0x10fd   :  { %v4441_v58 = vcombine.low %v4229_v33, %v4321_v27  ;;  %v4442_v18 = vcombine.high %v4229_v33, %v4321_v27  ;;  %v4573_v1 = vcombine.low %v17060_v57, %v17063_v47  ;;  %v4465_v42 = vrot.slane %v4457_v45, %v16364_v39 }
0x10fe   :  { %v15156_v8 = vpop.f32.mrf.mxu0  ;;  %v4370_v46 = vpop.f32.mrf.mxu1  ;;  %v4472_v59 = vrot.slane %v4458_v55, %v16364_v39  ;;  %v4572_v33 = vrot.slane %v4558_v30, %v16383_v52  ;;  %v4574_v48 = vcombine.high %v17060_v57, %v17063_v47 }
0x10ff   :  { %v4449_v60 = vrot.slane %v4441_v58, %v16364_v39  ;;  %v4456_v61 = vrot.slane %v4442_v18, %v16364_v39 }
0x1100   :  { %v4324_v62 = vpop.f32.mrf.mxu0  ;;  %v15163_v25 = vpop.f32.mrf.mxu1  ;;  %v4575_v23 = vcombine.low %v4556_v32, %v4572_v33  ;;  %v4576_v45 = vcombine.high %v4556_v32, %v4572_v33  ;;  %v4987_v33 = vld [vmem:[%s18768_s1 + $0x8] sm:$0xff] }
0x1101   :  { %v4473_v2 = vcombine.low %v4449_v60, %v4465_v42  ;;  %v4474_v24 = vcombine.high %v4449_v60, %v4465_v42  ;;  %v4489_v3 = vcombine.low %v4456_v61, %v4472_v59  ;;  %v4490_v7 = vcombine.high %v4456_v61, %v4472_v59 }
0x1102   :  { %v15157_v9 = vpop.f32.mrf.mxu0 }
0x1103   :  { %v4481_v13 = vrot.slane %v4473_v2, %v16383_v52  ;;  %v4488_v11 = vrot.slane %v4474_v24, %v16383_v52  ;;  %v4497_v20 = vrot.slane %v4489_v3, %v16383_v52  ;;  %v4504_v44 = vrot.slane %v4490_v7, %v16383_v52 }
0x1105   :  { %v4577_v21 = vcombine.low %v4481_v13, %v4488_v11  ;;  %v14404_v12 = vcombine.high %v4481_v13, %v4488_v11  ;;  %v4593_v29 = vcombine.low %v4497_v20, %v4504_v44  ;;  %v14405_v63 = vcombine.high %v4497_v20, %v4504_v44 }
0x1107   :  { %v4584_v4 = vrot.slane %v4577_v21, %v16364_v39  ;;  %v4592_v34 = vrot.slane %v14404_v12, %v16364_v39  ;;  %v4600_v37 = vrot.slane %v4593_v29, %v16364_v39  ;;  %v4608_v17 = vrot.slane %v14405_v63, %v16364_v39  ;;  %v4986_v12 = vld [vmem:[%s18768_s1] sm:$0xff] }
0x1109   :  { %v4610_v38 = vcombine.high %v4584_v4, %v4592_v34  ;;  %v4626_v40 = vcombine.high %v4600_v37, %v4608_v17  ;;  %v4609_v43 = vcombine.low %v4584_v4, %v4592_v34  ;;  %v4625_v54 = vcombine.low %v4600_v37, %v4608_v17 }
0x110b   :  { %v4624_v10 = vrot.slane %v4610_v38, %v16383_v52  ;;  %v4640_v5 = vrot.slane %v4626_v40, %v16383_v52  ;;  %v4617_v16 = vrot.slane %v4609_v43, %v16383_v52  ;;  %v4633_v26 = vrot.slane %v4625_v54, %v16383_v52  ;;  %v15848_v38 = vld [vmem:[#allocation2 + $0xbc] ss:$80 sps:$4 sm:$0xff]   ;;  %v15854_v43 = vld [vmem:[#allocation4 + $0x80] ss:$20 sps:$4 sm:$0xff]  }
0x110c   :  { %15173 = vmatpush3.bf16.msra.mxu1 %v15848_v38  ;;  %v15849_v40 = vld [vmem:[#allocation2 + $0x1c] ss:$80 sps:$4 sm:$0xff]   ;;  %v14431_v38 = vld [vmem:[#allocation6 + $0x12] ss:$0 sm:$0xff] }
0x110d   :  { %v4643_v31 = vcombine.low %v4624_v10, %v4640_v5  ;;  %v4642_v49 = vcombine.high %v4617_v16, %v4633_v26  ;;  %v4641_v22 = vcombine.low %v4617_v16, %v4633_v26  ;;  %v4644_v53 = vcombine.high %v4624_v10, %v4640_v5  ;;  %15174 = vmatprep.subr.bf16.mxu1 %v16230_v0 }
0x110f   :  { %v15759_v6 = vpack.i.bf16 %v4643_v31, %v4575_v23  ;;  %v15754_v51 = vpack.i.bf16 %v4642_v49, %v4574_v48  ;;  %v15764_v55 = vpack.i.bf16 %v4644_v53, %v4576_v45  ;;  %v14410_v48 = vld [vmem:[#allocation6 + $0xc] ss:$0 sm:$0xff] }
0x1110   :  { %15175 = vmatpush3.bf16.msra.mxu1 %v15849_v40 }
0x1111   :  { %15760 = vrot.lane.b32.xlu1 %v15759_v6, %s16241_s9  ;;  %15755 = vrot.lane.b32.xlu0 %v15754_v51, %s16229_s22  ;;  %v14411_v51 = vld [vmem:[#allocation6 + $0xd] ss:$0 sm:$0xff] }
0x1112   :  { %15192 = vmatprep.subr.bf16.mxu1 %v16230_v0 }
0x1115   :  { %15765 = vrot.lane.b32.xlu1 %v15764_v55, %s16242_s10 }
0x1183   :  { %v15761_v27 = vpop.permute.xlu1 %15760  ;;  %v15756_v56 = vpop.permute.xlu0 %15755 }
0x1184   :  { %v15758_v58 = vunpack.i.h.bf16 %v15756_v56  ;;  %v15757_v57 = vunpack.i.l.bf16 %v15756_v56  ;;  %v15763_v47 = vunpack.i.h.bf16 %v15761_v27  ;;  %v15762_v18 = vunpack.i.l.bf16 %v15761_v27  ;;  %v15850_v27 = vld [vmem:[#allocation4 + $0x78] ss:$20 sps:$4 sm:$0xff]  }
0x1186   :  { %v4669_v8 = vsel %vm1180_vm5, %v4573_v1, %v15757_v57  ;;  %v4670_v46 = vsel %vm1180_vm5, %v4641_v22, %v15758_v58  ;;  %v14406_v1 = vld [vmem:[#allocation6 + $0xb] ss:$0 sm:$0xff]  ;;  %v15851_v58 = vld [vmem:[#allocation4 + $0x50] ss:$20 sps:$4 sm:$0xff]   ;;  %v4985_v57 = vand.u32 127, %v368_v28 }
0x1187   :  { %v15766_v42 = vpop.permute.xlu1 %15765  ;;  %v4671_v61 = vsel %vm93_vm1, %v4669_v8, %v15762_v18  ;;  %v4672_v62 = vsel %vm93_vm1, %v4670_v46, %v15763_v47  ;;  %v15852_v8 = vld [vmem:[#allocation4 + $0x28] ss:$20 sps:$4 sm:$0xff]   ;;  %v15855_v28 = vld [vmem:[#allocation4 + $0x58] ss:$20 sps:$4 sm:$0xff]  }
0x1188   :  { %v15768_v59 = vunpack.i.h.bf16 %v15766_v42  ;;  %v15767_v60 = vunpack.i.l.bf16 %v15766_v42 }
0x118a   :  { %v4673_v25 = vsel %vm2314_vm7, %v4671_v61, %v15767_v60  ;;  %v4674_v2 = vsel %vm2314_vm7, %v4672_v62, %v15768_v59  ;;  %v15853_v59 = vld [vmem:[#allocation4] ss:$20 sps:$4 sm:$0xff]   ;;  %v15856_v61 = vld [vmem:[#allocation4 + $0x30] ss:$20 sps:$4 sm:$0xff]   ;;  %v15857_v62 = vld [vmem:[#allocation4 + $0x8] ss:$20 sps:$4 sm:$0xff]  }
0x118b   :  { %v4675_v24 = vpack.c.bf16 %v4674_v2, %v4673_v25  ;;  %v14412_v25 = vld [vmem:[#allocation6 + $0xe] ss:$0 sm:$0xff] }
0x118d   :  { %15169 = vmatmul.mubr.msk.bf16.vlgmr.msra.gmra.mxu0 %vm214_vm4, %v4675_v24 }
0x118e   :  { %15188 = vmatprep.mubr.msk.bf16.mxu0 %vm16231_vm0, %v16230_v0  ;;  %15181 = vmatpush3.bf16.msra.mxu0 %v15854_v43 }
0x118f   :  { %15182 = vmatprep.subr.bf16.mxu0 %v16230_v0 }
0x1192   :  { %15183 = vmatpush3.bf16.msra.mxu0 %v15855_v28 }
0x1193   :  { %15184 = vmatprep.subr.bf16.mxu0 %v16230_v0 }
0x1196   :  { %15185 = vmatpush3.bf16.msra.mxu0 %v15856_v61 }
0x1197   :  { %15186 = vmatprep.subr.bf16.mxu0 %v16230_v0 }
0x119a   :  { %15187 = vmatpush3.bf16.msra.mxu0 %v15857_v62 }
0x119b   :  { %15204 = vmatprep.subr.bf16.mxu0 %v16230_v0 }
0x124d   :  { %v4731_v3 = vpop.f32.mrf.mxu0 }
0x124e   :  { %v4732_v7 = vadd.f32 %v14406_v1, %v4731_v3 }
0x124f   :  { %v15170_v9 = vpop.f32.mrf.mxu0 }
0x1250   :  { %v4740_v13 = vadd.f32 %v4732_v7, %v16729_v35 }
0x1251   :  { %v4734_v11 = vpop.f32.mrf.mxu0 }
0x1252   :  { %v4735_v20 = vadd.f32 %v14406_v1, %v4734_v11  ;;  %v4742_v44 = vsel %vm214_vm4, %v4740_v13, 0.0 }
0x1253   :  { %4743 = vadd.xlane.f32.xlu0 %v4742_v44  ;;  %v15171_v19 = vpop.f32.mrf.mxu0 }
0x1254   :  { %v4741_v30 = vadd.f32 %v4735_v20, %v16731_v36  ;;  %v15858_v20 = vld [vmem:[#allocation2 + $0xc0] ss:$80 sps:$4 sm:$0xff]  }
0x1255   :  { %v15859_v19 = vld [vmem:[#allocation2 + $0x20] ss:$80 sps:$4 sm:$0xff]  }
0x1256   :  { %v4745_v21 = vsel %vm214_vm4, %v4741_v30, 0.0 }
0x1257   :  { %4746 = vadd.xlane.f32.xlu1 %v4745_v21 }
0x1268   :  { %4989 = vperm.xlu1 %15769, %v4986_v12  }
0x12dc   :  { %v4744_v29 = vpop.xlane.xlu0 %4743 }
0x12dd   :  { %v4748_v63 = vmul.f32 0.03125, %v4744_v29  ;;  %v16132_v29 = vld [vmem:[#allocation7] sm:$0xff] }
0x12df   :  { %v4750_v15 = vsub.f32 %v4740_v13, %v4748_v63 }
0x12e0   :  { %v4747_v35 = vpop.xlane.xlu1 %4746 }
0x12e1   :  { %v4749_v4 = vmul.f32 0.03125, %v4747_v35  ;;  %v4752_v34 = vmul.f32 %v4750_v15, %v4750_v15 }
0x12e3   :  { %v4751_v37 = vsub.f32 %v4741_v30, %v4749_v4  ;;  %v4754_v17 = vsel %vm214_vm4, %v4752_v34, 0.0 }
0x12e4   :  { %4755 = vadd.xlane.f32.xlu0 %v4754_v17  ;;  %v4990_v18 = vpop.permute.xlu1 %4989 }
0x12e5   :  { %v4753_v32 = vmul.f32 %v4751_v37, %v4751_v37  ;;  %vm4994_vm10 = vcmp.eq.s32.totalorder %v4990_v18, %v4985_v57 }
0x12e6   :  { %v14424_v42 = vsel %vm4994_vm10, 1.0, %v16230_v0 }
0x12e7   :  { %v4757_v36 = vsel %vm214_vm4, %v4753_v32, 0.0 }
0x12e8   :  { %4758 = vadd.xlane.f32.xlu0 %v4757_v36 }
0x12fe   :  { %4992 = vperm.xlu0 %15770, %v4987_v33  }
0x136d   :  { %v4756_v54 = vpop.xlane.xlu0 %4755 }
0x136e   :  { %v4760_v10 = vmul.f32 0.03125, %v4756_v54 }
0x1370   :  { %v4762_v5 = vadd.f32 1e-05, %v4760_v10 }
0x1371   :  { %v4759_v16 = vpop.xlane.xlu0 %4758 }
0x1372   :  { %15972 = vrsqrt.f32 %v4762_v5  ;;  %v4761_v26 = vmul.f32 0.03125, %v4759_v16 }
0x1374   :  { %v4763_v41 = vadd.f32 1e-05, %v4761_v26 }
0x1376   :  { %15974 = vrsqrt.f32 %v4763_v41 }
0x1379   :  { %v4993_v47 = vpop.permute.xlu0 %4992 }
0x137a   :  { %vm4995_vm9 = vcmp.eq.s32.totalorder %v4993_v47, %v4985_v57 }
0x137b   :  { %v14425_v46 = vsel %vm4995_vm9, 1.0, %v16230_v0 }
0x137c   :  { %v5000_v60 = vpack.c.bf16 %v14425_v46, %v14424_v42 }
0x137f   :  { %v15973_v23 = vpop.eup %15972 }
0x1380   :  { %v4766_v31 = vmul.f32 %v15973_v23, %v4750_v15  ;;  %v16133_v15 = vld [vmem:[#allocation7 + $0x8] sm:$0xff] }
0x1382   :  { %v4774_v6 = vmul.f32 %v14410_v48, %v4766_v31 }
0x1383   :  { %v15975_v49 = vpop.eup %15974 }
0x1384   :  { %v4767_v22 = vmul.f32 %v15975_v49, %v4751_v37  ;;  %v17116_v45 = vadd.f32 %v14411_v51, %v4774_v6 }
0x1386   :  { %v4775_v53 = vmul.f32 %v14410_v48, %v4767_v22 }
0x1388   :  { %v17118_v55 = vadd.f32 %v14411_v51, %v4775_v53 }
0x138a   :  { %v4798_v56 = vpack.c.bf16 %v17118_v55, %v17116_v45 }
0x138c   :  { %15177 = vmatmul.mubr.msk.bf16.vlgmr.msra.gmra.mxu1 %vm214_vm4, %v4798_v56 }
0x138d   :  { %15193 = vmatpush3.bf16.msra.mxu1 %v15850_v27  ;;  %15200 = vmatprep.mubr.msk.bf16.mxu1 %vm16231_vm0, %v16230_v0 }
0x138e   :  { %15194 = vmatprep.subr.bf16.mxu1 %v16230_v0 }
0x1391   :  { %15195 = vmatpush3.bf16.msra.mxu1 %v15851_v58 }
0x1392   :  { %15196 = vmatprep.subr.bf16.mxu1 %v16230_v0 }
0x1395   :  { %15197 = vmatpush3.bf16.msra.mxu1 %v15852_v8 }
0x1396   :  { %15198 = vmatprep.subr.bf16.mxu1 %v16230_v0 }
0x1399   :  { %15199 = vmatpush3.bf16.msra.mxu1 %v15853_v59 }
0x139a   :  { %15212 = vmatprep.subr.bf16.mxu1 %v16230_v0 }
0x139c   :  { %15201 = vmatmul.mubr.msk.bf16.vlgmr.msra.gmra.mxu1 %vm2537_vm8, %v5000_v60 }
0x139d   :  { %15214 = vmatprep.mubr.msk.bf16.mxu1 %vm16231_vm0, %v16230_v0 }
0x144c   :  { %v4854_v2 = vpop.f32.mrf.mxu1 }
0x144d   :  { %v4855_v1 = vadd.f32 %v14412_v25, %v4854_v2 }
0x144e   :  { %v15178_v24 = vpop.f32.mrf.mxu1 }
0x144f   :  { %v4861_v13 = vmax.f32 %v4855_v1, 0.0 }
0x1450   :  { %v4857_v3 = vpop.f32.mrf.mxu1 }
0x1451   :  { %v4858_v7 = vadd.f32 %v14412_v25, %v4857_v3 }
0x1452   :  { %v15179_v9 = vpop.f32.mrf.mxu1 }
0x1453   :  { %v4862_v11 = vmax.f32 %v4858_v7, 0.0 }
0x1455   :  { %v4863_v44 = vpack.c.bf16 %v4862_v11, %v4861_v13 }
0x1457   :  { %15189 = vmatmul.mubr.msk.bf16.vlgmr.msra.gmra.mxu0 %vm2537_vm8, %v4863_v44 }
0x1458   :  { %15205 = vmatpush3.bf16.msra.mxu0 %v15858_v20  ;;  %15208 = vmatprep.mubr.msk.bf16.mxu0 %vm16231_vm0, %v16230_v0 }
0x1459   :  { %15206 = vmatprep.subr.bf16.mxu0 %v16230_v0 }
0x145c   :  { %v5070_v30 = vpop.f32.mrf.mxu1  ;;  %15207 = vmatpush3.bf16.msra.mxu0 %v15859_v19 }
0x145d   :  { %15218 = vmatprep.subr.bf16.mxu0 %v16230_v0  ;;  %v17143_v63 = vadd.f32 %v16132_v29, %v5070_v30 }
0x145e   :  { %v15202_v21 = vpop.f32.mrf.mxu1 }
0x1460   :  { %v5073_v12 = vpop.f32.mrf.mxu1 }
0x1461   :  { %v17145_v35 = vadd.f32 %v16133_v15, %v5073_v12 }
0x1462   :  { %v15203_v4 = vpop.f32.mrf.mxu1 }
0x1463   :  { %v5087_v34 = vpack.c.bf16 %v17145_v35, %v17143_v63 }
0x1465   :  { %15209 = vmatmul.mubr.msk.bf16.vlgmr.msra.gmra.mxu0 %vm214_vm4, %v5087_v34 }
0x1466   :  { %15220 = vmatprep.mubr.msk.bf16.mxu0 %vm16231_vm0, %v16230_v0 }
0x1517   :  { %v17152_v37 = vpop.f32.mrf.mxu0 }
0x1519   :  { %v15190_v17 = vpop.f32.mrf.mxu0 }
0x151b   :  { %v17154_v32 = vpop.f32.mrf.mxu0 }
0x151d   :  { %v15191_v36 = vpop.f32.mrf.mxu0 }
0x1525   :  { %v5143_v33 = vpop.f32.mrf.mxu0 }
0x1526   :  { %v5144_v54 = vadd.f32 %v14431_v38, %v5143_v33 }
0x1527   :  { %v15210_v40 = vpop.f32.mrf.mxu0 }
0x1529   :  { %v5146_v43 = vpop.f32.mrf.mxu0 }
0x152a   :  { %v5147_v10 = vadd.f32 %v14431_v38, %v5146_v43 }
0x152b   :  { %v15211_v5 = vpop.f32.mrf.mxu0 }
0x152c   :  { %v17156_v16 = vpack.c.bf16 %v5147_v10, %v5144_v54 }
0x152e   :  { %5152 = vrot.lane.b32.xlu1 %v17156_v16, %s16235_s2  ;;  %v5162_v51 = vshrl.u32 %v17156_v16, 16 }
0x1532   :  { %5154 = vrot.lane.b32.xlu1 %v17156_v16, %s16237_s30 }
0x1536   :  { %5156 = vrot.lane.b32.xlu1 %v17156_v16, %s16234_s0 }
0x153a   :  { %5430 = vrot.lane.b32.xlu1 %v17156_v16, %s16236_s29 }
0x15a0   :  { %v17166_v26 = vpop.permute.xlu1 %5152 }
0x15a1   :  { %5432 = vrot.lane.b32.xlu1 %v17166_v26, %s16236_s29  ;;  %v5163_v48 = vshrl.u32 %v17166_v26, 16  ;;  %v17188_v27 = vpack.i.b16 %v17166_v26, %v17156_v16 }
0x15a3   :  { %v17190_v56 = vpack.i.b16 %v5163_v48, %v5162_v51  ;;  %v5181_v18 = vrot.slane %v17188_v27, %v16364_v39  ;;  %v5174_v2 = vcombine.high %v17188_v27, %v16381_v50 }
0x15a4   :  { %v17170_v41 = vpop.permute.xlu1 %5154 }
0x15a5   :  { %5434 = vrot.lane.b32.xlu1 %v17170_v41, %s16236_s29  ;;  %v5170_v49 = vshrl.u32 %v17170_v41, 16  ;;  %v5247_v8 = vrot.slane %v17190_v56, %v16364_v39  ;;  %v5240_v4 = vcombine.high %v17190_v56, %v16381_v50 }
0x15a8   :  { %v17174_v23 = vpop.permute.xlu1 %5156 }
0x15a9   :  { %5436 = vrot.lane.b32.xlu1 %v17174_v23, %s16236_s29  ;;  %v5171_v31 = vshrl.u32 %v17174_v23, 16  ;;  %v17183_v6 = vpack.i.b16 %v17174_v23, %v17170_v41 }
0x15ab   :  { %v5172_v53 = vpack.i.b16 %v5171_v31, %v5170_v49  ;;  %v5196_v57 = vrot.slane %v17183_v6, %v16364_v39  ;;  %v5189_v34 = vcombine.high %v17183_v6, %v16381_v50 }
0x15ac   :  { %v5431_v22 = vpop.permute.xlu1 %5430 }
0x15ad   :  { %v5262_v47 = vrot.slane %v5172_v53, %v16364_v39  ;;  %v5204_v59 = vcombine.low %v5181_v18, %v5196_v57  ;;  %v5205_v60 = vcombine.high %v5181_v18, %v5196_v57  ;;  %v5442_v62 = vshrl.u32 %v5431_v22, 16 }
0x15ae   :  { %v5255_v24 = vcombine.high %v5172_v53, %v16381_v50 }
0x15af   :  { %v5270_v28 = vcombine.low %v5247_v8, %v5262_v47  ;;  %v5271_v61 = vcombine.high %v5247_v8, %v5262_v47  ;;  %v5212_v7 = vrot.slane %v5204_v59, %v16383_v52  ;;  %v5219_v20 = vrot.slane %v5205_v60, %v16383_v52 }
0x15b0   :  { %v17215_v17 = vrot.slane %v5255_v24, %v16364_v39 }
0x15b1   :  { %v5278_v44 = vrot.slane %v5270_v28, %v16383_v52  ;;  %v5285_v19 = vrot.slane %v5271_v61, %v16383_v52  ;;  %v5306_v54 = vcombine.low %v5212_v7, %v5219_v20  ;;  %v14435_v28 = vcombine.high %v5212_v7, %v5219_v20 }
0x15b2   :  { %v5254_v7 = vrot.slane %v5240_v4, %v16364_v39  ;;  %v5203_v20 = vrot.slane %v5189_v34, %v16364_v39 }
0x15b3   :  { %v5331_v10 = vcombine.low %v5278_v44, %v5285_v19  ;;  %v14436_v48 = vcombine.high %v5278_v44, %v5285_v19 }
0x15b4   :  { %v5286_v34 = vcombine.low %v5254_v7, %v17215_v17 }
0x15b5   :  { %v5346_v19 = vrot.slane %v14436_v48, %v16364_v39 }
0x1613   :  { %v5433_v58 = vpop.permute.xlu1 %5432 }
0x1614   :  { %v5443_v46 = vshrl.u32 %v5433_v58, 16  ;;  %v5440_v25 = vpack.i.b16 %v5433_v58, %v5431_v22 }
0x1616   :  { %v5444_v1 = vpack.i.b16 %v5443_v46, %v5442_v62  ;;  %v5454_v30 = vcombine.high %v5440_v25, %v16381_v50  ;;  %v5461_v21 = vrot.slane %v5440_v25, %v16364_v39  ;;  %v5338_v25 = vrot.slane %v5331_v10, %v16364_v39 }
0x1617   :  { %v5435_v42 = vpop.permute.xlu1 %5434 }
0x1618   :  { %v5450_v9 = vshrl.u32 %v5435_v42, 16  ;;  %v5520_v36 = vcombine.high %v5444_v1, %v16381_v50  ;;  %v5527_v5 = vrot.slane %v5444_v1, %v16364_v39  ;;  %v5468_v49 = vrot.slane %v5454_v30, %v16364_v39 }
0x1619   :  { %v5347_v10 = vcombine.low %v5338_v25, %v5346_v19 }
0x161a   :  { %v5534_v51 = vrot.slane %v5520_v36, %v16364_v39 }
0x161b   :  { %v5437_v3 = vpop.permute.xlu1 %5436 }
0x161c   :  { %v5448_v13 = vpack.i.b16 %v5437_v3, %v5435_v42  ;;  %v5451_v11 = vshrl.u32 %v5437_v3, 16 }
0x161e   :  { %v5452_v12 = vpack.i.b16 %v5451_v11, %v5450_v9  ;;  %v5469_v29 = vcombine.high %v5448_v13, %v16381_v50  ;;  %v5476_v15 = vrot.slane %v5448_v13, %v16364_v39 }
0x1620   :  { %v5483_v33 = vrot.slane %v5469_v29, %v16364_v39  ;;  %v5484_v38 = vcombine.low %v5461_v21, %v5476_v15  ;;  %v5485_v40 = vcombine.high %v5461_v21, %v5476_v15  ;;  %v5535_v43 = vcombine.high %v5452_v12, %v16381_v50 }
0x1621   :  { %v5542_v31 = vrot.slane %v5452_v12, %v16364_v39  ;;  %v5313_v12 = vrot.slane %v5306_v54, %v16364_v39  ;;  %v5321_v29 = vrot.slane %v14435_v28, %v16364_v39 }
0x1622   :  { %v5492_v22 = vrot.slane %v5484_v38, %v16383_v52  ;;  %v5499_v6 = vrot.slane %v5485_v40, %v16383_v52  ;;  %v5549_v53 = vrot.slane %v5535_v43, %v16364_v39  ;;  %v5500_v57 = vcombine.low %v5468_v49, %v5483_v33 }
0x1623   :  { %v5550_v56 = vcombine.low %v5527_v5, %v5542_v31  ;;  %v5551_v58 = vcombine.high %v5527_v5, %v5542_v31  ;;  %v5501_v47 = vcombine.high %v5468_v49, %v5483_v33  ;;  %v5188_v33 = vrot.slane %v5174_v2, %v16364_v39 }
0x1624   :  { %v5586_v18 = vcombine.low %v5492_v22, %v5499_v6  ;;  %v14439_v8 = vcombine.high %v5492_v22, %v5499_v6  ;;  %v5566_v59 = vcombine.low %v5534_v51, %v5549_v53  ;;  %v5567_v60 = vcombine.high %v5534_v51, %v5549_v53 }
0x1625   :  { %v5558_v46 = vrot.slane %v5550_v56, %v16383_v52  ;;  %v5565_v42 = vrot.slane %v5551_v58, %v16383_v52  ;;  %v5508_v13 = vrot.slane %v5500_v57, %v16383_v52  ;;  %v5515_v11 = vrot.slane %v5501_v47, %v16383_v52 }
0x1626   :  { %v5593_v61 = vrot.slane %v5586_v18, %v16364_v39  ;;  %v5601_v62 = vrot.slane %v14439_v8, %v16364_v39  ;;  %v5574_v24 = vrot.slane %v5566_v59, %v16383_v52  ;;  %v5581_v1 = vrot.slane %v5567_v60, %v16383_v52 }
0x1627   :  { %v5611_v3 = vcombine.low %v5558_v46, %v5565_v42  ;;  %v14440_v9 = vcombine.high %v5558_v46, %v5565_v42  ;;  %v5287_v40 = vcombine.high %v5254_v7, %v17215_v17  ;;  %v5636_v43 = vcombine.low %v5508_v13, %v5515_v11 }
0x1628   :  { %v5602_v44 = vcombine.low %v5593_v61, %v5601_v62  ;;  %v5661_v15 = vcombine.low %v5574_v24, %v5581_v1  ;;  %v14442_v36 = vcombine.high %v5574_v24, %v5581_v1  ;;  %v5220_v5 = vcombine.low %v5188_v33, %v5203_v20 }
0x1629   :  { %v5618_v30 = vrot.slane %v5611_v3, %v16364_v39  ;;  %v5626_v21 = vrot.slane %v14440_v9, %v16364_v39  ;;  %v14441_v54 = vcombine.high %v5508_v13, %v5515_v11  ;;  %v5221_v48 = vcombine.high %v5188_v33, %v5203_v20 }
0x162a   :  { %v5609_v38 = vrot.slane %v5602_v44, %v16383_v52  ;;  %v5322_v49 = vcombine.low %v5313_v12, %v5321_v29  ;;  %v5668_v22 = vrot.slane %v5661_v15, %v16364_v39  ;;  %v5676_v27 = vrot.slane %v14442_v36, %v16364_v39 }
0x162b   :  { %v5627_v4 = vcombine.low %v5618_v30, %v5626_v21  ;;  %v5294_v56 = vrot.slane %v5286_v34, %v16383_v52  ;;  %v5301_v17 = vrot.slane %v5287_v40, %v16383_v52  ;;  %v5354_v58 = vrot.slane %v5347_v10, %v16383_v52 }
0x162c   :  { %v5689_v6 = vshrl.u32 %v5609_v38, 16  ;;  %v5643_v57 = vrot.slane %v5636_v43, %v16364_v39  ;;  %v5610_v8 = vcombine.high %v5609_v38, %v16233_v14  ;;  %v5651_v46 = vrot.slane %v14441_v54, %v16364_v39 }
0x162d   :  { %v5634_v31 = vrot.slane %v5627_v4, %v16383_v52  ;;  %v5228_v42 = vrot.slane %v5220_v5, %v16383_v52  ;;  %v5235_v59 = vrot.slane %v5221_v48, %v16383_v52  ;;  %v5329_v28 = vrot.slane %v5322_v49, %v16383_v52 }
0x162e   :  { %v5677_v62 = vcombine.low %v5668_v22, %v5676_v27  ;;  %v5381_v25 = vcombine.low %v5294_v56, %v5301_v17  ;;  %v14438_v24 = vcombine.high %v5294_v56, %v5301_v17  ;;  %v5410_v3 = vshrl.u32 %v5354_v58, 16 }
0x162f   :  { %v5688_v2 = vpack.i.b16 %v5634_v31, %v5609_v38  ;;  %v5690_v51 = vshrl.u32 %v5634_v31, 16  ;;  %v5635_v53 = vcombine.high %v5634_v31, %v16233_v14  ;;  %v5695_v9 = vshrl.u32 %v5610_v8, 16 }
0x1630   :  { %v5652_v13 = vcombine.low %v5643_v57, %v5651_v46  ;;  %v5356_v11 = vcombine.low %v5228_v42, %v5235_v59  ;;  %v14437_v44 = vcombine.high %v5228_v42, %v5235_v59  ;;  %v5408_v19 = vpack.i.b16 %v5354_v58, %v5329_v28 }
0x1631   :  { %v5994_v47 = vsel %vm1180_vm5, %v5688_v2, 0  ;;  %v5691_v18 = vpack.i.b16 %v5690_v51, %v5689_v6  ;;  %v5696_v61 = vshrl.u32 %v5635_v53, 16  ;;  %v5694_v1 = vpack.i.b16 %v5635_v53, %v5610_v8 }
0x1632   :  { %15213 = vmatpush3.bf16.xpose.msra.mxu1 %v5994_v47  ;;  %v5409_v7 = vshrl.u32 %v5329_v28, 16  ;;  %v5684_v30 = vrot.slane %v5677_v62, %v16383_v52  ;;  %v5388_v21 = vrot.slane %v5381_v25, %v16364_v39  ;;  %v5396_v12 = vrot.slane %v14438_v24, %v16364_v39 }
0x1633   :  { %v6040_v60 = vsel %vm1180_vm5, %v5691_v18, 0  ;;  %15224 = vmatprep.subr.bf16.mxu1 %v16230_v0  ;;  %v5697_v20 = vpack.i.b16 %v5696_v61, %v5695_v9  ;;  %v6086_v29 = vsel %vm1180_vm5, %v5694_v1, 0  ;;  %v5355_v36 = vcombine.high %v5354_v58, %v16233_v14 }
0x1634   :  { %15219 = vmatpush3.bf16.xpose.msra.mxu0 %v6040_v60  ;;  %v5411_v15 = vpack.i.b16 %v5410_v3, %v5409_v7  ;;  %v5659_v33 = vrot.slane %v5652_v13, %v16383_v52  ;;  %v5363_v38 = vrot.slane %v5356_v11, %v16364_v39  ;;  %v5371_v4 = vrot.slane %v14437_v44, %v16364_v39 }
0x1635   :  { %15230 = vmatprep.subr.bf16.mxu0 %v16230_v0  ;;  %v6132_v34 = vsel %vm1180_vm5, %v5697_v20, 0  ;;  %v5330_v40 = vcombine.high %v5329_v28, %v16233_v14  ;;  %v5702_v43 = vshrl.u32 %v5684_v30, 16  ;;  %v5416_v5 = vshrl.u32 %v5355_v36, 16 }
0x1636   :  { %v5700_v10 = vpack.i.b16 %v5684_v30, %v5659_v33  ;;  %v5701_v54 = vshrl.u32 %v5659_v33, 16  ;;  %v5397_v31 = vcombine.low %v5388_v21, %v5396_v12  ;;  %v5372_v48 = vcombine.low %v5363_v38, %v5371_v4 }
0x1637   :  { %v5414_v49 = vpack.i.b16 %v5355_v36, %v5330_v40  ;;  %v5415_v22 = vshrl.u32 %v5330_v40, 16  ;;  %v5685_v2 = vcombine.high %v5684_v30, %v16233_v14  ;;  %v5660_v56 = vcombine.high %v5659_v33, %v16233_v14 }
0x1638   :  { %v5703_v27 = vpack.i.b16 %v5702_v43, %v5701_v54  ;;  %v6178_v6 = vsel %vm1180_vm5, %v5700_v10, 0  ;;  %v5404_v53 = vrot.slane %v5397_v31, %v16383_v52  ;;  %v5379_v58 = vrot.slane %v5372_v48, %v16383_v52 }
0x1639   :  { %15215 = vmatmul.mubr.msk.bf16.vlgmr.msra.gmra.mxu1 %vm1180_vm5, %v5408_v19  ;;  %v5417_v51 = vpack.i.b16 %v5416_v5, %v5415_v22  ;;  %v5708_v57 = vshrl.u32 %v5685_v2, 16  ;;  %v5706_v47 = vpack.i.b16 %v5685_v2, %v5660_v56  ;;  %v5707_v8 = vshrl.u32 %v5660_v56, 16 }
0x163a   :  { %15225 = vmatpush3.bf16.xpose.msra.mxu1 %v6086_v29  ;;  %15226 = vmatprep.mubr.msk.bf16.mxu1 %vm16231_vm0, %v16230_v0  ;;  %v6224_v17 = vsel %vm1180_vm5, %v5703_v27, 0  ;;  %v5422_v18 = vshrl.u32 %v5404_v53, 16  ;;  %v5420_v46 = vpack.i.b16 %v5404_v53, %v5379_v58  ;;  %v5421_v42 = vshrl.u32 %v5379_v58, 16 }
0x163b   :  { %15221 = vmatmul.mubr.msk.bf16.vlgmr.msra.gmra.mxu0 %vm1180_vm5, %v5411_v15  ;;  %15236 = vmatprep.subr.bf16.mxu1 %v16230_v0  ;;  %v5709_v59 = vpack.i.b16 %v5708_v57, %v5707_v8  ;;  %v6270_v60 = vsel %vm1180_vm5, %v5706_v47, 0  ;;  %v5405_v61 = vcombine.high %v5404_v53, %v16233_v14  ;;  %v5380_v25 = vcombine.high %v5379_v58, %v16233_v14 }
0x163c   :  { %15231 = vmatpush3.bf16.xpose.msra.mxu0 %v6132_v34  ;;  %15232 = vmatprep.mubr.msk.bf16.mxu0 %vm16231_vm0, %v16230_v0  ;;  %v5423_v28 = vpack.i.b16 %v5422_v18, %v5421_v42 }
0x163d   :  { %15242 = vmatprep.subr.bf16.mxu0 %v16230_v0  ;;  %v6316_v62 = vsel %vm1180_vm5, %v5709_v59, 0  ;;  %v5428_v24 = vshrl.u32 %v5405_v61, 16  ;;  %v5426_v1 = vpack.i.b16 %v5405_v61, %v5380_v25  ;;  %v5427_v3 = vshrl.u32 %v5380_v25, 16 }
0x163f   :  { %v5429_v9 = vpack.i.b16 %v5428_v24, %v5427_v3 }
0x1641   :  { %15227 = vmatmul.mubr.msk.bf16.vlgmr.msra.gmra.mxu1 %vm1180_vm5, %v5414_v49 }
0x1642   :  { %15237 = vmatpush3.bf16.xpose.msra.mxu1 %v6178_v6  ;;  %15238 = vmatprep.mubr.msk.bf16.mxu1 %vm16231_vm0, %v16230_v0 }
0x1643   :  { %15233 = vmatmul.mubr.msk.bf16.vlgmr.msra.gmra.mxu0 %vm1180_vm5, %v5417_v51  ;;  %15248 = vmatprep.subr.bf16.mxu1 %v16230_v0 }
0x1644   :  { %15243 = vmatpush3.bf16.xpose.msra.mxu0 %v6224_v17  ;;  %15244 = vmatprep.mubr.msk.bf16.mxu0 %vm16231_vm0, %v16230_v0 }
0x1645   :  { %15254 = vmatprep.subr.bf16.mxu0 %v16230_v0 }
0x1649   :  { %15239 = vmatmul.mubr.msk.bf16.vlgmr.msra.gmra.mxu1 %vm1180_vm5, %v5420_v46 }
0x164a   :  { %15249 = vmatpush3.bf16.xpose.msra.mxu1 %v6270_v60  ;;  %15250 = vmatprep.mubr.msk.bf16.mxu1 %vm16231_vm0, %v16230_v0 }
0x164b   :  { %15245 = vmatmul.mubr.msk.bf16.vlgmr.msra.gmra.mxu0 %vm1180_vm5, %v5423_v28  ;;  %15260 = vmatprep.subr.bf16.mxu1 %v16230_v0 }
0x164c   :  { %15255 = vmatpush3.bf16.xpose.msra.mxu0 %v6316_v62  ;;  %15256 = vmatprep.mubr.msk.bf16.mxu0 %vm16231_vm0, %v16230_v0 }
0x164d   :  { %15266 = vmatprep.subr.bf16.mxu0 %v16230_v0 }
0x1651   :  { %15251 = vmatmul.mubr.msk.bf16.vlgmr.msra.gmra.mxu1 %vm1180_vm5, %v5426_v1 }
0x1652   :  { %15262 = vmatprep.mubr.msk.bf16.mxu1 %vm16231_vm0, %v16230_v0 }
0x1653   :  { %15257 = vmatmul.mubr.msk.bf16.vlgmr.msra.gmra.mxu0 %vm1180_vm5, %v5429_v9 }
0x1654   :  { %15268 = vmatprep.mubr.msk.bf16.mxu0 %vm16231_vm0, %v16230_v0 }
0x16f9   :  { %v6030_v13 = vpop.f32.mrf.mxu1 }
0x16fa   :  { %v6358_v11 = vsel %vm1180_vm5, %v6030_v13, -inf }
0x16fb   :  { %6359 = vmax.xlane.f32.xlu1 %v6358_v11  ;;  %v15216_v44 = vpop.f32.mrf.mxu1  ;;  %v6076_v19 = vpop.f32.mrf.mxu0 }
0x16fc   :  { %v6361_v7 = vsel %vm1180_vm5, %v6076_v19, -inf }
0x16fd   :  { %v6033_v20 = vpop.f32.mrf.mxu1  ;;  %6362 = vmax.xlane.f32.xlu0 %v6361_v7  ;;  %v15222_v30 = vpop.f32.mrf.mxu0 }
0x16ff   :  { %v15217_v21 = vpop.f32.mrf.mxu1  ;;  %v6079_v12 = vpop.f32.mrf.mxu0 }
0x1701   :  { %v15223_v29 = vpop.f32.mrf.mxu0  ;;  %v17319_v15 = vpop.f32.mrf.mxu1 }
0x1702   :  { %v6364_v36 = vsel %vm1180_vm5, %v17319_v15, -inf }
0x1703   :  { %v15228_v33 = vpop.f32.mrf.mxu1  ;;  %6365 = vmax.xlane.f32.xlu0 %v6364_v36  ;;  %v6168_v38 = vpop.f32.mrf.mxu0 }
0x1704   :  { %v6367_v4 = vsel %vm1180_vm5, %v6168_v38, -inf }
0x1705   :  { %v6125_v34 = vpop.f32.mrf.mxu1  ;;  %6368 = vmax.xlane.f32.xlu1 %v6367_v4  ;;  %v15234_v40 = vpop.f32.mrf.mxu0 }
0x1707   :  { %v15229_v43 = vpop.f32.mrf.mxu1  ;;  %v6171_v10 = vpop.f32.mrf.mxu0 }
0x1709   :  { %v15235_v5 = vpop.f32.mrf.mxu0  ;;  %v6214_v54 = vpop.f32.mrf.mxu1 }
0x170a   :  { %v6370_v31 = vsel %vm1180_vm5, %v6214_v54, -inf }
0x170b   :  { %v15240_v48 = vpop.f32.mrf.mxu1  ;;  %6371 = vmax.xlane.f32.xlu0 %v6370_v31  ;;  %v6260_v49 = vpop.f32.mrf.mxu0 }
0x170c   :  { %v6373_v22 = vsel %vm1180_vm5, %v6260_v49, -inf }
0x170d   :  { %v6217_v27 = vpop.f32.mrf.mxu1  ;;  %6374 = vmax.xlane.f32.xlu1 %v6373_v22  ;;  %v15246_v2 = vpop.f32.mrf.mxu0 }
0x170f   :  { %v15241_v6 = vpop.f32.mrf.mxu1  ;;  %v6263_v51 = vpop.f32.mrf.mxu0 }
0x1711   :  { %v15247_v53 = vpop.f32.mrf.mxu0  ;;  %v6306_v56 = vpop.f32.mrf.mxu1 }
0x1712   :  { %v6376_v17 = vsel %vm1180_vm5, %v6306_v56, -inf }
0x1713   :  { %v15252_v58 = vpop.f32.mrf.mxu1  ;;  %6377 = vmax.xlane.f32.xlu0 %v6376_v17  ;;  %v6352_v57 = vpop.f32.mrf.mxu0 }
0x1714   :  { %v6379_v47 = vsel %vm1180_vm5, %v6352_v57, -inf }
0x1715   :  { %v6309_v18 = vpop.f32.mrf.mxu1  ;;  %6380 = vmax.xlane.f32.xlu1 %v6379_v47  ;;  %v15258_v8 = vpop.f32.mrf.mxu0 }
0x1717   :  { %v15253_v46 = vpop.f32.mrf.mxu1  ;;  %v6355_v42 = vpop.f32.mrf.mxu0 }
0x1719   :  { %v15259_v59 = vpop.f32.mrf.mxu0 }
0x1726   :  { %5712 = vrot.lane.b32.xlu1 %v17166_v26, %s16240_s8 }
0x1729   :  { %5710 = vrot.lane.b32.xlu0 %v17156_v16, %s16240_s8 }
0x1784   :  { %v6360_v60 = vpop.xlane.xlu1 %6359 }
0x1785   :  { %v6382_v28 = vsub.f32 %v6030_v13, %v6360_v60 }
0x1786   :  { %v6363_v61 = vpop.xlane.xlu0 %6362 }
0x1787   :  { %v6390_v62 = vmul.f32 1.442695, %v6382_v28  ;;  %v6383_v25 = vsub.f32 %v6076_v19, %v6363_v61 }
0x1789   :  { %15976 = vpow2.f32 %v6390_v62  ;;  %v6392_v24 = vmul.f32 1.442695, %v6383_v25 }
0x178b   :  { %15978 = vpow2.f32 %v6392_v24 }
0x178c   :  { %v6366_v16 = vpop.xlane.xlu0 %6365 }
0x178d   :  { %v6384_v19 = vsub.f32 %v17319_v15, %v6366_v16 }
0x178e   :  { %v6369_v13 = vpop.xlane.xlu1 %6368 }
0x178f   :  { %v6385_v11 = vsub.f32 %v6168_v38, %v6369_v13  ;;  %v6394_v12 = vmul.f32 1.442695, %v6384_v19 }
0x1791   :  { %v6396_v20 = vmul.f32 1.442695, %v6385_v11 }
0x1793   :  { %15980 = vpow2.f32 %v6396_v20 }
0x1794   :  { %v6372_v44 = vpop.xlane.xlu0 %6371  ;;  %15982 = vpow2.f32 %v6394_v12 }
0x1795   :  { %v6386_v30 = vsub.f32 %v6214_v54, %v6372_v44 }
0x1796   :  { %v17332_v1 = vpop.eup %15976  ;;  %v6375_v7 = vpop.xlane.xlu1 %6374 }
0x1797   :  { %v6406_v3 = vsel %vm1180_vm5, %v17332_v1, 0.0  ;;  %v6387_v29 = vsub.f32 %v6260_v49, %v6375_v7  ;;  %v6398_v33 = vmul.f32 1.442695, %v6386_v30 }
0x1798   :  { %v17336_v9 = vpop.eup %15978  ;;  %6407 = vadd.xlane.f32.xlu0 %v6406_v3 }
0x1799   :  { %v6409_v26 = vsel %vm1180_vm5, %v17336_v9, 0.0  ;;  %15984 = vpow2.f32 %v6398_v33 }
0x179a   :  { %6410 = vadd.xlane.f32.xlu1 %v6409_v26 }
0x179c   :  { %v6378_v21 = vpop.xlane.xlu0 %6377 }
0x179d   :  { %v6388_v4 = vsub.f32 %v6306_v56, %v6378_v21 }
0x179e   :  { %v6381_v36 = vpop.xlane.xlu1 %6380 }
0x179f   :  { %v6389_v34 = vsub.f32 %v6352_v57, %v6381_v36 }
0x17a0   :  { %v17345_v15 = vpop.eup %15980  ;;  %v5711_v6 = vpop.permute.xlu0 %5710 }
0x17a1   :  { %v6404_v38 = vmul.f32 1.442695, %v6389_v34  ;;  %v17347_v40 = vpop.eup %15982  ;;  %v6415_v43 = vsel %vm1180_vm5, %v17345_v15, 0.0  ;;  %v5722_v47 = vshrl.u32 %v5711_v6, 16 }
0x17a2   :  { %v6412_v5 = vsel %vm1180_vm5, %v17347_v40, 0.0  ;;  %v5713_v51 = vpop.permute.xlu1 %5712 }
0x17a3   :  { %v5723_v17 = vshrl.u32 %v5713_v51, 16  ;;  %v17369_v57 = vpack.i.b16 %v5713_v51, %v5711_v6 }
0x17a5   :  { %v17373_v59 = vpack.i.b16 %v5723_v17, %v5722_v47  ;;  %v5741_v60 = vrot.slane %v17369_v57, %v16364_v39 }
0x17a6   :  { %v17351_v10 = vpop.eup %15984 }
0x17a7   :  { %v6418_v31 = vsel %vm1180_vm5, %v17351_v10, 0.0  ;;  %v5807_v24 = vrot.slane %v17373_v59, %v16364_v39 }
0x17ab   :  { %5714 = vrot.lane.b32.xlu1 %v17170_v41, %s16240_s8  ;;  %v6400_v41 = vmul.f32 1.442695, %v6387_v29 }
0x17ad   :  { %15986 = vpow2.f32 %v6400_v41 }
0x17ae   :  { %5716 = vrot.lane.b32.xlu0 %v17174_v23, %s16240_s8  ;;  %v6402_v23 = vmul.f32 1.442695, %v6388_v4 }
0x17b0   :  { %15988 = vpow2.f32 %v6402_v23 }
0x17b1   :  { %15990 = vpow2.f32 %v6404_v38 }
0x17ba   :  { %v17355_v54 = vpop.eup %15986 }
0x17bb   :  { %v6421_v49 = vsel %vm1180_vm5, %v17355_v54, 0.0 }
0x17bd   :  { %v17359_v48 = vpop.eup %15988 }
0x17be   :  { %v17363_v22 = vpop.eup %15990  ;;  %v6424_v27 = vsel %vm1180_vm5, %v17359_v48, 0.0 }
0x17bf   :  { %v6427_v2 = vsel %vm1180_vm5, %v17363_v22, 0.0 }
0x17cd   :  { %6416 = vadd.xlane.f32.xlu0 %v6415_v43 }
0x17cf   :  { %6413 = vadd.xlane.f32.xlu1 %v6412_v5 }
0x17d1   :  { %6419 = vadd.xlane.f32.xlu0 %v6418_v31 }
0x17d3   :  { %6422 = vadd.xlane.f32.xlu1 %v6421_v49 }
0x17d5   :  { %6425 = vadd.xlane.f32.xlu0 %v6424_v27 }
0x17d7   :  { %6428 = vadd.xlane.f32.xlu1 %v6427_v2 }
0x1821   :  { %v6408_v53 = vpop.xlane.xlu0 %6407 }
0x1822   :  { %15992 = vrcp.f32 %v6408_v53 }
0x1823   :  { %v6411_v56 = vpop.xlane.xlu1 %6410 }
0x1824   :  { %15994 = vrcp.f32 %v6411_v56 }
0x1825   :  { %v5717_v58 = vpop.permute.xlu0 %5716 }
0x1826   :  { %v5731_v8 = vshrl.u32 %v5717_v58, 16 }
0x1827   :  { %v5715_v18 = vpop.permute.xlu1 %5714 }
0x1828   :  { %v17371_v46 = vpack.i.b16 %v5717_v58, %v5715_v18  ;;  %v5730_v42 = vshrl.u32 %v5715_v18, 16 }
0x182a   :  { %v5732_v28 = vpack.i.b16 %v5731_v8, %v5730_v42  ;;  %v5756_v61 = vrot.slane %v17371_v46, %v16364_v39 }
0x182c   :  { %v5764_v62 = vcombine.low %v5741_v60, %v5756_v61  ;;  %v5765_v25 = vcombine.high %v5741_v60, %v5756_v61  ;;  %v5822_v3 = vrot.slane %v5732_v28, %v16364_v39  ;;  %v5815_v42 = vcombine.high %v5732_v28, %v16381_v50 }
0x182d   :  { %v5800_v61 = vcombine.high %v17373_v59, %v16381_v50 }
0x182e   :  { %v5772_v26 = vrot.slane %v5764_v62, %v16383_v52  ;;  %v5779_v16 = vrot.slane %v5765_v25, %v16383_v52  ;;  %v5830_v13 = vcombine.low %v5807_v24, %v5822_v3  ;;  %v5831_v11 = vcombine.high %v5807_v24, %v5822_v3 }
0x182f   :  { %v15993_v34 = vpop.eup %15992  ;;  %v5749_v62 = vcombine.high %v17371_v46, %v16381_v50  ;;  %v5734_v25 = vcombine.high %v17369_v57, %v16381_v50  ;;  %v5829_v24 = vrot.slane %v5815_v42, %v16364_v39  ;;  %v5814_v59 = vrot.slane %v5800_v61, %v16364_v39 }
0x1830   :  { %v5866_v44 = vcombine.low %v5772_v26, %v5779_v16  ;;  %v14443_v19 = vcombine.high %v5772_v26, %v5779_v16  ;;  %v5838_v7 = vrot.slane %v5830_v13, %v16383_v52  ;;  %v5845_v20 = vrot.slane %v5831_v11, %v16383_v52 }
0x1831   :  { %v15995_v43 = vpop.eup %15994  ;;  %v6438_v31 = vmul.f32 %v15993_v34, %v17332_v1  ;;  %v5763_v46 = vrot.slane %v5749_v62, %v16364_v39  ;;  %v5748_v3 = vrot.slane %v5734_v25, %v16364_v39  ;;  %v5846_v26 = vcombine.low %v5814_v59, %v5829_v24 }
0x1832   :  { %v5873_v30 = vrot.slane %v5866_v44, %v16364_v39  ;;  %v5881_v21 = vrot.slane %v14443_v19, %v16364_v39  ;;  %v5891_v12 = vcombine.low %v5838_v7, %v5845_v20  ;;  %v14444_v29 = vcombine.high %v5838_v7, %v5845_v20 }
0x1833   :  { %v6439_v51 = vmul.f32 %v15995_v43, %v17336_v9  ;;  %v6446_v8 = vpack.c.bf16 %v6438_v31, %v6438_v31  ;;  %v5847_v16 = vcombine.high %v5814_v59, %v5829_v24  ;;  %v5780_v13 = vcombine.low %v5748_v3, %v5763_v46 }
0x1834   :  { %v5882_v36 = vcombine.low %v5873_v30, %v5881_v21  ;;  %v5898_v33 = vrot.slane %v5891_v12, %v16364_v39  ;;  %v5906_v4 = vrot.slane %v14444_v29, %v16364_v39  ;;  %v5781_v11 = vcombine.high %v5748_v3, %v5763_v46 }
0x1835   :  { %v6447_v60 = vpack.c.bf16 %v6439_v51, %v6439_v51  ;;  %v5854_v44 = vrot.slane %v5846_v26, %v16383_v52  ;;  %v5861_v19 = vrot.slane %v5847_v16, %v16383_v52  ;;  %v5788_v57 = vrot.slane %v5780_v13, %v16383_v52 }
0x1836   :  { %v5889_v41 = vrot.slane %v5882_v36, %v16383_v52  ;;  %v5907_v23 = vcombine.low %v5898_v33, %v5906_v4  ;;  %v5795_v7 = vrot.slane %v5781_v11, %v16383_v52 }
0x1837   :  { %v5941_v20 = vcombine.low %v5854_v44, %v5861_v19  ;;  %v14446_v30 = vcombine.high %v5854_v44, %v5861_v19 }
0x1838   :  { %v5890_v38 = vcombine.high %v5889_v41, %v16233_v14  ;;  %v5914_v5 = vrot.slane %v5907_v23, %v16383_v52  ;;  %v5969_v27 = vshrl.u32 %v5889_v41, 16  ;;  %v5916_v21 = vcombine.low %v5788_v57, %v5795_v7 }
0x1839   :  { %v14445_v12 = vcombine.high %v5788_v57, %v5795_v7  ;;  %v5948_v29 = vrot.slane %v5941_v20, %v16364_v39  ;;  %v5956_v36 = vrot.slane %v14446_v30, %v16364_v39 }
0x183a   :  { %v5968_v49 = vpack.i.b16 %v5914_v5, %v5889_v41  ;;  %v5970_v2 = vshrl.u32 %v5914_v5, 16  ;;  %v5915_v6 = vcombine.high %v5914_v5, %v16233_v14  ;;  %v5975_v53 = vshrl.u32 %v5890_v38, 16 }
0x183b   :  { %v5923_v4 = vrot.slane %v5916_v21, %v16364_v39  ;;  %v5931_v41 = vrot.slane %v14445_v12, %v16364_v39  ;;  %v5957_v23 = vcombine.low %v5948_v29, %v5956_v36 }
0x183c   :  { %v6458_v56 = vsel %vm1648_vm6, %v5968_v49, 0  ;;  %v5971_v17 = vpack.i.b16 %v5970_v2, %v5969_v27  ;;  %v5974_v58 = vpack.i.b16 %v5915_v6, %v5890_v38  ;;  %v5976_v47 = vshrl.u32 %v5915_v6, 16 }
0x183d   :  { %15261 = vmatpush3.bf16.msra.mxu1 %v6458_v56  ;;  %v5932_v43 = vcombine.low %v5923_v4, %v5931_v41  ;;  %v5964_v31 = vrot.slane %v5957_v23, %v16383_v52 }
0x183e   :  { %v6504_v18 = vsel %vm1648_vm6, %v5971_v17, 0  ;;  %15272 = vmatprep.subr.bf16.mxu1 %v16230_v0  ;;  %v5977_v1 = vpack.i.b16 %v5976_v47, %v5975_v53  ;;  %v6550_v9 = vsel %vm1648_vm6, %v5974_v58, 0 }
0x183f   :  { %15267 = vmatpush3.bf16.msra.mxu0 %v6504_v18  ;;  %v5939_v49 = vrot.slane %v5932_v43, %v16383_v52  ;;  %v5982_v2 = vshrl.u32 %v5964_v31, 16  ;;  %v5965_v58 = vcombine.high %v5964_v31, %v16233_v14 }
0x1840   :  { %15263 = vmatmul.mubr.msk.bf16.vlgmr.msra.gmra.mxu1 %vm1180_vm5, %v6446_v8  ;;  %15278 = vmatprep.subr.bf16.mxu0 %v16230_v0  ;;  %v6596_v28 = vsel %vm1648_vm6, %v5977_v1, 0 }
0x1841   :  { %15273 = vmatpush3.bf16.msra.mxu1 %v6550_v9  ;;  %15274 = vmatprep.mubr.msk.bf16.mxu1 %vm16231_vm0, %v16230_v0  ;;  %v5981_v51 = vshrl.u32 %v5939_v49, 16  ;;  %v5980_v1 = vpack.i.b16 %v5964_v31, %v5939_v49  ;;  %v5940_v42 = vcombine.high %v5939_v49, %v16233_v14  ;;  %v5988_v62 = vshrl.u32 %v5965_v58, 16 }
0x1842   :  { %15269 = vmatmul.mubr.msk.bf16.vlgmr.msra.gmra.mxu0 %vm1180_vm5, %v6447_v60  ;;  %15284 = vmatprep.subr.bf16.mxu1 %v16230_v0 }
0x1843   :  { %15279 = vmatpush3.bf16.msra.mxu0 %v6596_v28  ;;  %15280 = vmatprep.mubr.msk.bf16.mxu0 %vm16231_vm0, %v16230_v0  ;;  %v5983_v17 = vpack.i.b16 %v5982_v2, %v5981_v51  ;;  %v5987_v25 = vshrl.u32 %v5940_v42, 16  ;;  %v5986_v3 = vpack.i.b16 %v5965_v58, %v5940_v42 }
0x1844   :  { %15290 = vmatprep.subr.bf16.mxu0 %v16230_v0 }
0x1845   :  { %v6688_v60 = vsel %vm1648_vm6, %v5983_v17, 0  ;;  %v5989_v24 = vpack.i.b16 %v5988_v62, %v5987_v25  ;;  %v6734_v44 = vsel %vm1648_vm6, %v5986_v3, 0 }
0x1856   :  { %v6417_v33 = vpop.xlane.xlu0 %6416 }
0x1857   :  { %15996 = vrcp.f32 %v6417_v33 }
0x1858   :  { %v6414_v34 = vpop.xlane.xlu1 %6413 }
0x1859   :  { %15998 = vrcp.f32 %v6414_v34 }
0x185a   :  { %v6420_v38 = vpop.xlane.xlu0 %6419 }
0x185b   :  { %16000 = vrcp.f32 %v6420_v38 }
0x185c   :  { %v6423_v5 = vpop.xlane.xlu1 %6422 }
0x185d   :  { %16002 = vrcp.f32 %v6423_v5 }
0x185e   :  { %v6426_v6 = vpop.xlane.xlu0 %6425 }
0x1860   :  { %v6429_v27 = vpop.xlane.xlu1 %6428 }
0x1861   :  { %16004 = vrcp.f32 %v6429_v27 }
0x1862   :  { %16006 = vrcp.f32 %v6426_v6 }
0x1864   :  { %v15997_v53 = vpop.eup %15996 }
0x1865   :  { %v6441_v56 = vmul.f32 %v15997_v53, %v17345_v15 }
0x1866   :  { %v15999_v47 = vpop.eup %15998 }
0x1867   :  { %v6449_v18 = vpack.c.bf16 %v6441_v56, %v6441_v56  ;;  %v6440_v8 = vmul.f32 %v15999_v47, %v17347_v40  ;;  %v6642_v40 = vsel %vm1648_vm6, %v5980_v1, 0 }
0x1868   :  { %v16001_v9 = vpop.eup %16000 }
0x1869   :  { %15281 = vmatmul.mubr.msk.bf16.vlgmr.msra.gmra.mxu0 %vm1180_vm5, %v6449_v18  ;;  %v6448_v61 = vpack.c.bf16 %v6440_v8, %v6440_v8  ;;  %v6442_v59 = vmul.f32 %v16001_v9, %v17351_v10 }
0x186a   :  { %v16003_v28 = vpop.eup %16002  ;;  %15291 = vmatpush3.bf16.msra.mxu0 %v6688_v60  ;;  %15292 = vmatprep.mubr.msk.bf16.mxu0 %vm16231_vm0, %v16230_v0 }
0x186b   :  { %v6443_v15 = vmul.f32 %v16003_v28, %v17355_v54  ;;  %15275 = vmatmul.mubr.msk.bf16.vlgmr.msra.gmra.mxu1 %vm1180_vm5, %v6448_v61  ;;  %15302 = vmatprep.subr.bf16.mxu0 %v16230_v0  ;;  %v6780_v54 = vsel %vm1648_vm6, %v5989_v24, 0  ;;  %v6450_v16 = vpack.c.bf16 %v6442_v59, %v6442_v59 }
0x186c   :  { %15285 = vmatpush3.bf16.msra.mxu1 %v6642_v40  ;;  %15286 = vmatprep.mubr.msk.bf16.mxu1 %vm16231_vm0, %v16230_v0 }
0x186d   :  { %15296 = vmatprep.subr.bf16.mxu1 %v16230_v0  ;;  %v6451_v46 = vpack.c.bf16 %v6443_v15, %v6443_v15 }
0x186e   :  { %v16005_v26 = vpop.eup %16004 }
0x186f   :  { %v16007_v13 = vpop.eup %16006  ;;  %v6445_v11 = vmul.f32 %v16005_v26, %v17363_v22 }
0x1870   :  { %v6444_v10 = vmul.f32 %v16007_v13, %v17359_v48 }
0x1871   :  { %15293 = vmatmul.mubr.msk.bf16.vlgmr.msra.gmra.mxu0 %vm1180_vm5, %v6451_v46  ;;  %v6453_v19 = vpack.c.bf16 %v6445_v11, %v6445_v11 }
0x1872   :  { %15303 = vmatpush3.bf16.msra.mxu0 %v6780_v54  ;;  %15304 = vmatprep.mubr.msk.bf16.mxu0 %vm16231_vm0, %v16230_v0  ;;  %v6452_v57 = vpack.c.bf16 %v6444_v10, %v6444_v10 }
0x1873   :  { %15287 = vmatmul.mubr.msk.bf16.vlgmr.msra.gmra.mxu1 %vm1180_vm5, %v6450_v16  ;;  %15316 = vmatprep.subr.bf16.mxu0 %v16230_v0 }
0x1874   :  { %15297 = vmatpush3.bf16.msra.mxu1 %v6734_v44  ;;  %15298 = vmatprep.mubr.msk.bf16.mxu1 %vm16231_vm0, %v16230_v0 }
0x1875   :  { %15308 = vmatprep.subr.bf16.mxu1 %v16230_v0 }
0x1879   :  { %15305 = vmatmul.mubr.msk.bf16.vlgmr.msra.gmra.mxu0 %vm1180_vm5, %v6453_v19 }
0x187a   :  { %15320 = vmatprep.mubr.msk.bf16.mxu0 %vm16231_vm0, %v16230_v0 }
0x187b   :  { %15299 = vmatmul.mubr.msk.bf16.vlgmr.msra.gmra.mxu1 %vm1180_vm5, %v6452_v57 }
0x187c   :  { %15312 = vmatprep.mubr.msk.bf16.mxu1 %vm16231_vm0, %v16230_v0 }
0x1900   :  { %v6494_v22 = vpop.f32.mrf.mxu1 }
0x1902   :  { %v15264_v7 = vpop.f32.mrf.mxu1  ;;  %v6540_v20 = vpop.f32.mrf.mxu0 }
0x1904   :  { %v6497_v30 = vpop.f32.mrf.mxu1  ;;  %v15270_v21 = vpop.f32.mrf.mxu0 }
0x1906   :  { %v15265_v48 = vpop.f32.mrf.mxu1  ;;  %v6543_v12 = vpop.f32.mrf.mxu0 }
0x1908   :  { %v15271_v29 = vpop.f32.mrf.mxu0 }
0x1929   :  { %v6632_v36 = vpop.f32.mrf.mxu0 }
0x192a   :  { %v6838_v33 = vcombine.low %v6540_v20, %v6632_v36  ;;  %v6839_v4 = vcombine.high %v6540_v20, %v6632_v36 }
0x192b   :  { %v6586_v41 = vpop.f32.mrf.mxu1  ;;  %v15282_v34 = vpop.f32.mrf.mxu0 }
0x192c   :  { %v6822_v23 = vcombine.low %v6494_v22, %v6586_v41  ;;  %v6823_v38 = vcombine.high %v6494_v22, %v6586_v41  ;;  %v6846_v31 = vrot.slane %v6838_v33, %v16364_v39  ;;  %v6853_v49 = vrot.slane %v6839_v4, %v16364_v39 }
0x192d   :  { %v15276_v43 = vpop.f32.mrf.mxu1  ;;  %v6635_v5 = vpop.f32.mrf.mxu0 }
0x192e   :  { %v6830_v27 = vrot.slane %v6822_v23, %v16364_v39  ;;  %v6837_v2 = vrot.slane %v6823_v38, %v16364_v39 }
0x192f   :  { %v6589_v6 = vpop.f32.mrf.mxu1  ;;  %v15283_v51 = vpop.f32.mrf.mxu0 }
0x1930   :  { %v6854_v53 = vcombine.low %v6830_v27, %v6846_v31  ;;  %v6855_v56 = vcombine.high %v6830_v27, %v6846_v31  ;;  %v6870_v17 = vcombine.low %v6837_v2, %v6853_v49  ;;  %v6871_v58 = vcombine.high %v6837_v2, %v6853_v49 }
0x1931   :  { %v15277_v47 = vpop.f32.mrf.mxu1  ;;  %v6724_v18 = vpop.f32.mrf.mxu0 }
0x1932   :  { %v6862_v8 = vrot.slane %v6854_v53, %v16383_v52  ;;  %v6869_v1 = vrot.slane %v6855_v56, %v16383_v52  ;;  %v6878_v42 = vrot.slane %v6870_v17, %v16383_v52  ;;  %v6885_v9 = vrot.slane %v6871_v58, %v16383_v52 }
0x1933   :  { %v6678_v60 = vpop.f32.mrf.mxu1  ;;  %v15294_v61 = vpop.f32.mrf.mxu0 }
0x1934   :  { %v6958_v62 = vcombine.low %v6862_v8, %v6869_v1  ;;  %v14463_v28 = vcombine.high %v6862_v8, %v6869_v1  ;;  %v6974_v15 = vcombine.low %v6878_v42, %v6885_v9  ;;  %v14464_v40 = vcombine.high %v6878_v42, %v6885_v9  ;;  %v15860_v1 = vld [vmem:[#allocation2 + $0xc4] ss:$80 sps:$4 sm:$0xff]  }
0x1935   :  { %v15288_v25 = vpop.f32.mrf.mxu1  ;;  %v6727_v24 = vpop.f32.mrf.mxu0  ;;  %15309 = vmatpush3.bf16.msra.mxu1 %v15860_v1 }
0x1936   :  { %v6965_v59 = vrot.slane %v6958_v62, %v16364_v39  ;;  %v6973_v46 = vrot.slane %v14463_v28, %v16364_v39  ;;  %v6981_v3 = vrot.slane %v6974_v15, %v16364_v39  ;;  %v6989_v26 = vrot.slane %v14464_v40, %v16364_v39  ;;  %15310 = vmatprep.subr.bf16.mxu1 %v16230_v0 }
0x1937   :  { %v6681_v54 = vpop.f32.mrf.mxu1  ;;  %v15295_v16 = vpop.f32.mrf.mxu0 }
0x1938   :  { %v6990_v13 = vcombine.low %v6965_v59, %v6973_v46  ;;  %v7006_v11 = vcombine.low %v6981_v3, %v6989_v26  ;;  %v6991_v56 = vcombine.high %v6965_v59, %v6973_v46  ;;  %v7007_v17 = vcombine.high %v6981_v3, %v6989_v26  ;;  %v15861_v54 = vld [vmem:[#allocation2 + $0x24] ss:$80 sps:$4 sm:$0xff]  }
0x1939   :  { %v15289_v44 = vpop.f32.mrf.mxu1  ;;  %v6816_v10 = vpop.f32.mrf.mxu0  ;;  %15311 = vmatpush3.bf16.msra.mxu1 %v15861_v54 }
0x193a   :  { %v6906_v19 = vcombine.low %v6724_v18, %v6816_v10  ;;  %v6907_v57 = vcombine.high %v6724_v18, %v6816_v10  ;;  %v17478_v20 = vrot.slane %v6990_v13, %v16383_v52  ;;  %v17481_v30 = vrot.slane %v7006_v11, %v16383_v52  ;;  %15324 = vmatprep.subr.bf16.mxu1 %v16230_v0 }
0x193b   :  { %v6770_v22 = vpop.f32.mrf.mxu1  ;;  %v15306_v7 = vpop.f32.mrf.mxu0  ;;  %v7005_v62 = vrot.slane %v6991_v56, %v16383_v52  ;;  %v7021_v28 = vrot.slane %v7007_v17, %v16383_v52 }
0x193c   :  { %v6890_v21 = vcombine.low %v6678_v60, %v6770_v22  ;;  %v6891_v48 = vcombine.high %v6678_v60, %v6770_v22  ;;  %v7022_v36 = vcombine.low %v17478_v20, %v17481_v30  ;;  %v6914_v33 = vrot.slane %v6906_v19, %v16364_v39 }
0x193d   :  { %v15300_v12 = vpop.f32.mrf.mxu1  ;;  %v6819_v29 = vpop.f32.mrf.mxu0  ;;  %v6921_v4 = vrot.slane %v6907_v57, %v16364_v39  ;;  %v7024_v16 = vcombine.low %v7005_v62, %v7021_v28  ;;  %v7023_v11 = vcombine.high %v17478_v20, %v17481_v30  ;;  %v7025_v7 = vcombine.high %v7005_v62, %v7021_v28 }
0x193e   :  { %v6898_v41 = vrot.slane %v6890_v21, %v16364_v39  ;;  %v6905_v34 = vrot.slane %v6891_v48, %v16364_v39  ;;  %v14416_v48 = vld [vmem:[#allocation6 + $0xf] ss:$0 sm:$0xff] }
0x193f   :  { %v6773_v23 = vpop.f32.mrf.mxu1  ;;  %v15307_v38 = vpop.f32.mrf.mxu0  ;;  %v4932_v12 = vadd.f32 %v14416_v48, %v17152_v37 }
0x1940   :  { %v6922_v43 = vcombine.low %v6898_v41, %v6914_v33  ;;  %v6923_v5 = vcombine.high %v6898_v41, %v6914_v33  ;;  %v6938_v31 = vcombine.low %v6905_v34, %v6921_v4  ;;  %v6939_v49 = vcombine.high %v6905_v34, %v6921_v4 }
0x1941   :  { %v15301_v27 = vpop.f32.mrf.mxu1  ;;  %v4940_v29 = vadd.f32 %v4932_v12, %v17116_v45  ;;  %v4935_v4 = vadd.f32 %v14416_v48, %v17154_v32 }
0x1942   :  { %v6930_v2 = vrot.slane %v6922_v43, %v16383_v52  ;;  %v6937_v6 = vrot.slane %v6923_v5, %v16383_v52  ;;  %v6946_v51 = vrot.slane %v6938_v31, %v16383_v52  ;;  %v6953_v53 = vrot.slane %v6939_v49, %v16383_v52 }
0x1943   :  { %v4942_v33 = vsel %vm214_vm4, %v4940_v29, 0.0  ;;  %v4941_v41 = vadd.f32 %v4935_v4, %v17118_v55 }
0x1944   :  { %v7026_v58 = vcombine.low %v6930_v2, %v6937_v6  ;;  %v14465_v47 = vcombine.high %v6930_v2, %v6937_v6  ;;  %v7042_v18 = vcombine.low %v6946_v51, %v6953_v53  ;;  %v14466_v8 = vcombine.high %v6946_v51, %v6953_v53 }
0x1945   :  { %v4945_v34 = vsel %vm214_vm4, %v4941_v41, 0.0 }
0x1946   :  { %v7033_v42 = vrot.slane %v7026_v58, %v16364_v39  ;;  %v7041_v9 = vrot.slane %v14465_v47, %v16364_v39  ;;  %v7049_v60 = vrot.slane %v7042_v18, %v16364_v39  ;;  %v7057_v61 = vrot.slane %v14466_v8, %v16364_v39  ;;  %v14467_v18 = vld [vmem:[#allocation6 + $0x13] ss:$0 sm:$0xff] }
0x1948   :  { %v7059_v15 = vcombine.high %v7033_v42, %v7041_v9  ;;  %v7075_v40 = vcombine.high %v7049_v60, %v7057_v61  ;;  %v7058_v25 = vcombine.low %v7033_v42, %v7041_v9  ;;  %v7074_v24 = vcombine.low %v7049_v60, %v7057_v61 }
0x194a   :  { %v7073_v59 = vrot.slane %v7059_v15, %v16383_v52  ;;  %v7089_v46 = vrot.slane %v7075_v40, %v16383_v52  ;;  %v7066_v3 = vrot.slane %v7058_v25, %v16383_v52  ;;  %v7082_v26 = vrot.slane %v7074_v24, %v16383_v52 }
0x194c   :  { %v7092_v13 = vcombine.low %v7073_v59, %v7089_v46  ;;  %v7091_v44 = vcombine.high %v7066_v3, %v7082_v26  ;;  %v7090_v10 = vcombine.low %v7066_v3, %v7082_v26  ;;  %v7093_v22 = vcombine.high %v7073_v59, %v7089_v46  ;;  %v15862_v3 = vld [vmem:[#allocation2 + $0xc8] ss:$80 sps:$4 sm:$0xff]  }
0x194d   :  { %15317 = vmatpush3.bf16.msra.mxu0 %v15862_v3  ;;  %v15863_v26 = vld [vmem:[#allocation2 + $0x28] ss:$80 sps:$4 sm:$0xff]  }
0x194e   :  { %v15776_v19 = vpack.i.bf16 %v7092_v13, %v7024_v16  ;;  %v15771_v57 = vpack.i.bf16 %v7091_v44, %v7023_v11  ;;  %v15781_v21 = vpack.i.bf16 %v7093_v22, %v7025_v7  ;;  %15318 = vmatprep.subr.bf16.mxu0 %v16230_v0 }
0x1950   :  { %15777 = vrot.lane.b32.xlu1 %v15776_v19, %s16241_s9  ;;  %15772 = vrot.lane.b32.xlu0 %v15771_v57, %s16229_s22 }
0x1951   :  { %15319 = vmatpush3.bf16.msra.mxu0 %v15863_v26 }
0x1952   :  { %15332 = vmatprep.subr.bf16.mxu0 %v16230_v0 }
0x1954   :  { %15782 = vrot.lane.b32.xlu1 %v15781_v21, %s16242_s10 }
0x196f   :  { %4943 = vadd.xlane.f32.xlu0 %v4942_v33 }
0x1978   :  { %4946 = vadd.xlane.f32.xlu1 %v4945_v34 }
0x19c2   :  { %v15778_v23 = vpop.permute.xlu1 %15777  ;;  %v15773_v38 = vpop.permute.xlu0 %15772 }
0x19c3   :  { %v15775_v43 = vunpack.i.h.bf16 %v15773_v38  ;;  %v15774_v5 = vunpack.i.l.bf16 %v15773_v38  ;;  %v15780_v31 = vunpack.i.h.bf16 %v15778_v23  ;;  %v15779_v49 = vunpack.i.l.bf16 %v15778_v23 }
0x19c5   :  { %v7118_v45 = vsel %vm1180_vm5, %v7022_v36, %v15774_v5  ;;  %v7119_v37 = vsel %vm1180_vm5, %v7090_v10, %v15775_v43  ;;  %v14423_v43 = vld [vmem:[#allocation6 + $0x11] ss:$0 sm:$0xff] }
0x19c6   :  { %v15783_v32 = vpop.permute.xlu1 %15782  ;;  %v7120_v55 = vsel %vm93_vm1, %v7118_v45, %v15779_v49  ;;  %v7121_v6 = vsel %vm93_vm1, %v7119_v37, %v15780_v31  ;;  %v15864_v37 = vld [vmem:[#allocation2 + $0xcc] ss:$80 sps:$4 sm:$0xff]  }
0x19c7   :  { %v15785_v27 = vunpack.i.h.bf16 %v15783_v32  ;;  %v15784_v2 = vunpack.i.l.bf16 %v15783_v32  ;;  %v15865_v32 = vld [vmem:[#allocation2 + $0x2c] ss:$80 sps:$4 sm:$0xff]  }
0x19c9   :  { %v7122_v51 = vsel %vm2314_vm7, %v7120_v55, %v15784_v2  ;;  %v7123_v53 = vsel %vm2314_vm7, %v7121_v6, %v15785_v27 }
0x19ca   :  { %v7124_v56 = vpack.c.bf16 %v7123_v53, %v7122_v51 }
0x19cc   :  { %15313 = vmatmul.mubr.msk.bf16.vlgmr.msra.gmra.mxu1 %vm214_vm4, %v7124_v56 }
0x19cd   :  { %15328 = vmatprep.mubr.msk.bf16.mxu1 %vm16231_vm0, %v16230_v0  ;;  %15325 = vmatpush3.bf16.msra.mxu1 %v15864_v37 }
0x19ce   :  { %15326 = vmatprep.subr.bf16.mxu1 %v16230_v0 }
0x19d1   :  { %15327 = vmatpush3.bf16.msra.mxu1 %v15865_v32 }
0x19d2   :  { %15338 = vmatprep.subr.bf16.mxu1 %v16230_v0 }
0x19f8   :  { %v4944_v20 = vpop.xlane.xlu0 %4943 }
0x19f9   :  { %v4948_v30 = vmul.f32 0.03125, %v4944_v20 }
0x19fb   :  { %v4950_v36 = vsub.f32 %v4940_v29, %v4948_v30  ;;  %v14471_v30 = vld [vmem:[#allocation6 + $0x14] ss:$0 sm:$0xff] }
0x19fd   :  { %v4952_v17 = vmul.f32 %v4950_v36, %v4950_v36 }
0x19ff   :  { %v4954_v58 = vsel %vm214_vm4, %v4952_v17, 0.0 }
0x1a00   :  { %4955 = vadd.xlane.f32.xlu1 %v4954_v58 }
0x1a01   :  { %v4947_v47 = vpop.xlane.xlu1 %4946 }
0x1a02   :  { %v4949_v1 = vmul.f32 0.03125, %v4947_v47  ;;  %v14472_v47 = vld [vmem:[#allocation6 + $0x15] ss:$0 sm:$0xff] }
0x1a04   :  { %v4951_v62 = vsub.f32 %v4941_v41, %v4949_v1  ;;  %v14422_v41 = vld [vmem:[#allocation6 + $0x10] ss:$0 sm:$0xff] }
0x1a06   :  { %v4953_v59 = vmul.f32 %v4951_v62, %v4951_v62 }
0x1a08   :  { %v4957_v46 = vsel %vm214_vm4, %v4953_v59, 0.0 }
0x1a8c   :  { %v7180_v8 = vpop.f32.mrf.mxu1 }
0x1a8d   :  { %v7181_v42 = vadd.f32 %v14467_v18, %v7180_v8 }
0x1a8e   :  { %v15314_v9 = vpop.f32.mrf.mxu1 }
0x1a8f   :  { %v7189_v60 = vadd.f32 %v7181_v42, %v17143_v63  ;;  %v4956_v63 = vpop.xlane.xlu1 %4955 }
0x1a90   :  { %v7183_v61 = vpop.f32.mrf.mxu1  ;;  %v4960_v54 = vmul.f32 0.03125, %v4956_v63 }
0x1a91   :  { %v7184_v28 = vadd.f32 %v14467_v18, %v7183_v61  ;;  %v7191_v15 = vsel %vm214_vm4, %v7189_v60, 0.0 }
0x1a92   :  { %7192 = vadd.xlane.f32.xlu0 %v7191_v15  ;;  %v15315_v40 = vpop.f32.mrf.mxu1 }
0x1a93   :  { %v7190_v25 = vadd.f32 %v7184_v28, %v17145_v35  ;;  %v4962_v35 = vadd.f32 1e-05, %v4960_v54 }
0x1a95   :  { %v7194_v24 = vsel %vm214_vm4, %v7190_v25, 0.0  ;;  %16008 = vrsqrt.f32 %v4962_v35 }
0x1a96   :  { %7195 = vadd.xlane.f32.xlu0 %v7194_v24 }
0x1a9a   :  { %4958 = vadd.xlane.f32.xlu0 %v4957_v46 }
0x1aa2   :  { %v16009_v33 = vpop.eup %16008 }
0x1aa3   :  { %v4966_v4 = vmul.f32 %v16009_v33, %v4950_v36 }
0x1aa5   :  { %v4974_v23 = vmul.f32 %v14422_v41, %v4966_v4 }
0x1aa7   :  { %v4982_v31 = vadd.f32 %v14423_v43, %v4974_v23 }
0x1b1b   :  { %v7193_v16 = vpop.xlane.xlu0 %7192 }
0x1b1c   :  { %v7197_v13 = vmul.f32 0.03125, %v7193_v16 }
0x1b1e   :  { %v7199_v11 = vsub.f32 %v7189_v60, %v7197_v13  ;;  %v14473_v60 = vld [vmem:[#allocation6 + $0x16] ss:$0 sm:$0xff] }
0x1b1f   :  { %v7196_v44 = vpop.xlane.xlu0 %7195 }
0x1b20   :  { %v7198_v10 = vmul.f32 0.03125, %v7196_v44  ;;  %v7201_v19 = vmul.f32 %v7199_v11, %v7199_v11 }
0x1b22   :  { %v7200_v57 = vsub.f32 %v7190_v25, %v7198_v10  ;;  %v7203_v22 = vsel %vm214_vm4, %v7201_v19, 0.0 }
0x1b23   :  { %7204 = vadd.xlane.f32.xlu1 %v7203_v22  ;;  %v4959_v7 = vpop.xlane.xlu0 %4958 }
0x1b24   :  { %v4961_v21 = vmul.f32 0.03125, %v4959_v7  ;;  %v7202_v48 = vmul.f32 %v7200_v57, %v7200_v57 }
0x1b26   :  { %v4963_v12 = vadd.f32 1e-05, %v4961_v21  ;;  %v7206_v29 = vsel %vm214_vm4, %v7202_v48, 0.0 }
0x1b27   :  { %7207 = vadd.xlane.f32.xlu0 %v7206_v29 }
0x1b28   :  { %16010 = vrsqrt.f32 %v4963_v12 }
0x1b35   :  { %v16011_v34 = vpop.eup %16010 }
0x1b36   :  { %v4967_v38 = vmul.f32 %v16011_v34, %v4951_v62 }
0x1b38   :  { %v4975_v5 = vmul.f32 %v14422_v41, %v4967_v38 }
0x1b3a   :  { %v4983_v49 = vadd.f32 %v14423_v43, %v4975_v5 }
0x1b3c   :  { %v17538_v45 = vpack.c.bf16 %v4983_v49, %v4982_v31 }
0x1b3e   :  { %15321 = vmatmul.mubr.msk.bf16.vlgmr.msra.gmra.mxu0 %vm214_vm4, %v17538_v45 }
0x1b3f   :  { %15334 = vmatprep.mubr.msk.bf16.mxu0 %vm16231_vm0, %v16230_v0 }
0x1bac   :  { %v7205_v27 = vpop.xlane.xlu1 %7204 }
0x1bad   :  { %v7209_v2 = vmul.f32 0.03125, %v7205_v27 }
0x1baf   :  { %v7211_v55 = vadd.f32 1e-05, %v7209_v2 }
0x1bb0   :  { %v7208_v6 = vpop.xlane.xlu0 %7207 }
0x1bb1   :  { %16012 = vrsqrt.f32 %v7211_v55  ;;  %v7210_v51 = vmul.f32 0.03125, %v7208_v6 }
0x1bb3   :  { %v7212_v53 = vadd.f32 1e-05, %v7210_v51 }
0x1bb5   :  { %16014 = vrsqrt.f32 %v7212_v53 }
0x1bbe   :  { %v16013_v56 = vpop.eup %16012 }
0x1bbf   :  { %v7215_v20 = vmul.f32 %v16013_v56, %v7199_v11 }
0x1bc1   :  { %v7223_v17 = vmul.f32 %v14471_v30, %v7215_v20 }
0x1bc2   :  { %v16015_v36 = vpop.eup %16014 }
0x1bc3   :  { %v7216_v58 = vmul.f32 %v16015_v36, %v7200_v57  ;;  %v17546_v8 = vadd.f32 %v14472_v47, %v7223_v17 }
0x1bc5   :  { %v7224_v18 = vmul.f32 %v14471_v30, %v7216_v58 }
0x1bc7   :  { %v17548_v1 = vadd.f32 %v14472_v47, %v7224_v18 }
0x1bc9   :  { %v7312_v42 = vpack.c.bf16 %v17548_v1, %v17546_v8 }
0x1bcb   :  { %15329 = vmatmul.mubr.msk.bf16.vlgmr.msra.gmra.mxu1 %vm214_vm4, %v7312_v42 }
0x1bcc   :  { %15340 = vmatprep.mubr.msk.bf16.mxu1 %vm16231_vm0, %v16230_v0 }
0x1bfe   :  { %v7304_v9 = vpop.f32.mrf.mxu0 }
0x1bff   :  { %v7305_v28 = vadd.f32 %v14473_v60, %v7304_v9 }
0x1c00   :  { %v15322_v61 = vpop.f32.mrf.mxu0 }
0x1c02   :  { %v7307_v62 = vpop.f32.mrf.mxu0 }
0x1c03   :  { %v7308_v15 = vadd.f32 %v14473_v60, %v7307_v62 }
0x1c04   :  { %v15323_v40 = vpop.f32.mrf.mxu0 }
0x1c05   :  { %v17555_v25 = vpack.c.bf16 %v7308_v15, %v7305_v28 }
0x1c07   :  { %7379 = vrot.lane.b32.xlu0 %v17555_v25, %s16237_s30  ;;  %7377 = vrot.lane.b32.xlu1 %v17555_v25, %s16235_s2  ;;  %v7387_v3 = vshrl.u32 %v17555_v25, 16 }
0x1c0b   :  { %7381 = vrot.lane.b32.xlu1 %v17555_v25, %s16234_s0 }
0x1c79   :  { %v17563_v24 = vpop.permute.xlu1 %7377  ;;  %v17569_v26 = vpop.permute.xlu0 %7379 }
0x1c7a   :  { %v7385_v59 = vpack.i.b16 %v17563_v24, %v17555_v25  ;;  %v7388_v46 = vshrl.u32 %v17563_v24, 16  ;;  %v7395_v35 = vshrl.u32 %v17569_v26, 16 }
0x1c7c   :  { %v7389_v63 = vpack.i.b16 %v7388_v46, %v7387_v3  ;;  %v7399_v16 = vcombine.high %v7385_v59, %v16381_v50  ;;  %v7406_v44 = vrot.slane %v7385_v59, %v16364_v39  ;;  %v14477_v3 = vld [vmem:[#allocation6 + $0x17] ss:$0 sm:$0xff] }
0x1c7d   :  { %v17571_v54 = vpop.permute.xlu1 %7381 }
0x1c7e   :  { %v7393_v13 = vpack.i.b16 %v17571_v54, %v17569_v26  ;;  %v7396_v11 = vshrl.u32 %v17571_v54, 16  ;;  %v7465_v57 = vcombine.high %v7389_v63, %v16381_v50  ;;  %v7413_v7 = vrot.slane %v7399_v16, %v16364_v39 }
0x1c7f   :  { %v7472_v29 = vrot.slane %v7389_v63, %v16364_v39 }
0x1c80   :  { %v7414_v10 = vcombine.high %v7393_v13, %v16381_v50  ;;  %v7421_v19 = vrot.slane %v7393_v13, %v16364_v39  ;;  %v7397_v22 = vpack.i.b16 %v7396_v11, %v7395_v35  ;;  %v7479_v43 = vrot.slane %v7465_v57, %v16364_v39 }
0x1c82   :  { %v7428_v21 = vrot.slane %v7414_v10, %v16364_v39  ;;  %v7429_v48 = vcombine.low %v7406_v44, %v7421_v19  ;;  %v7430_v12 = vcombine.high %v7406_v44, %v7421_v19  ;;  %v7480_v33 = vcombine.high %v7397_v22, %v16381_v50 }
0x1c83   :  { %v7487_v4 = vrot.slane %v7397_v22, %v16364_v39 }
0x1c84   :  { %v7437_v41 = vrot.slane %v7429_v48, %v16383_v52  ;;  %v7444_v34 = vrot.slane %v7430_v12, %v16383_v52  ;;  %v7445_v23 = vcombine.low %v7413_v7, %v7428_v21  ;;  %v7446_v38 = vcombine.high %v7413_v7, %v7428_v21 }
0x1c85   :  { %v7494_v5 = vrot.slane %v7480_v33, %v16364_v39  ;;  %v7495_v31 = vcombine.low %v7472_v29, %v7487_v4  ;;  %v7496_v49 = vcombine.high %v7472_v29, %v7487_v4 }
0x1c86   :  { %v7453_v37 = vrot.slane %v7445_v23, %v16383_v52  ;;  %v7460_v32 = vrot.slane %v7446_v38, %v16383_v52  ;;  %v7531_v27 = vcombine.low %v7437_v41, %v7444_v34  ;;  %v14481_v2 = vcombine.high %v7437_v41, %v7444_v34 }
0x1c87   :  { %v7503_v55 = vrot.slane %v7495_v31, %v16383_v52  ;;  %v7510_v6 = vrot.slane %v7496_v49, %v16383_v52  ;;  %v7511_v51 = vcombine.low %v7479_v43, %v7494_v5  ;;  %v7512_v53 = vcombine.high %v7479_v43, %v7494_v5 }
0x1c88   :  { %v7581_v56 = vcombine.low %v7453_v37, %v7460_v32  ;;  %v14483_v20 = vcombine.high %v7453_v37, %v7460_v32  ;;  %v7538_v30 = vrot.slane %v7531_v27, %v16364_v39  ;;  %v7546_v36 = vrot.slane %v14481_v2, %v16364_v39 }
0x1c89   :  { %v7519_v17 = vrot.slane %v7511_v51, %v16383_v52  ;;  %v7526_v58 = vrot.slane %v7512_v53, %v16383_v52  ;;  %v7556_v47 = vcombine.low %v7503_v55, %v7510_v6  ;;  %v14482_v18 = vcombine.high %v7503_v55, %v7510_v6 }
0x1c8a   :  { %v7547_v42 = vcombine.low %v7538_v30, %v7546_v36  ;;  %v7588_v9 = vrot.slane %v7581_v56, %v16364_v39  ;;  %v7596_v60 = vrot.slane %v14483_v20, %v16364_v39 }
0x1c8b   :  { %v7368_v61 = vpop.f32.mrf.mxu1  ;;  %v7563_v62 = vrot.slane %v7556_v47, %v16364_v39  ;;  %v7571_v28 = vrot.slane %v14482_v18, %v16364_v39  ;;  %v7606_v15 = vcombine.low %v7519_v17, %v7526_v58  ;;  %v14484_v40 = vcombine.high %v7519_v17, %v7526_v58 }
0x1c8c   :  { %v7554_v59 = vrot.slane %v7547_v42, %v16383_v52  ;;  %v7597_v46 = vcombine.low %v7588_v9, %v7596_v60  ;;  %v7369_v22 = vadd.f32 %v14477_v3, %v7368_v61 }
0x1c8d   :  { %v15330_v63 = vpop.f32.mrf.mxu1  ;;  %v7572_v16 = vcombine.low %v7563_v62, %v7571_v28  ;;  %v7613_v13 = vrot.slane %v7606_v15, %v16364_v39  ;;  %v7621_v35 = vrot.slane %v14484_v40, %v16364_v39 }
0x1c8e   :  { %v17607_v11 = vcombine.high %v7554_v59, %v16233_v14  ;;  %v17610_v44 = vrot.slane %v7597_v46, %v16383_v52  ;;  %v7634_v21 = vshrl.u32 %v7554_v59, 16 }
0x1c8f   :  { %v7371_v10 = vpop.f32.mrf.mxu1  ;;  %v7579_v19 = vrot.slane %v7572_v16, %v16383_v52  ;;  %v7622_v57 = vcombine.low %v7613_v13, %v7621_v35 }
0x1c90   :  { %v7372_v7 = vadd.f32 %v14477_v3, %v7371_v10  ;;  %v7640_v34 = vshrl.u32 %v17607_v11, 16  ;;  %v17622_v23 = vcombine.high %v17610_v44, %v16233_v14  ;;  %v7646_v37 = vshrl.u32 %v17610_v44, 16 }
0x1c91   :  { %v15331_v48 = vpop.f32.mrf.mxu1  ;;  %v7633_v12 = vpack.i.b16 %v7579_v19, %v7554_v59  ;;  %v7635_v29 = vshrl.u32 %v7579_v19, 16  ;;  %v17614_v33 = vcombine.high %v7579_v19, %v16233_v14  ;;  %v17617_v4 = vrot.slane %v7622_v57, %v16383_v52 }
0x1c92   :  { %v7375_v41 = vpack.c.bf16 %v7372_v7, %v7369_v22  ;;  %v7652_v53 = vshrl.u32 %v17622_v23, 16 }
0x1c93   :  { %v8218_v38 = vsel %vm1180_vm5, %v7633_v12, 0  ;;  %v7636_v43 = vpack.i.b16 %v7635_v29, %v7634_v21  ;;  %v7639_v5 = vpack.i.b16 %v17614_v33, %v17607_v11  ;;  %v7641_v31 = vshrl.u32 %v17614_v33, 16 }
0x1c94   :  { %15333 = vmatpush3.bf16.xpose.msra.mxu0 %v8218_v38  ;;  %7938 = vrot.lane.b32.xlu0 %v7375_v41, %s16237_s30  ;;  %v7645_v49 = vpack.i.b16 %v17617_v4, %v17610_v44  ;;  %v7647_v32 = vshrl.u32 %v17617_v4, 16  ;;  %v17635_v27 = vcombine.high %v17617_v4, %v16233_v14  ;;  %v7946_v17 = vshrl.u32 %v7375_v41, 16 }
0x1c95   :  { %7936 = vrot.lane.b32.xlu1 %v7375_v41, %s16235_s2  ;;  %v8264_v2 = vsel %vm1180_vm5, %v7636_v43, 0  ;;  %15344 = vmatprep.subr.bf16.mxu0 %v16230_v0  ;;  %v17640_v55 = vpack.i.b16 %v7641_v31, %v7640_v34 }
0x1c96   :  { %15339 = vmatpush3.bf16.xpose.msra.mxu1 %v8264_v2  ;;  %v17642_v6 = vpack.i.b16 %v7647_v32, %v7646_v37  ;;  %v7651_v51 = vpack.i.b16 %v17635_v27, %v17622_v23  ;;  %v7653_v56 = vshrl.u32 %v17635_v27, 16 }
0x1c97   :  { %15350 = vmatprep.subr.bf16.mxu1 %v16230_v0  ;;  %v8356_v11 = vsel %vm1180_vm5, %v17640_v55, 0  ;;  %v8402_v55 = vsel %vm1180_vm5, %v7645_v49, 0 }
0x1c98   :  { %v17649_v20 = vpack.i.b16 %v7653_v56, %v7652_v53 }
0x1c99   :  { %7940 = vrot.lane.b32.xlu1 %v7375_v41, %s16234_s0 }
0x1d06   :  { %v7939_v58 = vpop.permute.xlu0 %7938 }
0x1d07   :  { %v7937_v30 = vpop.permute.xlu1 %7936  ;;  %v7954_v60 = vshrl.u32 %v7939_v58, 16 }
0x1d08   :  { %v7947_v36 = vshrl.u32 %v7937_v30, 16  ;;  %v7944_v47 = vpack.i.b16 %v7937_v30, %v7375_v41 }
0x1d0a   :  { %v7948_v18 = vpack.i.b16 %v7947_v36, %v7946_v17  ;;  %v7965_v62 = vrot.slane %v7944_v47, %v16364_v39  ;;  %v7958_v46 = vcombine.high %v7944_v47, %v16381_v50 }
0x1d0b   :  { %v7941_v42 = vpop.permute.xlu1 %7940 }
0x1d0c   :  { %v7952_v9 = vpack.i.b16 %v7941_v42, %v7939_v58  ;;  %v7955_v61 = vshrl.u32 %v7941_v42, 16  ;;  %v8024_v40 = vcombine.high %v7948_v18, %v16381_v50  ;;  %v8031_v16 = vrot.slane %v7948_v18, %v16364_v39 }
0x1d0d   :  { %v7972_v12 = vrot.slane %v7958_v46, %v16364_v39 }
0x1d0e   :  { %v7973_v28 = vcombine.high %v7952_v9, %v16381_v50  ;;  %v7980_v15 = vrot.slane %v7952_v9, %v16364_v39  ;;  %v7956_v59 = vpack.i.b16 %v7955_v61, %v7954_v60  ;;  %v8038_v22 = vrot.slane %v8024_v40, %v16364_v39 }
0x1d10   :  { %v7988_v3 = vcombine.low %v7965_v62, %v7980_v15  ;;  %v7989_v63 = vcombine.high %v7965_v62, %v7980_v15  ;;  %v8039_v13 = vcombine.high %v7956_v59, %v16381_v50  ;;  %v8046_v35 = vrot.slane %v7956_v59, %v16364_v39 }
0x1d11   :  { %v7987_v10 = vrot.slane %v7973_v28, %v16364_v39 }
0x1d12   :  { %v7996_v19 = vrot.slane %v7988_v3, %v16383_v52  ;;  %v8003_v57 = vrot.slane %v7989_v63, %v16383_v52  ;;  %v8053_v7 = vrot.slane %v8039_v13, %v16364_v39  ;;  %v8054_v21 = vcombine.low %v8031_v16, %v8046_v35 }
0x1d13   :  { %v8055_v48 = vcombine.high %v8031_v16, %v8046_v35  ;;  %v8004_v37 = vcombine.low %v7972_v12, %v7987_v10  ;;  %v8005_v32 = vcombine.high %v7972_v12, %v7987_v10  ;;  %v8310_v16 = vsel %vm1180_vm5, %v7639_v5, 0 }
0x1d14   :  { %v8090_v29 = vcombine.low %v7996_v19, %v8003_v57  ;;  %v14489_v41 = vcombine.high %v7996_v19, %v8003_v57  ;;  %v8062_v34 = vrot.slane %v8054_v21, %v16383_v52  ;;  %v8070_v43 = vcombine.low %v8038_v22, %v8053_v7 }
0x1d15   :  { %v8069_v38 = vrot.slane %v8055_v48, %v16383_v52  ;;  %v8071_v31 = vcombine.high %v8038_v22, %v8053_v7  ;;  %v8012_v42 = vrot.slane %v8004_v37, %v16383_v52  ;;  %v8019_v9 = vrot.slane %v8005_v32, %v16383_v52 }
0x1d16   :  { %v8097_v2 = vrot.slane %v8090_v29, %v16364_v39  ;;  %v8105_v53 = vrot.slane %v14489_v41, %v16364_v39  ;;  %v8078_v17 = vrot.slane %v8070_v43, %v16383_v52  ;;  %v8494_v43 = vsel %vm1180_vm5, %v7651_v51, 0 }
0x1d17   :  { %v8115_v56 = vcombine.low %v8062_v34, %v8069_v38  ;;  %v14490_v30 = vcombine.high %v8062_v34, %v8069_v38  ;;  %v8085_v58 = vrot.slane %v8071_v31, %v16383_v52  ;;  %v8140_v40 = vcombine.low %v8012_v42, %v8019_v9 }
0x1d18   :  { %v8106_v36 = vcombine.low %v8097_v2, %v8105_v53  ;;  %v14491_v59 = vcombine.high %v8012_v42, %v8019_v9  ;;  %v8448_v38 = vsel %vm1180_vm5, %v17642_v6, 0  ;;  %v8540_v37 = vsel %vm1180_vm5, %v17649_v20, 0 }
0x1d19   :  { %v8122_v47 = vrot.slane %v8115_v56, %v16364_v39  ;;  %v8130_v18 = vrot.slane %v14490_v30, %v16364_v39  ;;  %v8165_v28 = vcombine.low %v8078_v17, %v8085_v58  ;;  %v14492_v15 = vcombine.high %v8078_v17, %v8085_v58 }
0x1d1a   :  { %v8113_v60 = vrot.slane %v8106_v36, %v16383_v52  ;;  %v8147_v57 = vrot.slane %v8140_v40, %v16364_v39  ;;  %v8155_v22 = vrot.slane %v14491_v59, %v16364_v39 }
0x1d1b   :  { %v8131_v61 = vcombine.low %v8122_v47, %v8130_v18  ;;  %v8172_v13 = vrot.slane %v8165_v28, %v16364_v39  ;;  %v8180_v35 = vrot.slane %v14492_v15, %v16364_v39 }
0x1d1c   :  { %v8193_v3 = vshrl.u32 %v8113_v60, 16  ;;  %v8114_v33 = vcombine.high %v8113_v60, %v16233_v14  ;;  %v8156_v21 = vcombine.low %v8147_v57, %v8155_v22 }
0x1d1d   :  { %v8138_v62 = vrot.slane %v8131_v61, %v16383_v52  ;;  %v8181_v5 = vcombine.low %v8172_v13, %v8180_v35 }
0x1d1e   :  { %v8199_v12 = vshrl.u32 %v8114_v33, 16  ;;  %v8163_v34 = vrot.slane %v8156_v21, %v16383_v52 }
0x1d1f   :  { %v8192_v46 = vpack.i.b16 %v8138_v62, %v8113_v60  ;;  %v8194_v63 = vshrl.u32 %v8138_v62, 16  ;;  %v8139_v19 = vcombine.high %v8138_v62, %v16233_v14  ;;  %v8188_v29 = vrot.slane %v8181_v5, %v16383_v52 }
0x1d20   :  { %v8205_v49 = vshrl.u32 %v8163_v34, 16  ;;  %v8164_v32 = vcombine.high %v8163_v34, %v16233_v14 }
0x1d21   :  { %15335 = vmatmul.mubr.msk.bf16.vlgmr.msra.gmra.mxu0 %vm1180_vm5, %v8192_v46  ;;  %v8195_v10 = vpack.i.b16 %v8194_v63, %v8193_v3  ;;  %v8200_v7 = vshrl.u32 %v8139_v19, 16  ;;  %v8198_v48 = vpack.i.b16 %v8139_v19, %v8114_v33  ;;  %v8206_v44 = vshrl.u32 %v8188_v29, 16 }
0x1d22   :  { %15345 = vmatpush3.bf16.xpose.msra.mxu0 %v8310_v16  ;;  %15346 = vmatprep.mubr.msk.bf16.mxu0 %vm16231_vm0, %v16230_v0  ;;  %v8204_v4 = vpack.i.b16 %v8188_v29, %v8163_v34  ;;  %v8189_v6 = vcombine.high %v8188_v29, %v16233_v14  ;;  %v8211_v51 = vshrl.u32 %v8164_v32, 16 }
0x1d23   :  { %15341 = vmatmul.mubr.msk.bf16.vlgmr.msra.gmra.mxu1 %vm1180_vm5, %v8195_v10  ;;  %15356 = vmatprep.subr.bf16.mxu0 %v16230_v0  ;;  %v8201_v41 = vpack.i.b16 %v8200_v7, %v8199_v12  ;;  %v8207_v31 = vpack.i.b16 %v8206_v44, %v8205_v49 }
0x1d24   :  { %15351 = vmatpush3.bf16.xpose.msra.mxu1 %v8356_v11  ;;  %15352 = vmatprep.mubr.msk.bf16.mxu1 %vm16231_vm0, %v16230_v0  ;;  %v8212_v23 = vshrl.u32 %v8189_v6, 16  ;;  %v8210_v27 = vpack.i.b16 %v8189_v6, %v8164_v32 }
0x1d25   :  { %15362 = vmatprep.subr.bf16.mxu1 %v16230_v0 }
0x1d26   :  { %v8213_v2 = vpack.i.b16 %v8212_v23, %v8211_v51 }
0x1d29   :  { %15347 = vmatmul.mubr.msk.bf16.vlgmr.msra.gmra.mxu0 %vm1180_vm5, %v8198_v48 }
0x1d2a   :  { %15357 = vmatpush3.bf16.xpose.msra.mxu0 %v8402_v55  ;;  %15358 = vmatprep.mubr.msk.bf16.mxu0 %vm16231_vm0, %v16230_v0 }
0x1d2b   :  { %15353 = vmatmul.mubr.msk.bf16.vlgmr.msra.gmra.mxu1 %vm1180_vm5, %v8201_v41  ;;  %15368 = vmatprep.subr.bf16.mxu0 %v16230_v0 }
0x1d2c   :  { %15363 = vmatpush3.bf16.xpose.msra.mxu1 %v8448_v38  ;;  %15364 = vmatprep.mubr.msk.bf16.mxu1 %vm16231_vm0, %v16230_v0 }
0x1d2d   :  { %15374 = vmatprep.subr.bf16.mxu1 %v16230_v0 }
0x1d31   :  { %15359 = vmatmul.mubr.msk.bf16.vlgmr.msra.gmra.mxu0 %vm1180_vm5, %v8204_v4 }
0x1d32   :  { %15369 = vmatpush3.bf16.xpose.msra.mxu0 %v8494_v43  ;;  %15370 = vmatprep.mubr.msk.bf16.mxu0 %vm16231_vm0, %v16230_v0 }
0x1d33   :  { %15365 = vmatmul.mubr.msk.bf16.vlgmr.msra.gmra.mxu1 %vm1180_vm5, %v8207_v31  ;;  %15380 = vmatprep.subr.bf16.mxu0 %v16230_v0 }
0x1d34   :  { %15375 = vmatpush3.bf16.xpose.msra.mxu1 %v8540_v37  ;;  %15376 = vmatprep.mubr.msk.bf16.mxu1 %vm16231_vm0, %v16230_v0 }
0x1d35   :  { %15386 = vmatprep.subr.bf16.mxu1 %v16230_v0 }
0x1d39   :  { %15371 = vmatmul.mubr.msk.bf16.vlgmr.msra.gmra.mxu0 %vm1180_vm5, %v8210_v27 }
0x1d3a   :  { %15382 = vmatprep.mubr.msk.bf16.mxu0 %vm16231_vm0, %v16230_v0 }
0x1d3b   :  { %15377 = vmatmul.mubr.msk.bf16.vlgmr.msra.gmra.mxu1 %vm1180_vm5, %v8213_v2 }
0x1d3c   :  { %15388 = vmatprep.mubr.msk.bf16.mxu1 %vm16231_vm0, %v16230_v0 }
0x1de1   :  { %v8254_v20 = vpop.f32.mrf.mxu0 }
0x1de2   :  { %v8582_v53 = vsel %vm1180_vm5, %v8254_v20, -inf }
0x1de3   :  { %v8300_v56 = vpop.f32.mrf.mxu1  ;;  %8583 = vmax.xlane.f32.xlu0 %v8582_v53  ;;  %v15336_v30 = vpop.f32.mrf.mxu0 }
0x1de4   :  { %v8585_v36 = vsel %vm1180_vm5, %v8300_v56, -inf }
0x1de5   :  { %8586 = vmax.xlane.f32.xlu1 %v8585_v36  ;;  %v8257_v17 = vpop.f32.mrf.mxu0  ;;  %v15342_v58 = vpop.f32.mrf.mxu1 }
0x1de7   :  { %v15337_v47 = vpop.f32.mrf.mxu0  ;;  %v8303_v18 = vpop.f32.mrf.mxu1 }
0x1de9   :  { %v15343_v42 = vpop.f32.mrf.mxu1  ;;  %v8346_v9 = vpop.f32.mrf.mxu0 }
0x1dea   :  { %v8588_v60 = vsel %vm1180_vm5, %v8346_v9, -inf }
0x1deb   :  { %v8392_v61 = vpop.f32.mrf.mxu1  ;;  %8589 = vmax.xlane.f32.xlu0 %v8588_v60  ;;  %v15348_v62 = vpop.f32.mrf.mxu0 }
0x1dec   :  { %v8591_v40 = vsel %vm1180_vm5, %v8392_v61, -inf }
0x1ded   :  { %v8349_v28 = vpop.f32.mrf.mxu0  ;;  %v15354_v15 = vpop.f32.mrf.mxu1 }
0x1def   :  { %v8395_v59 = vpop.f32.mrf.mxu1  ;;  %8592 = vmax.xlane.f32.xlu0 %v8591_v40  ;;  %v15349_v46 = vpop.f32.mrf.mxu0 }
0x1df1   :  { %v15355_v3 = vpop.f32.mrf.mxu1  ;;  %v8438_v63 = vpop.f32.mrf.mxu0 }
0x1df2   :  { %v8594_v16 = vsel %vm1180_vm5, %v8438_v63, -inf }
0x1df3   :  { %v8484_v13 = vpop.f32.mrf.mxu1  ;;  %8595 = vmax.xlane.f32.xlu1 %v8594_v16  ;;  %v15360_v35 = vpop.f32.mrf.mxu0 }
0x1df4   :  { %v8597_v10 = vsel %vm1180_vm5, %v8484_v13, -inf }
0x1df5   :  { %v15366_v19 = vpop.f32.mrf.mxu1  ;;  %8598 = vmax.xlane.f32.xlu0 %v8597_v10  ;;  %v8441_v57 = vpop.f32.mrf.mxu0 }
0x1df7   :  { %v15361_v22 = vpop.f32.mrf.mxu0  ;;  %v8487_v11 = vpop.f32.mrf.mxu1 }
0x1df9   :  { %v15367_v33 = vpop.f32.mrf.mxu1  ;;  %v8530_v5 = vpop.f32.mrf.mxu0 }
0x1dfa   :  { %v8600_v7 = vsel %vm1180_vm5, %v8530_v5, -inf }
0x1dfb   :  { %v8576_v21 = vpop.f32.mrf.mxu1  ;;  %8601 = vmax.xlane.f32.xlu1 %v8600_v7  ;;  %v15372_v48 = vpop.f32.mrf.mxu0 }
0x1dfc   :  { %v8603_v12 = vsel %vm1180_vm5, %v8576_v21, -inf }
0x1dfd   :  { %v15378_v29 = vpop.f32.mrf.mxu1  ;;  %8604 = vmax.xlane.f32.xlu0 %v8603_v12  ;;  %v8533_v55 = vpop.f32.mrf.mxu0 }
0x1dff   :  { %v15373_v41 = vpop.f32.mrf.mxu0  ;;  %v8579_v34 = vpop.f32.mrf.mxu1 }
0x1e01   :  { %v15379_v38 = vpop.f32.mrf.mxu1 }
0x1e0c   :  { %7655 = vrot.lane.b32.xlu1 %v17555_v25, %s16236_s29 }
0x1e6c   :  { %v8584_v44 = vpop.xlane.xlu0 %8583 }
0x1e6d   :  { %v8606_v4 = vsub.f32 %v8254_v20, %v8584_v44 }
0x1e6e   :  { %v8587_v49 = vpop.xlane.xlu1 %8586 }
0x1e6f   :  { %v8614_v43 = vmul.f32 1.442695, %v8606_v4  ;;  %v8607_v31 = vsub.f32 %v8300_v56, %v8587_v49 }
0x1e71   :  { %16016 = vpow2.f32 %v8614_v43  ;;  %v8616_v6 = vmul.f32 1.442695, %v8607_v31 }
0x1e73   :  { %16018 = vpow2.f32 %v8616_v6 }
0x1e74   :  { %v8590_v25 = vpop.xlane.xlu0 %8589 }
0x1e75   :  { %v8608_v20 = vsub.f32 %v8346_v9, %v8590_v25 }
0x1e77   :  { %v8618_v30 = vmul.f32 1.442695, %v8608_v20 }
0x1e78   :  { %v8593_v51 = vpop.xlane.xlu0 %8592 }
0x1e79   :  { %v8609_v53 = vsub.f32 %v8392_v61, %v8593_v51  ;;  %16020 = vpow2.f32 %v8618_v30 }
0x1e7b   :  { %v8620_v58 = vmul.f32 1.442695, %v8609_v53 }
0x1e7c   :  { %v8596_v2 = vpop.xlane.xlu1 %8595 }
0x1e7d   :  { %v8610_v36 = vsub.f32 %v8438_v63, %v8596_v2  ;;  %16022 = vpow2.f32 %v8620_v58 }
0x1e7e   :  { %v17746_v37 = vpop.eup %16016  ;;  %v8599_v17 = vpop.xlane.xlu0 %8598 }
0x1e7f   :  { %v8630_v32 = vsel %vm1180_vm5, %v17746_v37, 0.0  ;;  %v8622_v18 = vmul.f32 1.442695, %v8610_v36 }
0x1e80   :  { %v17750_v23 = vpop.eup %16018  ;;  %8631 = vadd.xlane.f32.xlu1 %v8630_v32 }
0x1e81   :  { %v8633_v27 = vsel %vm1180_vm5, %v17750_v23, 0.0  ;;  %16024 = vpow2.f32 %v8622_v18 }
0x1e82   :  { %8634 = vadd.xlane.f32.xlu0 %v8633_v27 }
0x1e84   :  { %v8602_v56 = vpop.xlane.xlu1 %8601 }
0x1e85   :  { %v8612_v47 = vsub.f32 %v8530_v5, %v8602_v56 }
0x1e86   :  { %v8605_v42 = vpop.xlane.xlu0 %8604  ;;  %v17760_v9 = vpop.eup %16020 }
0x1e87   :  { %v8613_v62 = vsub.f32 %v8576_v21, %v8605_v42  ;;  %v8636_v28 = vsel %vm1180_vm5, %v17760_v9, 0.0 }
0x1e88   :  { %v7656_v10 = vpop.permute.xlu1 %7655 }
0x1e89   :  { %v7667_v5 = vshrl.u32 %v7656_v10, 16 }
0x1e8a   :  { %v17762_v61 = vpop.eup %16022 }
0x1e8b   :  { %v8639_v40 = vsel %vm1180_vm5, %v17762_v61, 0.0 }
0x1e8e   :  { %v17766_v15 = vpop.eup %16024 }
0x1e8f   :  { %v8642_v46 = vsel %vm1180_vm5, %v17766_v15, 0.0 }
0x1e91   :  { %7659 = vrot.lane.b32.xlu1 %v17569_v26, %s16236_s29  ;;  %v8611_v26 = vsub.f32 %v8484_v13, %v8599_v17 }
0x1e93   :  { %v8624_v60 = vmul.f32 1.442695, %v8611_v26 }
0x1e95   :  { %7661 = vrot.lane.b32.xlu1 %v17571_v54, %s16236_s29  ;;  %v8626_v54 = vmul.f32 1.442695, %v8612_v47 }
0x1e97   :  { %16026 = vpow2.f32 %v8626_v54 }
0x1e98   :  { %7657 = vrot.lane.b32.xlu0 %v17563_v24, %s16236_s29  ;;  %16028 = vpow2.f32 %v8624_v60  ;;  %v8628_v24 = vmul.f32 1.442695, %v8613_v62 }
0x1e9a   :  { %16030 = vpow2.f32 %v8628_v24 }
0x1ea4   :  { %v17770_v59 = vpop.eup %16026 }
0x1ea5   :  { %v17774_v3 = vpop.eup %16028  ;;  %v8648_v63 = vsel %vm1180_vm5, %v17770_v59, 0.0 }
0x1ea6   :  { %v8645_v16 = vsel %vm1180_vm5, %v17774_v3, 0.0 }
0x1ea7   :  { %v17780_v13 = vpop.eup %16030 }
0x1ea8   :  { %v8651_v35 = vsel %vm1180_vm5, %v17780_v13, 0.0 }
0x1eb7   :  { %8637 = vadd.xlane.f32.xlu0 %v8636_v28 }
0x1eb9   :  { %8640 = vadd.xlane.f32.xlu1 %v8639_v40 }
0x1ebb   :  { %8643 = vadd.xlane.f32.xlu0 %v8642_v46 }
0x1ebd   :  { %8649 = vadd.xlane.f32.xlu1 %v8648_v63 }
0x1ebf   :  { %8646 = vadd.xlane.f32.xlu0 %v8645_v16 }
0x1ec3   :  { %8652 = vadd.xlane.f32.xlu0 %v8651_v35 }
0x1f09   :  { %v8632_v19 = vpop.xlane.xlu1 %8631 }
0x1f0a   :  { %16032 = vrcp.f32 %v8632_v19 }
0x1f0b   :  { %v8635_v57 = vpop.xlane.xlu0 %8634 }
0x1f0c   :  { %16034 = vrcp.f32 %v8635_v57 }
0x1f0d   :  { %v7660_v22 = vpop.permute.xlu1 %7659 }
0x1f0e   :  { %v7675_v12 = vshrl.u32 %v7660_v22, 16 }
0x1f0f   :  { %v7658_v11 = vpop.permute.xlu0 %7657 }
0x1f10   :  { %v7668_v33 = vshrl.u32 %v7658_v11, 16  ;;  %v17784_v7 = vpack.i.b16 %v7658_v11, %v7656_v10 }
0x1f11   :  { %v7662_v21 = vpop.permute.xlu1 %7661 }
0x1f12   :  { %v17786_v48 = vpack.i.b16 %v7662_v21, %v7660_v22  ;;  %v17788_v29 = vpack.i.b16 %v7668_v33, %v7667_v5  ;;  %v7676_v55 = vshrl.u32 %v7662_v21, 16  ;;  %v7686_v41 = vrot.slane %v17784_v7, %v16364_v39 }
0x1f14   :  { %v7677_v34 = vpack.i.b16 %v7676_v55, %v7675_v12  ;;  %v7701_v38 = vrot.slane %v17786_v48, %v16364_v39  ;;  %v7752_v44 = vrot.slane %v17788_v29, %v16364_v39  ;;  %v7745_v12 = vcombine.high %v17788_v29, %v16381_v50 }
0x1f15   :  { %v7694_v55 = vcombine.high %v17786_v48, %v16381_v50 }
0x1f16   :  { %v7709_v4 = vcombine.low %v7686_v41, %v7701_v38  ;;  %v7710_v49 = vcombine.high %v7686_v41, %v7701_v38  ;;  %v7767_v43 = vrot.slane %v7677_v34, %v16364_v39  ;;  %v7760_v21 = vcombine.high %v7677_v34, %v16381_v50 }
0x1f17   :  { %v16033_v26 = vpop.eup %16032  ;;  %v7679_v34 = vcombine.high %v17784_v7, %v16381_v50  ;;  %v7759_v29 = vrot.slane %v7745_v12, %v16364_v39  ;;  %v7708_v48 = vrot.slane %v7694_v55, %v16364_v39 }
0x1f18   :  { %v7717_v31 = vrot.slane %v7709_v4, %v16383_v52  ;;  %v7724_v6 = vrot.slane %v7710_v49, %v16383_v52  ;;  %v7775_v32 = vcombine.low %v7752_v44, %v7767_v43  ;;  %v7776_v27 = vcombine.high %v7752_v44, %v7767_v43 }
0x1f19   :  { %v16035_v60 = vpop.eup %16034  ;;  %v8662_v24 = vmul.f32 %v16033_v26, %v17746_v37  ;;  %v7774_v38 = vrot.slane %v7760_v21, %v16364_v39  ;;  %v7693_v44 = vrot.slane %v7679_v34, %v16364_v39 }
0x1f1a   :  { %v7783_v25 = vrot.slane %v7775_v32, %v16383_v52  ;;  %v7811_v51 = vcombine.low %v7717_v31, %v7724_v6  ;;  %v14485_v2 = vcombine.high %v7717_v31, %v7724_v6  ;;  %v7790_v20 = vrot.slane %v7776_v27, %v16383_v52 }
0x1f1b   :  { %v8663_v16 = vmul.f32 %v16035_v60, %v17750_v23  ;;  %v8670_v11 = vpack.c.bf16 %v8662_v24, %v8662_v24  ;;  %v7791_v4 = vcombine.low %v7759_v29, %v7774_v38  ;;  %v7792_v49 = vcombine.high %v7759_v29, %v7774_v38 }
0x1f1c   :  { %v7818_v53 = vrot.slane %v7811_v51, %v16364_v39  ;;  %v7826_v56 = vrot.slane %v14485_v2, %v16364_v39  ;;  %v7836_v30 = vcombine.low %v7783_v25, %v7790_v20  ;;  %v14486_v36 = vcombine.high %v7783_v25, %v7790_v20 }
0x1f1d   :  { %v8671_v5 = vpack.c.bf16 %v8663_v16, %v8663_v16  ;;  %v7725_v43 = vcombine.low %v7693_v44, %v7708_v48  ;;  %v7726_v31 = vcombine.high %v7693_v44, %v7708_v48  ;;  %v7799_v6 = vrot.slane %v7791_v4, %v16383_v52 }
0x1f1e   :  { %v7827_v17 = vcombine.low %v7818_v53, %v7826_v56  ;;  %v7843_v58 = vrot.slane %v7836_v30, %v16364_v39  ;;  %v7851_v47 = vrot.slane %v14486_v36, %v16364_v39  ;;  %v7806_v32 = vrot.slane %v7792_v49, %v16383_v52 }
0x1f1f   :  { %v7733_v7 = vrot.slane %v7725_v43, %v16383_v52  ;;  %v7740_v27 = vrot.slane %v7726_v31, %v16383_v52 }
0x1f20   :  { %v7834_v18 = vrot.slane %v7827_v17, %v16383_v52  ;;  %v7852_v42 = vcombine.low %v7843_v58, %v7851_v47  ;;  %v7886_v25 = vcombine.low %v7799_v6, %v7806_v32  ;;  %v14488_v51 = vcombine.high %v7799_v6, %v7806_v32 }
0x1f21   :  { %v7861_v2 = vcombine.low %v7733_v7, %v7740_v27  ;;  %v14487_v20 = vcombine.high %v7733_v7, %v7740_v27 }
0x1f22   :  { %v7835_v54 = vcombine.high %v7834_v18, %v16233_v14  ;;  %v7859_v62 = vrot.slane %v7852_v42, %v16383_v52  ;;  %v7914_v40 = vshrl.u32 %v7834_v18, 16  ;;  %v7893_v56 = vrot.slane %v7886_v25, %v16364_v39 }
0x1f23   :  { %v7901_v30 = vrot.slane %v14488_v51, %v16364_v39  ;;  %v7868_v17 = vrot.slane %v7861_v2, %v16364_v39  ;;  %v7876_v58 = vrot.slane %v14487_v20, %v16364_v39 }
0x1f24   :  { %v7913_v28 = vpack.i.b16 %v7859_v62, %v7834_v18  ;;  %v7915_v46 = vshrl.u32 %v7859_v62, 16  ;;  %v7860_v63 = vcombine.high %v7859_v62, %v16233_v14  ;;  %v7920_v35 = vshrl.u32 %v7835_v54, 16 }
0x1f25   :  { %v7902_v18 = vcombine.low %v7893_v56, %v7901_v30  ;;  %v7877_v26 = vcombine.low %v7868_v17, %v7876_v58 }
0x1f26   :  { %v8682_v10 = vsel %vm1648_vm6, %v7913_v28, 0  ;;  %v7916_v19 = vpack.i.b16 %v7915_v46, %v7914_v40  ;;  %v7919_v57 = vpack.i.b16 %v7860_v63, %v7835_v54  ;;  %v7921_v22 = vshrl.u32 %v7860_v63, 16 }
0x1f27   :  { %15381 = vmatpush3.bf16.msra.mxu0 %v8682_v10  ;;  %v7909_v54 = vrot.slane %v7902_v18, %v16383_v52  ;;  %v7884_v62 = vrot.slane %v7877_v26, %v16383_v52 }
0x1f28   :  { %v8728_v33 = vsel %vm1648_vm6, %v7916_v19, 0  ;;  %15392 = vmatprep.subr.bf16.mxu0 %v16230_v0  ;;  %v7922_v37 = vpack.i.b16 %v7921_v22, %v7920_v35  ;;  %v8774_v23 = vsel %vm1648_vm6, %v7919_v57, 0 }
0x1f29   :  { %15387 = vmatpush3.bf16.msra.mxu1 %v8728_v33  ;;  %v7927_v28 = vshrl.u32 %v7909_v54, 16  ;;  %v7925_v63 = vpack.i.b16 %v7909_v54, %v7884_v62  ;;  %v7926_v16 = vshrl.u32 %v7884_v62, 16  ;;  %v7910_v22 = vcombine.high %v7909_v54, %v16233_v14 }
0x1f2a   :  { %15383 = vmatmul.mubr.msk.bf16.vlgmr.msra.gmra.mxu0 %vm1180_vm5, %v8670_v11  ;;  %15398 = vmatprep.subr.bf16.mxu1 %v16230_v0  ;;  %v8820_v41 = vsel %vm1648_vm6, %v7922_v37, 0 }
0x1f2b   :  { %15393 = vmatpush3.bf16.msra.mxu0 %v8774_v23  ;;  %15394 = vmatprep.mubr.msk.bf16.mxu0 %vm16231_vm0, %v16230_v0  ;;  %v7928_v57 = vpack.i.b16 %v7927_v28, %v7926_v16  ;;  %v8866_v37 = vsel %vm1648_vm6, %v7925_v63, 0  ;;  %v7933_v21 = vshrl.u32 %v7910_v22, 16 }
0x1f2c   :  { %15389 = vmatmul.mubr.msk.bf16.vlgmr.msra.gmra.mxu1 %vm1180_vm5, %v8671_v5  ;;  %15404 = vmatprep.subr.bf16.mxu0 %v16230_v0  ;;  %v7885_v5 = vcombine.high %v7884_v62, %v16233_v14 }
0x1f2d   :  { %15399 = vmatpush3.bf16.msra.mxu1 %v8820_v41  ;;  %15400 = vmatprep.mubr.msk.bf16.mxu1 %vm16231_vm0, %v16230_v0 }
0x1f2e   :  { %15410 = vmatprep.subr.bf16.mxu1 %v16230_v0  ;;  %v7931_v55 = vpack.i.b16 %v7910_v22, %v7885_v5  ;;  %v7932_v41 = vshrl.u32 %v7885_v5, 16 }
0x1f30   :  { %v8958_v48 = vsel %vm1648_vm6, %v7931_v55, 0 }
0x1f40   :  { %v8638_v53 = vpop.xlane.xlu0 %8637 }
0x1f41   :  { %16036 = vrcp.f32 %v8638_v53 }
0x1f42   :  { %v8641_v36 = vpop.xlane.xlu1 %8640 }
0x1f43   :  { %16038 = vrcp.f32 %v8641_v36 }
0x1f44   :  { %v8644_v47 = vpop.xlane.xlu0 %8643 }
0x1f45   :  { %16040 = vrcp.f32 %v8644_v47 }
0x1f46   :  { %v8650_v60 = vpop.xlane.xlu1 %8649 }
0x1f48   :  { %v8647_v42 = vpop.xlane.xlu0 %8646 }
0x1f49   :  { %16042 = vrcp.f32 %v8647_v42 }
0x1f4a   :  { %16044 = vrcp.f32 %v8650_v60 }
0x1f4c   :  { %v8653_v24 = vpop.xlane.xlu0 %8652 }
0x1f4d   :  { %16046 = vrcp.f32 %v8653_v24 }
0x1f4e   :  { %v16037_v40 = vpop.eup %16036 }
0x1f4f   :  { %v8664_v46 = vmul.f32 %v16037_v40, %v17760_v9 }
0x1f50   :  { %v16039_v35 = vpop.eup %16038 }
0x1f51   :  { %v8672_v10 = vpack.c.bf16 %v8664_v46, %v8664_v46  ;;  %v8665_v19 = vmul.f32 %v16039_v35, %v17762_v61  ;;  %v8912_v61 = vsel %vm1648_vm6, %v7928_v57, 0 }
0x1f52   :  { %v16041_v11 = vpop.eup %16040 }
0x1f53   :  { %v8673_v33 = vpack.c.bf16 %v8665_v19, %v8665_v19  ;;  %15395 = vmatmul.mubr.msk.bf16.vlgmr.msra.gmra.mxu0 %vm1180_vm5, %v8672_v10  ;;  %v8666_v9 = vmul.f32 %v16041_v11, %v17766_v15  ;;  %v7934_v15 = vpack.i.b16 %v7933_v21, %v7932_v41 }
0x1f54   :  { %15405 = vmatpush3.bf16.msra.mxu0 %v8866_v37  ;;  %15406 = vmatprep.mubr.msk.bf16.mxu0 %vm16231_vm0, %v16230_v0 }
0x1f55   :  { %15401 = vmatmul.mubr.msk.bf16.vlgmr.msra.gmra.mxu1 %vm1180_vm5, %v8673_v33  ;;  %15416 = vmatprep.subr.bf16.mxu0 %v16230_v0  ;;  %v8674_v34 = vpack.c.bf16 %v8666_v9, %v8666_v9 }
0x1f56   :  { %v16043_v23 = vpop.eup %16042  ;;  %15411 = vmatpush3.bf16.msra.mxu1 %v8912_v61  ;;  %15412 = vmatprep.mubr.msk.bf16.mxu1 %vm16231_vm0, %v16230_v0 }
0x1f57   :  { %v8667_v12 = vmul.f32 %v16043_v23, %v17774_v3  ;;  %15422 = vmatprep.subr.bf16.mxu1 %v16230_v0  ;;  %v16045_v38 = vpop.eup %16044  ;;  %v9004_v3 = vsel %vm1648_vm6, %v7934_v15, 0 }
0x1f58   :  { %v8668_v4 = vmul.f32 %v16045_v38, %v17770_v59 }
0x1f59   :  { %v8675_v29 = vpack.c.bf16 %v8667_v12, %v8667_v12 }
0x1f5a   :  { %v16047_v44 = vpop.eup %16046  ;;  %v8676_v43 = vpack.c.bf16 %v8668_v4, %v8668_v4 }
0x1f5b   :  { %15407 = vmatmul.mubr.msk.bf16.vlgmr.msra.gmra.mxu0 %vm1180_vm5, %v8674_v34  ;;  %v8669_v49 = vmul.f32 %v16047_v44, %v17780_v13 }
0x1f5c   :  { %15417 = vmatpush3.bf16.msra.mxu0 %v8958_v48  ;;  %15418 = vmatprep.mubr.msk.bf16.mxu0 %vm16231_vm0, %v16230_v0 }
0x1f5d   :  { %15413 = vmatmul.mubr.msk.bf16.vlgmr.msra.gmra.mxu1 %vm1180_vm5, %v8675_v29  ;;  %15428 = vmatprep.subr.bf16.mxu0 %v16230_v0  ;;  %v8677_v31 = vpack.c.bf16 %v8669_v49, %v8669_v49 }
0x1f5e   :  { %15423 = vmatpush3.bf16.msra.mxu1 %v9004_v3  ;;  %15424 = vmatprep.mubr.msk.bf16.mxu1 %vm16231_vm0, %v16230_v0 }
0x1f5f   :  { %15436 = vmatprep.subr.bf16.mxu1 %v16230_v0 }
0x1f63   :  { %15419 = vmatmul.mubr.msk.bf16.vlgmr.msra.gmra.mxu0 %vm1180_vm5, %v8676_v43 }
0x1f64   :  { %15432 = vmatprep.mubr.msk.bf16.mxu0 %vm16231_vm0, %v16230_v0 }
0x1f65   :  { %15425 = vmatmul.mubr.msk.bf16.vlgmr.msra.gmra.mxu1 %vm1180_vm5, %v8677_v31 }
0x1f66   :  { %15440 = vmatprep.mubr.msk.bf16.mxu1 %vm16231_vm0, %v16230_v0 }
0x1fea   :  { %v8718_v59 = vpop.f32.mrf.mxu0 }
0x1fec   :  { %v15384_v6 = vpop.f32.mrf.mxu0  ;;  %v8764_v32 = vpop.f32.mrf.mxu1 }
0x1fee   :  { %v8721_v7 = vpop.f32.mrf.mxu0  ;;  %v15390_v27 = vpop.f32.mrf.mxu1 }
0x1ff0   :  { %v15385_v13 = vpop.f32.mrf.mxu0  ;;  %v8767_v25 = vpop.f32.mrf.mxu1 }
0x1ff2   :  { %v15391_v51 = vpop.f32.mrf.mxu1 }
0x2013   :  { %v8810_v2 = vpop.f32.mrf.mxu0 }
0x2014   :  { %v9046_v20 = vcombine.low %v8718_v59, %v8810_v2  ;;  %v9047_v53 = vcombine.high %v8718_v59, %v8810_v2 }
0x2015   :  { %v15396_v56 = vpop.f32.mrf.mxu0  ;;  %v8856_v30 = vpop.f32.mrf.mxu1 }
0x2016   :  { %v9062_v36 = vcombine.low %v8764_v32, %v8856_v30  ;;  %v9063_v17 = vcombine.high %v8764_v32, %v8856_v30  ;;  %v9054_v18 = vrot.slane %v9046_v20, %v16364_v39  ;;  %v9061_v26 = vrot.slane %v9047_v53, %v16364_v39 }
0x2017   :  { %v8813_v58 = vpop.f32.mrf.mxu0  ;;  %v15402_v47 = vpop.f32.mrf.mxu1 }
0x2018   :  { %v9070_v42 = vrot.slane %v9062_v36, %v16364_v39  ;;  %v9077_v54 = vrot.slane %v9063_v17, %v16364_v39 }
0x2019   :  { %v15397_v60 = vpop.f32.mrf.mxu0  ;;  %v8859_v62 = vpop.f32.mrf.mxu1 }
0x201a   :  { %v9078_v24 = vcombine.low %v9054_v18, %v9070_v42  ;;  %v9079_v28 = vcombine.high %v9054_v18, %v9070_v42  ;;  %v9094_v40 = vcombine.low %v9061_v26, %v9077_v54  ;;  %v9095_v46 = vcombine.high %v9061_v26, %v9077_v54 }
0x201b   :  { %v15403_v63 = vpop.f32.mrf.mxu1  ;;  %v8902_v16 = vpop.f32.mrf.mxu0 }
0x201c   :  { %v9086_v35 = vrot.slane %v9078_v24, %v16383_v52  ;;  %v9093_v10 = vrot.slane %v9079_v28, %v16383_v52  ;;  %v9102_v19 = vrot.slane %v9094_v40, %v16383_v52  ;;  %v9109_v57 = vrot.slane %v9095_v46, %v16383_v52  ;;  %v15866_v63 = vld [vmem:[#allocation2 + $0xd0] ss:$80 sps:$4 sm:$0xff]  }
0x201d   :  { %v15408_v22 = vpop.f32.mrf.mxu0  ;;  %v8948_v11 = vpop.f32.mrf.mxu1  ;;  %15429 = vmatpush3.bf16.msra.mxu0 %v15866_v63 }
0x201e   :  { %v9182_v33 = vcombine.low %v9086_v35, %v9093_v10  ;;  %v14509_v37 = vcombine.high %v9086_v35, %v9093_v10  ;;  %v9198_v5 = vcombine.low %v9102_v19, %v9109_v57  ;;  %v14510_v9 = vcombine.high %v9102_v19, %v9109_v57  ;;  %15430 = vmatprep.subr.bf16.mxu0 %v16230_v0 }
0x201f   :  { %v8905_v61 = vpop.f32.mrf.mxu0  ;;  %v15414_v21 = vpop.f32.mrf.mxu1 }
0x2020   :  { %v9189_v23 = vrot.slane %v9182_v33, %v16364_v39  ;;  %v9197_v12 = vrot.slane %v14509_v37, %v16364_v39  ;;  %v9205_v55 = vrot.slane %v9198_v5, %v16364_v39  ;;  %v9213_v41 = vrot.slane %v14510_v9, %v16364_v39 }
0x2021   :  { %v15409_v34 = vpop.f32.mrf.mxu0  ;;  %v8951_v15 = vpop.f32.mrf.mxu1 }
0x2022   :  { %v9214_v38 = vcombine.low %v9189_v23, %v9197_v12  ;;  %v9230_v29 = vcombine.low %v9205_v55, %v9213_v41  ;;  %v9215_v60 = vcombine.high %v9189_v23, %v9197_v12  ;;  %v9231_v62 = vcombine.high %v9205_v55, %v9213_v41  ;;  %v15867_v12 = vld [vmem:[#allocation2 + $0x30] ss:$80 sps:$4 sm:$0xff]  }
0x2023   :  { %v15415_v48 = vpop.f32.mrf.mxu1  ;;  %v8994_v44 = vpop.f32.mrf.mxu0  ;;  %15431 = vmatpush3.bf16.msra.mxu0 %v15867_v12 }
0x2024   :  { %v9114_v4 = vcombine.low %v8902_v16, %v8994_v44  ;;  %v9115_v3 = vcombine.high %v8902_v16, %v8994_v44  ;;  %v17893_v31 = vrot.slane %v9214_v38, %v16383_v52  ;;  %v17896_v59 = vrot.slane %v9230_v29, %v16383_v52  ;;  %15444 = vmatprep.subr.bf16.mxu0 %v16230_v0 }
0x2025   :  { %v15420_v49 = vpop.f32.mrf.mxu0  ;;  %v9040_v43 = vpop.f32.mrf.mxu1  ;;  %v9229_v57 = vrot.slane %v9215_v60, %v16383_v52  ;;  %v9245_v22 = vrot.slane %v9231_v62, %v16383_v52 }
0x2026   :  { %v9130_v6 = vcombine.low %v8948_v11, %v9040_v43  ;;  %v9131_v32 = vcombine.high %v8948_v11, %v9040_v43  ;;  %v9246_v13 = vcombine.low %v17893_v31, %v17896_v59  ;;  %v9122_v25 = vrot.slane %v9114_v4, %v16364_v39 }
0x2027   :  { %v8997_v7 = vpop.f32.mrf.mxu0  ;;  %v15426_v27 = vpop.f32.mrf.mxu1  ;;  %v9129_v51 = vrot.slane %v9115_v3, %v16364_v39  ;;  %v9248_v55 = vcombine.low %v9229_v57, %v9245_v22  ;;  %v9247_v34 = vcombine.high %v17893_v31, %v17896_v59  ;;  %v9249_v4 = vcombine.high %v9229_v57, %v9245_v22  ;;  %v15868_v22 = vld [vmem:[#allocation2 + $0xd4] ss:$80 sps:$4 sm:$0xff]  }
0x2028   :  { %v9138_v2 = vrot.slane %v9130_v6, %v16364_v39  ;;  %v9145_v20 = vrot.slane %v9131_v32, %v16364_v39  ;;  %15437 = vmatpush3.bf16.msra.mxu1 %v15868_v22 }
0x2029   :  { %v15421_v53 = vpop.f32.mrf.mxu0  ;;  %v9043_v56 = vpop.f32.mrf.mxu1  ;;  %15438 = vmatprep.subr.bf16.mxu1 %v16230_v0 }
0x202a   :  { %v9146_v30 = vcombine.low %v9122_v25, %v9138_v2  ;;  %v9147_v36 = vcombine.high %v9122_v25, %v9138_v2  ;;  %v9162_v17 = vcombine.low %v9129_v51, %v9145_v20  ;;  %v9163_v58 = vcombine.high %v9129_v51, %v9145_v20 }
0x202b   :  { %v15427_v47 = vpop.f32.mrf.mxu1 }
0x202c   :  { %v9154_v18 = vrot.slane %v9146_v30, %v16383_v52  ;;  %v9161_v26 = vrot.slane %v9147_v36, %v16383_v52  ;;  %v9170_v42 = vrot.slane %v9162_v17, %v16383_v52  ;;  %v9177_v54 = vrot.slane %v9163_v58, %v16383_v52 }
0x202e   :  { %v9250_v24 = vcombine.low %v9154_v18, %v9161_v26  ;;  %v14511_v28 = vcombine.high %v9154_v18, %v9161_v26  ;;  %v9266_v40 = vcombine.low %v9170_v42, %v9177_v54  ;;  %v14512_v46 = vcombine.high %v9170_v42, %v9177_v54 }
0x2030   :  { %v9257_v16 = vrot.slane %v9250_v24, %v16364_v39  ;;  %v9265_v35 = vrot.slane %v14511_v28, %v16364_v39  ;;  %v9273_v10 = vrot.slane %v9266_v40, %v16364_v39  ;;  %v9281_v19 = vrot.slane %v14512_v46, %v16364_v39 }
0x2032   :  { %v9283_v11 = vcombine.high %v9257_v16, %v9265_v35  ;;  %v9299_v33 = vcombine.high %v9273_v10, %v9281_v19  ;;  %v9282_v37 = vcombine.low %v9257_v16, %v9265_v35  ;;  %v9298_v5 = vcombine.low %v9273_v10, %v9281_v19 }
0x2034   :  { %v9297_v9 = vrot.slane %v9283_v11, %v16383_v52  ;;  %v9313_v61 = vrot.slane %v9299_v33, %v16383_v52  ;;  %v9290_v21 = vrot.slane %v9282_v37, %v16383_v52  ;;  %v9306_v23 = vrot.slane %v9298_v5, %v16383_v52  ;;  %v15870_v11 = vld [vmem:[#allocation4 + $0x84] ss:$20 sps:$4 sm:$0xff]  }
0x2036   :  { %v9316_v41 = vcombine.low %v9297_v9, %v9313_v61  ;;  %v9315_v15 = vcombine.high %v9290_v21, %v9306_v23  ;;  %v9314_v38 = vcombine.low %v9290_v21, %v9306_v23  ;;  %v9317_v44 = vcombine.high %v9297_v9, %v9313_v61 }
0x2038   :  { %v15791_v29 = vpack.i.bf16 %v9316_v41, %v9248_v55  ;;  %v15786_v48 = vpack.i.bf16 %v9315_v15, %v9247_v34  ;;  %v15796_v3 = vpack.i.bf16 %v9317_v44, %v9249_v4  ;;  %v14517_v55 = vld [vmem:[#allocation6 + $0x19] ss:$0 sm:$0xff] }
0x203a   :  { %15792 = vrot.lane.b32.xlu0 %v15791_v29, %s16241_s9  ;;  %15787 = vrot.lane.b32.xlu1 %v15786_v48, %s16229_s22 }
0x203e   :  { %15797 = vrot.lane.b32.xlu1 %v15796_v3, %s16242_s10  ;;  %v15871_v3 = vld [vmem:[#allocation4 + $0x5c] ss:$20 sps:$4 sm:$0xff]  }
0x20ac   :  { %v15793_v49 = vpop.permute.xlu0 %15792  ;;  %v15788_v43 = vpop.permute.xlu1 %15787 }
0x20ad   :  { %v15790_v6 = vunpack.i.h.bf16 %v15788_v43  ;;  %v15789_v31 = vunpack.i.l.bf16 %v15788_v43  ;;  %v15795_v59 = vunpack.i.h.bf16 %v15793_v49  ;;  %v15794_v32 = vunpack.i.l.bf16 %v15793_v49  ;;  %v15872_v49 = vld [vmem:[#allocation4 + $0x34] ss:$20 sps:$4 sm:$0xff]   ;;  %v15873_v43 = vld [vmem:[#allocation4 + $0xc] ss:$20 sps:$4 sm:$0xff]  }
0x20af   :  { %v9342_v7 = vsel %vm1180_vm5, %v9246_v13, %v15789_v31  ;;  %v9343_v27 = vsel %vm1180_vm5, %v9314_v38, %v15790_v6  ;;  %v14513_v13 = vld [vmem:[#allocation6 + $0x18] ss:$0 sm:$0xff]  ;;  %v14518_v38 = vld [vmem:[#allocation6 + $0x1a] ss:$0 sm:$0xff]  ;;  %v14519_v6 = vld [vmem:[#allocation6 + $0x1b] ss:$0 sm:$0xff] }
0x20b0   :  { %v15798_v25 = vpop.permute.xlu1 %15797  ;;  %v9344_v20 = vsel %vm93_vm1, %v9342_v7, %v15794_v32  ;;  %v9345_v53 = vsel %vm93_vm1, %v9343_v27, %v15795_v59 }
0x20b1   :  { %v15800_v51 = vunpack.i.h.bf16 %v15798_v25  ;;  %v15799_v2 = vunpack.i.l.bf16 %v15798_v25 }
0x20b3   :  { %v9346_v56 = vsel %vm2314_vm7, %v9344_v20, %v15799_v2  ;;  %v9347_v30 = vsel %vm2314_vm7, %v9345_v53, %v15800_v51  ;;  %v14523_v53 = vld [vmem:[#allocation6 + $0x1c] ss:$0 sm:$0xff] }
0x20b4   :  { %v9348_v36 = vpack.c.bf16 %v9347_v30, %v9346_v56 }
0x20b6   :  { %15433 = vmatmul.mubr.msk.bf16.vlgmr.msra.gmra.mxu0 %vm214_vm4, %v9348_v36 }
0x20b7   :  { %15452 = vmatprep.mubr.msk.bf16.mxu0 %vm16231_vm0, %v16230_v0  ;;  %15445 = vmatpush3.bf16.msra.mxu0 %v15870_v11 }
0x20b8   :  { %15446 = vmatprep.subr.bf16.mxu0 %v16230_v0 }
0x20bb   :  { %15447 = vmatpush3.bf16.msra.mxu0 %v15871_v3 }
0x20bc   :  { %15448 = vmatprep.subr.bf16.mxu0 %v16230_v0 }
0x20bf   :  { %15449 = vmatpush3.bf16.msra.mxu0 %v15872_v49 }
0x20c0   :  { %15450 = vmatprep.subr.bf16.mxu0 %v16230_v0 }
0x20c3   :  { %15451 = vmatpush3.bf16.msra.mxu0 %v15873_v43 }
0x20c4   :  { %15470 = vmatprep.subr.bf16.mxu0 %v16230_v0 }
0x2176   :  { %v9404_v17 = vpop.f32.mrf.mxu0 }
0x2177   :  { %v9405_v58 = vadd.f32 %v14513_v13, %v9404_v17 }
0x2178   :  { %v15434_v47 = vpop.f32.mrf.mxu0 }
0x2179   :  { %v9413_v18 = vadd.f32 %v9405_v58, %v17546_v8 }
0x217a   :  { %v9407_v26 = vpop.f32.mrf.mxu0 }
0x217b   :  { %v9408_v42 = vadd.f32 %v14513_v13, %v9407_v26  ;;  %v9415_v54 = vsel %vm214_vm4, %v9413_v18, 0.0 }
0x217c   :  { %9416 = vadd.xlane.f32.xlu1 %v9415_v54  ;;  %v15435_v60 = vpop.f32.mrf.mxu0 }
0x217d   :  { %v9414_v62 = vadd.f32 %v9408_v42, %v17548_v1  ;;  %v15869_v1 = vld [vmem:[#allocation2 + $0x34] ss:$80 sps:$4 sm:$0xff]  }
0x217e   :  { %15439 = vmatpush3.bf16.msra.mxu1 %v15869_v1 }
0x217f   :  { %v9418_v24 = vsel %vm214_vm4, %v9414_v62, 0.0  ;;  %15456 = vmatprep.subr.bf16.mxu1 %v16230_v0 }
0x2180   :  { %9419 = vadd.xlane.f32.xlu0 %v9418_v24 }
0x2205   :  { %v9417_v28 = vpop.xlane.xlu1 %9416 }
0x2206   :  { %v9421_v40 = vmul.f32 0.03125, %v9417_v28 }
0x2208   :  { %v9423_v46 = vsub.f32 %v9413_v18, %v9421_v40 }
0x2209   :  { %v9420_v63 = vpop.xlane.xlu0 %9419 }
0x220a   :  { %v9422_v16 = vmul.f32 0.03125, %v9420_v63  ;;  %v9425_v35 = vmul.f32 %v9423_v46, %v9423_v46 }
0x220c   :  { %v9424_v10 = vsub.f32 %v9414_v62, %v9422_v16  ;;  %v9427_v8 = vsel %vm214_vm4, %v9425_v35, 0.0 }
0x220d   :  { %9428 = vadd.xlane.f32.xlu0 %v9427_v8  ;;  %v15875_v8 = vld [vmem:[#allocation2 + $0x38] ss:$80 sps:$4 sm:$0xff]  }
0x220e   :  { %v9426_v19 = vmul.f32 %v9424_v10, %v9424_v10 }
0x2210   :  { %v9430_v57 = vsel %vm214_vm4, %v9426_v19, 0.0 }
0x2211   :  { %9431 = vadd.xlane.f32.xlu1 %v9430_v57 }
0x2296   :  { %v9429_v33 = vpop.xlane.xlu0 %9428 }
0x2297   :  { %v9433_v37 = vmul.f32 0.03125, %v9429_v33 }
0x2299   :  { %v9435_v5 = vadd.f32 1e-05, %v9433_v37 }
0x229a   :  { %v9432_v9 = vpop.xlane.xlu1 %9431 }
0x229b   :  { %16048 = vrsqrt.f32 %v9435_v5  ;;  %v9434_v61 = vmul.f32 0.03125, %v9432_v9  ;;  %v14529_v9 = vld [vmem:[#allocation6 + $0x1d] ss:$0 sm:$0xff] }
0x229d   :  { %v9436_v21 = vadd.f32 1e-05, %v9434_v61 }
0x229f   :  { %16050 = vrsqrt.f32 %v9436_v21 }
0x22a8   :  { %v16049_v23 = vpop.eup %16048 }
0x22a9   :  { %v9439_v12 = vmul.f32 %v16049_v23, %v9423_v46 }
0x22ab   :  { %v9447_v34 = vmul.f32 %v14517_v55, %v9439_v12  ;;  %v14530_v12 = vld [vmem:[#allocation6 + $0x1e] ss:$0 sm:$0xff] }
0x22ac   :  { %v16051_v41 = vpop.eup %16050 }
0x22ad   :  { %v9440_v15 = vmul.f32 %v16051_v41, %v9424_v10  ;;  %v9455_v48 = vadd.f32 %v14518_v38, %v9447_v34  ;;  %v15874_v10 = vld [vmem:[#allocation2 + $0xd8] ss:$80 sps:$4 sm:$0xff]  }
0x22af   :  { %v9448_v29 = vmul.f32 %v14517_v55, %v9440_v15 }
0x22b1   :  { %v9456_v44 = vadd.f32 %v14518_v38, %v9448_v29  ;;  %v14531_v29 = vld [vmem:[#allocation6 + $0x1f] ss:$0 sm:$0xff] }
0x22b3   :  { %v9471_v4 = vpack.c.bf16 %v9456_v44, %v9455_v48 }
0x22b5   :  { %15441 = vmatmul.mubr.msk.bf16.vlgmr.msra.gmra.mxu1 %vm214_vm4, %v9471_v4 }
0x22b6   :  { %15460 = vmatprep.mubr.msk.bf16.mxu1 %vm16231_vm0, %v16230_v0  ;;  %15457 = vmatpush3.bf16.msra.mxu1 %v15874_v10 }
0x22b7   :  { %15458 = vmatprep.subr.bf16.mxu1 %v16230_v0 }
0x22ba   :  { %15459 = vmatpush3.bf16.msra.mxu1 %v15875_v8 }
0x22bb   :  { %15464 = vmatprep.subr.bf16.mxu1 %v16230_v0 }
0x2375   :  { %v9527_v31 = vpop.f32.mrf.mxu1 }
0x2376   :  { %v9528_v32 = vadd.f32 %v14519_v6, %v9527_v31 }
0x2377   :  { %v15442_v59 = vpop.f32.mrf.mxu1 }
0x2378   :  { %v9534_v51 = vmax.f32 %v9528_v32, 0.0 }
0x2379   :  { %v9530_v7 = vpop.f32.mrf.mxu1 }
0x237a   :  { %v9531_v27 = vadd.f32 %v14519_v6, %v9530_v7 }
0x237b   :  { %v15443_v25 = vpop.f32.mrf.mxu1 }
0x237c   :  { %v9535_v2 = vmax.f32 %v9531_v27, 0.0 }
0x237e   :  { %v9536_v20 = vpack.c.bf16 %v9535_v2, %v9534_v51 }
0x2380   :  { %15453 = vmatmul.mubr.msk.bf16.vlgmr.msra.gmra.mxu0 %vm2537_vm8, %v9536_v20 }
0x2381   :  { %15472 = vmatprep.mubr.msk.bf16.mxu0 %vm16231_vm0, %v16230_v0 }
0x2440   :  { %v9604_v56 = vpop.f32.mrf.mxu0 }
0x2441   :  { %v9605_v30 = vadd.f32 %v14523_v53, %v9604_v56 }
0x2442   :  { %v15454_v36 = vpop.f32.mrf.mxu0 }
0x2443   :  { %v9613_v13 = vadd.f32 %v9605_v30, %v9455_v48 }
0x2444   :  { %v9607_v17 = vpop.f32.mrf.mxu0 }
0x2445   :  { %v9608_v58 = vadd.f32 %v14523_v53, %v9607_v17  ;;  %v9615_v47 = vsel %vm214_vm4, %v9613_v13, 0.0 }
0x2446   :  { %9616 = vadd.xlane.f32.xlu0 %v9615_v47  ;;  %v15455_v18 = vpop.f32.mrf.mxu0 }
0x2447   :  { %v9614_v26 = vadd.f32 %v9608_v58, %v9456_v44 }
0x2449   :  { %v9618_v42 = vsel %vm214_vm4, %v9614_v26, 0.0 }
0x244a   :  { %9619 = vadd.xlane.f32.xlu1 %v9618_v42 }
0x24cf   :  { %v9617_v54 = vpop.xlane.xlu0 %9616 }
0x24d0   :  { %v9621_v60 = vmul.f32 0.03125, %v9617_v54 }
0x24d2   :  { %v9623_v62 = vsub.f32 %v9613_v13, %v9621_v60 }
0x24d3   :  { %v9620_v24 = vpop.xlane.xlu1 %9619 }
0x24d4   :  { %v9622_v28 = vmul.f32 0.03125, %v9620_v24  ;;  %v9625_v40 = vmul.f32 %v9623_v62, %v9623_v62 }
0x24d6   :  { %v9624_v46 = vsub.f32 %v9614_v26, %v9622_v28  ;;  %v9627_v63 = vsel %vm214_vm4, %v9625_v40, 0.0 }
0x24d7   :  { %9628 = vadd.xlane.f32.xlu0 %v9627_v63 }
0x24d8   :  { %v9626_v16 = vmul.f32 %v9624_v46, %v9624_v46 }
0x24da   :  { %v9630_v35 = vsel %vm214_vm4, %v9626_v16, 0.0 }
0x24db   :  { %9631 = vadd.xlane.f32.xlu1 %v9630_v35 }
0x2560   :  { %v9629_v19 = vpop.xlane.xlu0 %9628 }
0x2561   :  { %v9633_v57 = vmul.f32 0.03125, %v9629_v19 }
0x2563   :  { %v9635_v22 = vadd.f32 1e-05, %v9633_v57 }
0x2564   :  { %v9632_v1 = vpop.xlane.xlu1 %9631 }
0x2565   :  { %16052 = vrsqrt.f32 %v9635_v22  ;;  %v9634_v11 = vmul.f32 0.03125, %v9632_v1 }
0x2567   :  { %v9636_v33 = vadd.f32 1e-05, %v9634_v11 }
0x2569   :  { %16054 = vrsqrt.f32 %v9636_v33 }
0x2572   :  { %v16053_v37 = vpop.eup %16052 }
0x2573   :  { %v9639_v5 = vmul.f32 %v16053_v37, %v9623_v62 }
0x2575   :  { %v9647_v21 = vmul.f32 %v14529_v9, %v9639_v5 }
0x2576   :  { %v16055_v61 = vpop.eup %16054 }
0x2577   :  { %v9640_v23 = vmul.f32 %v16055_v61, %v9624_v46  ;;  %v17958_v41 = vadd.f32 %v14530_v12, %v9647_v21 }
0x2579   :  { %v9648_v55 = vmul.f32 %v14529_v9, %v9640_v23 }
0x257b   :  { %v17960_v34 = vadd.f32 %v14530_v12, %v9648_v55 }
0x257d   :  { %v9667_v15 = vpack.c.bf16 %v17960_v34, %v17958_v41 }
0x257f   :  { %15461 = vmatmul.mubr.msk.bf16.vlgmr.msra.gmra.mxu1 %vm214_vm4, %v9667_v15 }
0x2580   :  { %15466 = vmatprep.mubr.msk.bf16.mxu1 %vm16231_vm0, %v16230_v0 }
0x263f   :  { %v9723_v38 = vpop.f32.mrf.mxu1 }
0x2640   :  { %v9724_v4 = vadd.f32 %v14531_v29, %v9723_v38 }
0x2641   :  { %v15462_v48 = vpop.f32.mrf.mxu1 }
0x2643   :  { %v9726_v44 = vpop.f32.mrf.mxu1 }
0x2644   :  { %v9727_v3 = vadd.f32 %v14531_v29, %v9726_v44 }
0x2645   :  { %v15463_v49 = vpop.f32.mrf.mxu1 }
0x2646   :  { %v17967_v43 = vpack.c.bf16 %v9727_v3, %v9724_v4 }
0x2648   :  { %9734 = vrot.lane.b32.xlu1 %v17967_v43, %s16237_s30  ;;  %9732 = vrot.lane.b32.xlu0 %v17967_v43, %s16235_s2  ;;  %v9742_v51 = vshrl.u32 %v17967_v43, 16 }
0x264c   :  { %9736 = vrot.lane.b32.xlu1 %v17967_v43, %s16234_s0  ;;  %10010 = vrot.lane.b32.xlu0 %v17967_v43, %s16236_s29 }
0x26ba   :  { %v17977_v6 = vpop.permute.xlu1 %9734  ;;  %v17979_v31 = vpop.permute.xlu0 %9732 }
0x26bb   :  { %10014 = vrot.lane.b32.xlu0 %v17977_v6, %s16236_s29  ;;  %10012 = vrot.lane.b32.xlu1 %v17979_v31, %s16236_s29  ;;  %v9750_v7 = vshrl.u32 %v17977_v6, 16  ;;  %v9743_v27 = vshrl.u32 %v17979_v31, 16  ;;  %v17999_v20 = vpack.i.b16 %v17979_v31, %v17967_v43 }
0x26bd   :  { %v18001_v53 = vpack.i.b16 %v9743_v27, %v9742_v51  ;;  %v9761_v36 = vrot.slane %v17999_v20, %v16364_v39  ;;  %v9754_v28 = vcombine.high %v17999_v20, %v16381_v50 }
0x26be   :  { %v17985_v59 = vpop.permute.xlu1 %9736  ;;  %v10011_v13 = vpop.permute.xlu0 %10010 }
0x26bf   :  { %10016 = vrot.lane.b32.xlu1 %v17985_v59, %s16236_s29  ;;  %v9751_v32 = vshrl.u32 %v17985_v59, 16  ;;  %v17994_v25 = vpack.i.b16 %v17985_v59, %v17977_v6  ;;  %v9827_v17 = vrot.slane %v18001_v53, %v16364_v39  ;;  %v10022_v60 = vshrl.u32 %v10011_v13, 16 }
0x26c0   :  { %v9820_v16 = vcombine.high %v18001_v53, %v16381_v50 }
0x26c1   :  { %v9752_v2 = vpack.i.b16 %v9751_v32, %v9750_v7  ;;  %v9776_v56 = vrot.slane %v17994_v25, %v16364_v39  ;;  %v9769_v9 = vcombine.high %v17994_v25, %v16381_v50 }
0x26c3   :  { %v9842_v30 = vrot.slane %v9752_v2, %v16364_v39  ;;  %v9784_v47 = vcombine.low %v9761_v36, %v9776_v56  ;;  %v9785_v18 = vcombine.high %v9761_v36, %v9776_v56  ;;  %v9835_v40 = vcombine.high %v9752_v2, %v16381_v50 }
0x26c5   :  { %v9850_v42 = vcombine.low %v9827_v17, %v9842_v30  ;;  %v9851_v54 = vcombine.high %v9827_v17, %v9842_v30  ;;  %v9792_v35 = vrot.slane %v9784_v47, %v16383_v52  ;;  %v9799_v10 = vrot.slane %v9785_v18, %v16383_v52 }
0x26c6   :  { %v18026_v61 = vrot.slane %v9835_v40, %v16364_v39 }
0x26c7   :  { %v9858_v19 = vrot.slane %v9850_v42, %v16383_v52  ;;  %v9865_v57 = vrot.slane %v9851_v54, %v16383_v52  ;;  %v9886_v12 = vcombine.low %v9792_v35, %v9799_v10  ;;  %v14535_v18 = vcombine.high %v9792_v35, %v9799_v10 }
0x26c8   :  { %v9834_v35 = vrot.slane %v9820_v16, %v16364_v39  ;;  %v9783_v10 = vrot.slane %v9769_v9, %v16364_v39 }
0x26c9   :  { %v9911_v29 = vcombine.low %v9858_v19, %v9865_v57  ;;  %v14536_v3 = vcombine.high %v9858_v19, %v9865_v57 }
0x26ca   :  { %v9866_v9 = vcombine.low %v9834_v35, %v18026_v61 }
0x272d   :  { %v10013_v58 = vpop.permute.xlu1 %10012  ;;  %v10015_v24 = vpop.permute.xlu0 %10014 }
0x272e   :  { %v10023_v26 = vshrl.u32 %v10013_v58, 16  ;;  %v10020_v62 = vpack.i.b16 %v10013_v58, %v10011_v13  ;;  %v10030_v22 = vshrl.u32 %v10015_v24, 16 }
0x2730   :  { %v10024_v46 = vpack.i.b16 %v10023_v26, %v10022_v60  ;;  %v10034_v11 = vcombine.high %v10020_v62, %v16381_v50  ;;  %v10041_v33 = vrot.slane %v10020_v62, %v16364_v39  ;;  %v9918_v26 = vrot.slane %v9911_v29, %v16364_v39 }
0x2731   :  { %v10017_v63 = vpop.permute.xlu1 %10016 }
0x2732   :  { %v10028_v8 = vpack.i.b16 %v10017_v63, %v10015_v24  ;;  %v10031_v1 = vshrl.u32 %v10017_v63, 16  ;;  %v10100_v21 = vcombine.high %v10024_v46, %v16381_v50  ;;  %v10107_v48 = vrot.slane %v10024_v46, %v16364_v39 }
0x2733   :  { %v10048_v49 = vrot.slane %v10034_v11, %v16364_v39  ;;  %v9926_v46 = vrot.slane %v14536_v3, %v16364_v39  ;;  %v9901_v11 = vrot.slane %v14535_v18, %v16364_v39 }
0x2734   :  { %v10049_v37 = vcombine.high %v10028_v8, %v16381_v50  ;;  %v10056_v5 = vrot.slane %v10028_v8, %v16364_v39  ;;  %v10032_v23 = vpack.i.b16 %v10031_v1, %v10030_v22  ;;  %v10114_v27 = vrot.slane %v10100_v21, %v16364_v39 }
0x2735   :  { %v9893_v1 = vrot.slane %v9886_v12, %v16364_v39 }
0x2736   :  { %v10063_v55 = vrot.slane %v10049_v37, %v16364_v39  ;;  %v10064_v15 = vcombine.low %v10041_v33, %v10056_v5  ;;  %v10065_v38 = vcombine.high %v10041_v33, %v10056_v5  ;;  %v10115_v44 = vcombine.high %v10032_v23, %v16381_v50 }
0x2737   :  { %v10122_v4 = vrot.slane %v10032_v23, %v16364_v39  ;;  %v9768_v5 = vrot.slane %v9754_v28, %v16364_v39  ;;  %v9867_v23 = vcombine.high %v9834_v35, %v18026_v61 }
0x2738   :  { %v10072_v32 = vrot.slane %v10064_v15, %v16383_v52  ;;  %v10079_v7 = vrot.slane %v10065_v38, %v16383_v52  ;;  %v10129_v25 = vrot.slane %v10115_v44, %v16364_v39  ;;  %v10080_v53 = vcombine.low %v10048_v49, %v10063_v55 }
0x2739   :  { %v10130_v51 = vcombine.low %v10107_v48, %v10122_v4  ;;  %v10131_v2 = vcombine.high %v10107_v48, %v10122_v4  ;;  %v10081_v56 = vcombine.high %v10048_v49, %v10063_v55  ;;  %v9927_v55 = vcombine.low %v9918_v26, %v9926_v46 }
0x273a   :  { %v10166_v30 = vcombine.low %v10072_v32, %v10079_v7  ;;  %v14539_v36 = vcombine.high %v10072_v32, %v10079_v7  ;;  %v10146_v58 = vcombine.low %v10114_v27, %v10129_v25  ;;  %v10147_v47 = vcombine.high %v10114_v27, %v10129_v25 }
0x273b   :  { %v10138_v13 = vrot.slane %v10130_v51, %v16383_v52  ;;  %v10145_v17 = vrot.slane %v10131_v2, %v16383_v52  ;;  %v10088_v63 = vrot.slane %v10080_v53, %v16383_v52  ;;  %v10095_v8 = vrot.slane %v10081_v56, %v16383_v52 }
0x273c   :  { %v10173_v42 = vrot.slane %v10166_v30, %v16364_v39  ;;  %v10181_v54 = vrot.slane %v14539_v36, %v16364_v39  ;;  %v10154_v60 = vrot.slane %v10146_v58, %v16383_v52  ;;  %v10161_v62 = vrot.slane %v10147_v47, %v16383_v52 }
0x273d   :  { %v10191_v24 = vcombine.low %v10138_v13, %v10145_v17  ;;  %v14540_v40 = vcombine.high %v10138_v13, %v10145_v17  ;;  %v10216_v15 = vcombine.low %v10088_v63, %v10095_v8  ;;  %v9800_v38 = vcombine.low %v9768_v5, %v9783_v10 }
0x273e   :  { %v10182_v19 = vcombine.low %v10173_v42, %v10181_v54  ;;  %v10241_v33 = vcombine.low %v10154_v60, %v10161_v62  ;;  %v14542_v37 = vcombine.high %v10154_v60, %v10161_v62  ;;  %v14541_v12 = vcombine.high %v10088_v63, %v10095_v8 }
0x273f   :  { %v10198_v57 = vrot.slane %v10191_v24, %v16364_v39  ;;  %v10206_v22 = vrot.slane %v14540_v40, %v16364_v39  ;;  %v9801_v48 = vcombine.high %v9768_v5, %v9783_v10  ;;  %v9902_v44 = vcombine.low %v9893_v1, %v9901_v11 }
0x2740   :  { %v10189_v21 = vrot.slane %v10182_v19, %v16383_v52  ;;  %v10248_v4 = vrot.slane %v10241_v33, %v16364_v39  ;;  %v10256_v20 = vrot.slane %v14542_v37, %v16364_v39  ;;  %v9874_v7 = vrot.slane %v9866_v9, %v16383_v52 }
0x2741   :  { %v10207_v16 = vcombine.low %v10198_v57, %v10206_v22  ;;  %v9881_v61 = vrot.slane %v9867_v23, %v16383_v52  ;;  %v9934_v27 = vrot.slane %v9927_v55, %v16383_v52  ;;  %v10223_v25 = vrot.slane %v10216_v15, %v16364_v39 }
0x2742   :  { %v10269_v3 = vshrl.u32 %v10189_v21, 16  ;;  %v10231_v51 = vrot.slane %v14541_v12, %v16364_v39  ;;  %v10190_v56 = vcombine.high %v10189_v21, %v16233_v14  ;;  %v9808_v30 = vrot.slane %v9800_v38, %v16383_v52 }
0x2743   :  { %v10214_v29 = vrot.slane %v10207_v16, %v16383_v52  ;;  %v9815_v36 = vrot.slane %v9801_v48, %v16383_v52  ;;  %v9909_v13 = vrot.slane %v9902_v44, %v16383_v52  ;;  %v10257_v47 = vcombine.low %v10248_v4, %v10256_v20 }
0x2744   :  { %v9961_v18 = vcombine.low %v9874_v7, %v9881_v61  ;;  %v14538_v26 = vcombine.high %v9874_v7, %v9881_v61  ;;  %v9990_v54 = vshrl.u32 %v9934_v27, 16  ;;  %v10275_v60 = vshrl.u32 %v10190_v56, 16 }
0x2745   :  { %v10268_v28 = vpack.i.b16 %v10214_v29, %v10189_v21  ;;  %v10270_v49 = vshrl.u32 %v10214_v29, 16  ;;  %v10215_v32 = vcombine.high %v10214_v29, %v16233_v14  ;;  %v10232_v62 = vcombine.low %v10223_v25, %v10231_v51 }
0x2746   :  { %v9936_v24 = vcombine.low %v9808_v30, %v9815_v36  ;;  %v14537_v40 = vcombine.high %v9808_v30, %v9815_v36  ;;  %v9988_v46 = vpack.i.b16 %v9934_v27, %v9909_v13  ;;  %v9989_v63 = vshrl.u32 %v9909_v13, 16 }
0x2747   :  { %v10574_v2 = vsel %vm1180_vm5, %v10268_v28, 0  ;;  %v10271_v53 = vpack.i.b16 %v10270_v49, %v10269_v3  ;;  %v10276_v58 = vshrl.u32 %v10215_v32, 16  ;;  %v10274_v42 = vpack.i.b16 %v10215_v32, %v10190_v56 }
0x2748   :  { %15465 = vmatpush3.bf16.xpose.msra.mxu1 %v10574_v2  ;;  %v10264_v19 = vrot.slane %v10257_v47, %v16383_v52  ;;  %v9968_v35 = vrot.slane %v9961_v18, %v16364_v39  ;;  %v9976_v10 = vrot.slane %v14538_v26, %v16364_v39  ;;  %v9991_v22 = vpack.i.b16 %v9990_v54, %v9989_v63 }
0x2749   :  { %v10620_v17 = vsel %vm1180_vm5, %v10271_v53, 0  ;;  %15476 = vmatprep.subr.bf16.mxu1 %v16230_v0  ;;  %v10277_v8 = vpack.i.b16 %v10276_v58, %v10275_v60  ;;  %v10666_v57 = vsel %vm1180_vm5, %v10274_v42, 0  ;;  %v9935_v1 = vcombine.high %v9934_v27, %v16233_v14 }
0x274a   :  { %15471 = vmatpush3.bf16.xpose.msra.mxu0 %v10620_v17  ;;  %v10239_v11 = vrot.slane %v10232_v62, %v16383_v52  ;;  %v9943_v33 = vrot.slane %v9936_v24, %v16364_v39  ;;  %v9951_v37 = vrot.slane %v14537_v40, %v16364_v39  ;;  %v9910_v21 = vcombine.high %v9909_v13, %v16233_v14 }
0x274b   :  { %15482 = vmatprep.subr.bf16.mxu0 %v16230_v0  ;;  %v10712_v5 = vsel %vm1180_vm5, %v10277_v8, 0  ;;  %v10282_v16 = vshrl.u32 %v10264_v19, 16  ;;  %v9977_v9 = vcombine.low %v9968_v35, %v9976_v10  ;;  %v9996_v55 = vshrl.u32 %v9935_v1, 16 }
0x274c   :  { %v10280_v23 = vpack.i.b16 %v10264_v19, %v10239_v11  ;;  %v10281_v15 = vshrl.u32 %v10239_v11, 16  ;;  %v9952_v38 = vcombine.low %v9943_v33, %v9951_v37  ;;  %v9994_v12 = vpack.i.b16 %v9935_v1, %v9910_v21 }
0x274d   :  { %v9995_v29 = vshrl.u32 %v9910_v21, 16  ;;  %v10265_v44 = vcombine.high %v10264_v19, %v16233_v14  ;;  %v9984_v28 = vrot.slane %v9977_v9, %v16383_v52  ;;  %v10240_v3 = vcombine.high %v10239_v11, %v16233_v14 }
0x274e   :  { %v10283_v48 = vpack.i.b16 %v10282_v16, %v10281_v15  ;;  %v10758_v4 = vsel %vm1180_vm5, %v10280_v23, 0  ;;  %v9959_v49 = vrot.slane %v9952_v38, %v16383_v52 }
0x274f   :  { %15467 = vmatmul.mubr.msk.bf16.vlgmr.msra.gmra.mxu1 %vm1180_vm5, %v9988_v46  ;;  %v9997_v20 = vpack.i.b16 %v9996_v55, %v9995_v29  ;;  %v10288_v7 = vshrl.u32 %v10265_v44, 16  ;;  %v10286_v61 = vpack.i.b16 %v10265_v44, %v10240_v3  ;;  %v10002_v27 = vshrl.u32 %v9984_v28, 16 }
0x2750   :  { %15477 = vmatpush3.bf16.xpose.msra.mxu1 %v10666_v57  ;;  %15478 = vmatprep.mubr.msk.bf16.mxu1 %vm16231_vm0, %v16230_v0  ;;  %v10804_v32 = vsel %vm1180_vm5, %v10283_v48, 0  ;;  %v10287_v25 = vshrl.u32 %v10240_v3, 16  ;;  %v10000_v51 = vpack.i.b16 %v9984_v28, %v9959_v49  ;;  %v10001_v2 = vshrl.u32 %v9959_v49, 16 }
0x2751   :  { %15473 = vmatmul.mubr.msk.bf16.vlgmr.msra.gmra.mxu0 %vm1180_vm5, %v9991_v22  ;;  %15488 = vmatprep.subr.bf16.mxu1 %v16230_v0  ;;  %v10850_v56 = vsel %vm1180_vm5, %v10286_v61, 0  ;;  %v9985_v36 = vcombine.high %v9984_v28, %v16233_v14  ;;  %v9960_v17 = vcombine.high %v9959_v49, %v16233_v14 }
0x2752   :  { %15483 = vmatpush3.bf16.xpose.msra.mxu0 %v10712_v5  ;;  %15484 = vmatprep.mubr.msk.bf16.mxu0 %vm16231_vm0, %v16230_v0  ;;  %v10289_v53 = vpack.i.b16 %v10288_v7, %v10287_v25  ;;  %v10003_v30 = vpack.i.b16 %v10002_v27, %v10001_v2 }
0x2753   :  { %15494 = vmatprep.subr.bf16.mxu0 %v16230_v0  ;;  %v10008_v58 = vshrl.u32 %v9985_v36, 16  ;;  %v10006_v47 = vpack.i.b16 %v9985_v36, %v9960_v17  ;;  %v10007_v18 = vshrl.u32 %v9960_v17, 16 }
0x2754   :  { %v10896_v13 = vsel %vm1180_vm5, %v10289_v53, 0 }
0x2755   :  { %v10009_v26 = vpack.i.b16 %v10008_v58, %v10007_v18 }
0x2757   :  { %15479 = vmatmul.mubr.msk.bf16.vlgmr.msra.gmra.mxu1 %vm1180_vm5, %v9994_v12 }
0x2758   :  { %15489 = vmatpush3.bf16.xpose.msra.mxu1 %v10758_v4  ;;  %15490 = vmatprep.mubr.msk.bf16.mxu1 %vm16231_vm0, %v16230_v0 }
0x2759   :  { %15485 = vmatmul.mubr.msk.bf16.vlgmr.msra.gmra.mxu0 %vm1180_vm5, %v9997_v20  ;;  %15500 = vmatprep.subr.bf16.mxu1 %v16230_v0 }
0x275a   :  { %15495 = vmatpush3.bf16.xpose.msra.mxu0 %v10804_v32  ;;  %15496 = vmatprep.mubr.msk.bf16.mxu0 %vm16231_vm0, %v16230_v0 }
0x275b   :  { %15506 = vmatprep.subr.bf16.mxu0 %v16230_v0 }
0x275f   :  { %15491 = vmatmul.mubr.msk.bf16.vlgmr.msra.gmra.mxu1 %vm1180_vm5, %v10000_v51 }
0x2760   :  { %15501 = vmatpush3.bf16.xpose.msra.mxu1 %v10850_v56  ;;  %15502 = vmatprep.mubr.msk.bf16.mxu1 %vm16231_vm0, %v16230_v0 }
0x2761   :  { %15497 = vmatmul.mubr.msk.bf16.vlgmr.msra.gmra.mxu0 %vm1180_vm5, %v10003_v30  ;;  %15512 = vmatprep.subr.bf16.mxu1 %v16230_v0 }
0x2762   :  { %15507 = vmatpush3.bf16.xpose.msra.mxu0 %v10896_v13  ;;  %15508 = vmatprep.mubr.msk.bf16.mxu0 %vm16231_vm0, %v16230_v0 }
0x2763   :  { %15518 = vmatprep.subr.bf16.mxu0 %v16230_v0 }
0x2767   :  { %15503 = vmatmul.mubr.msk.bf16.vlgmr.msra.gmra.mxu1 %vm1180_vm5, %v10006_v47 }
0x2768   :  { %15514 = vmatprep.mubr.msk.bf16.mxu1 %vm16231_vm0, %v16230_v0 }
0x2769   :  { %15509 = vmatmul.mubr.msk.bf16.vlgmr.msra.gmra.mxu0 %vm1180_vm5, %v10009_v26 }
0x276a   :  { %15520 = vmatprep.mubr.msk.bf16.mxu0 %vm16231_vm0, %v16230_v0 }
0x280f   :  { %v10610_v42 = vpop.f32.mrf.mxu1 }
0x2810   :  { %v10938_v54 = vsel %vm1180_vm5, %v10610_v42, -inf }
0x2811   :  { %10939 = vmax.xlane.f32.xlu0 %v10938_v54  ;;  %v15468_v60 = vpop.f32.mrf.mxu1  ;;  %v10656_v62 = vpop.f32.mrf.mxu0 }
0x2812   :  { %v10941_v24 = vsel %vm1180_vm5, %v10656_v62, -inf }
0x2813   :  { %v10613_v40 = vpop.f32.mrf.mxu1  ;;  %10942 = vmax.xlane.f32.xlu1 %v10941_v24  ;;  %v15474_v46 = vpop.f32.mrf.mxu0 }
0x2815   :  { %v15469_v63 = vpop.f32.mrf.mxu1  ;;  %v10659_v8 = vpop.f32.mrf.mxu0 }
0x2817   :  { %v15475_v19 = vpop.f32.mrf.mxu0  ;;  %v10702_v35 = vpop.f32.mrf.mxu1 }
0x2818   :  { %v10944_v10 = vsel %vm1180_vm5, %v10702_v35, -inf }
0x2819   :  { %10945 = vmax.xlane.f32.xlu0 %v10944_v10  ;;  %v15480_v57 = vpop.f32.mrf.mxu1  ;;  %v10748_v22 = vpop.f32.mrf.mxu0 }
0x281a   :  { %v10947_v33 = vsel %vm1180_vm5, %v10748_v22, -inf }
0x281b   :  { %v10705_v1 = vpop.f32.mrf.mxu1  ;;  %v15486_v11 = vpop.f32.mrf.mxu0 }
0x281d   :  { %v15481_v37 = vpop.f32.mrf.mxu1  ;;  %10948 = vmax.xlane.f32.xlu0 %v10947_v33  ;;  %v10751_v5 = vpop.f32.mrf.mxu0 }
0x281f   :  { %v15487_v21 = vpop.f32.mrf.mxu0  ;;  %v10794_v16 = vpop.f32.mrf.mxu1 }
0x2820   :  { %v10950_v9 = vsel %vm1180_vm5, %v10794_v16, -inf }
0x2821   :  { %v15492_v23 = vpop.f32.mrf.mxu1  ;;  %10951 = vmax.xlane.f32.xlu1 %v10950_v9  ;;  %v10840_v55 = vpop.f32.mrf.mxu0 }
0x2822   :  { %v10953_v15 = vsel %vm1180_vm5, %v10840_v55, -inf }
0x2823   :  { %v10797_v38 = vpop.f32.mrf.mxu1  ;;  %10954 = vmax.xlane.f32.xlu0 %v10953_v15  ;;  %v15498_v12 = vpop.f32.mrf.mxu0 }
0x2825   :  { %v15493_v29 = vpop.f32.mrf.mxu1  ;;  %v10843_v48 = vpop.f32.mrf.mxu0 }
0x2827   :  { %v15499_v44 = vpop.f32.mrf.mxu0  ;;  %v10886_v4 = vpop.f32.mrf.mxu1 }
0x2828   :  { %v10956_v20 = vsel %vm1180_vm5, %v10886_v4, -inf }
0x2829   :  { %v15504_v28 = vpop.f32.mrf.mxu1  ;;  %10957 = vmax.xlane.f32.xlu1 %v10956_v20  ;;  %v10932_v3 = vpop.f32.mrf.mxu0 }
0x282a   :  { %v10959_v49 = vsel %vm1180_vm5, %v10932_v3, -inf }
0x282b   :  { %v10889_v32 = vpop.f32.mrf.mxu1  ;;  %10960 = vmax.xlane.f32.xlu0 %v10959_v49  ;;  %v15510_v7 = vpop.f32.mrf.mxu0 }
0x282d   :  { %v15505_v61 = vpop.f32.mrf.mxu1  ;;  %v10935_v27 = vpop.f32.mrf.mxu0 }
0x282f   :  { %v15511_v25 = vpop.f32.mrf.mxu0 }
0x283a   :  { %10290 = vrot.lane.b32.xlu1 %v17967_v43, %s16240_s8 }
0x289a   :  { %v10940_v51 = vpop.xlane.xlu0 %10939 }
0x289b   :  { %v10962_v2 = vsub.f32 %v10610_v42, %v10940_v51 }
0x289c   :  { %v10943_v53 = vpop.xlane.xlu1 %10942 }
0x289d   :  { %v10970_v56 = vmul.f32 1.442695, %v10962_v2  ;;  %v10963_v30 = vsub.f32 %v10656_v62, %v10943_v53 }
0x289f   :  { %16056 = vpow2.f32 %v10970_v56  ;;  %v10972_v36 = vmul.f32 1.442695, %v10963_v30 }
0x28a1   :  { %16058 = vpow2.f32 %v10972_v36 }
0x28a2   :  { %v10946_v43 = vpop.xlane.xlu0 %10945 }
0x28a3   :  { %v10964_v42 = vsub.f32 %v10702_v35, %v10946_v43 }
0x28a5   :  { %v10974_v62 = vmul.f32 1.442695, %v10964_v42 }
0x28a6   :  { %v10949_v18 = vpop.xlane.xlu0 %10948 }
0x28a7   :  { %v10965_v54 = vsub.f32 %v10748_v22, %v10949_v18  ;;  %16060 = vpow2.f32 %v10974_v62 }
0x28a9   :  { %v10976_v46 = vmul.f32 1.442695, %v10965_v54 }
0x28aa   :  { %v10952_v26 = vpop.xlane.xlu1 %10951 }
0x28ab   :  { %v10966_v24 = vsub.f32 %v10794_v16, %v10952_v26  ;;  %16062 = vpow2.f32 %v10976_v46 }
0x28ac   :  { %v18138_v13 = vpop.eup %16056  ;;  %v10955_v40 = vpop.xlane.xlu0 %10954 }
0x28ad   :  { %v10986_v17 = vsel %vm1180_vm5, %v18138_v13, 0.0  ;;  %v10978_v8 = vmul.f32 1.442695, %v10966_v24 }
0x28ae   :  { %v18142_v58 = vpop.eup %16058  ;;  %10987 = vadd.xlane.f32.xlu1 %v10986_v17 }
0x28af   :  { %v10989_v47 = vsel %vm1180_vm5, %v18142_v58, 0.0  ;;  %16064 = vpow2.f32 %v10978_v8 }
0x28b0   :  { %10990 = vadd.xlane.f32.xlu0 %v10989_v47 }
0x28b2   :  { %v10958_v60 = vpop.xlane.xlu1 %10957 }
0x28b3   :  { %v10968_v63 = vsub.f32 %v10886_v4, %v10958_v60 }
0x28b4   :  { %v10961_v19 = vpop.xlane.xlu0 %10960  ;;  %v18152_v35 = vpop.eup %16060 }
0x28b5   :  { %v10969_v57 = vsub.f32 %v10932_v3, %v10961_v19  ;;  %v10992_v1 = vsel %vm1180_vm5, %v18152_v35, 0.0 }
0x28b6   :  { %v10291_v15 = vpop.permute.xlu1 %10290 }
0x28b7   :  { %v10302_v4 = vshrl.u32 %v10291_v15, 16 }
0x28b8   :  { %v18154_v22 = vpop.eup %16062 }
0x28b9   :  { %v10995_v33 = vsel %vm1180_vm5, %v18154_v22, 0.0 }
0x28bc   :  { %v18158_v11 = vpop.eup %16064 }
0x28bd   :  { %v10998_v5 = vsel %vm1180_vm5, %v18158_v11, 0.0 }
0x28bf   :  { %10294 = vrot.lane.b32.xlu1 %v17977_v6, %s16240_s8  ;;  %v10967_v6 = vsub.f32 %v10840_v55, %v10955_v40 }
0x28c1   :  { %v10980_v10 = vmul.f32 1.442695, %v10967_v6 }
0x28c3   :  { %10296 = vrot.lane.b32.xlu1 %v17985_v59, %s16240_s8  ;;  %v10982_v59 = vmul.f32 1.442695, %v10968_v63 }
0x28c5   :  { %16066 = vpow2.f32 %v10982_v59 }
0x28c6   :  { %10292 = vrot.lane.b32.xlu0 %v17979_v31, %s16240_s8  ;;  %16068 = vpow2.f32 %v10980_v10  ;;  %v10984_v31 = vmul.f32 1.442695, %v10969_v57 }
0x28c8   :  { %16070 = vpow2.f32 %v10984_v31 }
0x28d2   :  { %v18162_v37 = vpop.eup %16066 }
0x28d3   :  { %v18166_v21 = vpop.eup %16068  ;;  %v11004_v16 = vsel %vm1180_vm5, %v18162_v37, 0.0 }
0x28d4   :  { %v11001_v9 = vsel %vm1180_vm5, %v18166_v21, 0.0 }
0x28d5   :  { %v18172_v23 = vpop.eup %16070 }
0x28d6   :  { %v11007_v55 = vsel %vm1180_vm5, %v18172_v23, 0.0 }
0x28e5   :  { %10993 = vadd.xlane.f32.xlu0 %v10992_v1 }
0x28e7   :  { %10996 = vadd.xlane.f32.xlu1 %v10995_v33 }
0x28e9   :  { %10999 = vadd.xlane.f32.xlu0 %v10998_v5 }
0x28eb   :  { %11005 = vadd.xlane.f32.xlu1 %v11004_v16 }
0x28ed   :  { %11002 = vadd.xlane.f32.xlu0 %v11001_v9 }
0x28f1   :  { %11008 = vadd.xlane.f32.xlu0 %v11007_v55 }
0x2937   :  { %v10988_v38 = vpop.xlane.xlu1 %10987 }
0x2938   :  { %16072 = vrcp.f32 %v10988_v38 }
0x2939   :  { %v10991_v12 = vpop.xlane.xlu0 %10990 }
0x293a   :  { %16074 = vrcp.f32 %v10991_v12 }
0x293b   :  { %v10295_v29 = vpop.permute.xlu1 %10294 }
0x293c   :  { %v10310_v49 = vshrl.u32 %v10295_v29, 16 }
0x293d   :  { %v10293_v48 = vpop.permute.xlu0 %10292 }
0x293e   :  { %v10303_v44 = vshrl.u32 %v10293_v48, 16  ;;  %v18176_v20 = vpack.i.b16 %v10293_v48, %v10291_v15 }
0x293f   :  { %v10297_v28 = vpop.permute.xlu1 %10296 }
0x2940   :  { %v18178_v3 = vpack.i.b16 %v10297_v28, %v10295_v29  ;;  %v18180_v32 = vpack.i.b16 %v10303_v44, %v10302_v4  ;;  %v10311_v7 = vshrl.u32 %v10297_v28, 16  ;;  %v10321_v61 = vrot.slane %v18176_v20, %v16364_v39 }
0x2942   :  { %v10312_v27 = vpack.i.b16 %v10311_v7, %v10310_v49  ;;  %v10336_v25 = vrot.slane %v18178_v3, %v16364_v39  ;;  %v10387_v51 = vrot.slane %v18180_v32, %v16364_v39  ;;  %v10380_v49 = vcombine.high %v18180_v32, %v16381_v50 }
0x2943   :  { %v10329_v7 = vcombine.high %v18178_v3, %v16381_v50 }
0x2944   :  { %v10344_v2 = vcombine.low %v10321_v61, %v10336_v25  ;;  %v10345_v53 = vcombine.high %v10321_v61, %v10336_v25  ;;  %v10402_v56 = vrot.slane %v10312_v27, %v16364_v39  ;;  %v10395_v28 = vcombine.high %v10312_v27, %v16381_v50 }
0x2945   :  { %v16073_v6 = vpop.eup %16072  ;;  %v10314_v27 = vcombine.high %v18176_v20, %v16381_v50  ;;  %v10394_v32 = vrot.slane %v10380_v49, %v16364_v39  ;;  %v10343_v3 = vrot.slane %v10329_v7, %v16364_v39 }
0x2946   :  { %v10352_v30 = vrot.slane %v10344_v2, %v16383_v52  ;;  %v10359_v36 = vrot.slane %v10345_v53, %v16383_v52  ;;  %v10410_v17 = vcombine.low %v10387_v51, %v10402_v56  ;;  %v10411_v47 = vcombine.high %v10387_v51, %v10402_v56 }
0x2947   :  { %v16075_v10 = vpop.eup %16074  ;;  %v11018_v31 = vmul.f32 %v16073_v6, %v18138_v13  ;;  %v10409_v25 = vrot.slane %v10395_v28, %v16364_v39  ;;  %v10328_v51 = vrot.slane %v10314_v27, %v16364_v39 }
0x2948   :  { %v10418_v43 = vrot.slane %v10410_v17, %v16383_v52  ;;  %v10446_v18 = vcombine.low %v10352_v30, %v10359_v36  ;;  %v14543_v26 = vcombine.high %v10352_v30, %v10359_v36  ;;  %v10425_v42 = vrot.slane %v10411_v47, %v16383_v52 }
0x2949   :  { %v11019_v9 = vmul.f32 %v16075_v10, %v18142_v58  ;;  %v11026_v48 = vpack.c.bf16 %v11018_v31, %v11018_v31  ;;  %v10426_v2 = vcombine.low %v10394_v32, %v10409_v25  ;;  %v10427_v53 = vcombine.high %v10394_v32, %v10409_v25 }
0x294a   :  { %v10453_v54 = vrot.slane %v10446_v18, %v16364_v39  ;;  %v10461_v60 = vrot.slane %v14543_v26, %v16364_v39  ;;  %v10471_v62 = vcombine.low %v10418_v43, %v10425_v42  ;;  %v14544_v24 = vcombine.high %v10418_v43, %v10425_v42 }
0x294b   :  { %v11027_v4 = vpack.c.bf16 %v11019_v9, %v11019_v9  ;;  %v10360_v56 = vcombine.low %v10328_v51, %v10343_v3  ;;  %v10361_v30 = vcombine.high %v10328_v51, %v10343_v3  ;;  %v10434_v36 = vrot.slane %v10426_v2, %v16383_v52 }
0x294c   :  { %v10462_v40 = vcombine.low %v10453_v54, %v10461_v60  ;;  %v10478_v46 = vrot.slane %v10471_v62, %v16364_v39  ;;  %v10486_v63 = vrot.slane %v14544_v24, %v16364_v39  ;;  %v10441_v17 = vrot.slane %v10427_v53, %v16383_v52 }
0x294d   :  { %v10368_v20 = vrot.slane %v10360_v56, %v16383_v52  ;;  %v10375_v47 = vrot.slane %v10361_v30, %v16383_v52  ;;  %v15876_v30 = vld [vmem:[#allocation2 + $0xe0] ss:$80 sps:$4 sm:$0xff]  }
0x294e   :  { %v10469_v8 = vrot.slane %v10462_v40, %v16383_v52  ;;  %v10487_v19 = vcombine.low %v10478_v46, %v10486_v63  ;;  %v10521_v43 = vcombine.low %v10434_v36, %v10441_v17  ;;  %v14546_v18 = vcombine.high %v10434_v36, %v10441_v17 }
0x294f   :  { %v10496_v26 = vcombine.low %v10368_v20, %v10375_v47  ;;  %v14545_v42 = vcombine.high %v10368_v20, %v10375_v47 }
0x2950   :  { %v10470_v59 = vcombine.high %v10469_v8, %v16233_v14  ;;  %v10494_v57 = vrot.slane %v10487_v19, %v16383_v52  ;;  %v10549_v33 = vshrl.u32 %v10469_v8, 16  ;;  %v10528_v60 = vrot.slane %v10521_v43, %v16364_v39 }
0x2951   :  { %v10536_v62 = vrot.slane %v14546_v18, %v16364_v39  ;;  %v10503_v40 = vrot.slane %v10496_v26, %v16364_v39  ;;  %v10511_v46 = vrot.slane %v14545_v42, %v16364_v39 }
0x2952   :  { %v10548_v1 = vpack.i.b16 %v10494_v57, %v10469_v8  ;;  %v10550_v5 = vshrl.u32 %v10494_v57, 16  ;;  %v10495_v16 = vcombine.high %v10494_v57, %v16233_v14  ;;  %v10555_v55 = vshrl.u32 %v10470_v59, 16 }
0x2953   :  { %v10537_v8 = vcombine.low %v10528_v60, %v10536_v62  ;;  %v10512_v6 = vcombine.low %v10503_v40, %v10511_v46 }
0x2954   :  { %v11038_v15 = vsel %vm1648_vm6, %v10548_v1, 0  ;;  %v10551_v38 = vpack.i.b16 %v10550_v5, %v10549_v33  ;;  %v10554_v12 = vpack.i.b16 %v10495_v16, %v10470_v59  ;;  %v10556_v29 = vshrl.u32 %v10495_v16, 16 }
0x2955   :  { %15513 = vmatpush3.bf16.msra.mxu1 %v11038_v15  ;;  %v10544_v59 = vrot.slane %v10537_v8, %v16383_v52  ;;  %v10519_v57 = vrot.slane %v10512_v6, %v16383_v52 }
0x2956   :  { %v11084_v44 = vsel %vm1648_vm6, %v10551_v38, 0  ;;  %15524 = vmatprep.subr.bf16.mxu1 %v16230_v0  ;;  %v10557_v13 = vpack.i.b16 %v10556_v29, %v10555_v55  ;;  %v11130_v58 = vsel %vm1648_vm6, %v10554_v12, 0 }
0x2957   :  { %15519 = vmatpush3.bf16.msra.mxu0 %v11084_v44  ;;  %v10562_v1 = vshrl.u32 %v10544_v59, 16  ;;  %v10560_v16 = vpack.i.b16 %v10544_v59, %v10519_v57  ;;  %v10561_v9 = vshrl.u32 %v10519_v57, 16  ;;  %v10545_v29 = vcombine.high %v10544_v59, %v16233_v14 }
0x2958   :  { %15515 = vmatmul.mubr.msk.bf16.vlgmr.msra.gmra.mxu1 %vm1180_vm5, %v11026_v48  ;;  %15530 = vmatprep.subr.bf16.mxu0 %v16230_v0  ;;  %v11176_v61 = vsel %vm1648_vm6, %v10557_v13, 0 }
0x2959   :  { %15525 = vmatpush3.bf16.msra.mxu1 %v11130_v58  ;;  %15526 = vmatprep.mubr.msk.bf16.mxu1 %vm16231_vm0, %v16230_v0  ;;  %v10563_v12 = vpack.i.b16 %v10562_v1, %v10561_v9  ;;  %v11222_v13 = vsel %vm1648_vm6, %v10560_v16, 0  ;;  %v10568_v28 = vshrl.u32 %v10545_v29, 16 }
0x295a   :  { %15521 = vmatmul.mubr.msk.bf16.vlgmr.msra.gmra.mxu0 %vm1180_vm5, %v11027_v4  ;;  %15536 = vmatprep.subr.bf16.mxu1 %v16230_v0  ;;  %v10520_v4 = vcombine.high %v10519_v57, %v16233_v14 }
0x295b   :  { %15531 = vmatpush3.bf16.msra.mxu0 %v11176_v61  ;;  %15532 = vmatprep.mubr.msk.bf16.mxu0 %vm16231_vm0, %v16230_v0 }
0x295c   :  { %15542 = vmatprep.subr.bf16.mxu0 %v16230_v0  ;;  %v10566_v7 = vpack.i.b16 %v10545_v29, %v10520_v4  ;;  %v10567_v61 = vshrl.u32 %v10520_v4, 16 }
0x295e   :  { %v11314_v3 = vsel %vm1648_vm6, %v10566_v7, 0 }
0x296e   :  { %v10994_v54 = vpop.xlane.xlu0 %10993 }
0x296f   :  { %16076 = vrcp.f32 %v10994_v54 }
0x2970   :  { %v10997_v24 = vpop.xlane.xlu1 %10996 }
0x2971   :  { %16078 = vrcp.f32 %v10997_v24 }
0x2972   :  { %v11000_v63 = vpop.xlane.xlu0 %10999 }
0x2973   :  { %16080 = vrcp.f32 %v11000_v63 }
0x2974   :  { %v11006_v10 = vpop.xlane.xlu1 %11005 }
0x2976   :  { %v11003_v19 = vpop.xlane.xlu0 %11002 }
0x2977   :  { %16082 = vrcp.f32 %v11003_v19 }
0x2978   :  { %16084 = vrcp.f32 %v11006_v10 }
0x297a   :  { %v11009_v31 = vpop.xlane.xlu0 %11008 }
0x297b   :  { %16086 = vrcp.f32 %v11009_v31 }
0x297c   :  { %v16077_v33 = vpop.eup %16076 }
0x297d   :  { %v11020_v5 = vmul.f32 %v16077_v33, %v18152_v35 }
0x297e   :  { %v16079_v55 = vpop.eup %16078 }
0x297f   :  { %v11028_v15 = vpack.c.bf16 %v11020_v5, %v11020_v5  ;;  %v11021_v38 = vmul.f32 %v16079_v55, %v18154_v22  ;;  %v11268_v22 = vsel %vm1648_vm6, %v10563_v12, 0 }
0x2980   :  { %v16081_v48 = vpop.eup %16080 }
0x2981   :  { %v11029_v44 = vpack.c.bf16 %v11021_v38, %v11021_v38  ;;  %15527 = vmatmul.mubr.msk.bf16.vlgmr.msra.gmra.mxu1 %vm1180_vm5, %v11028_v15  ;;  %v11022_v35 = vmul.f32 %v16081_v48, %v18158_v11  ;;  %v10569_v11 = vpack.i.b16 %v10568_v28, %v10567_v61 }
0x2982   :  { %15537 = vmatpush3.bf16.msra.mxu1 %v11222_v13  ;;  %15538 = vmatprep.mubr.msk.bf16.mxu1 %vm16231_vm0, %v16230_v0 }
0x2983   :  { %15533 = vmatmul.mubr.msk.bf16.vlgmr.msra.gmra.mxu0 %vm1180_vm5, %v11029_v44  ;;  %15548 = vmatprep.subr.bf16.mxu1 %v16230_v0  ;;  %v11030_v27 = vpack.c.bf16 %v11022_v35, %v11022_v35 }
0x2984   :  { %v16083_v58 = vpop.eup %16082  ;;  %15543 = vmatpush3.bf16.msra.mxu0 %v11268_v22  ;;  %15544 = vmatprep.mubr.msk.bf16.mxu0 %vm16231_vm0, %v16230_v0 }
0x2985   :  { %v11023_v49 = vmul.f32 %v16083_v58, %v18166_v21  ;;  %15554 = vmatprep.subr.bf16.mxu0 %v16230_v0  ;;  %v16085_v25 = vpop.eup %16084  ;;  %v11360_v21 = vsel %vm1648_vm6, %v10569_v11, 0 }
0x2986   :  { %v11024_v2 = vmul.f32 %v16085_v25, %v18162_v37  ;;  %v15877_v37 = vld [vmem:[#allocation2 + $0x40] ss:$80 sps:$4 sm:$0xff]  }
0x2987   :  { %v11031_v32 = vpack.c.bf16 %v11023_v49, %v11023_v49 }
0x2988   :  { %v16087_v51 = vpop.eup %16086  ;;  %v11032_v56 = vpack.c.bf16 %v11024_v2, %v11024_v2 }
0x2989   :  { %15539 = vmatmul.mubr.msk.bf16.vlgmr.msra.gmra.mxu1 %vm1180_vm5, %v11030_v27  ;;  %v11025_v53 = vmul.f32 %v16087_v51, %v18172_v23 }
0x298a   :  { %15549 = vmatpush3.bf16.msra.mxu1 %v11314_v3  ;;  %15550 = vmatprep.mubr.msk.bf16.mxu1 %vm16231_vm0, %v16230_v0 }
0x298b   :  { %15545 = vmatmul.mubr.msk.bf16.vlgmr.msra.gmra.mxu0 %vm1180_vm5, %v11031_v32  ;;  %15560 = vmatprep.subr.bf16.mxu1 %v16230_v0  ;;  %v11033_v36 = vpack.c.bf16 %v11025_v53, %v11025_v53 }
0x298c   :  { %15555 = vmatpush3.bf16.msra.mxu0 %v11360_v21  ;;  %15556 = vmatprep.mubr.msk.bf16.mxu0 %vm16231_vm0, %v16230_v0 }
0x298d   :  { %15568 = vmatprep.subr.bf16.mxu0 %v16230_v0 }
0x2991   :  { %15551 = vmatmul.mubr.msk.bf16.vlgmr.msra.gmra.mxu1 %vm1180_vm5, %v11032_v56 }
0x2992   :  { %15564 = vmatprep.mubr.msk.bf16.mxu1 %vm16231_vm0, %v16230_v0 }
0x2993   :  { %15557 = vmatmul.mubr.msk.bf16.vlgmr.msra.gmra.mxu0 %vm1180_vm5, %v11033_v36 }
0x2994   :  { %15569 = vmatpush3.bf16.msra.mxu0 %v15876_v30  ;;  %15572 = vmatprep.mubr.msk.bf16.mxu0 %vm16231_vm0, %v16230_v0 }
0x2995   :  { %15570 = vmatprep.subr.bf16.mxu0 %v16230_v0 }
0x2998   :  { %15571 = vmatpush3.bf16.msra.mxu0 %v15877_v37 }
0x2999   :  { %15584 = vmatprep.subr.bf16.mxu0 %v16230_v0 }
0x299b   :  { %15573 = vmatmul.mubr.msk.bf16.vlgmr.msra.gmra.mxu0 %vm214_vm4, %v17538_v45 }
0x299c   :  { %15586 = vmatprep.mubr.msk.bf16.mxu0 %vm16231_vm0, %v16230_v0 }
0x2a18   :  { %v11074_v23 = vpop.f32.mrf.mxu1 }
0x2a1a   :  { %v15516_v17 = vpop.f32.mrf.mxu1  ;;  %v11120_v20 = vpop.f32.mrf.mxu0 }
0x2a1c   :  { %v11077_v47 = vpop.f32.mrf.mxu1  ;;  %v15522_v43 = vpop.f32.mrf.mxu0 }
0x2a1e   :  { %v15517_v18 = vpop.f32.mrf.mxu1  ;;  %v11123_v26 = vpop.f32.mrf.mxu0 }
0x2a20   :  { %v15523_v42 = vpop.f32.mrf.mxu0 }
0x2a41   :  { %v11166_v54 = vpop.f32.mrf.mxu1 }
0x2a42   :  { %v11402_v60 = vcombine.low %v11074_v23, %v11166_v54  ;;  %v11403_v62 = vcombine.high %v11074_v23, %v11166_v54 }
0x2a43   :  { %v15528_v24 = vpop.f32.mrf.mxu1  ;;  %v11212_v40 = vpop.f32.mrf.mxu0 }
0x2a44   :  { %v11418_v46 = vcombine.low %v11120_v20, %v11212_v40  ;;  %v11419_v63 = vcombine.high %v11120_v20, %v11212_v40  ;;  %v11410_v6 = vrot.slane %v11402_v60, %v16364_v39  ;;  %v11417_v19 = vrot.slane %v11403_v62, %v16364_v39 }
0x2a45   :  { %v11169_v8 = vpop.f32.mrf.mxu1  ;;  %v15534_v45 = vpop.f32.mrf.mxu0 }
0x2a46   :  { %v11426_v59 = vrot.slane %v11418_v46, %v16364_v39  ;;  %v11433_v10 = vrot.slane %v11419_v63, %v16364_v39 }
0x2a47   :  { %v15529_v57 = vpop.f32.mrf.mxu1  ;;  %v11215_v31 = vpop.f32.mrf.mxu0 }
0x2a48   :  { %v11434_v1 = vcombine.low %v11410_v6, %v11426_v59  ;;  %v11435_v33 = vcombine.high %v11410_v6, %v11426_v59  ;;  %v11450_v5 = vcombine.low %v11417_v19, %v11433_v10  ;;  %v11451_v16 = vcombine.high %v11417_v19, %v11433_v10 }
0x2a49   :  { %v15535_v9 = vpop.f32.mrf.mxu0  ;;  %v11258_v55 = vpop.f32.mrf.mxu1 }
0x2a4a   :  { %v11442_v15 = vrot.slane %v11434_v1, %v16383_v52  ;;  %v11449_v38 = vrot.slane %v11435_v33, %v16383_v52  ;;  %v11458_v12 = vrot.slane %v11450_v5, %v16383_v52  ;;  %v11465_v29 = vrot.slane %v11451_v16, %v16383_v52  ;;  %v14573_v9 = vld [vmem:[#allocation6 + $0x23] ss:$0 sm:$0xff] }
0x2a4b   :  { %v15540_v48 = vpop.f32.mrf.mxu1  ;;  %v11304_v44 = vpop.f32.mrf.mxu0 }
0x2a4c   :  { %v11538_v13 = vcombine.low %v11442_v15, %v11449_v38  ;;  %v14563_v4 = vcombine.high %v11442_v15, %v11449_v38  ;;  %v11554_v35 = vcombine.low %v11458_v12, %v11465_v29  ;;  %v14564_v22 = vcombine.high %v11458_v12, %v11465_v29  ;;  %v15878_v48 = vld [vmem:[#allocation2 + $0xdc] ss:$80 sps:$4 sm:$0xff]  }
0x2a4d   :  { %v11261_v28 = vpop.f32.mrf.mxu1  ;;  %v15546_v58 = vpop.f32.mrf.mxu0  ;;  %15561 = vmatpush3.bf16.msra.mxu1 %v15878_v48 }
0x2a4e   :  { %v11545_v49 = vrot.slane %v11538_v13, %v16364_v39  ;;  %v11553_v7 = vrot.slane %v14563_v4, %v16364_v39  ;;  %v11561_v61 = vrot.slane %v11554_v35, %v16364_v39  ;;  %v11569_v27 = vrot.slane %v14564_v22, %v16364_v39  ;;  %15562 = vmatprep.subr.bf16.mxu1 %v16230_v0 }
0x2a4f   :  { %v15541_v11 = vpop.f32.mrf.mxu1  ;;  %v11307_v25 = vpop.f32.mrf.mxu0 }
0x2a50   :  { %v11570_v32 = vcombine.low %v11545_v49, %v11553_v7  ;;  %v11586_v3 = vcombine.low %v11561_v61, %v11569_v27  ;;  %v11571_v57 = vcombine.high %v11545_v49, %v11553_v7  ;;  %v11587_v31 = vcombine.high %v11561_v61, %v11569_v27 }
0x2a51   :  { %v15547_v51 = vpop.f32.mrf.mxu0  ;;  %v11350_v2 = vpop.f32.mrf.mxu1 }
0x2a52   :  { %v11470_v21 = vcombine.low %v11258_v55, %v11350_v2  ;;  %v11471_v53 = vcombine.high %v11258_v55, %v11350_v2  ;;  %v18291_v36 = vrot.slane %v11570_v32, %v16383_v52  ;;  %v18294_v37 = vrot.slane %v11586_v3, %v16383_v52  ;;  %v15879_v3 = vld [vmem:[#allocation2 + $0x3c] ss:$80 sps:$4 sm:$0xff]  }
0x2a53   :  { %v15552_v56 = vpop.f32.mrf.mxu1  ;;  %v11396_v30 = vpop.f32.mrf.mxu0  ;;  %v11585_v4 = vrot.slane %v11571_v57, %v16383_v52  ;;  %v11601_v35 = vrot.slane %v11587_v31, %v16383_v52  ;;  %15563 = vmatpush3.bf16.msra.mxu1 %v15879_v3 }
0x2a54   :  { %v11486_v23 = vcombine.low %v11304_v44, %v11396_v30  ;;  %v11487_v17 = vcombine.high %v11304_v44, %v11396_v30  ;;  %v11602_v43 = vcombine.low %v18291_v36, %v18294_v37  ;;  %v11478_v18 = vrot.slane %v11470_v21, %v16364_v39  ;;  %15576 = vmatprep.subr.bf16.mxu1 %v16230_v0 }
0x2a55   :  { %v11353_v20 = vpop.f32.mrf.mxu1  ;;  %v15558_v47 = vpop.f32.mrf.mxu0  ;;  %v11485_v26 = vrot.slane %v11471_v53, %v16364_v39  ;;  %v11604_v2 = vcombine.low %v11585_v4, %v11601_v35  ;;  %v11603_v53 = vcombine.high %v18291_v36, %v18294_v37  ;;  %v14567_v36 = vld [vmem:[#allocation6 + $0x20] ss:$0 sm:$0xff] }
0x2a56   :  { %v11494_v42 = vrot.slane %v11486_v23, %v16364_v39  ;;  %v11501_v54 = vrot.slane %v11487_v17, %v16364_v39  ;;  %v11605_v47 = vcombine.high %v11585_v4, %v11601_v35 }
0x2a57   :  { %v15553_v60 = vpop.f32.mrf.mxu1  ;;  %v11399_v62 = vpop.f32.mrf.mxu0 }
0x2a58   :  { %v11502_v24 = vcombine.low %v11478_v18, %v11494_v42  ;;  %v11503_v40 = vcombine.high %v11478_v18, %v11494_v42  ;;  %v11518_v46 = vcombine.low %v11485_v26, %v11501_v54  ;;  %v11519_v63 = vcombine.high %v11485_v26, %v11501_v54 }
0x2a59   :  { %v15559_v8 = vpop.f32.mrf.mxu0 }
0x2a5a   :  { %v11510_v45 = vrot.slane %v11502_v24, %v16383_v52  ;;  %v11517_v6 = vrot.slane %v11503_v40, %v16383_v52  ;;  %v11526_v19 = vrot.slane %v11518_v46, %v16383_v52  ;;  %v11533_v59 = vrot.slane %v11519_v63, %v16383_v52 }
0x2a5b   :  { %v11880_v10 = vpop.f32.mrf.mxu0 }
0x2a5c   :  { %v11606_v1 = vcombine.low %v11510_v45, %v11517_v6  ;;  %v14565_v33 = vcombine.high %v11510_v45, %v11517_v6  ;;  %v11622_v5 = vcombine.low %v11526_v19, %v11533_v59  ;;  %v14566_v16 = vcombine.high %v11526_v19, %v11533_v59 }
0x2a5d   :  { %v15574_v55 = vpop.f32.mrf.mxu0  ;;  %v11881_v44 = vadd.f32 %v14573_v9, %v11880_v10 }
0x2a5e   :  { %v11613_v15 = vrot.slane %v11606_v1, %v16364_v39  ;;  %v11621_v38 = vrot.slane %v14565_v33, %v16364_v39  ;;  %v11629_v12 = vrot.slane %v11622_v5, %v16364_v39  ;;  %v11637_v29 = vrot.slane %v14566_v16, %v16364_v39 }
0x2a5f   :  { %v11883_v13 = vpop.f32.mrf.mxu0 }
0x2a60   :  { %v11884_v22 = vadd.f32 %v14573_v9, %v11883_v13  ;;  %v11639_v28 = vcombine.high %v11613_v15, %v11621_v38  ;;  %v11655_v58 = vcombine.high %v11629_v12, %v11637_v29  ;;  %v11638_v49 = vcombine.low %v11613_v15, %v11621_v38 }
0x2a61   :  { %v15575_v7 = vpop.f32.mrf.mxu0  ;;  %v11654_v61 = vcombine.low %v11629_v12, %v11637_v29 }
0x2a62   :  { %v18313_v27 = vpack.c.bf16 %v11884_v22, %v11881_v44  ;;  %v11653_v11 = vrot.slane %v11639_v28, %v16383_v52  ;;  %v11669_v25 = vrot.slane %v11655_v58, %v16383_v52  ;;  %v11646_v32 = vrot.slane %v11638_v49, %v16383_v52  ;;  %v15881_v28 = vld [vmem:[#allocation2 + $0x44] ss:$80 sps:$4 sm:$0xff]  }
0x2a63   :  { %v11662_v51 = vrot.slane %v11654_v61, %v16383_v52 }
0x2a64   :  { %v11672_v21 = vcombine.low %v11653_v11, %v11669_v25  ;;  %v11673_v20 = vcombine.high %v11653_v11, %v11669_v25 }
0x2a65   :  { %v11671_v56 = vcombine.high %v11646_v32, %v11662_v51  ;;  %v11670_v30 = vcombine.low %v11646_v32, %v11662_v51 }
0x2a66   :  { %v15806_v23 = vpack.i.bf16 %v11672_v21, %v11604_v2  ;;  %v15811_v18 = vpack.i.bf16 %v11673_v20, %v11605_v47  ;;  %v11963_v2 = vshrl.u32 %v18313_v27, 16 }
0x2a67   :  { %v15801_v17 = vpack.i.bf16 %v11671_v56, %v11603_v53 }
0x2a68   :  { %15807 = vrot.lane.b32.xlu0 %v15806_v23, %s16241_s9 }
0x2a69   :  { %15802 = vrot.lane.b32.xlu1 %v15801_v17, %s16229_s22 }
0x2a6d   :  { %15812 = vrot.lane.b32.xlu1 %v15811_v18, %s16242_s10 }
0x2ada   :  { %v15808_v26 = vpop.permute.xlu0 %15807 }
0x2adb   :  { %v15803_v42 = vpop.permute.xlu1 %15802  ;;  %v15810_v62 = vunpack.i.h.bf16 %v15808_v26  ;;  %v15809_v24 = vunpack.i.l.bf16 %v15808_v26 }
0x2adc   :  { %v15805_v54 = vunpack.i.h.bf16 %v15803_v42  ;;  %v15804_v60 = vunpack.i.l.bf16 %v15803_v42 }
0x2ade   :  { %v11698_v40 = vsel %vm1180_vm5, %v11602_v43, %v15804_v60  ;;  %v11699_v46 = vsel %vm1180_vm5, %v11670_v30, %v15805_v54 }
0x2adf   :  { %v15813_v63 = vpop.permute.xlu1 %15812  ;;  %v11700_v6 = vsel %vm93_vm1, %v11698_v40, %v15809_v24  ;;  %v11701_v19 = vsel %vm93_vm1, %v11699_v46, %v15810_v62 }
0x2ae0   :  { %v15815_v8 = vunpack.i.h.bf16 %v15813_v63  ;;  %v15814_v45 = vunpack.i.l.bf16 %v15813_v63 }
0x2ae2   :  { %v11702_v59 = vsel %vm2314_vm7, %v11700_v6, %v15814_v45  ;;  %v11703_v10 = vsel %vm2314_vm7, %v11701_v19, %v15815_v8  ;;  %v14571_v8 = vld [vmem:[#allocation6 + $0x21] ss:$0 sm:$0xff] }
0x2ae3   :  { %v11704_v57 = vpack.c.bf16 %v11703_v10, %v11702_v59 }
0x2ae5   :  { %15565 = vmatmul.mubr.msk.bf16.vlgmr.msra.gmra.mxu1 %vm214_vm4, %v11704_v57 }
0x2ae6   :  { %15580 = vmatprep.mubr.msk.bf16.mxu1 %vm16231_vm0, %v16230_v0 }
0x2ba5   :  { %v11760_v37 = vpop.f32.mrf.mxu1 }
0x2ba6   :  { %v11761_v43 = vadd.f32 %v14567_v36, %v11760_v37 }
0x2ba7   :  { %v15566_v31 = vpop.f32.mrf.mxu1 }
0x2ba8   :  { %v11769_v1 = vadd.f32 %v11761_v43, %v17958_v41 }
0x2ba9   :  { %v11763_v33 = vpop.f32.mrf.mxu1 }
0x2baa   :  { %v11764_v5 = vadd.f32 %v14567_v36, %v11763_v33  ;;  %v11771_v16 = vsel %vm214_vm4, %v11769_v1, 0.0 }
0x2bab   :  { %11772 = vadd.xlane.f32.xlu1 %v11771_v16  ;;  %v15567_v9 = vpop.f32.mrf.mxu1 }
0x2bac   :  { %v11770_v55 = vadd.f32 %v11764_v5, %v17960_v34  ;;  %v15880_v34 = vld [vmem:[#allocation2 + $0xe4] ss:$80 sps:$4 sm:$0xff]  }
0x2bad   :  { %15577 = vmatpush3.bf16.msra.mxu1 %v15880_v34 }
0x2bae   :  { %v11774_v15 = vsel %vm214_vm4, %v11770_v55, 0.0  ;;  %15578 = vmatprep.subr.bf16.mxu1 %v16230_v0 }
0x2baf   :  { %11775 = vadd.xlane.f32.xlu0 %v11774_v15 }
0x2bb1   :  { %15579 = vmatpush3.bf16.msra.mxu1 %v15881_v28 }
0x2bb2   :  { %15590 = vmatprep.subr.bf16.mxu1 %v16230_v0 }
0x2c34   :  { %v11773_v38 = vpop.xlane.xlu1 %11772 }
0x2c35   :  { %v11777_v12 = vmul.f32 0.03125, %v11773_v38 }
0x2c37   :  { %v11779_v29 = vsub.f32 %v11769_v1, %v11777_v12 }
0x2c38   :  { %v11776_v48 = vpop.xlane.xlu0 %11775 }
0x2c39   :  { %v11778_v44 = vmul.f32 0.03125, %v11776_v48  ;;  %v11781_v13 = vmul.f32 %v11779_v29, %v11779_v29  ;;  %v14572_v48 = vld [vmem:[#allocation6 + $0x22] ss:$0 sm:$0xff] }
0x2c3b   :  { %v18341_v4 = vsub.f32 %v11770_v55, %v11778_v44  ;;  %v11783_v41 = vsel %vm214_vm4, %v11781_v13, 0.0 }
0x2c3c   :  { %11784 = vadd.xlane.f32.xlu0 %v11783_v41 }
0x2c3d   :  { %v11782_v35 = vmul.f32 %v18341_v4, %v18341_v4 }
0x2c3f   :  { %v11786_v22 = vsel %vm214_vm4, %v11782_v35, 0.0 }
0x2c40   :  { %11787 = vadd.xlane.f32.xlu1 %v11786_v22 }
0x2c51   :  { %11955 = vrot.lane.b32.xlu1 %v18313_v27, %s16237_s30 }
0x2c52   :  { %11953 = vrot.lane.b32.xlu0 %v18313_v27, %s16235_s2 }
0x2c55   :  { %11957 = vrot.lane.b32.xlu1 %v18313_v27, %s16234_s0 }
0x2cc5   :  { %v11785_v58 = vpop.xlane.xlu0 %11784 }
0x2cc6   :  { %v11789_v49 = vmul.f32 0.03125, %v11785_v58 }
0x2cc8   :  { %v11791_v7 = vadd.f32 1e-05, %v11789_v49 }
0x2cc9   :  { %v11788_v61 = vpop.xlane.xlu1 %11787  ;;  %v18355_v11 = vpop.permute.xlu0 %11953 }
0x2cca   :  { %16088 = vrsqrt.f32 %v11791_v7  ;;  %v11790_v25 = vmul.f32 0.03125, %v11788_v61  ;;  %v11964_v32 = vshrl.u32 %v18355_v11, 16  ;;  %v11961_v51 = vpack.i.b16 %v18355_v11, %v18313_v27 }
0x2ccc   :  { %v11792_v3 = vadd.f32 1e-05, %v11790_v25  ;;  %v11965_v53 = vpack.i.b16 %v11964_v32, %v11963_v2  ;;  %v11975_v56 = vcombine.high %v11961_v51, %v16381_v50  ;;  %v11982_v18 = vrot.slane %v11961_v51, %v16364_v39 }
0x2ccd   :  { %v18361_v21 = vpop.permute.xlu1 %11955 }
0x2cce   :  { %16090 = vrsqrt.f32 %v11792_v3  ;;  %v11971_v23 = vshrl.u32 %v18361_v21, 16  ;;  %v12041_v47 = vcombine.high %v11965_v53, %v16381_v50  ;;  %v11989_v60 = vrot.slane %v11975_v56, %v16364_v39 }
0x2ccf   :  { %v12048_v45 = vrot.slane %v11965_v53, %v16364_v39 }
0x2cd0   :  { %v12055_v6 = vrot.slane %v12041_v47, %v16364_v39 }
0x2cd1   :  { %v18364_v30 = vpop.permute.xlu1 %11957 }
0x2cd2   :  { %v11969_v17 = vpack.i.b16 %v18364_v30, %v18361_v21  ;;  %v11972_v20 = vshrl.u32 %v18364_v30, 16 }
0x2cd4   :  { %v11973_v26 = vpack.i.b16 %v11972_v20, %v11971_v23  ;;  %v11990_v42 = vcombine.high %v11969_v17, %v16381_v50  ;;  %v11997_v54 = vrot.slane %v11969_v17, %v16364_v39 }
0x2cd6   :  { %v12004_v62 = vrot.slane %v11990_v42, %v16364_v39  ;;  %v12005_v24 = vcombine.low %v11982_v18, %v11997_v54  ;;  %v12006_v40 = vcombine.high %v11982_v18, %v11997_v54  ;;  %v12056_v46 = vcombine.high %v11973_v26, %v16381_v50 }
0x2cd7   :  { %v16089_v63 = vpop.eup %16088  ;;  %v12063_v19 = vrot.slane %v11973_v26, %v16364_v39 }
0x2cd8   :  { %v11795_v59 = vmul.f32 %v16089_v63, %v11779_v29  ;;  %v12013_v10 = vrot.slane %v12005_v24, %v16383_v52  ;;  %v12020_v57 = vrot.slane %v12006_v40, %v16383_v52  ;;  %v12021_v36 = vcombine.low %v11989_v60, %v12004_v62 }
0x2cd9   :  { %v12022_v37 = vcombine.high %v11989_v60, %v12004_v62  ;;  %v12070_v43 = vrot.slane %v12056_v46, %v16364_v39  ;;  %v12071_v31 = vcombine.low %v12048_v45, %v12063_v19  ;;  %v12072_v1 = vcombine.high %v12048_v45, %v12063_v19 }
0x2cda   :  { %v11803_v33 = vmul.f32 %v14571_v8, %v11795_v59  ;;  %v12029_v5 = vrot.slane %v12021_v36, %v16383_v52  ;;  %v12107_v16 = vcombine.low %v12013_v10, %v12020_v57  ;;  %v14581_v9 = vcombine.high %v12013_v10, %v12020_v57 }
0x2cdb   :  { %v16091_v55 = vpop.eup %16090  ;;  %v12036_v15 = vrot.slane %v12022_v37, %v16383_v52  ;;  %v12079_v38 = vrot.slane %v12071_v31, %v16383_v52  ;;  %v12086_v12 = vrot.slane %v12072_v1, %v16383_v52  ;;  %v12087_v29 = vcombine.low %v12055_v6, %v12070_v43 }
0x2cdc   :  { %v11796_v44 = vmul.f32 %v16091_v55, %v18341_v4  ;;  %v12088_v13 = vcombine.high %v12055_v6, %v12070_v43  ;;  %v12114_v41 = vrot.slane %v12107_v16, %v16364_v39  ;;  %v12122_v35 = vrot.slane %v14581_v9, %v16364_v39 }
0x2cdd   :  { %v12095_v22 = vrot.slane %v12087_v29, %v16383_v52  ;;  %v12132_v34 = vcombine.low %v12079_v38, %v12086_v12  ;;  %v14582_v28 = vcombine.high %v12079_v38, %v12086_v12  ;;  %v12157_v58 = vcombine.low %v12029_v5, %v12036_v15  ;;  %v14577_v29 = vld [vmem:[#allocation6 + $0x24] ss:$0 sm:$0xff] }
0x2cde   :  { %v11804_v49 = vmul.f32 %v14571_v8, %v11796_v44  ;;  %v12102_v7 = vrot.slane %v12088_v13, %v16383_v52  ;;  %v14583_v61 = vcombine.high %v12029_v5, %v12036_v15  ;;  %v18392_v25 = vadd.f32 %v14572_v48, %v11803_v33 }
0x2cdf   :  { %v12123_v32 = vcombine.low %v12114_v41, %v12122_v35  ;;  %v12139_v3 = vrot.slane %v12132_v34, %v16364_v39  ;;  %v12147_v4 = vrot.slane %v14582_v28, %v16364_v39  ;;  %v12164_v51 = vrot.slane %v12157_v58, %v16364_v39 }
0x2ce0   :  { %v12182_v2 = vcombine.low %v12095_v22, %v12102_v7  ;;  %v14584_v53 = vcombine.high %v12095_v22, %v12102_v7  ;;  %v18397_v56 = vadd.f32 %v14572_v48, %v11804_v49  ;;  %v12172_v23 = vrot.slane %v14583_v61, %v16364_v39 }
0x2ce1   :  { %v12130_v17 = vrot.slane %v12123_v32, %v16383_v52  ;;  %v12148_v20 = vcombine.low %v12139_v3, %v12147_v4 }
0x2ce2   :  { %v11888_v47 = vpack.c.bf16 %v18397_v56, %v18392_v25  ;;  %v12173_v18 = vcombine.low %v12164_v51, %v12172_v23  ;;  %v12189_v26 = vrot.slane %v12182_v2, %v16364_v39  ;;  %v12197_v42 = vrot.slane %v14584_v53, %v16364_v39 }
0x2ce3   :  { %v12155_v54 = vrot.slane %v12148_v20, %v16383_v52  ;;  %v18407_v60 = vcombine.high %v12130_v17, %v16233_v14  ;;  %v12210_v46 = vshrl.u32 %v12130_v17, 16 }
0x2ce4   :  { %15581 = vmatmul.mubr.msk.bf16.vlgmr.msra.gmra.mxu1 %vm214_vm4, %v11888_v47  ;;  %v18411_v62 = vrot.slane %v12173_v18, %v16383_v52  ;;  %v12198_v24 = vcombine.low %v12189_v26, %v12197_v42 }
0x2ce5   :  { %v12209_v40 = vpack.i.b16 %v12155_v54, %v12130_v17  ;;  %v12211_v63 = vshrl.u32 %v12155_v54, 16  ;;  %v18414_v8 = vcombine.high %v12155_v54, %v16233_v14  ;;  %15592 = vmatprep.mubr.msk.bf16.mxu1 %vm16231_vm0, %v16230_v0  ;;  %v12216_v45 = vshrl.u32 %v18407_v60, 16 }
0x2ce6   :  { %v18420_v6 = vrot.slane %v12198_v24, %v16383_v52  ;;  %v18424_v19 = vcombine.high %v18411_v62, %v16233_v14  ;;  %v12222_v43 = vshrl.u32 %v18411_v62, 16 }
0x2ce7   :  { %v12794_v59 = vsel %vm1180_vm5, %v12209_v40, 0  ;;  %v12212_v10 = vpack.i.b16 %v12211_v63, %v12210_v46  ;;  %v12215_v57 = vpack.i.b16 %v18414_v8, %v18407_v60  ;;  %v12217_v36 = vshrl.u32 %v18414_v8, 16 }
0x2ce8   :  { %15585 = vmatpush3.bf16.xpose.msra.mxu0 %v12794_v59  ;;  %v12221_v37 = vpack.i.b16 %v18420_v6, %v18411_v62  ;;  %v12223_v31 = vshrl.u32 %v18420_v6, 16  ;;  %v18436_v1 = vcombine.high %v18420_v6, %v16233_v14  ;;  %v12228_v55 = vshrl.u32 %v18424_v19, 16 }
0x2ce9   :  { %v12840_v33 = vsel %vm1180_vm5, %v12212_v10, 0  ;;  %15596 = vmatprep.subr.bf16.mxu0 %v16230_v0  ;;  %v18440_v5 = vpack.i.b16 %v12217_v36, %v12216_v45 }
0x2cea   :  { %15591 = vmatpush3.bf16.xpose.msra.mxu1 %v12840_v33  ;;  %v18442_v16 = vpack.i.b16 %v12223_v31, %v12222_v43  ;;  %v12227_v9 = vpack.i.b16 %v18436_v1, %v18424_v19  ;;  %v12229_v15 = vshrl.u32 %v18436_v1, 16 }
0x2ceb   :  { %15602 = vmatprep.subr.bf16.mxu1 %v16230_v0  ;;  %v12932_v60 = vsel %vm1180_vm5, %v18440_v5, 0  ;;  %v12978_v5 = vsel %vm1180_vm5, %v12221_v37, 0 }
0x2cec   :  { %v18449_v38 = vpack.i.b16 %v12229_v15, %v12228_v55 }
0x2da4   :  { %v11944_v12 = vpop.f32.mrf.mxu1 }
0x2da5   :  { %v11945_v13 = vadd.f32 %v14577_v29, %v11944_v12 }
0x2da6   :  { %v15582_v48 = vpop.f32.mrf.mxu1 }
0x2da8   :  { %v11947_v44 = vpop.f32.mrf.mxu1 }
0x2da9   :  { %v11948_v41 = vadd.f32 %v14577_v29, %v11947_v44 }
0x2daa   :  { %v15583_v35 = vpop.f32.mrf.mxu1 }
0x2dab   :  { %v11951_v22 = vpack.c.bf16 %v11948_v41, %v11945_v13 }
0x2dad   :  { %12514 = vrot.lane.b32.xlu1 %v11951_v22, %s16237_s30  ;;  %12512 = vrot.lane.b32.xlu0 %v11951_v22, %s16235_s2  ;;  %v12522_v58 = vshrl.u32 %v11951_v22, 16 }
0x2db1   :  { %12516 = vrot.lane.b32.xlu0 %v11951_v22, %s16234_s0 }
0x2e1f   :  { %v12513_v34 = vpop.permute.xlu0 %12512  ;;  %v12515_v49 = vpop.permute.xlu1 %12514 }
0x2e20   :  { %v12523_v28 = vshrl.u32 %v12513_v34, 16  ;;  %v12520_v7 = vpack.i.b16 %v12513_v34, %v11951_v22  ;;  %v12530_v4 = vshrl.u32 %v12515_v49, 16 }
0x2e22   :  { %v12524_v61 = vpack.i.b16 %v12523_v28, %v12522_v58  ;;  %v12541_v2 = vrot.slane %v12520_v7, %v16364_v39  ;;  %v12534_v47 = vcombine.high %v12520_v7, %v16381_v50 }
0x2e23   :  { %v12517_v32 = vpop.permute.xlu0 %12516 }
0x2e24   :  { %v12528_v3 = vpack.i.b16 %v12517_v32, %v12515_v49  ;;  %v12531_v51 = vshrl.u32 %v12517_v32, 16  ;;  %v12600_v17 = vcombine.high %v12524_v61, %v16381_v50  ;;  %v12607_v42 = vrot.slane %v12524_v61, %v16364_v39 }
0x2e25   :  { %v12548_v43 = vrot.slane %v12534_v47, %v16364_v39 }
0x2e26   :  { %v12549_v53 = vcombine.high %v12528_v3, %v16381_v50  ;;  %v12556_v23 = vrot.slane %v12528_v3, %v16364_v39  ;;  %v12532_v20 = vpack.i.b16 %v12531_v51, %v12530_v4  ;;  %v12614_v45 = vrot.slane %v12600_v17, %v16364_v39 }
0x2e28   :  { %v12564_v18 = vcombine.low %v12541_v2, %v12556_v23  ;;  %v12565_v26 = vcombine.high %v12541_v2, %v12556_v23  ;;  %v12615_v54 = vcombine.high %v12532_v20, %v16381_v50  ;;  %v12622_v24 = vrot.slane %v12532_v20, %v16364_v39 }
0x2e29   :  { %v12563_v40 = vrot.slane %v12549_v53, %v16364_v39 }
0x2e2a   :  { %v12572_v46 = vrot.slane %v12564_v18, %v16383_v52  ;;  %v12579_v63 = vrot.slane %v12565_v26, %v16383_v52  ;;  %v12629_v59 = vrot.slane %v12615_v54, %v16364_v39  ;;  %v12630_v10 = vcombine.low %v12607_v42, %v12622_v24 }
0x2e2b   :  { %v12631_v36 = vcombine.high %v12607_v42, %v12622_v24  ;;  %v12580_v48 = vcombine.low %v12548_v43, %v12563_v40  ;;  %v12581_v44 = vcombine.high %v12548_v43, %v12563_v40  ;;  %v12886_v26 = vsel %vm1180_vm5, %v12215_v57, 0 }
0x2e2c   :  { %v12666_v31 = vcombine.low %v12572_v46, %v12579_v63  ;;  %v14589_v33 = vcombine.high %v12572_v46, %v12579_v63  ;;  %v12638_v55 = vrot.slane %v12630_v10, %v16383_v52  ;;  %v12646_v12 = vcombine.low %v12614_v45, %v12629_v59 }
0x2e2d   :  { %v12645_v15 = vrot.slane %v12631_v36, %v16383_v52  ;;  %v12647_v29 = vcombine.high %v12614_v45, %v12629_v59  ;;  %v12588_v61 = vrot.slane %v12580_v48, %v16383_v52  ;;  %v12595_v32 = vrot.slane %v12581_v44, %v16383_v52 }
0x2e2e   :  { %v12673_v13 = vrot.slane %v12666_v31, %v16364_v39  ;;  %v12681_v41 = vrot.slane %v14589_v33, %v16364_v39  ;;  %v12654_v28 = vrot.slane %v12646_v12, %v16383_v52 }
0x2e2f   :  { %v12691_v35 = vcombine.low %v12638_v55, %v12645_v15  ;;  %v14590_v22 = vcombine.high %v12638_v55, %v12645_v15  ;;  %v12661_v58 = vrot.slane %v12647_v29, %v16383_v52  ;;  %v12716_v23 = vcombine.low %v12588_v61, %v12595_v32 }
0x2e30   :  { %v12682_v34 = vcombine.low %v12673_v13, %v12681_v41  ;;  %v14591_v17 = vcombine.high %v12588_v61, %v12595_v32  ;;  %v13024_v55 = vsel %vm1180_vm5, %v18442_v16, 0  ;;  %v13070_v15 = vsel %vm1180_vm5, %v12227_v9, 0 }
0x2e31   :  { %v12698_v49 = vrot.slane %v12691_v35, %v16364_v39  ;;  %v12706_v7 = vrot.slane %v14590_v22, %v16364_v39  ;;  %v12741_v2 = vcombine.low %v12654_v28, %v12661_v58  ;;  %v14592_v53 = vcombine.high %v12654_v28, %v12661_v58 }
0x2e32   :  { %v12689_v3 = vrot.slane %v12682_v34, %v16383_v52  ;;  %v12723_v46 = vrot.slane %v12716_v23, %v16364_v39  ;;  %v12731_v63 = vrot.slane %v14591_v17, %v16364_v39  ;;  %v13116_v29 = vsel %vm1180_vm5, %v18449_v38, 0 }
0x2e33   :  { %v12707_v4 = vcombine.low %v12698_v49, %v12706_v7  ;;  %v12748_v42 = vrot.slane %v12741_v2, %v16364_v39  ;;  %v12756_v54 = vrot.slane %v14592_v53, %v16364_v39 }
0x2e34   :  { %v12769_v47 = vshrl.u32 %v12689_v3, 16  ;;  %v12690_v8 = vcombine.high %v12689_v3, %v16233_v14  ;;  %v12732_v59 = vcombine.low %v12723_v46, %v12731_v63 }
0x2e35   :  { %v12714_v51 = vrot.slane %v12707_v4, %v16383_v52  ;;  %v12757_v57 = vcombine.low %v12748_v42, %v12756_v54 }
0x2e36   :  { %v12775_v36 = vshrl.u32 %v12690_v8, 16  ;;  %v12739_v33 = vrot.slane %v12732_v59, %v16383_v52 }
0x2e37   :  { %v12768_v20 = vpack.i.b16 %v12714_v51, %v12689_v3  ;;  %v12770_v18 = vshrl.u32 %v12714_v51, 16  ;;  %v12715_v40 = vcombine.high %v12714_v51, %v16233_v14  ;;  %v12764_v43 = vrot.slane %v12757_v57, %v16383_v52 }
0x2e38   :  { %v12781_v37 = vshrl.u32 %v12739_v33, 16  ;;  %v12740_v48 = vcombine.high %v12739_v33, %v16233_v14 }
0x2e39   :  { %15587 = vmatmul.mubr.msk.bf16.vlgmr.msra.gmra.mxu0 %vm1180_vm5, %v12768_v20  ;;  %v12771_v24 = vpack.i.b16 %v12770_v18, %v12769_v47  ;;  %v12776_v45 = vshrl.u32 %v12715_v40, 16  ;;  %v12774_v10 = vpack.i.b16 %v12715_v40, %v12690_v8  ;;  %v12782_v62 = vshrl.u32 %v12764_v43, 16 }
0x2e3a   :  { %15597 = vmatpush3.bf16.xpose.msra.mxu0 %v12886_v26  ;;  %15598 = vmatprep.mubr.msk.bf16.mxu0 %vm16231_vm0, %v16230_v0  ;;  %v12780_v6 = vpack.i.b16 %v12764_v43, %v12739_v33  ;;  %v12765_v16 = vcombine.high %v12764_v43, %v16233_v14  ;;  %v12787_v9 = vshrl.u32 %v12740_v48, 16 }
0x2e3b   :  { %15593 = vmatmul.mubr.msk.bf16.vlgmr.msra.gmra.mxu1 %vm1180_vm5, %v12771_v24  ;;  %15608 = vmatprep.subr.bf16.mxu0 %v16230_v0  ;;  %v12777_v31 = vpack.i.b16 %v12776_v45, %v12775_v36  ;;  %v12783_v12 = vpack.i.b16 %v12782_v62, %v12781_v37 }
0x2e3c   :  { %15603 = vmatpush3.bf16.xpose.msra.mxu1 %v12932_v60  ;;  %15604 = vmatprep.mubr.msk.bf16.mxu1 %vm16231_vm0, %v16230_v0  ;;  %v12788_v19 = vshrl.u32 %v12765_v16, 16  ;;  %v12786_v1 = vpack.i.b16 %v12765_v16, %v12740_v48 }
0x2e3d   :  { %15614 = vmatprep.subr.bf16.mxu1 %v16230_v0 }
0x2e3e   :  { %v12789_v44 = vpack.i.b16 %v12788_v19, %v12787_v9 }
0x2e41   :  { %15599 = vmatmul.mubr.msk.bf16.vlgmr.msra.gmra.mxu0 %vm1180_vm5, %v12774_v10 }
0x2e42   :  { %15609 = vmatpush3.bf16.xpose.msra.mxu0 %v12978_v5  ;;  %15610 = vmatprep.mubr.msk.bf16.mxu0 %vm16231_vm0, %v16230_v0 }
0x2e43   :  { %15605 = vmatmul.mubr.msk.bf16.vlgmr.msra.gmra.mxu1 %vm1180_vm5, %v12777_v31  ;;  %15620 = vmatprep.subr.bf16.mxu0 %v16230_v0 }
0x2e44   :  { %15615 = vmatpush3.bf16.xpose.msra.mxu1 %v13024_v55  ;;  %15616 = vmatprep.mubr.msk.bf16.mxu1 %vm16231_vm0, %v16230_v0 }
0x2e45   :  { %15626 = vmatprep.subr.bf16.mxu1 %v16230_v0 }
0x2e49   :  { %15611 = vmatmul.mubr.msk.bf16.vlgmr.msra.gmra.mxu0 %vm1180_vm5, %v12780_v6 }
0x2e4a   :  { %15621 = vmatpush3.bf16.xpose.msra.mxu0 %v13070_v15  ;;  %15622 = vmatprep.mubr.msk.bf16.mxu0 %vm16231_vm0, %v16230_v0 }
0x2e4b   :  { %15617 = vmatmul.mubr.msk.bf16.vlgmr.msra.gmra.mxu1 %vm1180_vm5, %v12783_v12  ;;  %15632 = vmatprep.subr.bf16.mxu0 %v16230_v0 }
0x2e4c   :  { %15627 = vmatpush3.bf16.xpose.msra.mxu1 %v13116_v29  ;;  %15628 = vmatprep.mubr.msk.bf16.mxu1 %vm16231_vm0, %v16230_v0 }
0x2e4d   :  { %15638 = vmatprep.subr.bf16.mxu1 %v16230_v0 }
0x2e51   :  { %15623 = vmatmul.mubr.msk.bf16.vlgmr.msra.gmra.mxu0 %vm1180_vm5, %v12786_v1 }
0x2e52   :  { %15634 = vmatprep.mubr.msk.bf16.mxu0 %vm16231_vm0, %v16230_v0 }
0x2e53   :  { %15629 = vmatmul.mubr.msk.bf16.vlgmr.msra.gmra.mxu1 %vm1180_vm5, %v12789_v44 }
0x2e54   :  { %15640 = vmatprep.mubr.msk.bf16.mxu1 %vm16231_vm0, %v16230_v0 }
0x2ef9   :  { %v12830_v38 = vpop.f32.mrf.mxu0 }
0x2efa   :  { %v13158_v13 = vsel %vm1180_vm5, %v12830_v38, -inf }
0x2efb   :  { %v12876_v41 = vpop.f32.mrf.mxu1  ;;  %13159 = vmax.xlane.f32.xlu1 %v13158_v13  ;;  %v15588_v35 = vpop.f32.mrf.mxu0 }
0x2efc   :  { %v13161_v22 = vsel %vm1180_vm5, %v12876_v41, -inf }
0x2efd   :  { %13162 = vmax.xlane.f32.xlu0 %v13161_v22  ;;  %v12833_v34 = vpop.f32.mrf.mxu0  ;;  %v15594_v28 = vpop.f32.mrf.mxu1 }
0x2eff   :  { %v15589_v58 = vpop.f32.mrf.mxu0  ;;  %v12879_v49 = vpop.f32.mrf.mxu1 }
0x2f01   :  { %v15595_v7 = vpop.f32.mrf.mxu1  ;;  %v18540_v61 = vpop.f32.mrf.mxu0 }
0x2f02   :  { %v13164_v32 = vsel %vm1180_vm5, %v18540_v61, -inf }
0x2f03   :  { %v12968_v3 = vpop.f32.mrf.mxu1  ;;  %13165 = vmax.xlane.f32.xlu0 %v13164_v32  ;;  %v15600_v4 = vpop.f32.mrf.mxu0 }
0x2f04   :  { %v13167_v51 = vsel %vm1180_vm5, %v12968_v3, -inf }
0x2f05   :  { %v15606_v2 = vpop.f32.mrf.mxu1  ;;  %13168 = vmax.xlane.f32.xlu1 %v13167_v51  ;;  %v12925_v53 = vpop.f32.mrf.mxu0 }
0x2f07   :  { %v15601_v23 = vpop.f32.mrf.mxu0  ;;  %v12971_v17 = vpop.f32.mrf.mxu1 }
0x2f09   :  { %v15607_v20 = vpop.f32.mrf.mxu1  ;;  %v13014_v47 = vpop.f32.mrf.mxu0 }
0x2f0a   :  { %v13170_v18 = vsel %vm1180_vm5, %v13014_v47, -inf }
0x2f0b   :  { %v13060_v26 = vpop.f32.mrf.mxu1  ;;  %13171 = vmax.xlane.f32.xlu0 %v13170_v18  ;;  %v15612_v42 = vpop.f32.mrf.mxu0 }
0x2f0c   :  { %v13173_v54 = vsel %vm1180_vm5, %v13060_v26, -inf }
0x2f0d   :  { %v15618_v24 = vpop.f32.mrf.mxu1  ;;  %13174 = vmax.xlane.f32.xlu1 %v13173_v54  ;;  %v13017_v40 = vpop.f32.mrf.mxu0 }
0x2f0f   :  { %v15613_v46 = vpop.f32.mrf.mxu0  ;;  %v13063_v63 = vpop.f32.mrf.mxu1 }
0x2f11   :  { %v15619_v60 = vpop.f32.mrf.mxu1  ;;  %v13106_v8 = vpop.f32.mrf.mxu0 }
0x2f12   :  { %v13176_v57 = vsel %vm1180_vm5, %v13106_v8, -inf }
0x2f13   :  { %v13152_v45 = vpop.f32.mrf.mxu1  ;;  %13177 = vmax.xlane.f32.xlu0 %v13176_v57  ;;  %v15624_v59 = vpop.f32.mrf.mxu0 }
0x2f14   :  { %v13179_v10 = vsel %vm1180_vm5, %v13152_v45, -inf }
0x2f15   :  { %v15630_v36 = vpop.f32.mrf.mxu1  ;;  %13180 = vmax.xlane.f32.xlu1 %v13179_v10  ;;  %v13109_v43 = vpop.f32.mrf.mxu0 }
0x2f17   :  { %v15625_v5 = vpop.f32.mrf.mxu0  ;;  %v13155_v31 = vpop.f32.mrf.mxu1 }
0x2f19   :  { %v15631_v33 = vpop.f32.mrf.mxu1 }
0x2f26   :  { %12233 = vrot.lane.b32.xlu1 %v18355_v11, %s16236_s29 }
0x2f29   :  { %12231 = vrot.lane.b32.xlu0 %v18313_v27, %s16236_s29 }
0x2f84   :  { %v13160_v55 = vpop.xlane.xlu1 %13159 }
0x2f85   :  { %v13182_v62 = vsub.f32 %v12830_v38, %v13160_v55 }
0x2f86   :  { %v13163_v6 = vpop.xlane.xlu0 %13162 }
0x2f87   :  { %v13190_v37 = vmul.f32 1.442695, %v13182_v62  ;;  %v13183_v15 = vsub.f32 %v12876_v41, %v13163_v6 }
0x2f89   :  { %16092 = vpow2.f32 %v13190_v37  ;;  %v13192_v12 = vmul.f32 1.442695, %v13183_v15 }
0x2f8b   :  { %16094 = vpow2.f32 %v13192_v12 }
0x2f8c   :  { %v13166_v27 = vpop.xlane.xlu0 %13165 }
0x2f8d   :  { %v13184_v44 = vsub.f32 %v18540_v61, %v13166_v27 }
0x2f8e   :  { %v13169_v19 = vpop.xlane.xlu1 %13168 }
0x2f8f   :  { %v13185_v1 = vsub.f32 %v12968_v3, %v13169_v19  ;;  %v13194_v22 = vmul.f32 1.442695, %v13184_v44 }
0x2f91   :  { %v13196_v13 = vmul.f32 1.442695, %v13185_v1 }
0x2f93   :  { %16096 = vpow2.f32 %v13196_v13 }
0x2f94   :  { %v13172_v9 = vpop.xlane.xlu0 %13171  ;;  %16098 = vpow2.f32 %v13194_v22 }
0x2f95   :  { %v13186_v41 = vsub.f32 %v13014_v47, %v13172_v9 }
0x2f96   :  { %v18553_v16 = vpop.eup %16092  ;;  %v13175_v38 = vpop.xlane.xlu1 %13174 }
0x2f97   :  { %v13206_v29 = vsel %vm1180_vm5, %v18553_v16, 0.0  ;;  %v13187_v34 = vsub.f32 %v13060_v26, %v13175_v38  ;;  %v13198_v58 = vmul.f32 1.442695, %v13186_v41 }
0x2f98   :  { %v18557_v48 = vpop.eup %16094  ;;  %13207 = vadd.xlane.f32.xlu0 %v13206_v29 }
0x2f99   :  { %v13209_v11 = vsel %vm1180_vm5, %v18557_v48, 0.0  ;;  %16100 = vpow2.f32 %v13198_v58 }
0x2f9a   :  { %13210 = vadd.xlane.f32.xlu1 %v13209_v11 }
0x2f9c   :  { %v13178_v35 = vpop.xlane.xlu0 %13177 }
0x2f9d   :  { %v13188_v49 = vsub.f32 %v13106_v8, %v13178_v35 }
0x2f9e   :  { %v13181_v28 = vpop.xlane.xlu1 %13180 }
0x2f9f   :  { %v13189_v7 = vsub.f32 %v13152_v45, %v13181_v28 }
0x2fa0   :  { %v18566_v61 = vpop.eup %16096  ;;  %v12232_v42 = vpop.permute.xlu0 %12231 }
0x2fa1   :  { %v13204_v32 = vmul.f32 1.442695, %v13189_v7  ;;  %v18568_v3 = vpop.eup %16098  ;;  %v13215_v4 = vsel %vm1180_vm5, %v18566_v61, 0.0  ;;  %v12243_v8 = vshrl.u32 %v12232_v42, 16 }
0x2fa2   :  { %v13212_v2 = vsel %vm1180_vm5, %v18568_v3, 0.0  ;;  %v12234_v54 = vpop.permute.xlu1 %12233 }
0x2fa3   :  { %v12244_v46 = vshrl.u32 %v12234_v54, 16  ;;  %v18590_v60 = vpack.i.b16 %v12234_v54, %v12232_v42 }
0x2fa5   :  { %v18594_v36 = vpack.i.b16 %v12244_v46, %v12243_v8  ;;  %v12262_v43 = vrot.slane %v18590_v60, %v16364_v39 }
0x2fa6   :  { %v18572_v51 = vpop.eup %16100 }
0x2fa7   :  { %v13218_v23 = vsel %vm1180_vm5, %v18572_v51, 0.0  ;;  %v12328_v62 = vrot.slane %v18594_v36, %v16364_v39 }
0x2fab   :  { %12235 = vrot.lane.b32.xlu1 %v18361_v21, %s16236_s29  ;;  %v13200_v21 = vmul.f32 1.442695, %v13187_v34 }
0x2fad   :  { %16102 = vpow2.f32 %v13200_v21 }
0x2fae   :  { %12237 = vrot.lane.b32.xlu0 %v18364_v30, %s16236_s29  ;;  %v13202_v30 = vmul.f32 1.442695, %v13188_v49 }
0x2fb0   :  { %16104 = vpow2.f32 %v13202_v30 }
0x2fb1   :  { %16106 = vpow2.f32 %v13204_v32 }
0x2fba   :  { %v18576_v53 = vpop.eup %16102 }
0x2fbb   :  { %v13221_v20 = vsel %vm1180_vm5, %v18576_v53, 0.0 }
0x2fbd   :  { %v18580_v17 = vpop.eup %16104 }
0x2fbe   :  { %v18584_v47 = vpop.eup %16106  ;;  %v13224_v18 = vsel %vm1180_vm5, %v18580_v17, 0.0 }
0x2fbf   :  { %v13227_v26 = vsel %vm1180_vm5, %v18584_v47, 0.0 }
0x2fcd   :  { %13216 = vadd.xlane.f32.xlu0 %v13215_v4 }
0x2fcf   :  { %13213 = vadd.xlane.f32.xlu1 %v13212_v2 }
0x2fd1   :  { %13219 = vadd.xlane.f32.xlu0 %v13218_v23 }
0x2fd3   :  { %13222 = vadd.xlane.f32.xlu1 %v13221_v20 }
0x2fd5   :  { %13225 = vadd.xlane.f32.xlu0 %v13224_v18 }
0x2fd7   :  { %13228 = vadd.xlane.f32.xlu1 %v13227_v26 }
0x3021   :  { %v13208_v24 = vpop.xlane.xlu0 %13207 }
0x3022   :  { %16108 = vrcp.f32 %v13208_v24 }
0x3023   :  { %v13211_v40 = vpop.xlane.xlu1 %13210 }
0x3024   :  { %16110 = vrcp.f32 %v13211_v40 }
0x3025   :  { %v12238_v63 = vpop.permute.xlu0 %12237 }
0x3026   :  { %v12252_v45 = vshrl.u32 %v12238_v63, 16 }
0x3027   :  { %v12236_v57 = vpop.permute.xlu1 %12235 }
0x3028   :  { %v18592_v59 = vpack.i.b16 %v12238_v63, %v12236_v57  ;;  %v12251_v10 = vshrl.u32 %v12236_v57, 16  ;;  %v12321_v57 = vcombine.high %v18594_v36, %v16381_v50 }
0x302a   :  { %v12253_v5 = vpack.i.b16 %v12252_v45, %v12251_v10  ;;  %v12277_v31 = vrot.slane %v18592_v59, %v16364_v39  ;;  %v12270_v45 = vcombine.high %v18592_v59, %v16381_v50  ;;  %v12335_v36 = vrot.slane %v12321_v57, %v16364_v39 }
0x302c   :  { %v12285_v33 = vcombine.low %v12262_v43, %v12277_v31  ;;  %v12286_v55 = vcombine.high %v12262_v43, %v12277_v31  ;;  %v12343_v6 = vrot.slane %v12253_v5, %v16364_v39  ;;  %v12336_v8 = vcombine.high %v12253_v5, %v16381_v50 }
0x302d   :  { %v12255_v43 = vcombine.high %v18590_v60, %v16381_v50  ;;  %v12284_v59 = vrot.slane %v12270_v45, %v16364_v39 }
0x302e   :  { %v12293_v37 = vrot.slane %v12285_v33, %v16383_v52  ;;  %v12300_v15 = vrot.slane %v12286_v55, %v16383_v52  ;;  %v12351_v12 = vcombine.low %v12328_v62, %v12343_v6  ;;  %v12352_v29 = vcombine.high %v12328_v62, %v12343_v6 }
0x302f   :  { %v16109_v34 = vpop.eup %16108  ;;  %v12350_v5 = vrot.slane %v12336_v8, %v16364_v39  ;;  %v12269_v31 = vrot.slane %v12255_v43, %v16364_v39 }
0x3030   :  { %v12387_v11 = vcombine.low %v12293_v37, %v12300_v15  ;;  %v12359_v27 = vrot.slane %v12351_v12, %v16383_v52  ;;  %v12366_v19 = vrot.slane %v12352_v29, %v16383_v52  ;;  %v14585_v9 = vcombine.high %v12293_v37, %v12300_v15 }
0x3031   :  { %v16111_v49 = vpop.eup %16110  ;;  %v13238_v7 = vmul.f32 %v16109_v34, %v18553_v16  ;;  %v12367_v33 = vcombine.low %v12335_v36, %v12350_v5  ;;  %v12368_v55 = vcombine.high %v12335_v36, %v12350_v5  ;;  %v12301_v62 = vcombine.low %v12269_v31, %v12284_v59 }
0x3032   :  { %v12394_v1 = vrot.slane %v12387_v11, %v16364_v39  ;;  %v12412_v44 = vcombine.low %v12359_v27, %v12366_v19  ;;  %v14586_v38 = vcombine.high %v12359_v27, %v12366_v19  ;;  %v12402_v13 = vrot.slane %v14585_v9, %v16364_v39 }
0x3033   :  { %v13239_v20 = vmul.f32 %v16111_v49, %v18557_v48  ;;  %v13246_v40 = vpack.c.bf16 %v13238_v7, %v13238_v7  ;;  %v12302_v6 = vcombine.high %v12269_v31, %v12284_v59  ;;  %v12375_v37 = vrot.slane %v12367_v33, %v16383_v52 }
0x3034   :  { %v12419_v41 = vrot.slane %v12412_v44, %v16364_v39  ;;  %v12427_v35 = vrot.slane %v14586_v38, %v16364_v39  ;;  %v12403_v22 = vcombine.low %v12394_v1, %v12402_v13  ;;  %v12382_v15 = vrot.slane %v12368_v55, %v16383_v52 }
0x3035   :  { %v13247_v63 = vpack.c.bf16 %v13239_v20, %v13239_v20  ;;  %v12309_v50 = vrot.slane %v12301_v62, %v16383_v52  ;;  %v12316_v60 = vrot.slane %v12302_v6, %v16383_v52 }
0x3036   :  { %v12428_v28 = vcombine.low %v12419_v41, %v12427_v35  ;;  %v12410_v58 = vrot.slane %v12403_v22, %v16383_v52  ;;  %v12462_v12 = vcombine.low %v12375_v37, %v12382_v15  ;;  %v14588_v29 = vcombine.high %v12375_v37, %v12382_v15 }
0x3037   :  { %v12437_v11 = vcombine.low %v12309_v50, %v12316_v60  ;;  %v14587_v27 = vcombine.high %v12309_v50, %v12316_v60 }
0x3038   :  { %v12435_v21 = vrot.slane %v12428_v28, %v16383_v52  ;;  %v12411_v30 = vcombine.high %v12410_v58, %v16233_v14  ;;  %v12490_v4 = vshrl.u32 %v12410_v58, 16  ;;  %v12469_v19 = vrot.slane %v12462_v12, %v16364_v39 }
0x3039   :  { %v12477_v1 = vrot.slane %v14588_v29, %v16364_v39  ;;  %v12444_v44 = vrot.slane %v12437_v11, %v16364_v39  ;;  %v12452_v38 = vrot.slane %v14587_v27, %v16364_v39 }
0x303a   :  { %v12489_v32 = vpack.i.b16 %v12435_v21, %v12410_v58  ;;  %v12491_v2 = vshrl.u32 %v12435_v21, 16  ;;  %v12436_v23 = vcombine.high %v12435_v21, %v16233_v14  ;;  %v12496_v18 = vshrl.u32 %v12411_v30, 16 }
0x303b   :  { %v12478_v41 = vcombine.low %v12469_v19, %v12477_v1  ;;  %v12453_v22 = vcombine.low %v12444_v44, %v12452_v38 }
0x303c   :  { %v13258_v26 = vsel %vm1648_vm6, %v12489_v32, 0  ;;  %v12492_v42 = vpack.i.b16 %v12491_v2, %v12490_v4  ;;  %v12495_v54 = vpack.i.b16 %v12436_v23, %v12411_v30  ;;  %v12497_v24 = vshrl.u32 %v12436_v23, 16 }
0x303d   :  { %15633 = vmatpush3.bf16.msra.mxu0 %v13258_v26  ;;  %v12485_v28 = vrot.slane %v12478_v41, %v16383_v52  ;;  %v12460_v58 = vrot.slane %v12453_v22, %v16383_v52 }
0x303e   :  { %v13304_v46 = vsel %vm1648_vm6, %v12492_v42, 0  ;;  %15644 = vmatprep.subr.bf16.mxu0 %v16230_v0  ;;  %v12498_v16 = vpack.i.b16 %v12497_v24, %v12496_v18  ;;  %v13350_v48 = vsel %vm1648_vm6, %v12495_v54, 0 }
0x303f   :  { %15639 = vmatpush3.bf16.msra.mxu1 %v13304_v46  ;;  %v12503_v21 = vshrl.u32 %v12485_v28, 16  ;;  %v12502_v30 = vshrl.u32 %v12460_v58, 16  ;;  %v12486_v23 = vcombine.high %v12485_v28, %v16233_v14  ;;  %v12501_v42 = vpack.i.b16 %v12485_v28, %v12460_v58 }
0x3040   :  { %15635 = vmatmul.mubr.msk.bf16.vlgmr.msra.gmra.mxu0 %vm1180_vm5, %v13246_v40  ;;  %15650 = vmatprep.subr.bf16.mxu1 %v16230_v0  ;;  %v13396_v10 = vsel %vm1648_vm6, %v12498_v16, 0  ;;  %v12461_v54 = vcombine.high %v12460_v58, %v16233_v14 }
0x3041   :  { %15645 = vmatpush3.bf16.msra.mxu0 %v13350_v48  ;;  %15646 = vmatprep.mubr.msk.bf16.mxu0 %vm16231_vm0, %v16230_v0  ;;  %v12504_v2 = vpack.i.b16 %v12503_v21, %v12502_v30  ;;  %v12509_v16 = vshrl.u32 %v12486_v23, 16 }
0x3042   :  { %15641 = vmatmul.mubr.msk.bf16.vlgmr.msra.gmra.mxu1 %vm1180_vm5, %v13247_v63  ;;  %15656 = vmatprep.subr.bf16.mxu0 %v16230_v0  ;;  %v12508_v14 = vshrl.u32 %v12461_v54, 16  ;;  %v12507_v45 = vpack.i.b16 %v12486_v23, %v12461_v54 }
0x3043   :  { %15651 = vmatpush3.bf16.msra.mxu1 %v13396_v10  ;;  %15652 = vmatprep.mubr.msk.bf16.mxu1 %vm16231_vm0, %v16230_v0  ;;  %v13488_v46 = vsel %vm1648_vm6, %v12504_v2, 0 }
0x3044   :  { %15662 = vmatprep.subr.bf16.mxu1 %v16230_v0  ;;  %v12510_v48 = vpack.i.b16 %v12509_v16, %v12508_v14 }
0x3046   :  { %v13580_v43 = vsel %vm1648_vm6, %v12510_v48, 0 }
0x3056   :  { %v13217_v9 = vpop.xlane.xlu0 %13216 }
0x3057   :  { %16112 = vrcp.f32 %v13217_v9 }
0x3058   :  { %v13214_v13 = vpop.xlane.xlu1 %13213 }
0x3059   :  { %16114 = vrcp.f32 %v13214_v13 }
0x305a   :  { %v13220_v35 = vpop.xlane.xlu0 %13219 }
0x305b   :  { %16116 = vrcp.f32 %v13220_v35 }
0x305c   :  { %v13223_v34 = vpop.xlane.xlu1 %13222 }
0x305d   :  { %16118 = vrcp.f32 %v13223_v34 }
0x305e   :  { %v13226_v7 = vpop.xlane.xlu0 %13225 }
0x3060   :  { %v13229_v49 = vpop.xlane.xlu1 %13228 }
0x3061   :  { %16120 = vrcp.f32 %v13229_v49 }
0x3062   :  { %16122 = vrcp.f32 %v13226_v7 }
0x3064   :  { %v16113_v32 = vpop.eup %16112 }
0x3065   :  { %v13241_v4 = vmul.f32 %v16113_v32, %v18566_v61 }
0x3066   :  { %v16115_v20 = vpop.eup %16114 }
0x3067   :  { %v13249_v18 = vpack.c.bf16 %v13241_v4, %v13241_v4  ;;  %v13240_v26 = vmul.f32 %v16115_v20, %v18568_v3  ;;  %v13442_v3 = vsel %vm1648_vm6, %v12501_v42, 0 }
0x3068   :  { %v16117_v24 = vpop.eup %16116 }
0x3069   :  { %v13248_v40 = vpack.c.bf16 %v13240_v26, %v13240_v26  ;;  %15653 = vmatmul.mubr.msk.bf16.vlgmr.msra.gmra.mxu1 %vm1180_vm5, %v13249_v18  ;;  %v13242_v8 = vmul.f32 %v16117_v24, %v18572_v51  ;;  %v13534_v51 = vsel %vm1648_vm6, %v12507_v45, 0 }
0x306a   :  { %v16119_v63 = vpop.eup %16118  ;;  %15663 = vmatpush3.bf16.msra.mxu1 %v13488_v46  ;;  %15664 = vmatprep.mubr.msk.bf16.mxu1 %vm16231_vm0, %v16230_v0 }
0x306b   :  { %v13243_v61 = vmul.f32 %v16119_v63, %v18576_v53  ;;  %15647 = vmatmul.mubr.msk.bf16.vlgmr.msra.gmra.mxu0 %vm1180_vm5, %v13248_v40  ;;  %15674 = vmatprep.subr.bf16.mxu1 %v16230_v0  ;;  %v13250_v53 = vpack.c.bf16 %v13242_v8, %v13242_v8 }
0x306c   :  { %15657 = vmatpush3.bf16.msra.mxu0 %v13442_v3  ;;  %15658 = vmatprep.mubr.msk.bf16.mxu0 %vm16231_vm0, %v16230_v0 }
0x306d   :  { %15668 = vmatprep.subr.bf16.mxu0 %v16230_v0  ;;  %v13251_v57 = vpack.c.bf16 %v13243_v61, %v13243_v61 }
0x306e   :  { %v16121_v10 = vpop.eup %16120 }
0x306f   :  { %v16123_v5 = vpop.eup %16122  ;;  %v13245_v36 = vmul.f32 %v16121_v10, %v18584_v47 }
0x3070   :  { %v13244_v59 = vmul.f32 %v16123_v5, %v18580_v17 }
0x3071   :  { %15665 = vmatmul.mubr.msk.bf16.vlgmr.msra.gmra.mxu1 %vm1180_vm5, %v13251_v57  ;;  %v13253_v31 = vpack.c.bf16 %v13245_v36, %v13245_v36 }
0x3072   :  { %15675 = vmatpush3.bf16.msra.mxu1 %v13580_v43  ;;  %15676 = vmatprep.mubr.msk.bf16.mxu1 %vm16231_vm0, %v16230_v0  ;;  %v13252_v33 = vpack.c.bf16 %v13244_v59, %v13244_v59 }
0x3073   :  { %15659 = vmatmul.mubr.msk.bf16.vlgmr.msra.gmra.mxu0 %vm1180_vm5, %v13250_v53  ;;  %15688 = vmatprep.subr.bf16.mxu1 %v16230_v0 }
0x3074   :  { %15669 = vmatpush3.bf16.msra.mxu0 %v13534_v51  ;;  %15670 = vmatprep.mubr.msk.bf16.mxu0 %vm16231_vm0, %v16230_v0 }
0x3075   :  { %15680 = vmatprep.subr.bf16.mxu0 %v16230_v0 }
0x3079   :  { %15677 = vmatmul.mubr.msk.bf16.vlgmr.msra.gmra.mxu1 %vm1180_vm5, %v13253_v31 }
0x307a   :  { %15692 = vmatprep.mubr.msk.bf16.mxu1 %vm16231_vm0, %v16230_v0 }
0x307b   :  { %15671 = vmatmul.mubr.msk.bf16.vlgmr.msra.gmra.mxu0 %vm1180_vm5, %v13252_v33 }
0x307c   :  { %15684 = vmatprep.mubr.msk.bf16.mxu0 %vm16231_vm0, %v16230_v0 }
0x3100   :  { %v13294_v47 = vpop.f32.mrf.mxu0 }
0x3102   :  { %v15636_v55 = vpop.f32.mrf.mxu0  ;;  %v13340_v62 = vpop.f32.mrf.mxu1 }
0x3104   :  { %v13297_v6 = vpop.f32.mrf.mxu0  ;;  %v15642_v37 = vpop.f32.mrf.mxu1 }
0x3106   :  { %v15637_v17 = vpop.f32.mrf.mxu0  ;;  %v13343_v15 = vpop.f32.mrf.mxu1 }
0x3108   :  { %v15643_v50 = vpop.f32.mrf.mxu1 }
0x3129   :  { %v13432_v60 = vpop.f32.mrf.mxu1 }
0x312a   :  { %v13638_v12 = vcombine.low %v13340_v62, %v13432_v60  ;;  %v13639_v29 = vcombine.high %v13340_v62, %v13432_v60 }
0x312b   :  { %v13386_v11 = vpop.f32.mrf.mxu0  ;;  %v15654_v27 = vpop.f32.mrf.mxu1 }
0x312c   :  { %v13622_v19 = vcombine.low %v13294_v47, %v13386_v11  ;;  %v13623_v1 = vcombine.high %v13294_v47, %v13386_v11  ;;  %v13646_v38 = vrot.slane %v13638_v12, %v16364_v39  ;;  %v13653_v13 = vrot.slane %v13639_v29, %v16364_v39 }
0x312d   :  { %v15648_v9 = vpop.f32.mrf.mxu0  ;;  %v13435_v44 = vpop.f32.mrf.mxu1 }
0x312e   :  { %v13630_v41 = vrot.slane %v13622_v19, %v16364_v39  ;;  %v13637_v35 = vrot.slane %v13623_v1, %v16364_v39 }
0x312f   :  { %v13389_v22 = vpop.f32.mrf.mxu0  ;;  %v15655_v34 = vpop.f32.mrf.mxu1 }
0x3130   :  { %v13654_v28 = vcombine.low %v13630_v41, %v13646_v38  ;;  %v13655_v58 = vcombine.high %v13630_v41, %v13646_v38  ;;  %v13670_v49 = vcombine.low %v13637_v35, %v13653_v13  ;;  %v13671_v21 = vcombine.high %v13637_v35, %v13653_v13 }
0x3131   :  { %v15649_v7 = vpop.f32.mrf.mxu0  ;;  %v13524_v30 = vpop.f32.mrf.mxu1 }
0x3132   :  { %v13662_v32 = vrot.slane %v13654_v28, %v16383_v52  ;;  %v13669_v4 = vrot.slane %v13655_v58, %v16383_v52  ;;  %v13678_v2 = vrot.slane %v13670_v49, %v16383_v52  ;;  %v13685_v23 = vrot.slane %v13671_v21, %v16383_v52  ;;  %v15882_v58 = vld [vmem:[#allocation2 + $0xe8] ss:$80 sps:$4 sm:$0xff]  }
0x3133   :  { %v13478_v20 = vpop.f32.mrf.mxu0  ;;  %v15666_v18 = vpop.f32.mrf.mxu1  ;;  %15681 = vmatpush3.bf16.msra.mxu0 %v15882_v58 }
0x3134   :  { %v13758_v26 = vcombine.low %v13662_v32, %v13669_v4  ;;  %v14609_v42 = vcombine.high %v13662_v32, %v13669_v4  ;;  %v13774_v54 = vcombine.low %v13678_v2, %v13685_v23  ;;  %v14610_v24 = vcombine.high %v13678_v2, %v13685_v23  ;;  %15682 = vmatprep.subr.bf16.mxu0 %v16230_v0 }
0x3135   :  { %v15660_v40 = vpop.f32.mrf.mxu0  ;;  %v13527_v46 = vpop.f32.mrf.mxu1 }
0x3136   :  { %v13765_v16 = vrot.slane %v13758_v26, %v16364_v39  ;;  %v13773_v63 = vrot.slane %v14609_v42, %v16364_v39  ;;  %v13781_v61 = vrot.slane %v13774_v54, %v16364_v39  ;;  %v13789_v3 = vrot.slane %v14610_v24, %v16364_v39  ;;  %v15883_v26 = vld [vmem:[#allocation2 + $0x48] ss:$80 sps:$4 sm:$0xff]  }
0x3137   :  { %v13481_v14 = vpop.f32.mrf.mxu0  ;;  %v15667_v8 = vpop.f32.mrf.mxu1  ;;  %15683 = vmatpush3.bf16.msra.mxu0 %v15883_v26  ;;  %v14617_v26 = vld [vmem:[#allocation6 + $0x26] ss:$0 sm:$0xff] }
0x3138   :  { %v13790_v48 = vcombine.low %v13765_v16, %v13773_v63  ;;  %v13806_v57 = vcombine.low %v13781_v61, %v13789_v3  ;;  %v13791_v13 = vcombine.high %v13765_v16, %v13773_v63  ;;  %v13807_v41 = vcombine.high %v13781_v61, %v13789_v3  ;;  %15696 = vmatprep.subr.bf16.mxu0 %v16230_v0 }
0x3139   :  { %v15661_v45 = vpop.f32.mrf.mxu0  ;;  %v13616_v10 = vpop.f32.mrf.mxu1 }
0x313a   :  { %v13706_v53 = vcombine.low %v13524_v30, %v13616_v10  ;;  %v13707_v43 = vcombine.high %v13524_v30, %v13616_v10  ;;  %v18699_v51 = vrot.slane %v13790_v48, %v16383_v52  ;;  %v18702_v59 = vrot.slane %v13806_v57, %v16383_v52 }
0x313b   :  { %v13570_v5 = vpop.f32.mrf.mxu0  ;;  %v15678_v36 = vpop.f32.mrf.mxu1  ;;  %v13805_v32 = vrot.slane %v13791_v13, %v16383_v52  ;;  %v13821_v4 = vrot.slane %v13807_v41, %v16383_v52 }
0x313c   :  { %v13690_v31 = vcombine.low %v13478_v20, %v13570_v5  ;;  %v13691_v33 = vcombine.high %v13478_v20, %v13570_v5  ;;  %v13822_v62 = vcombine.low %v18699_v51, %v18702_v59  ;;  %v13714_v6 = vrot.slane %v13706_v53, %v16364_v39 }
0x313d   :  { %v15672_v47 = vpop.f32.mrf.mxu0  ;;  %v13619_v55 = vpop.f32.mrf.mxu1  ;;  %v13721_v37 = vrot.slane %v13707_v43, %v16364_v39  ;;  %v13824_v40 = vcombine.low %v13805_v32, %v13821_v4  ;;  %v13823_v16 = vcombine.high %v18699_v51, %v18702_v59  ;;  %v13825_v48 = vcombine.high %v13805_v32, %v13821_v4 }
0x313e   :  { %v13698_v17 = vrot.slane %v13690_v31, %v16364_v39  ;;  %v13705_v15 = vrot.slane %v13691_v33, %v16364_v39 }
0x313f   :  { %v13573_v50 = vpop.f32.mrf.mxu0  ;;  %v15679_v60 = vpop.f32.mrf.mxu1 }
0x3140   :  { %v13722_v12 = vcombine.low %v13698_v17, %v13714_v6  ;;  %v13723_v29 = vcombine.high %v13698_v17, %v13714_v6  ;;  %v13738_v11 = vcombine.low %v13705_v15, %v13721_v37  ;;  %v13739_v27 = vcombine.high %v13705_v15, %v13721_v37 }
0x3141   :  { %v15673_v19 = vpop.f32.mrf.mxu0 }
0x3142   :  { %v13730_v1 = vrot.slane %v13722_v12, %v16383_v52  ;;  %v13737_v9 = vrot.slane %v13723_v29, %v16383_v52  ;;  %v13746_v44 = vrot.slane %v13738_v11, %v16383_v52  ;;  %v13753_v38 = vrot.slane %v13739_v27, %v16383_v52 }
0x3144   :  { %v13826_v35 = vcombine.low %v13730_v1, %v13737_v9  ;;  %v14611_v22 = vcombine.high %v13730_v1, %v13737_v9  ;;  %v13842_v34 = vcombine.low %v13746_v44, %v13753_v38  ;;  %v14612_v28 = vcombine.high %v13746_v44, %v13753_v38 }
0x3146   :  { %v13833_v49 = vrot.slane %v13826_v35, %v16364_v39  ;;  %v13841_v21 = vrot.slane %v14611_v22, %v16364_v39  ;;  %v13849_v7 = vrot.slane %v13842_v34, %v16364_v39  ;;  %v13857_v30 = vrot.slane %v14612_v28, %v16364_v39 }
0x3148   :  { %v13859_v2 = vcombine.high %v13833_v49, %v13841_v21  ;;  %v13875_v23 = vcombine.high %v13849_v7, %v13857_v30  ;;  %v13858_v20 = vcombine.low %v13833_v49, %v13841_v21  ;;  %v13874_v18 = vcombine.low %v13849_v7, %v13857_v30  ;;  %v15884_v49 = vld [vmem:[#allocation2 + $0xec] ss:$80 sps:$4 sm:$0xff]  }
0x3149   :  { %15689 = vmatpush3.bf16.msra.mxu1 %v15884_v49  ;;  %v15886_v21 = vld [vmem:[#allocation4 + $0x88] ss:$20 sps:$4 sm:$0xff]  }
0x314a   :  { %v13873_v42 = vrot.slane %v13859_v2, %v16383_v52  ;;  %v13889_v54 = vrot.slane %v13875_v23, %v16383_v52  ;;  %v13866_v24 = vrot.slane %v13858_v20, %v16383_v52  ;;  %v13882_v39 = vrot.slane %v13874_v18, %v16383_v52  ;;  %15690 = vmatprep.subr.bf16.mxu1 %v16230_v0 }
0x314c   :  { %v13892_v46 = vcombine.low %v13873_v42, %v13889_v54  ;;  %v13891_v63 = vcombine.high %v13866_v24, %v13882_v39  ;;  %v13890_v61 = vcombine.low %v13866_v24, %v13882_v39  ;;  %v13893_v8 = vcombine.high %v13873_v42, %v13889_v54  ;;  %v14618_v39 = vld [vmem:[#allocation6 + $0x27] ss:$0 sm:$0xff] }
0x314e   :  { %v15821_v3 = vpack.i.bf16 %v13892_v46, %v13824_v40  ;;  %v15816_v14 = vpack.i.bf16 %v13891_v63, %v13823_v16  ;;  %v15826_v57 = vpack.i.bf16 %v13893_v8, %v13825_v48  ;;  %v14619_v8 = vld [vmem:[#allocation6 + $0x28] ss:$0 sm:$0xff] }
0x3150   :  { %15822 = vrot.lane.b32.xlu1 %v15821_v3, %s16241_s9  ;;  %15817 = vrot.lane.b32.xlu0 %v15816_v14, %s16229_s22  ;;  %v15888_v3 = vld [vmem:[#allocation4 + $0x38] ss:$20 sps:$4 sm:$0xff]   ;;  %v15889_v14 = vld [vmem:[#allocation4 + $0x10] ss:$20 sps:$4 sm:$0xff]  }
0x3154   :  { %15827 = vrot.lane.b32.xlu1 %v15826_v57, %s16242_s10 }
0x31c2   :  { %v15823_v52 = vpop.permute.xlu1 %15822  ;;  %v15818_v45 = vpop.permute.xlu0 %15817 }
0x31c3   :  { %v15820_v10 = vunpack.i.h.bf16 %v15818_v45  ;;  %v15819_v53 = vunpack.i.l.bf16 %v15818_v45  ;;  %v15825_v43 = vunpack.i.h.bf16 %v15823_v52  ;;  %v15824_v5 = vunpack.i.l.bf16 %v15823_v52 }
0x31c5   :  { %v13918_v36 = vsel %vm1180_vm5, %v13822_v62, %v15819_v53  ;;  %v13919_v51 = vsel %vm1180_vm5, %v13890_v61, %v15820_v10  ;;  %v14613_v62 = vld [vmem:[#allocation6 + $0x25] ss:$0 sm:$0xff]  ;;  %v15887_v61 = vld [vmem:[#allocation4 + $0x60] ss:$20 sps:$4 sm:$0xff]  }
0x31c6   :  { %v15828_v59 = vpop.permute.xlu1 %15827  ;;  %v13920_v47 = vsel %vm93_vm1, %v13918_v36, %v15824_v5  ;;  %v13921_v55 = vsel %vm93_vm1, %v13919_v51, %v15825_v43  ;;  %v14623_v51 = vld [vmem:[#allocation6 + $0x29] ss:$0 sm:$0xff] }
0x31c7   :  { %v15830_v31 = vunpack.i.h.bf16 %v15828_v59  ;;  %v15829_v33 = vunpack.i.l.bf16 %v15828_v59 }
0x31c9   :  { %v13922_v6 = vsel %vm2314_vm7, %v13920_v47, %v15829_v33  ;;  %v13923_v37 = vsel %vm2314_vm7, %v13921_v55, %v15830_v31 }
0x31ca   :  { %v13924_v17 = vpack.c.bf16 %v13923_v37, %v13922_v6 }
0x31cc   :  { %15685 = vmatmul.mubr.msk.bf16.vlgmr.msra.gmra.mxu0 %vm214_vm4, %v13924_v17 }
0x31cd   :  { %15704 = vmatprep.mubr.msk.bf16.mxu0 %vm16231_vm0, %v16230_v0  ;;  %15697 = vmatpush3.bf16.msra.mxu0 %v15886_v21 }
0x31ce   :  { %15698 = vmatprep.subr.bf16.mxu0 %v16230_v0 }
0x31d1   :  { %15699 = vmatpush3.bf16.msra.mxu0 %v15887_v61 }
0x31d2   :  { %15700 = vmatprep.subr.bf16.mxu0 %v16230_v0 }
0x31d5   :  { %15701 = vmatpush3.bf16.msra.mxu0 %v15888_v3 }
0x31d6   :  { %15702 = vmatprep.subr.bf16.mxu0 %v16230_v0 }
0x31d9   :  { %15703 = vmatpush3.bf16.msra.mxu0 %v15889_v14 }
0x328c   :  { %v13980_v15 = vpop.f32.mrf.mxu0 }
0x328d   :  { %v13981_v50 = vadd.f32 %v14613_v62, %v13980_v15 }
0x328e   :  { %v15686_v60 = vpop.f32.mrf.mxu0 }
0x328f   :  { %v13989_v12 = vadd.f32 %v13981_v50, %v18392_v25 }
0x3290   :  { %v13983_v29 = vpop.f32.mrf.mxu0 }
0x3291   :  { %v13984_v11 = vadd.f32 %v14613_v62, %v13983_v29  ;;  %v13991_v27 = vsel %vm214_vm4, %v13989_v12, 0.0 }
0x3292   :  { %13992 = vadd.xlane.f32.xlu0 %v13991_v27  ;;  %v15687_v19 = vpop.f32.mrf.mxu0 }
0x3293   :  { %v13990_v1 = vadd.f32 %v13984_v11, %v18397_v56  ;;  %v15885_v56 = vld [vmem:[#allocation2 + $0x4c] ss:$80 sps:$4 sm:$0xff]  }
0x3294   :  { %15691 = vmatpush3.bf16.msra.mxu1 %v15885_v56  ;;  %v14629_v56 = vld [vmem:[#allocation6 + $0x2a] ss:$0 sm:$0xff] }
0x3295   :  { %v13994_v9 = vsel %vm214_vm4, %v13990_v1, 0.0  ;;  %15708 = vmatprep.subr.bf16.mxu1 %v16230_v0 }
0x3296   :  { %13995 = vadd.xlane.f32.xlu1 %v13994_v9 }
0x331b   :  { %v13993_v44 = vpop.xlane.xlu0 %13992 }
0x331c   :  { %v13997_v38 = vmul.f32 0.03125, %v13993_v44 }
0x331e   :  { %v13999_v13 = vsub.f32 %v13989_v12, %v13997_v38  ;;  %v15890_v38 = vld [vmem:[#allocation2 + $0xa4] ss:$80 sps:$4 sm:$0xff]  }
0x331f   :  { %v13996_v41 = vpop.xlane.xlu1 %13995 }
0x3320   :  { %v13998_v35 = vmul.f32 0.03125, %v13996_v41  ;;  %v14001_v22 = vmul.f32 %v13999_v13, %v13999_v13 }
0x3322   :  { %v14000_v34 = vsub.f32 %v13990_v1, %v13998_v35  ;;  %v14003_v25 = vsel %vm214_vm4, %v14001_v22, 0.0 }
0x3323   :  { %14004 = vadd.xlane.f32.xlu0 %v14003_v25 }
0x3324   :  { %v14002_v28 = vmul.f32 %v14000_v34, %v14000_v34 }
0x3326   :  { %v14006_v58 = vsel %vm214_vm4, %v14002_v28, 0.0 }
0x3327   :  { %14007 = vadd.xlane.f32.xlu0 %v14006_v58 }
0x33ac   :  { %v14005_v7 = vpop.xlane.xlu0 %14004 }
0x33ad   :  { %v14009_v30 = vmul.f32 0.03125, %v14005_v7 }
0x33af   :  { %v14011_v32 = vadd.f32 1e-05, %v14009_v30 }
0x33b0   :  { %v14008_v4 = vpop.xlane.xlu0 %14007 }
0x33b1   :  { %16124 = vrsqrt.f32 %v14011_v32  ;;  %v14010_v2 = vmul.f32 0.03125, %v14008_v4  ;;  %v14630_v32 = vld [vmem:[#allocation6 + $0x2b] ss:$0 sm:$0xff] }
0x33b3   :  { %v14012_v23 = vadd.f32 1e-05, %v14010_v2 }
0x33b5   :  { %16126 = vrsqrt.f32 %v14012_v23 }
0x33be   :  { %v16125_v20 = vpop.eup %16124 }
0x33bf   :  { %v14015_v18 = vmul.f32 %v16125_v20, %v13999_v13  ;;  %v15891_v13 = vld [vmem:[#allocation2 + $0x4] ss:$80 sps:$4 sm:$0xff]   ;;  %v14631_v20 = vld [vmem:[#allocation6 + $0x1] ss:$0 sm:$0xff] }
0x33c1   :  { %v14023_v54 = vmul.f32 %v14617_v26, %v14015_v18 }
0x33c2   :  { %v16127_v42 = vpop.eup %16126 }
0x33c3   :  { %v14016_v24 = vmul.f32 %v16127_v42, %v14000_v34  ;;  %v14031_v46 = vadd.f32 %v14618_v39, %v14023_v54 }
0x33c5   :  { %v14024_v40 = vmul.f32 %v14617_v26, %v14016_v24 }
0x33c7   :  { %v14032_v16 = vadd.f32 %v14618_v39, %v14024_v40 }
0x33c9   :  { %v14047_v63 = vpack.c.bf16 %v14032_v16, %v14031_v46 }
0x33cb   :  { %15693 = vmatmul.mubr.msk.bf16.vlgmr.msra.gmra.mxu1 %vm214_vm4, %v14047_v63 }
0x33cc   :  { %15712 = vmatprep.mubr.msk.bf16.mxu1 %vm16231_vm0, %v16230_v0  ;;  %15709 = vmatpush3.bf16.msra.mxu1 %v15890_v38 }
0x33cd   :  { %15710 = vmatprep.subr.bf16.mxu1 %v16230_v0 }
0x33d0   :  { %15711 = vmatpush3.bf16.msra.mxu1 %v15891_v13 }
0x348b   :  { %v14103_v48 = vpop.f32.mrf.mxu1 }
0x348c   :  { %v14104_v52 = vadd.f32 %v14619_v8, %v14103_v48 }
0x348d   :  { %v15694_v57 = vpop.f32.mrf.mxu1 }
0x348e   :  { %v14110_v43 = vmax.f32 %v14104_v52, 0.0 }
0x348f   :  { %v14106_v45 = vpop.f32.mrf.mxu1 }
0x3490   :  { %v14107_v10 = vadd.f32 %v14619_v8, %v14106_v45 }
0x3491   :  { %v15695_v53 = vpop.f32.mrf.mxu1 }
0x3492   :  { %v14111_v5 = vmax.f32 %v14107_v10, 0.0 }
0x3494   :  { %v14112_v36 = vpack.c.bf16 %v14111_v5, %v14110_v43 }
0x3496   :  { %15705 = vmatmul.mubr.msk.bf16.vlgmr.msra.gmra.mxu0 %vm2537_vm8, %v14112_v36 }
0x3556   :  { %v14180_v59 = vpop.f32.mrf.mxu0 }
0x3557   :  { %v14181_v31 = vadd.f32 %v14623_v51, %v14180_v59 }
0x3558   :  { %v15706_v33 = vpop.f32.mrf.mxu0 }
0x3559   :  { %v14189_v47 = vadd.f32 %v14181_v31, %v14031_v46 }
0x355a   :  { %v14183_v55 = vpop.f32.mrf.mxu0 }
0x355b   :  { %v14184_v6 = vadd.f32 %v14623_v51, %v14183_v55  ;;  %v14191_v37 = vsel %vm214_vm4, %v14189_v47, 0.0 }
0x355c   :  { %14192 = vadd.xlane.f32.xlu1 %v14191_v37  ;;  %v15707_v17 = vpop.f32.mrf.mxu0 }
0x355d   :  { %v14190_v62 = vadd.f32 %v14184_v6, %v14032_v16 }
0x355f   :  { %v14194_v15 = vsel %vm214_vm4, %v14190_v62, 0.0 }
0x3560   :  { %14195 = vadd.xlane.f32.xlu0 %v14194_v15 }
0x35e5   :  { %v14193_v50 = vpop.xlane.xlu1 %14192 }
0x35e6   :  { %v14197_v60 = vmul.f32 0.03125, %v14193_v50 }
0x35e8   :  { %v14199_v12 = vsub.f32 %v14189_v47, %v14197_v60 }
0x35e9   :  { %v14196_v29 = vpop.xlane.xlu0 %14195 }
0x35ea   :  { %v14198_v11 = vmul.f32 0.03125, %v14196_v29  ;;  %v14201_v27 = vmul.f32 %v14199_v12, %v14199_v12 }
0x35ec   :  { %v14200_v19 = vsub.f32 %v14190_v62, %v14198_v11  ;;  %v14203_v1 = vsel %vm214_vm4, %v14201_v27, 0.0 }
0x35ed   :  { %14204 = vadd.xlane.f32.xlu1 %v14203_v1 }
0x35ee   :  { %v14202_v9 = vmul.f32 %v14200_v19, %v14200_v19 }
0x35f0   :  { %v14206_v44 = vsel %vm214_vm4, %v14202_v9, 0.0 }
0x35f1   :  { %14207 = vadd.xlane.f32.xlu0 %v14206_v44 }
0x3676   :  { %v14205_v41 = vpop.xlane.xlu1 %14204 }
0x3677   :  { %v14209_v35 = vmul.f32 0.03125, %v14205_v41 }
0x3679   :  { %v14211_v22 = vadd.f32 1e-05, %v14209_v35 }
0x367a   :  { %v14208_v34 = vpop.xlane.xlu0 %14207 }
0x367b   :  { %16128 = vrsqrt.f32 %v14211_v22  ;;  %v14210_v25 = vmul.f32 0.03125, %v14208_v34 }
0x367d   :  { %v14212_v28 = vadd.f32 1e-05, %v14210_v25 }
0x367f   :  { %16130 = vrsqrt.f32 %v14212_v28 }
0x3688   :  { %v16129_v58 = vpop.eup %16128 }
0x3689   :  { %v14215_v49 = vmul.f32 %v16129_v58, %v14199_v12 }
0x368b   :  { %v14223_v7 = vmul.f32 %v14629_v56, %v14215_v49 }
0x368c   :  { %v16131_v21 = vpop.eup %16130 }
0x368d   :  { %v14216_v30 = vmul.f32 %v16131_v21, %v14200_v19  ;;  %v14231_v2 = vadd.f32 %v14630_v32, %v14223_v7 }
0x368f   :  { %v14224_v4 = vmul.f32 %v14629_v56, %v14216_v30 }
0x3691   :  { %v14232_v0 = vadd.f32 %v14630_v32, %v14224_v4 }
0x3693   :  { %v14237_v23 = vpack.c.bf16 %v14232_v0, %v14231_v2 }
0x3695   :  { %15713 = vmatmul.mubr.msk.bf16.vlgmr.msra.gmra.mxu1 %vm214_vm4, %v14237_v23 }
0x3755   :  { %v14294_v18 = vpop.f32.mrf.mxu1 }
0x3756   :  { %v14295_v26 = vadd.f32 %v14631_v20, %v14294_v18 }
0x3757   :  { %v15714_v42 = vpop.f32.mrf.mxu1 }
0x3758   :  { %14301 = vst [vmem:[%s18774_s7] sm:$0xff] %v14295_v26 }
0x3759   :  { %v14297_v54 = vpop.f32.mrf.mxu1 }
0x375a   :  { %v14298_v24 = vadd.f32 %v14631_v20, %v14297_v54 }
0x375b   :  { %v15715_v39 = vpop.f32.mrf.mxu1 }
0x375c   :  { %14302 = vst [vmem:[%s18774_s7 + $0x8] sm:$0xff] %v14298_v24 }
0x375d   :  { %14307 = vsyncpa [#allocation3], 1 }
0x375e   :  { %14308 = vsyncpa [#allocation5], 1 }
0x375f   :  { %14309 = vsyncpa [#allocation8], 1 }

</bundles_post_ra>
